<compile_context>
chip_gen: v7x
topology: tpu7x:2x2x1
jax: 0.10.0
libtpu: 0.0.40
codegen_flags: <defaults>
</compile_context>

<pallas_src>
import functools

import jax
import jax.numpy as jnp
import numpy as np
from jax import lax
from jax.experimental import pallas as pl
from jax.experimental.pallas import tpu as pltpu

_BASE = 8          # lead positions before padded row 0 (any value >= 1 works)
_NEG = -3.0e38     # finite "-inf" for the pool frame (must stay finite: it feeds an MXU gather)


def _dims(H, W):
    Ho, Wo = (H + 1) // 2, (W + 1) // 2
    S1, S2 = W + 2, Wo + 2            # tight row strides: only the 2 pad columns per row
    M1, M2 = H * S1, Ho * S2          # conv-output slab widths (padded rows 1..H / 1..Ho)
    Lt1 = _BASE + (H + 3) * S1        # per-image flat buffer length, full-res stage
    Lt2 = _BASE + (Ho + 3) * S2       # per-image flat buffer length, pooled stages
    return Ho, Wo, S1, S2, M1, M2, Lt1, Lt2


def _pick_nb(n):
    """Images per grid step: amortize grid-step overhead, keep grid >= 2 for megacore."""
    for d in (8, 4, 2):
        if n % d == 0 and n // d >= 2:
            return d
    return 1


# --------------------------------- fused kernel ---------------------------------

def _conv_sequence_kernel(x_ref, wc_ref, bc_ref, wr_ref, br_ref,
                          spad_ref, gpool_ref, eout_ref, mk1_ref, mk2_ref,
                          o_ref, sx, sy, sp, st, sq, *, H, W, Cin, Cout, nb):
    f32 = jnp.float32
    HIGH = jax.lax.Precision.HIGHEST
    Ho, Wo, S1, S2, M1, M2, Lt1, Lt2 = _dims(H, W)
    B = _BASE
    p1, p2 = B + S1, B + S2           # flat index of padded (row 1, col 0)

    # ---- per-step frame init: only lead/top/bottom frame rows (never overwritten) ----
    # (megacore-safe: runs every step; in-row pad columns are rewritten by the masked
    #  bulk stores below, so no full-buffer re-init and no strided frame restores.)
    sx[:, 0:p1] = jnp.zeros((Cin, p1), f32)
    sx[:, p1 + M1:Lt1] = jnp.zeros((Cin, Lt1 - p1 - M1), f32)
    sy[:, 0:p1] = jnp.full((Cout, p1), _NEG, f32)
    sy[:, p1 + M1:Lt1] = jnp.full((Cout, Lt1 - p1 - M1), _NEG, f32)
    for buf in (sp, st, sq):
        buf[:, 0:p2] = jnp.zeros((Cout, p2), f32)
        buf[:, p2 + M2:Lt2] = jnp.zeros((Cout, Lt2 - p2 - M2), f32)

    # ---- hoisted weights / constants (loaded once per grid step) ----
    wc, bc = wc_ref[...], bc_ref[...]
    wr = [wr_ref[i] for i in range(4)]
    br = [br_ref[i] for i in range(4)]
    spad, gpool, eout = spad_ref[...], gpool_ref[...], eout_ref[...]
    mask1 = mk1_ref[...] != 0.0       # (1, M1) real-column mask
    mask2 = mk2_ref[...] != 0.0       # (1, M2)
    Kg = gpool.shape[0]

    def mm(a, bmat):
        return jnp.dot(a, bmat, preferred_element_type=f32, precision=HIGH)

    def conv3x3(src, w_packed, bias, Hc, S, M, mask, frame, relu_in):
        # One im2col matmul over the whole padded-rows-1..Hc slab of `src`.
        xin = src[...]
        if relu_in:
            xin = jnp.maximum(xin, 0.0)            # ReLU applied exactly once per conv input
        base = B - 1
        patches = jnp.concatenate(
            [xin[:, base + dy * S + dx: base + dy * S + dx + M]
             for dy in range(3) for dx in range(3)], axis=0)     # (9*Ci, M)
        out = mm(w_packed, patches) + bias                        # (Cout, M)
        return jnp.where(mask, out, frame)                        # in-row pad cols -> frame

    for b in range(nb):                                           # images in this grid step
        # stage 0: scatter NCHW pixels into the zero-framed flat slab (one MXU matmul).
        sx[:, p1:p1 + M1] = mm(x_ref[b].astype(f32), spad)
        # stage 1: conv (Cin -> Cout); -inf-framed output is the max-pool input.
        sy[:, p1:p1 + M1] = conv3x3(sx, wc, bc, H, S1, M1, mask1, _NEG, False)
        # stage 2: max_pool2d(kernel=3, stride=2, padding=1).
        v = sy[...]
        Lh = Lt1 - 2
        hm = jnp.maximum(jnp.maximum(v[:, 0:Lh], v[:, 1:Lh + 1]), v[:, 2:Lh + 2])
        Lv = Lh - 2 * S1
        vm = jnp.maximum(jnp.maximum(hm[:, 0:Lv], hm[:, S1:S1 + Lv]),
                         hm[:, 2 * S1:2 * S1 + Lv])               # 3x3 window max, all offsets
        sp[:, p2:p2 + M2] = mm(vm[:, 0:Kg], gpool)                # stride-2 gather -> flat layout

        # stages 3..6: two residual blocks (out = conv1(relu(conv0(relu(x)))) + x).
        def res_block(src, w0, b0, w1, b1):
            st[:, p2:p2 + M2] = conv3x3(src, w0, b0, Ho, S2, M2, mask2, 0.0, True)
            u = conv3x3(st, w1, b1, Ho, S2, M2, mask2, 0.0, True)
            return u + src[:, p2:p2 + M2]

        sq[:, p2:p2 + M2] = res_block(sp, wr[0], br[0], wr[1], br[1])
        o1 = res_block(sq, wr[2], br[2], wr[3], br[3])
        # lane-dense output: drop pad columns with one matmul -> (Cout, Ho*Wo), one store.
        o_ref[b] = mm(o1, eout).astype(o_ref.dtype)


# --------------------------------- JAX wrapper -----------------------------------

def conv_sequence(x_nchw, params):
    """ConvSequence.forward: (N, Cin, H, W) -> (N, Cout, (H+1)//2, (W+1)//2)."""
    (wc, bc), ((w00, b00), (w01, b01)), ((w10, b10), (w11, b11)) = params
    N, Cin, H, W = x_nchw.shape
    Cout = wc.shape[-1]
    Ho, Wo, S1, S2, M1, M2, Lt1, Lt2 = _dims(H, W)
    B = _BASE
    nb = _pick_nb(N)
    assert N % nb == 0

    # ---- weight packing: (9, Ci, Co), tap-major -> (Co, 9*Ci), K index = tap*Ci + ci ----
    def pack(w):
        return jnp.transpose(w, (2, 0, 1)).reshape(w.shape[2], 9 * w.shape[1])

    wc_p = pack(wc)                                               # (Cout, 9*Cin)
    wr_p = jnp.stack([pack(w00), pack(w01), pack(w10), pack(w11)])  # (4, Cout, 9*Cout)
    bc_p = bc.reshape(Cout, 1)
    br_p = jnp.stack([b00, b01, b10, b11]).reshape(4, Cout, 1)

    # ---- constant 0/1 gather/scatter matrices & masks (trace-time numpy) ----
    r = np.repeat(np.arange(H), W)
    c = np.tile(np.arange(W), H)
    spad = np.zeros((H * W, M1), np.float32)
    spad[r * W + c, r * S1 + c + 1] = 1.0                         # pixel (r,c) -> slab col
    i = np.repeat(np.arange(Ho), Wo)
    j = np.tile(np.arange(Wo), Ho)
    Kg = B + 2 * (Ho - 1) * S1 + 2 * (Wo - 1) + 1
    gpool = np.zeros((Kg, M2), np.float32)
    gpool[B + 2 * i * S1 + 2 * j, i * S2 + j + 1] = 1.0           # window max -> pooled slab
    eout = np.zeros((M2, Ho * Wo), np.float32)
    eout[i * S2 + j + 1, i * Wo + j] = 1.0                        # slab -> dense (Ho*Wo)
    mask1 = np.zeros((1, M1), np.float32)
    mask1[0, r * S1 + c + 1] = 1.0
    mask2 = np.zeros((1, M2), np.float32)
    mask2[0, i * S2 + j + 1] = 1.0

    kern = functools.partial(_conv_sequence_kernel, H=H, W=W, Cin=Cin, Cout=Cout, nb=nb)
    out = pl.pallas_call(
        kern,
        out_shape=jax.ShapeDtypeStruct((N, Cout, Ho * Wo), x_nchw.dtype),
        grid=(N // nb,),
        in_specs=[
            pl.BlockSpec((nb, Cin, H * W), lambda n: (n, 0, 0)),      # nb images / step
            pl.BlockSpec((Cout, 9 * Cin), lambda n: (0, 0)),
            pl.BlockSpec((Cout, 1), lambda n: (0, 0)),
            pl.BlockSpec((4, Cout, 9 * Cout), lambda n: (0, 0, 0)),
            pl.BlockSpec((4, Cout, 1), lambda n: (0, 0, 0)),
            pl.BlockSpec((H * W, M1), lambda n: (0, 0)),
            pl.BlockSpec((Kg, M2), lambda n: (0, 0)),
            pl.BlockSpec((M2, Ho * Wo), lambda n: (0, 0)),
            pl.BlockSpec((1, M1), lambda n: (0, 0)),
            pl.BlockSpec((1, M2), lambda n: (0, 0)),
        ],
        out_specs=pl.BlockSpec((nb, Cout, Ho * Wo), lambda n: (n, 0, 0)),
        scratch_shapes=[
            pltpu.VMEM((Cin, Lt1), jnp.float32),    # sx: conv-1 input   (zero frame)
            pltpu.VMEM((Cout, Lt1), jnp.float32),   # sy: conv-1 output  (-inf frame, pool in)
            pltpu.VMEM((Cout, Lt2), jnp.float32),   # sp: pooled         (zero frame, residual)
            pltpu.VMEM((Cout, Lt2), jnp.float32),   # st: res-block intermediate
            pltpu.VMEM((Cout, Lt2), jnp.float32),   # sq: res_block0 output
        ],
        compiler_params=pltpu.CompilerParams(dimension_semantics=("parallel",)),
    )(x_nchw.reshape(N, Cin, H * W), wc_p, bc_p, wr_p, br_p,
      jnp.asarray(spad), jnp.asarray(gpool), jnp.asarray(eout),
      jnp.asarray(mask1), jnp.asarray(mask2))
    return out.reshape(N, Cout, Ho, Wo)                           # free reshape (contiguous)


# ----------------------------- params & pure-JAX reference -----------------------

def init_conv(key, cin, cout):
    kw, kb = jax.random.split(key)
    bound = float(1.0 / (cin * 9) ** 0.5)                         # PyTorch-style fan_in
    w = jax.random.uniform(kw, (9, cin, cout), jnp.float32, -bound, bound)
    b = jax.random.uniform(kb, (cout,), jnp.float32, -bound, bound)
    return w, b


def _conv_ref(x, w9, b):
    w = w9.reshape(3, 3, w9.shape[1], w9.shape[2])                # HWIO
    y = lax.conv_general_dilated(x, w, (1, 1), 'SAME',
                                 dimension_numbers=('NHWC', 'HWIO', 'NHWC'),
                                 precision=lax.Precision.HIGHEST)
    return y + b


def conv_sequence_ref(x_nchw, params):
    x = jnp.transpose(x_nchw, (0, 2, 3, 1))
    (wc, bc), rb0, rb1 = params
    x = _conv_ref(x, wc, bc)
    x = lax.reduce_window(x, -jnp.inf, lax.max, (1, 3, 3, 1), (1, 2, 2, 1),
                          [(0, 0), (1, 1), (1, 1), (0, 0)])
    for (w0, b0), (w1, b1) in (rb0, rb1):
        r = x
        x = _conv_ref(jax.nn.relu(x), w0, b0)
        x = _conv_ref(jax.nn.relu(x), w1, b1) + r
    return jnp.transpose(x, (0, 3, 1, 2))


# -------------------------------------- main -------------------------------------

if __name__ == "__main__":
    key = jax.random.PRNGKey(0)
    k_x, k0, k1, k2, k3, k4 = jax.random.split(key, 6)

    N, Cin, H, W = 4, 4, 16, 16          # N=4 -> nb=2 images per grid step, grid=(2,)
    Cout = 8
    x = jax.random.normal(k_x, (N, Cin, H, W), jnp.float32)

    params = (
        init_conv(k0, Cin, Cout),                                 # ConvSequence.conv
        (init_conv(k1, Cout, Cout), init_conv(k2, Cout, Cout)),   # res_block0
        (init_conv(k3, Cout, Cout), init_conv(k4, Cout, Cout)),   # res_block1
    )

    fwd = jax.jit(conv_sequence)
    out = jax.block_until_ready(fwd(x, params))
    expected_shape = (N, Cout, (H + 1) // 2, (W + 1) // 2)
    assert out.shape == expected_shape, out.shape

    ref = jax.block_until_ready(conv_sequence_ref(x, params))
    err = float(jnp.max(jnp.abs(out - ref)))
    assert jnp.allclose(out, ref, atol=2e-3, rtol=2e-3), err

    print("KERNEL_OK")
</pallas_src>

<mosaic_0001>
module attributes {stable_mosaic.version = 11 : i64} {
  func.func @_conv_sequence_kernel(%arg0: i32, %arg1: memref<2x4x256xf32, #tpu.memory_space<vmem>>, %arg2: memref<8x36xf32, #tpu.memory_space<vmem>>, %arg3: memref<8x1xf32, #tpu.memory_space<vmem>>, %arg4: memref<4x8x72xf32, #tpu.memory_space<vmem>>, %arg5: memref<4x8x1xf32, #tpu.memory_space<vmem>>, %arg6: memref<256x288xf32, #tpu.memory_space<vmem>>, %arg7: memref<275x80xf32, #tpu.memory_space<vmem>>, %arg8: memref<80x64xf32, #tpu.memory_space<vmem>>, %arg9: memref<1x288xf32, #tpu.memory_space<vmem>>, %arg10: memref<1x80xf32, #tpu.memory_space<vmem>>, %arg11: memref<2x8x64xf32, #tpu.memory_space<vmem>>, %arg12: memref<4x350xf32, #tpu.memory_space<vmem>>, %arg13: memref<8x350xf32, #tpu.memory_space<vmem>>, %arg14: memref<8x118xf32, #tpu.memory_space<vmem>>, %arg15: memref<8x118xf32, #tpu.memory_space<vmem>>, %arg16: memref<8x118xf32, #tpu.memory_space<vmem>>) attributes {dimension_semantics = [#tpu.dimension_semantics<parallel>], iteration_bounds = array<i64: 2>, scalar_prefetch = 0 : i64, scratch_operands = 5 : i64, tpu.core_type = #tpu.core_type<tc>, window_params = [{transform_indices = @transform_0, window_bounds = array<i64: 2, 4, 256>}, {pipeline_mode = #tpu.pipeline_mode<synchronous>, transform_indices = @transform_1, window_bounds = array<i64: 8, 36>}, {pipeline_mode = #tpu.pipeline_mode<synchronous>, transform_indices = @transform_2, window_bounds = array<i64: 8, 1>}, {pipeline_mode = #tpu.pipeline_mode<synchronous>, transform_indices = @transform_3, window_bounds = array<i64: 4, 8, 72>}, {pipeline_mode = #tpu.pipeline_mode<synchronous>, transform_indices = @transform_4, window_bounds = array<i64: 4, 8, 1>}, {pipeline_mode = #tpu.pipeline_mode<synchronous>, transform_indices = @transform_5, window_bounds = array<i64: 256, 288>}, {pipeline_mode = #tpu.pipeline_mode<synchronous>, transform_indices = @transform_6, window_bounds = array<i64: 275, 80>}, {pipeline_mode = #tpu.pipeline_mode<synchronous>, transform_indices = @transform_7, window_bounds = array<i64: 80, 64>}, {pipeline_mode = #tpu.pipeline_mode<synchronous>, transform_indices = @transform_8, window_bounds = array<i64: 1, 288>}, {pipeline_mode = #tpu.pipeline_mode<synchronous>, transform_indices = @transform_9, window_bounds = array<i64: 1, 80>}, {transform_indices = @transform_10, window_bounds = array<i64: 2, 8, 64>}]} {
    %cst = arith.constant 0.000000e+00 : f32
    %0 = vector.broadcast %cst : f32 to vector<4x26xf32>
    %c0 = arith.constant 0 : index
    %c0_0 = arith.constant 0 : index
    %1 = vector.load %arg12[%c0, %c0_0] : memref<4x350xf32, #tpu.memory_space<vmem>>, vector<4x26xf32>
    tpu.vector_store %arg12[%c0, %c0_0], %0 {strides = array<i32>} : memref<4x350xf32, #tpu.memory_space<vmem>>, vector<4x26xf32>,
    %cst_1 = arith.constant 0.000000e+00 : f32
    %2 = vector.broadcast %cst_1 : f32 to vector<4x36xf32>
    %c0_2 = arith.constant 0 : index
    %c314 = arith.constant 314 : index
    %3 = vector.load %arg12[%c0_2, %c314] : memref<4x350xf32, #tpu.memory_space<vmem>>, vector<4x36xf32>
    tpu.vector_store %arg12[%c0_2, %c314], %2 {strides = array<i32>} : memref<4x350xf32, #tpu.memory_space<vmem>>, vector<4x36xf32>,
    %cst_3 = arith.constant -3.000000e+38 : f32
    %4 = vector.broadcast %cst_3 : f32 to vector<8x26xf32>
    %c0_4 = arith.constant 0 : index
    %c0_5 = arith.constant 0 : index
    %5 = vector.load %arg13[%c0_4, %c0_5] : memref<8x350xf32, #tpu.memory_space<vmem>>, vector<8x26xf32>
    tpu.vector_store %arg13[%c0_4, %c0_5], %4 {strides = array<i32>} : memref<8x350xf32, #tpu.memory_space<vmem>>, vector<8x26xf32>,
    %cst_6 = arith.constant -3.000000e+38 : f32
    %6 = vector.broadcast %cst_6 : f32 to vector<8x36xf32>
    %c0_7 = arith.constant 0 : index
    %c314_8 = arith.constant 314 : index
    %7 = vector.load %arg13[%c0_7, %c314_8] : memref<8x350xf32, #tpu.memory_space<vmem>>, vector<8x36xf32>
    tpu.vector_store %arg13[%c0_7, %c314_8], %6 {strides = array<i32>} : memref<8x350xf32, #tpu.memory_space<vmem>>, vector<8x36xf32>,
    %cst_9 = arith.constant 0.000000e+00 : f32
    %8 = vector.broadcast %cst_9 : f32 to vector<8x18xf32>
    %c0_10 = arith.constant 0 : index
    %c0_11 = arith.constant 0 : index
    %9 = vector.load %arg14[%c0_10, %c0_11] : memref<8x118xf32, #tpu.memory_space<vmem>>, vector<8x18xf32>
    tpu.vector_store %arg14[%c0_10, %c0_11], %8 {strides = array<i32>} : memref<8x118xf32, #tpu.memory_space<vmem>>, vector<8x18xf32>,
    %cst_12 = arith.constant 0.000000e+00 : f32
    %10 = vector.broadcast %cst_12 : f32 to vector<8x20xf32>
    %c0_13 = arith.constant 0 : index
    %c98 = arith.constant 98 : index
    %11 = vector.load %arg14[%c0_13, %c98] : memref<8x118xf32, #tpu.memory_space<vmem>>, vector<8x20xf32>
    tpu.vector_store %arg14[%c0_13, %c98], %10 {strides = array<i32>} : memref<8x118xf32, #tpu.memory_space<vmem>>, vector<8x20xf32>,
    %cst_14 = arith.constant 0.000000e+00 : f32
    %12 = vector.broadcast %cst_14 : f32 to vector<8x18xf32>
    %c0_15 = arith.constant 0 : index
    %c0_16 = arith.constant 0 : index
    %13 = vector.load %arg15[%c0_15, %c0_16] : memref<8x118xf32, #tpu.memory_space<vmem>>, vector<8x18xf32>
    tpu.vector_store %arg15[%c0_15, %c0_16], %12 {strides = array<i32>} : memref<8x118xf32, #tpu.memory_space<vmem>>, vector<8x18xf32>,
    %cst_17 = arith.constant 0.000000e+00 : f32
    %14 = vector.broadcast %cst_17 : f32 to vector<8x20xf32>
    %c0_18 = arith.constant 0 : index
    %c98_19 = arith.constant 98 : index
    %15 = vector.load %arg15[%c0_18, %c98_19] : memref<8x118xf32, #tpu.memory_space<vmem>>, vector<8x20xf32>
    tpu.vector_store %arg15[%c0_18, %c98_19], %14 {strides = array<i32>} : memref<8x118xf32, #tpu.memory_space<vmem>>, vector<8x20xf32>,
    %cst_20 = arith.constant 0.000000e+00 : f32
    %16 = vector.broadcast %cst_20 : f32 to vector<8x18xf32>
    %c0_21 = arith.constant 0 : index
    %c0_22 = arith.constant 0 : index
    %17 = vector.load %arg16[%c0_21, %c0_22] : memref<8x118xf32, #tpu.memory_space<vmem>>, vector<8x18xf32>
    tpu.vector_store %arg16[%c0_21, %c0_22], %16 {strides = array<i32>} : memref<8x118xf32, #tpu.memory_space<vmem>>, vector<8x18xf32>,
    %cst_23 = arith.constant 0.000000e+00 : f32
    %18 = vector.broadcast %cst_23 : f32 to vector<8x20xf32>
    %c0_24 = arith.constant 0 : index
    %c98_25 = arith.constant 98 : index
    %19 = vector.load %arg16[%c0_24, %c98_25] : memref<8x118xf32, #tpu.memory_space<vmem>>, vector<8x20xf32>
    tpu.vector_store %arg16[%c0_24, %c98_25], %18 {strides = array<i32>} : memref<8x118xf32, #tpu.memory_space<vmem>>, vector<8x20xf32>,
    %c0_26 = arith.constant 0 : index
    %c0_27 = arith.constant 0 : index
    %20 = vector.load %arg2[%c0_26, %c0_27] : memref<8x36xf32, #tpu.memory_space<vmem>>, vector<8x36xf32>
    %c0_28 = arith.constant 0 : index
    %c0_29 = arith.constant 0 : index
    %21 = vector.load %arg3[%c0_28, %c0_29] : memref<8x1xf32, #tpu.memory_space<vmem>>, vector<8x1xf32>
    %c0_30 = arith.constant 0 : index
    %c0_31 = arith.constant 0 : index
    %c0_32 = arith.constant 0 : index
    %22 = vector.load %arg4[%c0_30, %c0_31, %c0_32] : memref<4x8x72xf32, #tpu.memory_space<vmem>>, vector<1x8x72xf32>
    %23 = vector.shape_cast %22 : vector<1x8x72xf32> to vector<8x72xf32>
    %c1 = arith.constant 1 : index
    %c0_33 = arith.constant 0 : index
    %c0_34 = arith.constant 0 : index
    %24 = vector.load %arg4[%c1, %c0_33, %c0_34] : memref<4x8x72xf32, #tpu.memory_space<vmem>>, vector<1x8x72xf32>
    %25 = vector.shape_cast %24 : vector<1x8x72xf32> to vector<8x72xf32>
    %c2 = arith.constant 2 : index
    %c0_35 = arith.constant 0 : index
    %c0_36 = arith.constant 0 : index
    %26 = vector.load %arg4[%c2, %c0_35, %c0_36] : memref<4x8x72xf32, #tpu.memory_space<vmem>>, vector<1x8x72xf32>
    %27 = vector.shape_cast %26 : vector<1x8x72xf32> to vector<8x72xf32>
    %c3 = arith.constant 3 : index
    %c0_37 = arith.constant 0 : index
    %c0_38 = arith.constant 0 : index
    %28 = vector.load %arg4[%c3, %c0_37, %c0_38] : memref<4x8x72xf32, #tpu.memory_space<vmem>>, vector<1x8x72xf32>
    %29 = vector.shape_cast %28 : vector<1x8x72xf32> to vector<8x72xf32>
    %c0_39 = arith.constant 0 : index
    %c0_40 = arith.constant 0 : index
    %c0_41 = arith.constant 0 : index
    %30 = vector.load %arg5[%c0_39, %c0_40, %c0_41] : memref<4x8x1xf32, #tpu.memory_space<vmem>>, vector<1x8x1xf32>
    %31 = vector.shape_cast %30 : vector<1x8x1xf32> to vector<8x1xf32>
    %c1_42 = arith.constant 1 : index
    %c0_43 = arith.constant 0 : index
    %c0_44 = arith.constant 0 : index
    %32 = vector.load %arg5[%c1_42, %c0_43, %c0_44] : memref<4x8x1xf32, #tpu.memory_space<vmem>>, vector<1x8x1xf32>
    %33 = vector.shape_cast %32 : vector<1x8x1xf32> to vector<8x1xf32>
    %c2_45 = arith.constant 2 : index
    %c0_46 = arith.constant 0 : index
    %c0_47 = arith.constant 0 : index
    %34 = vector.load %arg5[%c2_45, %c0_46, %c0_47] : memref<4x8x1xf32, #tpu.memory_space<vmem>>, vector<1x8x1xf32>
    %35 = vector.shape_cast %34 : vector<1x8x1xf32> to vector<8x1xf32>
    %c3_48 = arith.constant 3 : index
    %c0_49 = arith.constant 0 : index
    %c0_50 = arith.constant 0 : index
    %36 = vector.load %arg5[%c3_48, %c0_49, %c0_50] : memref<4x8x1xf32, #tpu.memory_space<vmem>>, vector<1x8x1xf32>
    %37 = vector.shape_cast %36 : vector<1x8x1xf32> to vector<8x1xf32>
    %c0_51 = arith.constant 0 : index
    %c0_52 = arith.constant 0 : index
    %38 = vector.load %arg6[%c0_51, %c0_52] : memref<256x288xf32, #tpu.memory_space<vmem>>, vector<256x288xf32>
    %c0_53 = arith.constant 0 : index
    %c0_54 = arith.constant 0 : index
    %39 = vector.load %arg7[%c0_53, %c0_54] : memref<275x80xf32, #tpu.memory_space<vmem>>, vector<275x80xf32>
    %c0_55 = arith.constant 0 : index
    %c0_56 = arith.constant 0 : index
    %40 = vector.load %arg8[%c0_55, %c0_56] : memref<80x64xf32, #tpu.memory_space<vmem>>, vector<80x64xf32>
    %c0_57 = arith.constant 0 : index
    %c0_58 = arith.constant 0 : index
    %41 = vector.load %arg9[%c0_57, %c0_58] : memref<1x288xf32, #tpu.memory_space<vmem>>, vector<1x288xf32>
    %cst_59 = arith.constant 0.000000e+00 : f32
    %42 = vector.broadcast %cst_59 : f32 to vector<1x288xf32>
    %43 = arith.cmpf one, %41, %42 : vector<1x288xf32>
    %c0_60 = arith.constant 0 : index
    %c0_61 = arith.constant 0 : index
    %44 = vector.load %arg10[%c0_60, %c0_61] : memref<1x80xf32, #tpu.memory_space<vmem>>, vector<1x80xf32>
    %cst_62 = arith.constant 0.000000e+00 : f32
    %45 = vector.broadcast %cst_62 : f32 to vector<1x80xf32>
    %46 = arith.cmpf one, %44, %45 : vector<1x80xf32>
    %c0_63 = arith.constant 0 : index
    %c0_64 = arith.constant 0 : index
    %c0_65 = arith.constant 0 : index
    %47 = vector.load %arg1[%c0_63, %c0_64, %c0_65] : memref<2x4x256xf32, #tpu.memory_space<vmem>>, vector<1x4x256xf32>
    %48 = vector.shape_cast %47 : vector<1x4x256xf32> to vector<4x256xf32>
    %cst_66 = arith.constant dense<0.000000e+00> : vector<4x288xf32>
    %49 = tpu.matmul %48, %38, %cst_66 {dimension_numbers = #tpu.dot_dimension_numbers<[1], [0], [0], [1], [0, 0, 1, 1], [], []>, precision = #tpu.contract_precision<fp32>} : vector<4x256xf32>, vector<256x288xf32>, vector<4x288xf32> -> vector<4x288xf32>
    %c0_67 = arith.constant 0 : index
    %c26 = arith.constant 26 : index
    %50 = vector.load %arg12[%c0_67, %c26] : memref<4x350xf32, #tpu.memory_space<vmem>>, vector<4x288xf32>
    tpu.vector_store %arg12[%c0_67, %c26], %49 {strides = array<i32>} : memref<4x350xf32, #tpu.memory_space<vmem>>, vector<4x288xf32>,
    %c0_68 = arith.constant 0 : index
    %c0_69 = arith.constant 0 : index
    %51 = vector.load %arg12[%c0_68, %c0_69] : memref<4x350xf32, #tpu.memory_space<vmem>>, vector<4x350xf32>
    %52 = vector.extract_strided_slice %51 {offsets = [0, 7], sizes = [4, 288], strides = [1, 1]} : vector<4x350xf32> to vector<4x288xf32>
    %53 = vector.extract_strided_slice %51 {offsets = [0, 8], sizes = [4, 288], strides = [1, 1]} : vector<4x350xf32> to vector<4x288xf32>
    %54 = vector.extract_strided_slice %51 {offsets = [0, 9], sizes = [4, 288], strides = [1, 1]} : vector<4x350xf32> to vector<4x288xf32>
    %55 = vector.extract_strided_slice %51 {offsets = [0, 25], sizes = [4, 288], strides = [1, 1]} : vector<4x350xf32> to vector<4x288xf32>
    %56 = vector.extract_strided_slice %51 {offsets = [0, 26], sizes = [4, 288], strides = [1, 1]} : vector<4x350xf32> to vector<4x288xf32>
    %57 = vector.extract_strided_slice %51 {offsets = [0, 27], sizes = [4, 288], strides = [1, 1]} : vector<4x350xf32> to vector<4x288xf32>
    %58 = vector.extract_strided_slice %51 {offsets = [0, 43], sizes = [4, 288], strides = [1, 1]} : vector<4x350xf32> to vector<4x288xf32>
    %59 = vector.extract_strided_slice %51 {offsets = [0, 44], sizes = [4, 288], strides = [1, 1]} : vector<4x350xf32> to vector<4x288xf32>
    %60 = vector.extract_strided_slice %51 {offsets = [0, 45], sizes = [4, 288], strides = [1, 1]} : vector<4x350xf32> to vector<4x288xf32>
    %61 = tpu.concatenate %52, %53, %54, %55, %56, %57, %58, %59, %60 in 0 : vector<4x288xf32>, vector<4x288xf32>, vector<4x288xf32>, vector<4x288xf32>, vector<4x288xf32>, vector<4x288xf32>, vector<4x288xf32>, vector<4x288xf32>, vector<4x288xf32> -> vector<36x288xf32>
    %cst_70 = arith.constant dense<0.000000e+00> : vector<8x288xf32>
    %62 = tpu.matmul %20, %61, %cst_70 {dimension_numbers = #tpu.dot_dimension_numbers<[1], [0], [0], [1], [0, 0, 1, 1], [], []>, precision = #tpu.contract_precision<fp32>} : vector<8x36xf32>, vector<36x288xf32>, vector<8x288xf32> -> vector<8x288xf32>
    %63 = vector.broadcast %21 : vector<8x1xf32> to vector<8x288xf32>
    %64 = arith.addf %62, %63 : vector<8x288xf32>
    %cst_71 = arith.constant -3.000000e+38 : f32
    %65 = vector.shape_cast %43 : vector<1x288xi1> to vector<1x288xi1>
    %66 = vector.broadcast %65 : vector<1x288xi1> to vector<8x288xi1>
    %67 = vector.broadcast %cst_71 : f32 to vector<8x288xf32>
    %68 = arith.select %66, %64, %67 : vector<8x288xi1>, vector<8x288xf32>
    %c0_72 = arith.constant 0 : index
    %c26_73 = arith.constant 26 : index
    %69 = vector.load %arg13[%c0_72, %c26_73] : memref<8x350xf32, #tpu.memory_space<vmem>>, vector<8x288xf32>
    tpu.vector_store %arg13[%c0_72, %c26_73], %68 {strides = array<i32>} : memref<8x350xf32, #tpu.memory_space<vmem>>, vector<8x288xf32>,
    %c0_74 = arith.constant 0 : index
    %c0_75 = arith.constant 0 : index
    %70 = vector.load %arg13[%c0_74, %c0_75] : memref<8x350xf32, #tpu.memory_space<vmem>>, vector<8x350xf32>
    %71 = vector.extract_strided_slice %70 {offsets = [0, 0], sizes = [8, 348], strides = [1, 1]} : vector<8x350xf32> to vector<8x348xf32>
    %72 = vector.extract_strided_slice %70 {offsets = [0, 1], sizes = [8, 348], strides = [1, 1]} : vector<8x350xf32> to vector<8x348xf32>
    %73 = arith.maximumf %71, %72 : vector<8x348xf32>
    %74 = vector.extract_strided_slice %70 {offsets = [0, 2], sizes = [8, 348], strides = [1, 1]} : vector<8x350xf32> to vector<8x348xf32>
    %75 = arith.maximumf %73, %74 : vector<8x348xf32>
    %76 = vector.extract_strided_slice %75 {offsets = [0, 0], sizes = [8, 312], strides = [1, 1]} : vector<8x348xf32> to vector<8x312xf32>
    %77 = vector.extract_strided_slice %75 {offsets = [0, 18], sizes = [8, 312], strides = [1, 1]} : vector<8x348xf32> to vector<8x312xf32>
    %78 = arith.maximumf %76, %77 : vector<8x312xf32>
    %79 = vector.extract_strided_slice %75 {offsets = [0, 36], sizes = [8, 312], strides = [1, 1]} : vector<8x348xf32> to vector<8x312xf32>
    %80 = arith.maximumf %78, %79 : vector<8x312xf32>
    %81 = vector.extract_strided_slice %80 {offsets = [0, 0], sizes = [8, 275], strides = [1, 1]} : vector<8x312xf32> to vector<8x275xf32>
    %cst_76 = arith.constant dense<0.000000e+00> : vector<8x80xf32>
    %82 = tpu.matmul %81, %39, %cst_76 {dimension_numbers = #tpu.dot_dimension_numbers<[1], [0], [0], [1], [0, 0, 1, 1], [], []>, precision = #tpu.contract_precision<fp32>} : vector<8x275xf32>, vector<275x80xf32>, vector<8x80xf32> -> vector<8x80xf32>
    %c0_77 = arith.constant 0 : index
    %c18 = arith.constant 18 : index
    %83 = vector.load %arg14[%c0_77, %c18] : memref<8x118xf32, #tpu.memory_space<vmem>>, vector<8x80xf32>
    tpu.vector_store %arg14[%c0_77, %c18], %82 {strides = array<i32>} : memref<8x118xf32, #tpu.memory_space<vmem>>, vector<8x80xf32>,
    %c0_78 = arith.constant 0 : index
    %c0_79 = arith.constant 0 : index
    %84 = vector.load %arg14[%c0_78, %c0_79] : memref<8x118xf32, #tpu.memory_space<vmem>>, vector<8x118xf32>
    %cst_80 = arith.constant 0.000000e+00 : f32
    %85 = vector.broadcast %cst_80 : f32 to vector<8x118xf32>
    %86 = arith.maximumf %84, %85 : vector<8x118xf32>
    %87 = vector.extract_strided_slice %86 {offsets = [0, 7], sizes = [8, 80], strides = [1, 1]} : vector<8x118xf32> to vector<8x80xf32>
    %88 = vector.extract_strided_slice %86 {offsets = [0, 8], sizes = [8, 80], strides = [1, 1]} : vector<8x118xf32> to vector<8x80xf32>
    %89 = vector.extract_strided_slice %86 {offsets = [0, 9], sizes = [8, 80], strides = [1, 1]} : vector<8x118xf32> to vector<8x80xf32>
    %90 = vector.extract_strided_slice %86 {offsets = [0, 17], sizes = [8, 80], strides = [1, 1]} : vector<8x118xf32> to vector<8x80xf32>
    %91 = vector.extract_strided_slice %86 {offsets = [0, 18], sizes = [8, 80], strides = [1, 1]} : vector<8x118xf32> to vector<8x80xf32>
    %92 = vector.extract_strided_slice %86 {offsets = [0, 19], sizes = [8, 80], strides = [1, 1]} : vector<8x118xf32> to vector<8x80xf32>
    %93 = vector.extract_strided_slice %86 {offsets = [0, 27], sizes = [8, 80], strides = [1, 1]} : vector<8x118xf32> to vector<8x80xf32>
    %94 = vector.extract_strided_slice %86 {offsets = [0, 28], sizes = [8, 80], strides = [1, 1]} : vector<8x118xf32> to vector<8x80xf32>
    %95 = vector.extract_strided_slice %86 {offsets = [0, 29], sizes = [8, 80], strides = [1, 1]} : vector<8x118xf32> to vector<8x80xf32>
    %96 = tpu.concatenate %87, %88, %89, %90, %91, %92, %93, %94, %95 in 0 : vector<8x80xf32>, vector<8x80xf32>, vector<8x80xf32>, vector<8x80xf32>, vector<8x80xf32>, vector<8x80xf32>, vector<8x80xf32>, vector<8x80xf32>, vector<8x80xf32> -> vector<72x80xf32>
    %cst_81 = arith.constant dense<0.000000e+00> : vector<8x80xf32>
    %97 = tpu.matmul %23, %96, %cst_81 {dimension_numbers = #tpu.dot_dimension_numbers<[1], [0], [0], [1], [0, 0, 1, 1], [], []>, precision = #tpu.contract_precision<fp32>} : vector<8x72xf32>, vector<72x80xf32>, vector<8x80xf32> -> vector<8x80xf32>
    %98 = vector.broadcast %31 : vector<8x1xf32> to vector<8x80xf32>
    %99 = arith.addf %97, %98 : vector<8x80xf32>
    %cst_82 = arith.constant 0.000000e+00 : f32
    %100 = vector.shape_cast %46 : vector<1x80xi1> to vector<1x80xi1>
    %101 = vector.broadcast %100 : vector<1x80xi1> to vector<8x80xi1>
    %102 = vector.broadcast %cst_82 : f32 to vector<8x80xf32>
    %103 = arith.select %101, %99, %102 : vector<8x80xi1>, vector<8x80xf32>
    %c0_83 = arith.constant 0 : index
    %c18_84 = arith.constant 18 : index
    %104 = vector.load %arg15[%c0_83, %c18_84] : memref<8x118xf32, #tpu.memory_space<vmem>>, vector<8x80xf32>
    tpu.vector_store %arg15[%c0_83, %c18_84], %103 {strides = array<i32>} : memref<8x118xf32, #tpu.memory_space<vmem>>, vector<8x80xf32>,
    %c0_85 = arith.constant 0 : index
    %c0_86 = arith.constant 0 : index
    %105 = vector.load %arg15[%c0_85, %c0_86] : memref<8x118xf32, #tpu.memory_space<vmem>>, vector<8x118xf32>
    %cst_87 = arith.constant 0.000000e+00 : f32
    %106 = vector.broadcast %cst_87 : f32 to vector<8x118xf32>
    %107 = arith.maximumf %105, %106 : vector<8x118xf32>
    %108 = vector.extract_strided_slice %107 {offsets = [0, 7], sizes = [8, 80], strides = [1, 1]} : vector<8x118xf32> to vector<8x80xf32>
    %109 = vector.extract_strided_slice %107 {offsets = [0, 8], sizes = [8, 80], strides = [1, 1]} : vector<8x118xf32> to vector<8x80xf32>
    %110 = vector.extract_strided_slice %107 {offsets = [0, 9], sizes = [8, 80], strides = [1, 1]} : vector<8x118xf32> to vector<8x80xf32>
    %111 = vector.extract_strided_slice %107 {offsets = [0, 17], sizes = [8, 80], strides = [1, 1]} : vector<8x118xf32> to vector<8x80xf32>
    %112 = vector.extract_strided_slice %107 {offsets = [0, 18], sizes = [8, 80], strides = [1, 1]} : vector<8x118xf32> to vector<8x80xf32>
    %113 = vector.extract_strided_slice %107 {offsets = [0, 19], sizes = [8, 80], strides = [1, 1]} : vector<8x118xf32> to vector<8x80xf32>
    %114 = vector.extract_strided_slice %107 {offsets = [0, 27], sizes = [8, 80], strides = [1, 1]} : vector<8x118xf32> to vector<8x80xf32>
    %115 = vector.extract_strided_slice %107 {offsets = [0, 28], sizes = [8, 80], strides = [1, 1]} : vector<8x118xf32> to vector<8x80xf32>
    %116 = vector.extract_strided_slice %107 {offsets = [0, 29], sizes = [8, 80], strides = [1, 1]} : vector<8x118xf32> to vector<8x80xf32>
    %117 = tpu.concatenate %108, %109, %110, %111, %112, %113, %114, %115, %116 in 0 : vector<8x80xf32>, vector<8x80xf32>, vector<8x80xf32>, vector<8x80xf32>, vector<8x80xf32>, vector<8x80xf32>, vector<8x80xf32>, vector<8x80xf32>, vector<8x80xf32> -> vector<72x80xf32>
    %cst_88 = arith.constant dense<0.000000e+00> : vector<8x80xf32>
    %118 = tpu.matmul %25, %117, %cst_88 {dimension_numbers = #tpu.dot_dimension_numbers<[1], [0], [0], [1], [0, 0, 1, 1], [], []>, precision = #tpu.contract_precision<fp32>} : vector<8x72xf32>, vector<72x80xf32>, vector<8x80xf32> -> vector<8x80xf32>
    %119 = vector.broadcast %33 : vector<8x1xf32> to vector<8x80xf32>
    %120 = arith.addf %118, %119 : vector<8x80xf32>
    %cst_89 = arith.constant 0.000000e+00 : f32
    %121 = vector.shape_cast %46 : vector<1x80xi1> to vector<1x80xi1>
    %122 = vector.broadcast %121 : vector<1x80xi1> to vector<8x80xi1>
    %123 = vector.broadcast %cst_89 : f32 to vector<8x80xf32>
    %124 = arith.select %122, %120, %123 : vector<8x80xi1>, vector<8x80xf32>
    %c0_90 = arith.constant 0 : index
    %c18_91 = arith.constant 18 : index
    %125 = vector.load %arg14[%c0_90, %c18_91] : memref<8x118xf32, #tpu.memory_space<vmem>>, vector<8x80xf32>
    %126 = arith.addf %124, %125 : vector<8x80xf32>
    %c0_92 = arith.constant 0 : index
    %c18_93 = arith.constant 18 : index
    %127 = vector.load %arg16[%c0_92, %c18_93] : memref<8x118xf32, #tpu.memory_space<vmem>>, vector<8x80xf32>
    tpu.vector_store %arg16[%c0_92, %c18_93], %126 {strides = array<i32>} : memref<8x118xf32, #tpu.memory_space<vmem>>, vector<8x80xf32>,
    %c0_94 = arith.constant 0 : index
    %c0_95 = arith.constant 0 : index
    %128 = vector.load %arg16[%c0_94, %c0_95] : memref<8x118xf32, #tpu.memory_space<vmem>>, vector<8x118xf32>
    %cst_96 = arith.constant 0.000000e+00 : f32
    %129 = vector.broadcast %cst_96 : f32 to vector<8x118xf32>
    %130 = arith.maximumf %128, %129 : vector<8x118xf32>
    %131 = vector.extract_strided_slice %130 {offsets = [0, 7], sizes = [8, 80], strides = [1, 1]} : vector<8x118xf32> to vector<8x80xf32>
    %132 = vector.extract_strided_slice %130 {offsets = [0, 8], sizes = [8, 80], strides = [1, 1]} : vector<8x118xf32> to vector<8x80xf32>
    %133 = vector.extract_strided_slice %130 {offsets = [0, 9], sizes = [8, 80], strides = [1, 1]} : vector<8x118xf32> to vector<8x80xf32>
    %134 = vector.extract_strided_slice %130 {offsets = [0, 17], sizes = [8, 80], strides = [1, 1]} : vector<8x118xf32> to vector<8x80xf32>
    %135 = vector.extract_strided_slice %130 {offsets = [0, 18], sizes = [8, 80], strides = [1, 1]} : vector<8x118xf32> to vector<8x80xf32>
    %136 = vector.extract_strided_slice %130 {offsets = [0, 19], sizes = [8, 80], strides = [1, 1]} : vector<8x118xf32> to vector<8x80xf32>
    %137 = vector.extract_strided_slice %130 {offsets = [0, 27], sizes = [8, 80], strides = [1, 1]} : vector<8x118xf32> to vector<8x80xf32>
    %138 = vector.extract_strided_slice %130 {offsets = [0, 28], sizes = [8, 80], strides = [1, 1]} : vector<8x118xf32> to vector<8x80xf32>
    %139 = vector.extract_strided_slice %130 {offsets = [0, 29], sizes = [8, 80], strides = [1, 1]} : vector<8x118xf32> to vector<8x80xf32>
    %140 = tpu.concatenate %131, %132, %133, %134, %135, %136, %137, %138, %139 in 0 : vector<8x80xf32>, vector<8x80xf32>, vector<8x80xf32>, vector<8x80xf32>, vector<8x80xf32>, vector<8x80xf32>, vector<8x80xf32>, vector<8x80xf32>, vector<8x80xf32> -> vector<72x80xf32>
    %cst_97 = arith.constant dense<0.000000e+00> : vector<8x80xf32>
    %141 = tpu.matmul %27, %140, %cst_97 {dimension_numbers = #tpu.dot_dimension_numbers<[1], [0], [0], [1], [0, 0, 1, 1], [], []>, precision = #tpu.contract_precision<fp32>} : vector<8x72xf32>, vector<72x80xf32>, vector<8x80xf32> -> vector<8x80xf32>
    %142 = vector.broadcast %35 : vector<8x1xf32> to vector<8x80xf32>
    %143 = arith.addf %141, %142 : vector<8x80xf32>
    %cst_98 = arith.constant 0.000000e+00 : f32
    %144 = vector.shape_cast %46 : vector<1x80xi1> to vector<1x80xi1>
    %145 = vector.broadcast %144 : vector<1x80xi1> to vector<8x80xi1>
    %146 = vector.broadcast %cst_98 : f32 to vector<8x80xf32>
    %147 = arith.select %145, %143, %146 : vector<8x80xi1>, vector<8x80xf32>
    %c0_99 = arith.constant 0 : index
    %c18_100 = arith.constant 18 : index
    %148 = vector.load %arg15[%c0_99, %c18_100] : memref<8x118xf32, #tpu.memory_space<vmem>>, vector<8x80xf32>
    tpu.vector_store %arg15[%c0_99, %c18_100], %147 {strides = array<i32>} : memref<8x118xf32, #tpu.memory_space<vmem>>, vector<8x80xf32>,
    %c0_101 = arith.constant 0 : index
    %c0_102 = arith.constant 0 : index
    %149 = vector.load %arg15[%c0_101, %c0_102] : memref<8x118xf32, #tpu.memory_space<vmem>>, vector<8x118xf32>
    %cst_103 = arith.constant 0.000000e+00 : f32
    %150 = vector.broadcast %cst_103 : f32 to vector<8x118xf32>
    %151 = arith.maximumf %149, %150 : vector<8x118xf32>
    %152 = vector.extract_strided_slice %151 {offsets = [0, 7], sizes = [8, 80], strides = [1, 1]} : vector<8x118xf32> to vector<8x80xf32>
    %153 = vector.extract_strided_slice %151 {offsets = [0, 8], sizes = [8, 80], strides = [1, 1]} : vector<8x118xf32> to vector<8x80xf32>
    %154 = vector.extract_strided_slice %151 {offsets = [0, 9], sizes = [8, 80], strides = [1, 1]} : vector<8x118xf32> to vector<8x80xf32>
    %155 = vector.extract_strided_slice %151 {offsets = [0, 17], sizes = [8, 80], strides = [1, 1]} : vector<8x118xf32> to vector<8x80xf32>
    %156 = vector.extract_strided_slice %151 {offsets = [0, 18], sizes = [8, 80], strides = [1, 1]} : vector<8x118xf32> to vector<8x80xf32>
    %157 = vector.extract_strided_slice %151 {offsets = [0, 19], sizes = [8, 80], strides = [1, 1]} : vector<8x118xf32> to vector<8x80xf32>
    %158 = vector.extract_strided_slice %151 {offsets = [0, 27], sizes = [8, 80], strides = [1, 1]} : vector<8x118xf32> to vector<8x80xf32>
    %159 = vector.extract_strided_slice %151 {offsets = [0, 28], sizes = [8, 80], strides = [1, 1]} : vector<8x118xf32> to vector<8x80xf32>
    %160 = vector.extract_strided_slice %151 {offsets = [0, 29], sizes = [8, 80], strides = [1, 1]} : vector<8x118xf32> to vector<8x80xf32>
    %161 = tpu.concatenate %152, %153, %154, %155, %156, %157, %158, %159, %160 in 0 : vector<8x80xf32>, vector<8x80xf32>, vector<8x80xf32>, vector<8x80xf32>, vector<8x80xf32>, vector<8x80xf32>, vector<8x80xf32>, vector<8x80xf32>, vector<8x80xf32> -> vector<72x80xf32>
    %cst_104 = arith.constant dense<0.000000e+00> : vector<8x80xf32>
    %162 = tpu.matmul %29, %161, %cst_104 {dimension_numbers = #tpu.dot_dimension_numbers<[1], [0], [0], [1], [0, 0, 1, 1], [], []>, precision = #tpu.contract_precision<fp32>} : vector<8x72xf32>, vector<72x80xf32>, vector<8x80xf32> -> vector<8x80xf32>
    %163 = vector.broadcast %37 : vector<8x1xf32> to vector<8x80xf32>
    %164 = arith.addf %162, %163 : vector<8x80xf32>
    %cst_105 = arith.constant 0.000000e+00 : f32
    %165 = vector.shape_cast %46 : vector<1x80xi1> to vector<1x80xi1>
    %166 = vector.broadcast %165 : vector<1x80xi1> to vector<8x80xi1>
    %167 = vector.broadcast %cst_105 : f32 to vector<8x80xf32>
    %168 = arith.select %166, %164, %167 : vector<8x80xi1>, vector<8x80xf32>
    %c0_106 = arith.constant 0 : index
    %c18_107 = arith.constant 18 : index
    %169 = vector.load %arg16[%c0_106, %c18_107] : memref<8x118xf32, #tpu.memory_space<vmem>>, vector<8x80xf32>
    %170 = arith.addf %168, %169 : vector<8x80xf32>
    %cst_108 = arith.constant dense<0.000000e+00> : vector<8x64xf32>
    %171 = tpu.matmul %170, %40, %cst_108 {dimension_numbers = #tpu.dot_dimension_numbers<[1], [0], [0], [1], [0, 0, 1, 1], [], []>, precision = #tpu.contract_precision<fp32>} : vector<8x80xf32>, vector<80x64xf32>, vector<8x64xf32> -> vector<8x64xf32>
    %c0_109 = arith.constant 0 : index
    %c0_110 = arith.constant 0 : index
    %c0_111 = arith.constant 0 : index
    %172 = vector.load %arg11[%c0_109, %c0_110, %c0_111] : memref<2x8x64xf32, #tpu.memory_space<vmem>>, vector<1x8x64xf32>
    %173 = vector.shape_cast %172 : vector<1x8x64xf32> to vector<8x64xf32>
    %174 = vector.shape_cast %171 : vector<8x64xf32> to vector<1x8x64xf32>
    tpu.vector_store %arg11[%c0_109, %c0_110, %c0_111], %174 {strides = array<i32>} : memref<2x8x64xf32, #tpu.memory_space<vmem>>, vector<1x8x64xf32>,
    %c1_112 = arith.constant 1 : index
    %c0_113 = arith.constant 0 : index
    %c0_114 = arith.constant 0 : index
    %175 = vector.load %arg1[%c1_112, %c0_113, %c0_114] : memref<2x4x256xf32, #tpu.memory_space<vmem>>, vector<1x4x256xf32>
    %176 = vector.shape_cast %175 : vector<1x4x256xf32> to vector<4x256xf32>
    %cst_115 = arith.constant dense<0.000000e+00> : vector<4x288xf32>
    %177 = tpu.matmul %176, %38, %cst_115 {dimension_numbers = #tpu.dot_dimension_numbers<[1], [0], [0], [1], [0, 0, 1, 1], [], []>, precision = #tpu.contract_precision<fp32>} : vector<4x256xf32>, vector<256x288xf32>, vector<4x288xf32> -> vector<4x288xf32>
    %c0_116 = arith.constant 0 : index
    %c26_117 = arith.constant 26 : index
    %178 = vector.load %arg12[%c0_116, %c26_117] : memref<4x350xf32, #tpu.memory_space<vmem>>, vector<4x288xf32>
    tpu.vector_store %arg12[%c0_116, %c26_117], %177 {strides = array<i32>} : memref<4x350xf32, #tpu.memory_space<vmem>>, vector<4x288xf32>,
    %c0_118 = arith.constant 0 : index
    %c0_119 = arith.constant 0 : index
    %179 = vector.load %arg12[%c0_118, %c0_119] : memref<4x350xf32, #tpu.memory_space<vmem>>, vector<4x350xf32>
    %180 = vector.extract_strided_slice %179 {offsets = [0, 7], sizes = [4, 288], strides = [1, 1]} : vector<4x350xf32> to vector<4x288xf32>
    %181 = vector.extract_strided_slice %179 {offsets = [0, 8], sizes = [4, 288], strides = [1, 1]} : vector<4x350xf32> to vector<4x288xf32>
    %182 = vector.extract_strided_slice %179 {offsets = [0, 9], sizes = [4, 288], strides = [1, 1]} : vector<4x350xf32> to vector<4x288xf32>
    %183 = vector.extract_strided_slice %179 {offsets = [0, 25], sizes = [4, 288], strides = [1, 1]} : vector<4x350xf32> to vector<4x288xf32>
    %184 = vector.extract_strided_slice %179 {offsets = [0, 26], sizes = [4, 288], strides = [1, 1]} : vector<4x350xf32> to vector<4x288xf32>
    %185 = vector.extract_strided_slice %179 {offsets = [0, 27], sizes = [4, 288], strides = [1, 1]} : vector<4x350xf32> to vector<4x288xf32>
    %186 = vector.extract_strided_slice %179 {offsets = [0, 43], sizes = [4, 288], strides = [1, 1]} : vector<4x350xf32> to vector<4x288xf32>
    %187 = vector.extract_strided_slice %179 {offsets = [0, 44], sizes = [4, 288], strides = [1, 1]} : vector<4x350xf32> to vector<4x288xf32>
    %188 = vector.extract_strided_slice %179 {offsets = [0, 45], sizes = [4, 288], strides = [1, 1]} : vector<4x350xf32> to vector<4x288xf32>
    %189 = tpu.concatenate %180, %181, %182, %183, %184, %185, %186, %187, %188 in 0 : vector<4x288xf32>, vector<4x288xf32>, vector<4x288xf32>, vector<4x288xf32>, vector<4x288xf32>, vector<4x288xf32>, vector<4x288xf32>, vector<4x288xf32>, vector<4x288xf32> -> vector<36x288xf32>
    %cst_120 = arith.constant dense<0.000000e+00> : vector<8x288xf32>
    %190 = tpu.matmul %20, %189, %cst_120 {dimension_numbers = #tpu.dot_dimension_numbers<[1], [0], [0], [1], [0, 0, 1, 1], [], []>, precision = #tpu.contract_precision<fp32>} : vector<8x36xf32>, vector<36x288xf32>, vector<8x288xf32> -> vector<8x288xf32>
    %191 = vector.broadcast %21 : vector<8x1xf32> to vector<8x288xf32>
    %192 = arith.addf %190, %191 : vector<8x288xf32>
    %cst_121 = arith.constant -3.000000e+38 : f32
    %193 = vector.shape_cast %43 : vector<1x288xi1> to vector<1x288xi1>
    %194 = vector.broadcast %193 : vector<1x288xi1> to vector<8x288xi1>
    %195 = vector.broadcast %cst_121 : f32 to vector<8x288xf32>
    %196 = arith.select %194, %192, %195 : vector<8x288xi1>, vector<8x288xf32>
    %c0_122 = arith.constant 0 : index
    %c26_123 = arith.constant 26 : index
    %197 = vector.load %arg13[%c0_122, %c26_123] : memref<8x350xf32, #tpu.memory_space<vmem>>, vector<8x288xf32>
    tpu.vector_store %arg13[%c0_122, %c26_123], %196 {strides = array<i32>} : memref<8x350xf32, #tpu.memory_space<vmem>>, vector<8x288xf32>,
    %c0_124 = arith.constant 0 : index
    %c0_125 = arith.constant 0 : index
    %198 = vector.load %arg13[%c0_124, %c0_125] : memref<8x350xf32, #tpu.memory_space<vmem>>, vector<8x350xf32>
    %199 = vector.extract_strided_slice %198 {offsets = [0, 0], sizes = [8, 348], strides = [1, 1]} : vector<8x350xf32> to vector<8x348xf32>
    %200 = vector.extract_strided_slice %198 {offsets = [0, 1], sizes = [8, 348], strides = [1, 1]} : vector<8x350xf32> to vector<8x348xf32>
    %201 = arith.maximumf %199, %200 : vector<8x348xf32>
    %202 = vector.extract_strided_slice %198 {offsets = [0, 2], sizes = [8, 348], strides = [1, 1]} : vector<8x350xf32> to vector<8x348xf32>
    %203 = arith.maximumf %201, %202 : vector<8x348xf32>
    %204 = vector.extract_strided_slice %203 {offsets = [0, 0], sizes = [8, 312], strides = [1, 1]} : vector<8x348xf32> to vector<8x312xf32>
    %205 = vector.extract_strided_slice %203 {offsets = [0, 18], sizes = [8, 312], strides = [1, 1]} : vector<8x348xf32> to vector<8x312xf32>
    %206 = arith.maximumf %204, %205 : vector<8x312xf32>
    %207 = vector.extract_strided_slice %203 {offsets = [0, 36], sizes = [8, 312], strides = [1, 1]} : vector<8x348xf32> to vector<8x312xf32>
    %208 = arith.maximumf %206, %207 : vector<8x312xf32>
    %209 = vector.extract_strided_slice %208 {offsets = [0, 0], sizes = [8, 275], strides = [1, 1]} : vector<8x312xf32> to vector<8x275xf32>
    %cst_126 = arith.constant dense<0.000000e+00> : vector<8x80xf32>
    %210 = tpu.matmul %209, %39, %cst_126 {dimension_numbers = #tpu.dot_dimension_numbers<[1], [0], [0], [1], [0, 0, 1, 1], [], []>, precision = #tpu.contract_precision<fp32>} : vector<8x275xf32>, vector<275x80xf32>, vector<8x80xf32> -> vector<8x80xf32>
    %c0_127 = arith.constant 0 : index
    %c18_128 = arith.constant 18 : index
    %211 = vector.load %arg14[%c0_127, %c18_128] : memref<8x118xf32, #tpu.memory_space<vmem>>, vector<8x80xf32>
    tpu.vector_store %arg14[%c0_127, %c18_128], %210 {strides = array<i32>} : memref<8x118xf32, #tpu.memory_space<vmem>>, vector<8x80xf32>,
    %c0_129 = arith.constant 0 : index
    %c0_130 = arith.constant 0 : index
    %212 = vector.load %arg14[%c0_129, %c0_130] : memref<8x118xf32, #tpu.memory_space<vmem>>, vector<8x118xf32>
    %cst_131 = arith.constant 0.000000e+00 : f32
    %213 = vector.broadcast %cst_131 : f32 to vector<8x118xf32>
    %214 = arith.maximumf %212, %213 : vector<8x118xf32>
    %215 = vector.extract_strided_slice %214 {offsets = [0, 7], sizes = [8, 80], strides = [1, 1]} : vector<8x118xf32> to vector<8x80xf32>
    %216 = vector.extract_strided_slice %214 {offsets = [0, 8], sizes = [8, 80], strides = [1, 1]} : vector<8x118xf32> to vector<8x80xf32>
    %217 = vector.extract_strided_slice %214 {offsets = [0, 9], sizes = [8, 80], strides = [1, 1]} : vector<8x118xf32> to vector<8x80xf32>
    %218 = vector.extract_strided_slice %214 {offsets = [0, 17], sizes = [8, 80], strides = [1, 1]} : vector<8x118xf32> to vector<8x80xf32>
    %219 = vector.extract_strided_slice %214 {offsets = [0, 18], sizes = [8, 80], strides = [1, 1]} : vector<8x118xf32> to vector<8x80xf32>
    %220 = vector.extract_strided_slice %214 {offsets = [0, 19], sizes = [8, 80], strides = [1, 1]} : vector<8x118xf32> to vector<8x80xf32>
    %221 = vector.extract_strided_slice %214 {offsets = [0, 27], sizes = [8, 80], strides = [1, 1]} : vector<8x118xf32> to vector<8x80xf32>
    %222 = vector.extract_strided_slice %214 {offsets = [0, 28], sizes = [8, 80], strides = [1, 1]} : vector<8x118xf32> to vector<8x80xf32>
    %223 = vector.extract_strided_slice %214 {offsets = [0, 29], sizes = [8, 80], strides = [1, 1]} : vector<8x118xf32> to vector<8x80xf32>
    %224 = tpu.concatenate %215, %216, %217, %218, %219, %220, %221, %222, %223 in 0 : vector<8x80xf32>, vector<8x80xf32>, vector<8x80xf32>, vector<8x80xf32>, vector<8x80xf32>, vector<8x80xf32>, vector<8x80xf32>, vector<8x80xf32>, vector<8x80xf32> -> vector<72x80xf32>
    %cst_132 = arith.constant dense<0.000000e+00> : vector<8x80xf32>
    %225 = tpu.matmul %23, %224, %cst_132 {dimension_numbers = #tpu.dot_dimension_numbers<[1], [0], [0], [1], [0, 0, 1, 1], [], []>, precision = #tpu.contract_precision<fp32>} : vector<8x72xf32>, vector<72x80xf32>, vector<8x80xf32> -> vector<8x80xf32>
    %226 = vector.broadcast %31 : vector<8x1xf32> to vector<8x80xf32>
    %227 = arith.addf %225, %226 : vector<8x80xf32>
    %cst_133 = arith.constant 0.000000e+00 : f32
    %228 = vector.shape_cast %46 : vector<1x80xi1> to vector<1x80xi1>
    %229 = vector.broadcast %228 : vector<1x80xi1> to vector<8x80xi1>
    %230 = vector.broadcast %cst_133 : f32 to vector<8x80xf32>
    %231 = arith.select %229, %227, %230 : vector<8x80xi1>, vector<8x80xf32>
    %c0_134 = arith.constant 0 : index
    %c18_135 = arith.constant 18 : index
    %232 = vector.load %arg15[%c0_134, %c18_135] : memref<8x118xf32, #tpu.memory_space<vmem>>, vector<8x80xf32>
    tpu.vector_store %arg15[%c0_134, %c18_135], %231 {strides = array<i32>} : memref<8x118xf32, #tpu.memory_space<vmem>>, vector<8x80xf32>,
    %c0_136 = arith.constant 0 : index
    %c0_137 = arith.constant 0 : index
    %233 = vector.load %arg15[%c0_136, %c0_137] : memref<8x118xf32, #tpu.memory_space<vmem>>, vector<8x118xf32>
    %cst_138 = arith.constant 0.000000e+00 : f32
    %234 = vector.broadcast %cst_138 : f32 to vector<8x118xf32>
    %235 = arith.maximumf %233, %234 : vector<8x118xf32>
    %236 = vector.extract_strided_slice %235 {offsets = [0, 7], sizes = [8, 80], strides = [1, 1]} : vector<8x118xf32> to vector<8x80xf32>
    %237 = vector.extract_strided_slice %235 {offsets = [0, 8], sizes = [8, 80], strides = [1, 1]} : vector<8x118xf32> to vector<8x80xf32>
    %238 = vector.extract_strided_slice %235 {offsets = [0, 9], sizes = [8, 80], strides = [1, 1]} : vector<8x118xf32> to vector<8x80xf32>
    %239 = vector.extract_strided_slice %235 {offsets = [0, 17], sizes = [8, 80], strides = [1, 1]} : vector<8x118xf32> to vector<8x80xf32>
    %240 = vector.extract_strided_slice %235 {offsets = [0, 18], sizes = [8, 80], strides = [1, 1]} : vector<8x118xf32> to vector<8x80xf32>
    %241 = vector.extract_strided_slice %235 {offsets = [0, 19], sizes = [8, 80], strides = [1, 1]} : vector<8x118xf32> to vector<8x80xf32>
    %242 = vector.extract_strided_slice %235 {offsets = [0, 27], sizes = [8, 80], strides = [1, 1]} : vector<8x118xf32> to vector<8x80xf32>
    %243 = vector.extract_strided_slice %235 {offsets = [0, 28], sizes = [8, 80], strides = [1, 1]} : vector<8x118xf32> to vector<8x80xf32>
    %244 = vector.extract_strided_slice %235 {offsets = [0, 29], sizes = [8, 80], strides = [1, 1]} : vector<8x118xf32> to vector<8x80xf32>
    %245 = tpu.concatenate %236, %237, %238, %239, %240, %241, %242, %243, %244 in 0 : vector<8x80xf32>, vector<8x80xf32>, vector<8x80xf32>, vector<8x80xf32>, vector<8x80xf32>, vector<8x80xf32>, vector<8x80xf32>, vector<8x80xf32>, vector<8x80xf32> -> vector<72x80xf32>
    %cst_139 = arith.constant dense<0.000000e+00> : vector<8x80xf32>
    %246 = tpu.matmul %25, %245, %cst_139 {dimension_numbers = #tpu.dot_dimension_numbers<[1], [0], [0], [1], [0, 0, 1, 1], [], []>, precision = #tpu.contract_precision<fp32>} : vector<8x72xf32>, vector<72x80xf32>, vector<8x80xf32> -> vector<8x80xf32>
    %247 = vector.broadcast %33 : vector<8x1xf32> to vector<8x80xf32>
    %248 = arith.addf %246, %247 : vector<8x80xf32>
    %cst_140 = arith.constant 0.000000e+00 : f32
    %249 = vector.shape_cast %46 : vector<1x80xi1> to vector<1x80xi1>
    %250 = vector.broadcast %249 : vector<1x80xi1> to vector<8x80xi1>
    %251 = vector.broadcast %cst_140 : f32 to vector<8x80xf32>
    %252 = arith.select %250, %248, %251 : vector<8x80xi1>, vector<8x80xf32>
    %c0_141 = arith.constant 0 : index
    %c18_142 = arith.constant 18 : index
    %253 = vector.load %arg14[%c0_141, %c18_142] : memref<8x118xf32, #tpu.memory_space<vmem>>, vector<8x80xf32>
    %254 = arith.addf %252, %253 : vector<8x80xf32>
    %c0_143 = arith.constant 0 : index
    %c18_144 = arith.constant 18 : index
    %255 = vector.load %arg16[%c0_143, %c18_144] : memref<8x118xf32, #tpu.memory_space<vmem>>, vector<8x80xf32>
    tpu.vector_store %arg16[%c0_143, %c18_144], %254 {strides = array<i32>} : memref<8x118xf32, #tpu.memory_space<vmem>>, vector<8x80xf32>,
    %c0_145 = arith.constant 0 : index
    %c0_146 = arith.constant 0 : index
    %256 = vector.load %arg16[%c0_145, %c0_146] : memref<8x118xf32, #tpu.memory_space<vmem>>, vector<8x118xf32>
    %cst_147 = arith.constant 0.000000e+00 : f32
    %257 = vector.broadcast %cst_147 : f32 to vector<8x118xf32>
    %258 = arith.maximumf %256, %257 : vector<8x118xf32>
    %259 = vector.extract_strided_slice %258 {offsets = [0, 7], sizes = [8, 80], strides = [1, 1]} : vector<8x118xf32> to vector<8x80xf32>
    %260 = vector.extract_strided_slice %258 {offsets = [0, 8], sizes = [8, 80], strides = [1, 1]} : vector<8x118xf32> to vector<8x80xf32>
    %261 = vector.extract_strided_slice %258 {offsets = [0, 9], sizes = [8, 80], strides = [1, 1]} : vector<8x118xf32> to vector<8x80xf32>
    %262 = vector.extract_strided_slice %258 {offsets = [0, 17], sizes = [8, 80], strides = [1, 1]} : vector<8x118xf32> to vector<8x80xf32>
    %263 = vector.extract_strided_slice %258 {offsets = [0, 18], sizes = [8, 80], strides = [1, 1]} : vector<8x118xf32> to vector<8x80xf32>
    %264 = vector.extract_strided_slice %258 {offsets = [0, 19], sizes = [8, 80], strides = [1, 1]} : vector<8x118xf32> to vector<8x80xf32>
    %265 = vector.extract_strided_slice %258 {offsets = [0, 27], sizes = [8, 80], strides = [1, 1]} : vector<8x118xf32> to vector<8x80xf32>
    %266 = vector.extract_strided_slice %258 {offsets = [0, 28], sizes = [8, 80], strides = [1, 1]} : vector<8x118xf32> to vector<8x80xf32>
    %267 = vector.extract_strided_slice %258 {offsets = [0, 29], sizes = [8, 80], strides = [1, 1]} : vector<8x118xf32> to vector<8x80xf32>
    %268 = tpu.concatenate %259, %260, %261, %262, %263, %264, %265, %266, %267 in 0 : vector<8x80xf32>, vector<8x80xf32>, vector<8x80xf32>, vector<8x80xf32>, vector<8x80xf32>, vector<8x80xf32>, vector<8x80xf32>, vector<8x80xf32>, vector<8x80xf32> -> vector<72x80xf32>
    %cst_148 = arith.constant dense<0.000000e+00> : vector<8x80xf32>
    %269 = tpu.matmul %27, %268, %cst_148 {dimension_numbers = #tpu.dot_dimension_numbers<[1], [0], [0], [1], [0, 0, 1, 1], [], []>, precision = #tpu.contract_precision<fp32>} : vector<8x72xf32>, vector<72x80xf32>, vector<8x80xf32> -> vector<8x80xf32>
    %270 = vector.broadcast %35 : vector<8x1xf32> to vector<8x80xf32>
    %271 = arith.addf %269, %270 : vector<8x80xf32>
    %cst_149 = arith.constant 0.000000e+00 : f32
    %272 = vector.shape_cast %46 : vector<1x80xi1> to vector<1x80xi1>
    %273 = vector.broadcast %272 : vector<1x80xi1> to vector<8x80xi1>
    %274 = vector.broadcast %cst_149 : f32 to vector<8x80xf32>
    %275 = arith.select %273, %271, %274 : vector<8x80xi1>, vector<8x80xf32>
    %c0_150 = arith.constant 0 : index
    %c18_151 = arith.constant 18 : index
    %276 = vector.load %arg15[%c0_150, %c18_151] : memref<8x118xf32, #tpu.memory_space<vmem>>, vector<8x80xf32>
    tpu.vector_store %arg15[%c0_150, %c18_151], %275 {strides = array<i32>} : memref<8x118xf32, #tpu.memory_space<vmem>>, vector<8x80xf32>,
    %c0_152 = arith.constant 0 : index
    %c0_153 = arith.constant 0 : index
    %277 = vector.load %arg15[%c0_152, %c0_153] : memref<8x118xf32, #tpu.memory_space<vmem>>, vector<8x118xf32>
    %cst_154 = arith.constant 0.000000e+00 : f32
    %278 = vector.broadcast %cst_154 : f32 to vector<8x118xf32>
    %279 = arith.maximumf %277, %278 : vector<8x118xf32>
    %280 = vector.extract_strided_slice %279 {offsets = [0, 7], sizes = [8, 80], strides = [1, 1]} : vector<8x118xf32> to vector<8x80xf32>
    %281 = vector.extract_strided_slice %279 {offsets = [0, 8], sizes = [8, 80], strides = [1, 1]} : vector<8x118xf32> to vector<8x80xf32>
    %282 = vector.extract_strided_slice %279 {offsets = [0, 9], sizes = [8, 80], strides = [1, 1]} : vector<8x118xf32> to vector<8x80xf32>
    %283 = vector.extract_strided_slice %279 {offsets = [0, 17], sizes = [8, 80], strides = [1, 1]} : vector<8x118xf32> to vector<8x80xf32>
    %284 = vector.extract_strided_slice %279 {offsets = [0, 18], sizes = [8, 80], strides = [1, 1]} : vector<8x118xf32> to vector<8x80xf32>
    %285 = vector.extract_strided_slice %279 {offsets = [0, 19], sizes = [8, 80], strides = [1, 1]} : vector<8x118xf32> to vector<8x80xf32>
    %286 = vector.extract_strided_slice %279 {offsets = [0, 27], sizes = [8, 80], strides = [1, 1]} : vector<8x118xf32> to vector<8x80xf32>
    %287 = vector.extract_strided_slice %279 {offsets = [0, 28], sizes = [8, 80], strides = [1, 1]} : vector<8x118xf32> to vector<8x80xf32>
    %288 = vector.extract_strided_slice %279 {offsets = [0, 29], sizes = [8, 80], strides = [1, 1]} : vector<8x118xf32> to vector<8x80xf32>
    %289 = tpu.concatenate %280, %281, %282, %283, %284, %285, %286, %287, %288 in 0 : vector<8x80xf32>, vector<8x80xf32>, vector<8x80xf32>, vector<8x80xf32>, vector<8x80xf32>, vector<8x80xf32>, vector<8x80xf32>, vector<8x80xf32>, vector<8x80xf32> -> vector<72x80xf32>
    %cst_155 = arith.constant dense<0.000000e+00> : vector<8x80xf32>
    %290 = tpu.matmul %29, %289, %cst_155 {dimension_numbers = #tpu.dot_dimension_numbers<[1], [0], [0], [1], [0, 0, 1, 1], [], []>, precision = #tpu.contract_precision<fp32>} : vector<8x72xf32>, vector<72x80xf32>, vector<8x80xf32> -> vector<8x80xf32>
    %291 = vector.broadcast %37 : vector<8x1xf32> to vector<8x80xf32>
    %292 = arith.addf %290, %291 : vector<8x80xf32>
    %cst_156 = arith.constant 0.000000e+00 : f32
    %293 = vector.shape_cast %46 : vector<1x80xi1> to vector<1x80xi1>
    %294 = vector.broadcast %293 : vector<1x80xi1> to vector<8x80xi1>
    %295 = vector.broadcast %cst_156 : f32 to vector<8x80xf32>
    %296 = arith.select %294, %292, %295 : vector<8x80xi1>, vector<8x80xf32>
    %c0_157 = arith.constant 0 : index
    %c18_158 = arith.constant 18 : index
    %297 = vector.load %arg16[%c0_157, %c18_158] : memref<8x118xf32, #tpu.memory_space<vmem>>, vector<8x80xf32>
    %298 = arith.addf %296, %297 : vector<8x80xf32>
    %cst_159 = arith.constant dense<0.000000e+00> : vector<8x64xf32>
    %299 = tpu.matmul %298, %40, %cst_159 {dimension_numbers = #tpu.dot_dimension_numbers<[1], [0], [0], [1], [0, 0, 1, 1], [], []>, precision = #tpu.contract_precision<fp32>} : vector<8x80xf32>, vector<80x64xf32>, vector<8x64xf32> -> vector<8x64xf32>
    %c1_160 = arith.constant 1 : index
    %c0_161 = arith.constant 0 : index
    %c0_162 = arith.constant 0 : index
    %300 = vector.load %arg11[%c1_160, %c0_161, %c0_162] : memref<2x8x64xf32, #tpu.memory_space<vmem>>, vector<1x8x64xf32>
    %301 = vector.shape_cast %300 : vector<1x8x64xf32> to vector<8x64xf32>
    %302 = vector.shape_cast %299 : vector<8x64xf32> to vector<1x8x64xf32>
    tpu.vector_store %arg11[%c1_160, %c0_161, %c0_162], %302 {strides = array<i32>} : memref<2x8x64xf32, #tpu.memory_space<vmem>>, vector<1x8x64xf32>,
    return
  }
  func.func @transform_0(%arg0: i32) -> (i32, i32, i32) {
    %c0_i32 = arith.constant 0 : i32
    %c0_i32_0 = arith.constant 0 : i32
    %c0_i32_1 = arith.constant 0 : i32
    return %arg0, %c0_i32, %c0_i32_0 : i32, i32, i32
  }
  func.func @transform_1(%arg0: i32) -> (i32, i32) {
    %c0_i32 = arith.constant 0 : i32
    %c0_i32_0 = arith.constant 0 : i32
    %c0_i32_1 = arith.constant 0 : i32
    return %c0_i32, %c0_i32_0 : i32, i32
  }
  func.func @transform_2(%arg0: i32) -> (i32, i32) {
    %c0_i32 = arith.constant 0 : i32
    %c0_i32_0 = arith.constant 0 : i32
    %c0_i32_1 = arith.constant 0 : i32
    return %c0_i32, %c0_i32_0 : i32, i32
  }
  func.func @transform_3(%arg0: i32) -> (i32, i32, i32) {
    %c0_i32 = arith.constant 0 : i32
    %c0_i32_0 = arith.constant 0 : i32
    %c0_i32_1 = arith.constant 0 : i32
    %c0_i32_2 = arith.constant 0 : i32
    return %c0_i32, %c0_i32_0, %c0_i32_1 : i32, i32, i32
  }
  func.func @transform_4(%arg0: i32) -> (i32, i32, i32) {
    %c0_i32 = arith.constant 0 : i32
    %c0_i32_0 = arith.constant 0 : i32
    %c0_i32_1 = arith.constant 0 : i32
    %c0_i32_2 = arith.constant 0 : i32
    return %c0_i32, %c0_i32_0, %c0_i32_1 : i32, i32, i32
  }
  func.func @transform_5(%arg0: i32) -> (i32, i32) {
    %c0_i32 = arith.constant 0 : i32
    %c0_i32_0 = arith.constant 0 : i32
    %c0_i32_1 = arith.constant 0 : i32
    return %c0_i32, %c0_i32_0 : i32, i32
  }
  func.func @transform_6(%arg0: i32) -> (i32, i32) {
    %c0_i32 = arith.constant 0 : i32
    %c0_i32_0 = arith.constant 0 : i32
    %c0_i32_1 = arith.constant 0 : i32
    return %c0_i32, %c0_i32_0 : i32, i32
  }
  func.func @transform_7(%arg0: i32) -> (i32, i32) {
    %c0_i32 = arith.constant 0 : i32
    %c0_i32_0 = arith.constant 0 : i32
    %c0_i32_1 = arith.constant 0 : i32
    return %c0_i32, %c0_i32_0 : i32, i32
  }
  func.func @transform_8(%arg0: i32) -> (i32, i32) {
    %c0_i32 = arith.constant 0 : i32
    %c0_i32_0 = arith.constant 0 : i32
    %c0_i32_1 = arith.constant 0 : i32
    return %c0_i32, %c0_i32_0 : i32, i32
  }
  func.func @transform_9(%arg0: i32) -> (i32, i32) {
    %c0_i32 = arith.constant 0 : i32
    %c0_i32_0 = arith.constant 0 : i32
    %c0_i32_1 = arith.constant 0 : i32
    return %c0_i32, %c0_i32_0 : i32, i32
  }
  func.func @transform_10(%arg0: i32) -> (i32, i32, i32) {
    %c0_i32 = arith.constant 0 : i32
    %c0_i32_0 = arith.constant 0 : i32
    %c0_i32_1 = arith.constant 0 : i32
    return %arg0, %c0_i32, %c0_i32_0 : i32, i32, i32
  }
}

</mosaic_0001>

<bundles_post_ra>
// kernel: conv_sequence.1
= control target key start
LH: loop header
LB: loop body
LE: loop exit
PB: predicated region body
PF: predicated region fallthrough
CT: control target
= control target key end

     0   :  { %s22276_s13 = smov 0   ;;  %s28783_s0 = inlined_call_operand.vmem [shape: f32[4,4,256], index: 0, kind: input, shape index: {}]   ;;  %s28784_s1 = inlined_call_operand.vmem [shape: f32[8,36], index: 1, kind: input, shape index: {}]   ;;  %s28785_s2 = inlined_call_operand.vmem [shape: f32[8,1], index: 2, kind: input, shape index: {}]   ;;  %s28786_s3 = inlined_call_operand.vmem [shape: f32[4,8,72], index: 3, kind: input, shape index: {}]   ;;  %s28787_s4 = inlined_call_operand.vmem [shape: f32[4,8,1], index: 4, kind: input, shape index: {}]   ;;  %s28788_s5 = inlined_call_operand.vmem [shape: f32[256,288], index: 5, kind: input, shape index: {}]   ;;  %s28789_s6 = inlined_call_operand.vmem [shape: f32[275,80], index: 6, kind: input, shape index: {}]   ;;  %s28790_s7 = inlined_call_operand.vmem [shape: f32[80,64], index: 7, kind: input, shape index: {}]   ;;  %s28791_s8 = inlined_call_operand.vmem [shape: f32[1,288], index: 8, kind: input, shape index: {}]   ;;  %s28792_s9 = inlined_call_operand.vmem [shape: f32[1,80], index: 9, kind: input, shape index: {}]   ;;  %s28793_s10 = inlined_call_operand.vmem [shape: f32[4,8,64], index: 10, kind: output, shape index: {}]  }
   0x1 LB: > { %s16321_s14 = sadd.s32 4294967295, %s22198_s13   ;;  %p16325_p0 = scmp.ge.s32.totalorder %s22198_s13, 1  ;;  %s22198_s13 = sphi %s22276_s13, %s20_s13  }
   0x2   : > { %p314_p1 = scmp.lt.s32.totalorder %s22198_s13, 3 }
   0x4   : > { %p315_p2 = pnand %p16325_p0, %p314_p1 }
   0x6   : > { %318 = sbr.rel (%p315_p2) target bundleno = 9824 (0x2660), region = 60 }
   0xd   : > { %v399_v0 = vld [vmem:[%s28788_s5 + $0x8] sm:$0xff]  ;;  %v402_v1 = vld [vmem:[%s28788_s5 + $0x20] sm:$0xff]  ;;  %v401_v5 = vld [vmem:[%s28788_s5 + $0x18] sm:$0xff]  ;;  %s23157_s15 = sshll.u32 %s16321_s14, 1  ;;  %vm366_vm0 = vcmask 207872   ;;  %vm368_vm1 = vcmask 765392  }
   0xe   : > { %v398_v2 = vld [vmem:[%s28788_s5] sm:$0xff]  ;;  %v547_v3 = vand.u32 4294901760, %v399_v0  ;;  %v551_v4 = vand.u32 4294901760, %v402_v1  ;;  %v405_v7 = vld [vmem:[%s28788_s5 + $0x38] sm:$0xff]  ;;  %v408_v8 = vld [vmem:[%s28788_s5 + $0x50] sm:$0xff]  ;;  %v553_v9 = vand.u32 4294901760, %v401_v5 }
   0xf   : > { %v549_v6 = vand.u32 4294901760, %v398_v2  ;;  %v555_v10 = vand.u32 4294901760, %v405_v7  ;;  %v559_v11 = vand.u32 4294901760, %v408_v8  ;;  %v404_v12 = vld [vmem:[%s28788_s5 + $0x30] sm:$0xff]  ;;  %v407_v13 = vld [vmem:[%s28788_s5 + $0x48] sm:$0xff]  ;;  %v22318_v18 = vld [vmem:[%s28788_s5 + $0x80] sm:$0xff] }
  0x10   : > { %v22311_v14 = vld [vmem:[%s28788_s5 + $0x68] sm:$0xff]  ;;  %v22313_v15 = vpack.c.bf16 %v551_v4, %v547_v3  ;;  %v557_v16 = vand.u32 4294901760, %v404_v12  ;;  %v561_v17 = vand.u32 4294901760, %v407_v13  ;;  %v22324_v20 = vld [vmem:[%s28788_s5 + $0x60] sm:$0xff]  ;;  %v22329_v21 = vld [vmem:[%s28788_s5 + $0x78] sm:$0xff]  ;;  %v567_v24 = vand.u32 4294901760, %v22318_v18 }
  0x11   : > { %v563_v19 = vand.u32 4294901760, %v22311_v14  ;;  %v22331_v22 = vpack.c.bf16 %v553_v9, %v549_v6  ;;  %v22333_v23 = vpack.c.bf16 %v559_v11, %v555_v10  ;;  %v22336_v25 = vsub.f32 %v399_v0, %v547_v3  ;;  %v22341_v26 = vld [vmem:[%s28788_s5 + $0x98] sm:$0xff]  ;;  %v22346_v27 = vld [vmem:[%s28788_s5 + $0xb0] sm:$0xff]  ;;  %v22392_v45 = vld [vmem:[%s28788_s5 + $0xa8] sm:$0xff]  ;;  %p354_p3 = scmp.lt.s32.totalorder %s23157_s15, 3  ;;  %s22201_s21 = smov 26  }
  0x12   : > { %29518 = vst [vmem:[#allocation7_spill] sm:$0xff] %v22313_v15  ;;  %19463 = vmatprep.subr.bf16.mxu1 %v22313_v15  ;;  %v22349_v28 = vpack.c.bf16 %v561_v17, %v557_v16  ;;  %v22351_v29 = vsub.f32 %v402_v1, %v551_v4  ;;  %v565_v30 = vand.u32 4294901760, %v22324_v20  ;;  %v569_v31 = vand.u32 4294901760, %v22329_v21  ;;  %v22370_v36 = vld [vmem:[%s28788_s5 + $0x90] sm:$0xff]  ;;  %v22422_v58 = vld [vmem:[%s28788_s5 + $0xc8] sm:$0xff]  ;;  %v22432_v63 = vld [vmem:[%s28788_s5 + $0xe0] sm:$0xff] }
  0x13   : > { %29519 = vst [vmem:[#allocation8_spill] sm:$0xff] %v22331_v22  ;;  %29520 = vst [vmem:[#allocation9_spill] sm:$0xff] %v22333_v23  ;;  %19465 = vmatpush1.bf16.msra.mxu1 %v22331_v22  ;;  %v22360_v32 = vpack.c.bf16 %v567_v24, %v563_v19  ;;  %v28807_v33 = vand.u32 4294901760, %v22336_v25  ;;  %v22363_v34 = vsub.f32 %v398_v2, %v549_v6  ;;  %v571_v39 = vand.u32 4294901760, %v22341_v26  ;;  %v22449_v4 = vld [vmem:[%s28788_s5 + $0xc0] sm:$0xff]  ;;  %s30878_s15 = smov (!%p354_p3, %s23157_s15), 3 }
  0x14   : > { %29521 = vst [vmem:[#allocation10_spill] sm:$0xff] %v22336_v25  ;;  %29522 = vst [vmem:[#allocation11_spill] sm:$0xff] %v22349_v28  ;;  %v22365_v35 = vsub.f32 %v401_v5, %v553_v9  ;;  %19467 = vmatprep.subr.bf16.mxu1 %v22333_v23  ;;  %v28806_v37 = vand.u32 4294901760, %v22351_v29  ;;  %v22378_v38 = vpack.c.bf16 %v569_v31, %v565_v30  ;;  %v575_v40 = vand.u32 4294901760, %v22346_v27  ;;  %v22454_v5 = vld [vmem:[%s28788_s5 + $0xd8] sm:$0xff]  ;;  %s16341_s11 = sshll.u32 %s30878_s15, 3 }
  0x15   : > { %29523 = vst [vmem:[#allocation12_spill] sm:$0xff] %v22351_v29  ;;  %29524 = vst [vmem:[#allocation13_spill] sm:$0xff] %v22360_v32  ;;  %v695_v41 = vsub.f32 %v22336_v25, %v28807_v33  ;;  %v28803_v42 = vand.u32 4294901760, %v22363_v34  ;;  %v22387_v44 = vsub.f32 %v405_v7, %v555_v10  ;;  %v22403_v48 = vsub.f32 %v408_v8, %v559_v11  ;;  %s23360_s20 = scalar_lea.vmem %s28783_s0, %s16341_s11  ;;  %s22202_s22 = smov 110  }
  0x16   : > { %29525 = vst [vmem:[#allocation14_spill] sm:$0xff] %v22363_v34  ;;  %29526 = vst [vmem:[#allocation15_spill] sm:$0xff] %v22365_v35  ;;  %v28802_v43 = vand.u32 4294901760, %v22365_v35  ;;  %v707_v46 = vsub.f32 %v22351_v29, %v28806_v37  ;;  %v22401_v47 = vpack.c.bf16 %v575_v40, %v571_v39  ;;  %v573_v49 = vand.u32 4294901760, %v22370_v36  ;;  %s22203_s23 = smov 127   ;;  %s29389_s24 = smov 109  }
  0x17   : > { %29527 = vst [vmem:[#allocation16_spill] sm:$0xff] %v22378_v38  ;;  %29528 = vst [vmem:[#allocation17_spill] sm:$0xff] %v22387_v44  ;;  %19469 = vmatpush1.bf16.msra.mxu1 %v22349_v28  ;;  %v696_v50 = vand.u32 4294901760, %v695_v41  ;;  %v701_v51 = vsub.f32 %v22363_v34, %v28803_v42  ;;  %v28801_v53 = vand.u32 4294901760, %v22387_v44  ;;  %v28800_v55 = vand.u32 4294901760, %v22403_v48  ;;  %s22205_s25 = smov 126  }
  0x18   : > { %29529 = vst [vmem:[#allocation18_spill] sm:$0xff] %v22401_v47  ;;  %29530 = vst [vmem:[#allocation19_spill] sm:$0xff] %v22403_v48  ;;  %v713_v52 = vsub.f32 %v22365_v35, %v28802_v43  ;;  %19471 = vmatprep.subr.bf16.mxu1 %v22360_v32  ;;  %v708_v54 = vand.u32 4294901760, %v707_v46  ;;  %v577_v56 = vand.u32 4294901760, %v22392_v45  ;;  %v22417_v57 = vsub.f32 %v404_v12, %v557_v16  ;;  %s29387_s26 = smov 92   ;;  %s22207_s27 = smov 108  }
  0x19   : > { %v702_v59 = vand.u32 4294901760, %v701_v51  ;;  %v719_v61 = vsub.f32 %v22387_v44, %v28801_v53  ;;  %v22427_v62 = vsub.f32 %v407_v13, %v561_v17  ;;  %v731_v1 = vsub.f32 %v22403_v48, %v28800_v55  ;;  %s29247_s28 = smov 91   ;;  %s29245_s29 = smov 90  }
  0x1a   : > { %29531 = vst [vmem:[#allocation20_spill] sm:$0xff] %v22417_v57  ;;  %v714_v60 = vand.u32 4294901760, %v713_v52  ;;  %v22434_v0 = vpack.c.bf16 %v708_v54, %v696_v50  ;;  %v22443_v2 = vpack.c.bf16 %v577_v56, %v573_v49  ;;  %v28797_v3 = vand.u32 4294901760, %v22417_v57  ;;  %s22210_s30 = smov 121   ;;  %s22215_s18 = smov 18  }
  0x1b   : > { %29532 = vst [vmem:[#allocation21_spill] sm:$0xff] %v22427_v62  ;;  %19473 = vmatpush1.bf16.msra.mxu1 %v22378_v38  ;;  %v720_v7 = vand.u32 4294901760, %v719_v61  ;;  %v28796_v8 = vand.u32 4294901760, %v22427_v62  ;;  %v579_v9 = vand.u32 4294901760, %v22422_v58  ;;  %v732_v10 = vand.u32 4294901760, %v731_v1  ;;  %s22216_s19 = smov 117  }
  0x1c   : > { %29533 = vst [vmem:[#allocation22_spill] sm:$0xff] %v22434_v0  ;;  %29534 = vst [vmem:[#allocation23_spill] sm:$0xff] %v22443_v2  ;;  %v22457_v6 = vpack.c.bf16 %v714_v60, %v702_v59  ;;  %19527 = vmatprep.subr.bf16.mxu0 %v22434_v0  ;;  %19475 = vmatprep.subr.bf16.mxu1 %v22401_v47  ;;  %v725_v11 = vsub.f32 %v22417_v57, %v28797_v3  ;;  %v583_v12 = vand.u32 4294901760, %v22432_v63  ;;  %vm2706_vm2 = vcmask 1043664   ;;  %s22217_s12 = smov 118   ;;  %s29455_s16 = smov 116  }
  0x1d   : > { %v22470_v13 = vsub.f32 %v22311_v14, %v563_v19  ;;  %v737_v16 = vsub.f32 %v22427_v62, %v28796_v8  ;;  %v22479_v17 = vsub.f32 %v22318_v18, %v567_v24  ;;  %v581_v41 = vand.u32 4294901760, %v22449_v4  ;;  %v22486_v14 = vld [vmem:[%s28788_s5 + $0xf8] sm:$0xff]  ;;  %v22491_v19 = vld [vmem:[%s28788_s5 + $0x110] sm:$0xff]  ;;  %s29453_s14 = smov 106   ;;  %s29451_s17 = smov 107  }
  0x1e   : > { %29535 = vst [vmem:[#allocation24_spill] sm:$0xff] %v22457_v6  ;;  %19529 = vmatpush1.bf16.msra.mxu0 %v22457_v6  ;;  %v585_v46 = vand.u32 4294901760, %v22454_v5  ;;  %v22493_v50 = vpack.c.bf16 %v732_v10, %v720_v7  ;;  %v726_v51 = vand.u32 4294901760, %v725_v11  ;;  %v22499_v18 = vpack.c.bf16 %v583_v12, %v579_v9  ;;  %s30733_s15 = smov 109  }
  0x1f   : > { %29536 = vst [vmem:[#allocation25_spill] sm:$0xff] %v22470_v13  ;;  %29537 = vst [vmem:[#allocation26_spill] sm:$0xff] %v22479_v17  ;;  %v28794_v24 = vand.u32 4294901760, %v22470_v13  ;;  %19477 = vmatpush1.bf16.msra.mxu1 %v22443_v2  ;;  %v738_v52 = vand.u32 4294901760, %v737_v16  ;;  %v28795_v54 = vand.u32 4294901760, %v22479_v17  ;;  %v22513_v60 = vsub.f32 %v22324_v20, %v565_v30  ;;  %v22530_v20 = vld [vmem:[%s28788_s5 + $0xf0] sm:$0xff] }
  0x20   : > { %29538 = vst [vmem:[#allocation27_spill] sm:$0xff] %v22493_v50  ;;  %29539 = vst [vmem:[#allocation28_spill] sm:$0xff] %v22499_v18  ;;  %v22508_v59 = vpack.c.bf16 %v585_v46, %v581_v41  ;;  %19531 = vmatprep.subr.bf16.mxu0 %v22493_v50  ;;  %19479 = vmatprep.subr.bf16.mxu1 %v22499_v18  ;;  %v22523_v1 = vsub.f32 %v22329_v21, %v569_v31  ;;  %v28818_v7 = vand.u32 4294901760, %v22486_v14  ;;  %v22546_v31 = vld [vmem:[%s28788_s5 + $0x108] sm:$0xff]  ;;  %vm2707_vm3 = vcmask 1047556  }
  0x21   : > { %29541 = vst [vmem:[#allocation30_spill] sm:$0xff] %v22513_v60  ;;  %v743_v61 = vsub.f32 %v22470_v13, %v28794_v24  ;;  %v28814_v10 = vand.u32 4294901760, %v22491_v19  ;;  %v22532_v30 = vpack.c.bf16 %v738_v52, %v726_v51  ;;  %v755_v11 = vsub.f32 %v22479_v17, %v28795_v54  ;;  %vm24865_vm5 = vmor %vm2707_vm3, %vm2706_vm2 }
  0x22   : > { %29540 = vst [vmem:[#allocation29_spill] sm:$0xff] %v22508_v59  ;;  %29542 = vst [vmem:[#allocation31_spill] sm:$0xff] %v22523_v1  ;;  %v28798_v16 = vand.u32 4294901760, %v22513_v60  ;;  %v22541_v21 = vsub.f32 %v22341_v26, %v571_v39  ;;  %v28799_v51 = vand.u32 4294901760, %v22523_v1  ;;  %v22558_v54 = vsub.f32 %v22346_v27, %v575_v40 }
  0x23   : > { %29543 = vst [vmem:[#allocation32_spill] sm:$0xff] %v22532_v30  ;;  %v744_v24 = vand.u32 4294901760, %v743_v61  ;;  %v22553_v52 = vpack.c.bf16 %v28814_v10, %v28818_v7  ;;  %19533 = vmatpush1.bf16.msra.mxu0 %v22532_v30  ;;  %v756_v26 = vand.u32 4294901760, %v755_v11  ;;  %19481 = vmatpush1.bf16.msra.mxu1 %v22508_v59  ;;  %v28809_v8 = vand.u32 4294901760, %v22530_v20 }
  0x24   : > { %29544 = vst [vmem:[#allocation33_spill] sm:$0xff] %v22541_v21  ;;  %29546 = vst [vmem:[#allocation35_spill] sm:$0xff] %v22558_v54  ;;  %v749_v39 = vsub.f32 %v22513_v60, %v28798_v16  ;;  %v28805_v61 = vand.u32 4294901760, %v22541_v21  ;;  %v761_v3 = vsub.f32 %v22523_v1, %v28799_v51  ;;  %v28804_v27 = vand.u32 4294901760, %v22558_v54  ;;  %v22581_v16 = vld [vmem:[%s28788_s5 + $0x128] sm:$0xff]  ;;  %v22586_v51 = vld [vmem:[%s28788_s5 + $0x140] sm:$0xff] }
  0x25   : > { %29545 = vst [vmem:[#allocation34_spill] sm:$0xff] %v22553_v52  ;;  %19483 = vmatprep.subr.bf16.mxu1 %v22553_v52  ;;  %v28808_v40 = vand.u32 4294901760, %v22546_v31  ;;  %v22576_v11 = vsub.f32 %v22370_v36, %v573_v49  ;;  %v22588_v55 = vpack.c.bf16 %v756_v26, %v744_v24  ;;  %v22596_v36 = vsub.f32 %v22392_v45, %v577_v56 }
  0x26   : > { %v750_v53 = vand.u32 4294901760, %v749_v39  ;;  %v767_v43 = vsub.f32 %v22541_v21, %v28805_v61  ;;  %v762_v49 = vand.u32 4294901760, %v761_v3  ;;  %v779_v42 = vsub.f32 %v22558_v54, %v28804_v27  ;;  %v22611_v39 = vld [vmem:[%s28788_s5 + $0x120] sm:$0xff]  ;;  %v22620_v61 = vld [vmem:[%s28788_s5 + $0x138] sm:$0xff] }
  0x27   : > { %29547 = vst [vmem:[#allocation36_spill] sm:$0xff] %v22576_v11  ;;  %29548 = vst [vmem:[#allocation37_spill] sm:$0xff] %v22588_v55  ;;  %v22605_v24 = vpack.c.bf16 %v28808_v40, %v28809_v8  ;;  %v28811_v26 = vand.u32 4294901760, %v22576_v11  ;;  %19535 = vmatprep.subr.bf16.mxu0 %v22588_v55  ;;  %v28810_v56 = vand.u32 4294901760, %v22596_v36  ;;  %v28813_v3 = vand.u32 4294901760, %v22581_v16 }
  0x28   : > { %29549 = vst [vmem:[#allocation38_spill] sm:$0xff] %v22596_v36  ;;  %v768_v45 = vand.u32 4294901760, %v767_v43  ;;  %v28812_v27 = vand.u32 4294901760, %v22586_v51  ;;  %v22622_v37 = vpack.c.bf16 %v762_v49, %v750_v53  ;;  %v780_v33 = vand.u32 4294901760, %v779_v42 }
  0x29   : > { %29550 = vst [vmem:[#allocation39_spill] sm:$0xff] %v22605_v24  ;;  %19485 = vmatpush1.bf16.msra.mxu1 %v22605_v24  ;;  %v773_v43 = vsub.f32 %v22576_v11, %v28811_v26  ;;  %v22631_v40 = vsub.f32 %v22422_v58, %v579_v9  ;;  %v785_v8 = vsub.f32 %v22596_v36, %v28810_v56  ;;  %v28817_v49 = vand.u32 4294901760, %v22611_v39  ;;  %v22651_v58 = vld [vmem:[%s28788_s5 + $0x158] sm:$0xff]  ;;  %v22656_v9 = vld [vmem:[%s28788_s5 + $0x170] sm:$0xff] }
  0x2a   : > { %29551 = vst [vmem:[#allocation40_spill] sm:$0xff] %v22622_v37  ;;  %v22640_v42 = vpack.c.bf16 %v28812_v27, %v28813_v3  ;;  %v22645_v53 = vsub.f32 %v22432_v63, %v583_v12  ;;  %19537 = vmatpush1.bf16.msra.mxu0 %v22622_v37  ;;  %v22659_v56 = vpack.c.bf16 %v780_v33, %v768_v45  ;;  %v28816_v12 = vand.u32 4294901760, %v22620_v61 }
  0x2b   : > { %29552 = vst [vmem:[#allocation41_spill] sm:$0xff] %v22631_v40  ;;  %v774_v26 = vand.u32 4294901760, %v773_v43  ;;  %v28815_v63 = vand.u32 4294901760, %v22631_v40  ;;  %v786_v27 = vand.u32 4294901760, %v785_v8  ;;  %v22668_v10 = vsub.f32 %v22449_v4, %v581_v41 }
  0x2c   : > { %29553 = vst [vmem:[#allocation42_spill] sm:$0xff] %v22640_v42  ;;  %29554 = vst [vmem:[#allocation43_spill] sm:$0xff] %v22645_v53  ;;  %19487 = vmatprep.subr.bf16.mxu1 %v22640_v42  ;;  %v28819_v3 = vand.u32 4294901760, %v22645_v53  ;;  %v22673_v33 = vsub.f32 %v22454_v5, %v585_v46  ;;  %19539 = vmatprep.subr.bf16.mxu0 %v22659_v56  ;;  %v22683_v45 = vpack.c.bf16 %v28816_v12, %v28817_v49  ;;  %v22690_v5 = vld [vmem:[%s28788_s5 + $0x150] sm:$0xff]  ;;  %v22702_v49 = vld [vmem:[%s28788_s5 + $0x168] sm:$0xff]  ;;  %vm370_vm4 = vcmask 211968  }
  0x2d   : > { %29555 = vst [vmem:[#allocation44_spill] sm:$0xff] %v22659_v56  ;;  %29556 = vst [vmem:[#allocation45_spill] sm:$0xff] %v22668_v10  ;;  %v791_v8 = vsub.f32 %v22631_v40, %v28815_v63  ;;  %v28823_v4 = vand.u32 4294901760, %v22651_v58  ;;  %v28822_v41 = vand.u32 4294901760, %v22656_v9  ;;  %v22692_v46 = vpack.c.bf16 %v786_v27, %v774_v26 }
  0x2e   : > { %29557 = vst [vmem:[#allocation46_spill] sm:$0xff] %v22673_v33  ;;  %29558 = vst [vmem:[#allocation47_spill] sm:$0xff] %v22683_v45  ;;  %v803_v43 = vsub.f32 %v22645_v53, %v28819_v3  ;;  %19489 = vmatpush1.bf16.msra.mxu1 %v22683_v45  ;;  %v29561_v26 = vand.u32 4294901760, %v22486_v14  ;;  %v29563_v12 = vand.u32 4294901760, %v22491_v19  ;;  %v29565_v56 = vand.u32 4294901760, %v22668_v10 }
  0x2f   : > { %29559 = vst [vmem:[#allocation48_spill] sm:$0xff] %v22692_v46  ;;  %v792_v7 = vand.u32 4294901760, %v791_v8  ;;  %v22709_v27 = vpack.c.bf16 %v28822_v41, %v28823_v4  ;;  %19541 = vmatpush1.bf16.msra.mxu0 %v22692_v46  ;;  %v29566_v41 = vand.u32 4294901760, %v22673_v33  ;;  %v29574_v6 = vand.u32 4294901760, %v22690_v5 }
  0x30   : > { %v22714_v3 = vsub.f32 %v22486_v14, %v29561_v26  ;;  %v22719_v63 = vsub.f32 %v22491_v19, %v29563_v12  ;;  %v804_v8 = vand.u32 4294901760, %v803_v43  ;;  %v797_v37 = vsub.f32 %v22668_v10, %v29565_v56  ;;  %v22741_v56 = vld [vmem:[%s28788_s5 + $0x188] sm:$0xff] }
  0x31   : > { %29560 = vst [vmem:[#allocation49_spill] sm:$0xff] %v22709_v27  ;;  %v809_v4 = vsub.f32 %v22673_v33, %v29566_v41  ;;  %19491 = vmatprep.subr.bf16.mxu1 %v22709_v27  ;;  %v29567_v43 = vand.u32 4294901760, %v22530_v20  ;;  %v22746_v41 = vld [vmem:[%s28788_s5 + $0x1a0] sm:$0xff]  ;;  %v29570_v12 = vand.u32 4294901760, %v22546_v31  ;;  %v29588_v27 = vand.u32 4294901760, %v22611_v39 }
  0x32   : > { %29562 = vst [vmem:[#allocation50_spill] sm:$0xff] %v22714_v3  ;;  %29564 = vst [vmem:[#allocation51_spill] sm:$0xff] %v22719_v63  ;;  %v22748_v55 = vpack.c.bf16 %v804_v8, %v792_v7  ;;  %v798_v19 = vand.u32 4294901760, %v797_v37  ;;  %v29573_v30 = vand.u32 4294901760, %v22719_v63  ;;  %v29575_v7 = vand.u32 4294901760, %v22702_v49 }
  0x33   : > { %v22736_v26 = vsub.f32 %v22530_v20, %v29567_v43  ;;  %v810_v14 = vand.u32 4294901760, %v809_v4  ;;  %v22753_v46 = vsub.f32 %v22546_v31, %v29570_v12  ;;  %v29572_v20 = vand.u32 4294901760, %v22714_v3  ;;  %v22771_v31 = vld [vmem:[%s28788_s5 + $0x180] sm:$0xff] }
  0x34   : > { %29569 = vst [vmem:[#allocation53_spill] sm:$0xff] %v22748_v55  ;;  %v827_v50 = vsub.f32 %v22719_v63, %v29573_v30  ;;  %v22765_v8 = vpack.c.bf16 %v29575_v7, %v29574_v6  ;;  %19543 = vmatprep.subr.bf16.mxu0 %v22748_v55  ;;  %v22782_v6 = vld [vmem:[%s28788_s5 + $0x198] sm:$0xff]  ;;  %v22828_v45 = vsub.f32 %v22611_v39, %v29588_v27  ;;  %v29590_v42 = vand.u32 4294901760, %v22620_v61 }
  0x35   : > { %29568 = vst [vmem:[#allocation52_spill] sm:$0xff] %v22736_v26  ;;  %29571 = vst [vmem:[#allocation54_spill] sm:$0xff] %v22753_v46  ;;  %v815_v43 = vsub.f32 %v22714_v3, %v29572_v20  ;;  %v22774_v4 = vpack.c.bf16 %v810_v14, %v798_v19  ;;  %v29578_v0 = vand.u32 4294901760, %v22736_v26  ;;  %v29579_v19 = vand.u32 4294901760, %v22581_v16 }
  0x36   : > { %29576 = vst [vmem:[#allocation55_spill] sm:$0xff] %v22765_v8  ;;  %v828_v37 = vand.u32 4294901760, %v827_v50  ;;  %19493 = vmatpush1.bf16.msra.mxu1 %v22765_v8  ;;  %v29581_v20 = vand.u32 4294901760, %v22753_v46  ;;  %v29583_v50 = vand.u32 4294901760, %v22746_v41  ;;  %v29585_v8 = vand.u32 4294901760, %v22586_v51  ;;  %29589 = vst [vmem:[#allocation61_spill] sm:$0xff] %v22828_v45 }
  0x37   : > { %29577 = vst [vmem:[#allocation56_spill] sm:$0xff] %v22774_v4  ;;  %v816_v7 = vand.u32 4294901760, %v815_v43  ;;  %v821_v14 = vsub.f32 %v22736_v26, %v29578_v0  ;;  %v22791_v12 = vsub.f32 %v22581_v16, %v29579_v19  ;;  %19545 = vmatpush1.bf16.msra.mxu0 %v22774_v4  ;;  %v29582_v43 = vand.u32 4294901760, %v22741_v56  ;;  %v22812_v19 = vld [vmem:[%s28788_s5 + $0x1b8] sm:$0xff] }
  0x38   : > { %v833_v30 = vsub.f32 %v22753_v46, %v29581_v20  ;;  %v22806_v0 = vsub.f32 %v22586_v51, %v29585_v8  ;;  %v22817_v20 = vld [vmem:[%s28788_s5 + $0x1d0] sm:$0xff]  ;;  %v28842_v51 = vand.u32 4294901760, %v22782_v6  ;;  %v28850_v39 = vand.u32 4294901760, %v22812_v19 }
  0x39   : > { %29580 = vst [vmem:[#allocation57_spill] sm:$0xff] %v22791_v12  ;;  %v22801_v55 = vpack.c.bf16 %v29583_v50, %v29582_v43  ;;  %v22819_v4 = vpack.c.bf16 %v828_v37, %v816_v7  ;;  %v822_v43 = vand.u32 4294901760, %v821_v14  ;;  %v28840_v50 = vand.u32 4294901760, %v22791_v12 }
  0x3a   : > { %29586 = vst [vmem:[#allocation59_spill] sm:$0xff] %v22806_v0  ;;  %v834_v8 = vand.u32 4294901760, %v833_v30  ;;  %v28843_v16 = vand.u32 4294901760, %v22806_v0  ;;  %v22833_v37 = vsub.f32 %v22620_v61, %v29590_v42  ;;  %v29592_v7 = vand.u32 4294901760, %v22771_v31  ;;  %v22850_v61 = vld [vmem:[%s28788_s5 + $0x1b0] sm:$0xff] }
  0x3b   : > { %29584 = vst [vmem:[#allocation58_spill] sm:$0xff] %v22801_v55  ;;  %29587 = vst [vmem:[#allocation60_spill] sm:$0xff] %v22819_v4  ;;  %19495 = vmatprep.subr.bf16.mxu1 %v22801_v55  ;;  %19547 = vmatprep.subr.bf16.mxu0 %v22819_v4  ;;  %v839_v30 = vsub.f32 %v22791_v12, %v28840_v50  ;;  %v29610_v18 = vand.u32 4294901760, %v22850_v61  ;;  %v29624_v47 = vand.u32 4294901760, %v22771_v31  ;;  %v29626_v32 = vand.u32 4294901760, %v22782_v6 }
  0x3c   : > { %29591 = vst [vmem:[#allocation62_spill] sm:$0xff] %v22833_v37  ;;  %v22843_v14 = vpack.c.bf16 %v28842_v51, %v29592_v7  ;;  %v22852_v42 = vpack.c.bf16 %v834_v8, %v822_v43  ;;  %v851_v50 = vsub.f32 %v22806_v0, %v28843_v16  ;;  %v22862_v51 = vld [vmem:[%s28788_s5 + $0x1c8] sm:$0xff]  ;;  %v29595_v43 = vand.u32 4294901760, %v22817_v20 }
  0x3d   : > { %v840_v27 = vand.u32 4294901760, %v839_v30  ;;  %v29597_v16 = vand.u32 4294901760, %v22651_v58  ;;  %v29599_v7 = vand.u32 4294901760, %v22656_v9  ;;  %v22988_v38 = vsub.f32 %v22771_v31, %v29624_v47 }
  0x3e   : > { %29593 = vst [vmem:[#allocation63_spill] sm:$0xff] %v22843_v14  ;;  %29594 = vst [vmem:[#allocation64_spill] sm:$0xff] %v22852_v42  ;;  %19497 = vmatpush1.bf16.msra.mxu1 %v22843_v14  ;;  %v22869_v8 = vpack.c.bf16 %v29595_v43, %v28850_v39  ;;  %19549 = vmatpush1.bf16.msra.mxu0 %v22852_v42  ;;  %v852_v30 = vand.u32 4294901760, %v851_v50  ;;  %v29601_v14 = vand.u32 4294901760, %v22828_v45  ;;  %v29602_v43 = vand.u32 4294901760, %v22833_v37 }
  0x3f   : > { %v22874_v4 = vsub.f32 %v22651_v58, %v29597_v16  ;;  %v22879_v55 = vsub.f32 %v22656_v9, %v29599_v7  ;;  %v29603_v50 = vand.u32 4294901760, %v22690_v5  ;;  %v29606_v16 = vand.u32 4294901760, %v22702_v49  ;;  %29625 = vst [vmem:[#allocation77_spill] sm:$0xff] %v22988_v38 }
  0x40   : > { %29596 = vst [vmem:[#allocation65_spill] sm:$0xff] %v22869_v8  ;;  %v845_v24 = vsub.f32 %v22828_v45, %v29601_v14  ;;  %v857_v39 = vsub.f32 %v22833_v37, %v29602_v43  ;;  %19499 = vmatprep.subr.bf16.mxu1 %v22869_v8  ;;  %v22901_v14 = vld [vmem:[%s28788_s5 + $0x1e8] sm:$0xff]  ;;  %v22906_v43 = vld [vmem:[%s28788_s5 + $0x200] sm:$0xff]  ;;  %v22908_v52 = vpack.c.bf16 %v852_v30, %v840_v27  ;;  %v29611_v27 = vand.u32 4294901760, %v22862_v51 }
  0x41   : > { %29598 = vst [vmem:[#allocation66_spill] sm:$0xff] %v22874_v4  ;;  %29600 = vst [vmem:[#allocation67_spill] sm:$0xff] %v22879_v55  ;;  %v22896_v7 = vsub.f32 %v22690_v5, %v29603_v50  ;;  %v22913_v42 = vsub.f32 %v22702_v49, %v29606_v16  ;;  %v29608_v5 = vand.u32 4294901760, %v22874_v4  ;;  %v29609_v8 = vand.u32 4294901760, %v22879_v55  ;;  %v22931_v49 = vld [vmem:[%s28788_s5 + $0x1e0] sm:$0xff] }
  0x42   : > { %29605 = vst [vmem:[#allocation69_spill] sm:$0xff] %v22908_v52  ;;  %v846_v9 = vand.u32 4294901760, %v845_v24  ;;  %v858_v58 = vand.u32 4294901760, %v857_v39  ;;  %v22925_v30 = vpack.c.bf16 %v29611_v27, %v29610_v18  ;;  %19551 = vmatprep.subr.bf16.mxu0 %v22908_v52  ;;  %v22942_v18 = vld [vmem:[%s28788_s5 + $0x1f8] sm:$0xff]  ;;  %vm2710_vm6 = vcmask 470016  }
  0x43   : > { %29604 = vst [vmem:[#allocation68_spill] sm:$0xff] %v22896_v7  ;;  %29607 = vst [vmem:[#allocation70_spill] sm:$0xff] %v22913_v42  ;;  %v863_v50 = vsub.f32 %v22874_v4, %v29608_v5  ;;  %v875_v59 = vsub.f32 %v22879_v55, %v29609_v8  ;;  %v29614_v2 = vand.u32 4294901760, %v22896_v7  ;;  %v29617_v5 = vand.u32 4294901760, %v22913_v42 }
  0x44   : > { %29612 = vst [vmem:[#allocation71_spill] sm:$0xff] %v22925_v30  ;;  %v22934_v39 = vpack.c.bf16 %v858_v58, %v846_v9  ;;  %19501 = vmatpush1.bf16.msra.mxu1 %v22925_v30  ;;  %v29615_v9 = vand.u32 4294901760, %v22741_v56  ;;  %v29621_v30 = vand.u32 4294901760, %v22746_v41  ;;  %vm2726_vm7 = vcmask 1039360  }
  0x45   : > { %v864_v27 = vand.u32 4294901760, %v863_v50  ;;  %v876_v24 = vand.u32 4294901760, %v875_v59  ;;  %v869_v58 = vsub.f32 %v22896_v7, %v29614_v2  ;;  %v881_v8 = vsub.f32 %v22913_v42, %v29617_v5  ;;  %v22977_v5 = vld [vmem:[%s28788_s5 + $0x230] sm:$0xff] }
  0x46   : > { %29613 = vst [vmem:[#allocation72_spill] sm:$0xff] %v22934_v39  ;;  %v22951_v16 = vsub.f32 %v22741_v56, %v29615_v9  ;;  %19553 = vmatpush1.bf16.msra.mxu0 %v22934_v39  ;;  %v29618_v50 = vand.u32 4294901760, %v22901_v14  ;;  %v29619_v59 = vand.u32 4294901760, %v22906_v43  ;;  %v22966_v2 = vsub.f32 %v22746_v41, %v29621_v30  ;;  %v22972_v9 = vld [vmem:[%s28788_s5 + $0x218] sm:$0xff] }
  0x47   : > { %v22979_v39 = vpack.c.bf16 %v876_v24, %v864_v27  ;;  %v28874_v41 = vand.u32 4294901760, %v22942_v18  ;;  %v882_v30 = vand.u32 4294901760, %v881_v8  ;;  %v22993_v24 = vsub.f32 %v22782_v6, %v29626_v32  ;;  %v23010_v32 = vld [vmem:[%s28788_s5 + $0x210] sm:$0xff] }
  0x48   : > { %29616 = vst [vmem:[#allocation73_spill] sm:$0xff] %v22951_v16  ;;  %v22961_v52 = vpack.c.bf16 %v29619_v59, %v29618_v50  ;;  %29622 = vst [vmem:[#allocation75_spill] sm:$0xff] %v22966_v2  ;;  %v870_v50 = vand.u32 4294901760, %v869_v58  ;;  %v28872_v59 = vand.u32 4294901760, %v22951_v16  ;;  %v28875_v56 = vand.u32 4294901760, %v22966_v2 }
  0x49   : > { %29623 = vst [vmem:[#allocation76_spill] sm:$0xff] %v22979_v39  ;;  %29627 = vst [vmem:[#allocation78_spill] sm:$0xff] %v22993_v24  ;;  %19555 = vmatprep.subr.bf16.mxu0 %v22979_v39  ;;  %v29628_v27 = vand.u32 4294901760, %v22931_v49  ;;  %v28882_v47 = vand.u32 4294901760, %v22972_v9  ;;  %v29646_v15 = vand.u32 4294901760, %v23010_v32  ;;  %vm2813_vm8 = vcmask 1043456  }
  0x4a   : > { %29620 = vst [vmem:[#allocation74_spill] sm:$0xff] %v22961_v52  ;;  %19503 = vmatprep.subr.bf16.mxu1 %v22961_v52  ;;  %v887_v8 = vsub.f32 %v22951_v16, %v28872_v59  ;;  %v23012_v6 = vpack.c.bf16 %v882_v30, %v870_v50  ;;  %v899_v59 = vsub.f32 %v22966_v2, %v28875_v56  ;;  %v29631_v50 = vand.u32 4294901760, %v22977_v5 }
  0x4b   : > { %v23003_v58 = vpack.c.bf16 %v28874_v41, %v29628_v27  ;;  %v23022_v41 = vld [vmem:[%s28788_s5 + $0x228] sm:$0xff]  ;;  %v29633_v56 = vand.u32 4294901760, %v22812_v19  ;;  %v29635_v27 = vand.u32 4294901760, %v22817_v20  ;;  %vm2738_vm9 = vcmask 1031168  }
  0x4c   : > { %29630 = vst [vmem:[#allocation80_spill] sm:$0xff] %v23012_v6  ;;  %v888_v31 = vand.u32 4294901760, %v887_v8  ;;  %v23029_v30 = vpack.c.bf16 %v29631_v50, %v28882_v47  ;;  %19557 = vmatpush1.bf16.msra.mxu0 %v23012_v6  ;;  %v900_v8 = vand.u32 4294901760, %v899_v59  ;;  %v29638_v50 = vand.u32 4294901760, %v22993_v24 }
  0x4d   : > { %29629 = vst [vmem:[#allocation79_spill] sm:$0xff] %v23003_v58  ;;  %19505 = vmatpush1.bf16.msra.mxu1 %v23003_v58  ;;  %v23034_v39 = vsub.f32 %v22812_v19, %v29633_v56  ;;  %v23039_v52 = vsub.f32 %v22817_v20, %v29635_v27  ;;  %v29637_v58 = vand.u32 4294901760, %v22988_v38  ;;  %v29639_v59 = vand.u32 4294901760, %v22850_v61 }
  0x4e   : > { %29632 = vst [vmem:[#allocation81_spill] sm:$0xff] %v23029_v30  ;;  %v905_v47 = vsub.f32 %v22993_v24, %v29638_v50  ;;  %19507 = vmatprep.subr.bf16.mxu1 %v23029_v30  ;;  %v23066_v50 = vld [vmem:[%s28788_s5 + $0x260] sm:$0xff]  ;;  %v23068_v23 = vpack.c.bf16 %v900_v8, %v888_v31  ;;  %v29642_v56 = vand.u32 4294901760, %v22862_v51  ;;  %v29647_v31 = vand.u32 4294901760, %v23022_v41 }
  0x4f   : > { %29634 = vst [vmem:[#allocation82_spill] sm:$0xff] %v23034_v39  ;;  %29636 = vst [vmem:[#allocation83_spill] sm:$0xff] %v23039_v52  ;;  %v893_v28 = vsub.f32 %v22988_v38, %v29637_v58  ;;  %v23056_v27 = vsub.f32 %v22850_v61, %v29639_v59  ;;  %v23061_v58 = vld [vmem:[%s28788_s5 + $0x248] sm:$0xff]  ;;  %v29644_v61 = vand.u32 4294901760, %v23034_v39  ;;  %v29645_v30 = vand.u32 4294901760, %v23039_v52 }
  0x50   : > { %29641 = vst [vmem:[#allocation85_spill] sm:$0xff] %v23068_v23  ;;  %v906_v19 = vand.u32 4294901760, %v905_v47  ;;  %v23073_v6 = vsub.f32 %v22862_v51, %v29642_v56  ;;  %v23085_v8 = vpack.c.bf16 %v29647_v31, %v29646_v15  ;;  %v23091_v51 = vld [vmem:[%s28788_s5 + $0x240] sm:$0xff]  ;;  %19559 = vmatprep.subr.bf16.mxu0 %v23068_v23  ;;  %v23102_v15 = vld [vmem:[%s28788_s5 + $0x258] sm:$0xff]  ;;  %vm2750_vm10 = vcmask 900096  }
  0x51   : > { %29640 = vst [vmem:[#allocation84_spill] sm:$0xff] %v23056_v27  ;;  %v894_v20 = vand.u32 4294901760, %v893_v28  ;;  %v911_v59 = vsub.f32 %v23034_v39, %v29644_v61  ;;  %v923_v22 = vsub.f32 %v23039_v52, %v29645_v30  ;;  %v29650_v52 = vand.u32 4294901760, %v23056_v27 }
  0x52   : > { %29643 = vst [vmem:[#allocation86_spill] sm:$0xff] %v23073_v6  ;;  %29648 = vst [vmem:[#allocation87_spill] sm:$0xff] %v23085_v8  ;;  %19509 = vmatpush1.bf16.msra.mxu1 %v23085_v8  ;;  %v29653_v61 = vand.u32 4294901760, %v23073_v6  ;;  %v29662_v39 = vand.u32 4294901760, %v22942_v18  ;;  %vm2762_vm11 = vcmask 891904   ;;  %vm2774_vm12 = vcmask 883712  }
  0x53   : > { %v23094_v47 = vpack.c.bf16 %v906_v19, %v894_v20  ;;  %v912_v31 = vand.u32 4294901760, %v911_v59  ;;  %v924_v28 = vand.u32 4294901760, %v923_v22  ;;  %v917_v19 = vsub.f32 %v23056_v27, %v29650_v52 }
  0x54   : > { %v29651_v20 = vand.u32 4294901760, %v22901_v14  ;;  %v929_v30 = vsub.f32 %v23073_v6, %v29653_v61  ;;  %v29654_v22 = vand.u32 4294901760, %v23061_v58  ;;  %v29655_v59 = vand.u32 4294901760, %v23066_v50  ;;  %v23137_v61 = vld [vmem:[%s28788_s5 + $0x290] sm:$0xff] }
  0x55   : > { %29649 = vst [vmem:[#allocation88_spill] sm:$0xff] %v23094_v47  ;;  %19561 = vmatpush1.bf16.msra.mxu0 %v23094_v47  ;;  %v29657_v52 = vand.u32 4294901760, %v22906_v43  ;;  %v23139_v47 = vpack.c.bf16 %v924_v28, %v912_v31  ;;  %v29660_v6 = vand.u32 4294901760, %v22931_v49  ;;  %v23153_v28 = vsub.f32 %v22942_v18, %v29662_v39  ;;  %v23174_v18 = vld [vmem:[%s28788_s5 + $0x270] sm:$0xff] }
  0x56   : > { %v23111_v56 = vsub.f32 %v22901_v14, %v29651_v20  ;;  %v23121_v23 = vpack.c.bf16 %v29655_v59, %v29654_v22  ;;  %v23132_v20 = vld [vmem:[%s28788_s5 + $0x278] sm:$0xff]  ;;  %v918_v22 = vand.u32 4294901760, %v917_v19  ;;  %v29664_v31 = vand.u32 4294901760, %v23091_v51 }
  0x57   : > { %v23126_v8 = vsub.f32 %v22906_v43, %v29657_v52  ;;  %29659 = vst [vmem:[#allocation92_spill] sm:$0xff] %v23139_v47  ;;  %v28906_v43 = vand.u32 4294901760, %v23102_v15  ;;  %v930_v52 = vand.u32 4294901760, %v929_v30  ;;  %v23148_v27 = vsub.f32 %v22931_v49, %v29660_v6  ;;  %29663 = vst [vmem:[#allocation94_spill] sm:$0xff] %v23153_v28  ;;  %19563 = vmatprep.subr.bf16.mxu0 %v23139_v47 }
  0x58   : > { %29652 = vst [vmem:[#allocation89_spill] sm:$0xff] %v23111_v56  ;;  %29656 = vst [vmem:[#allocation90_spill] sm:$0xff] %v23121_v23  ;;  %v28904_v59 = vand.u32 4294901760, %v23111_v56  ;;  %19511 = vmatprep.subr.bf16.mxu1 %v23121_v23  ;;  %v28914_v6 = vand.u32 4294901760, %v23132_v20  ;;  %vm2786_vm13 = vcmask 752640   ;;  %vm2798_vm14 = vcmask 744448  }
  0x59   : > { %29658 = vst [vmem:[#allocation91_spill] sm:$0xff] %v23126_v8  ;;  %v28907_v14 = vand.u32 4294901760, %v23126_v8  ;;  %29661 = vst [vmem:[#allocation93_spill] sm:$0xff] %v23148_v27  ;;  %v23167_v49 = vpack.c.bf16 %v28906_v43, %v29664_v31  ;;  %v23176_v19 = vpack.c.bf16 %v930_v52, %v918_v22  ;;  %v23186_v43 = vld [vmem:[%s28788_s5 + $0x288] sm:$0xff]  ;;  %v29667_v22 = vand.u32 4294901760, %v23137_v61 }
  0x5a   : > { %v935_v30 = vsub.f32 %v23111_v56, %v28904_v59  ;;  %v29671_v31 = vand.u32 4294901760, %v22977_v5  ;;  %v29682_v56 = vand.u32 4294901760, %v23174_v18  ;;  %vm29243_vm15 = vcmask 736256  }
  0x5b   : > { %29665 = vst [vmem:[#allocation95_spill] sm:$0xff] %v23167_v49  ;;  %29666 = vst [vmem:[#allocation96_spill] sm:$0xff] %v23176_v19  ;;  %v947_v59 = vsub.f32 %v23126_v8, %v28907_v14  ;;  %19513 = vmatpush1.bf16.msra.mxu1 %v23167_v49  ;;  %v23193_v52 = vpack.c.bf16 %v29667_v22, %v28914_v6  ;;  %v29669_v14 = vand.u32 4294901760, %v22972_v9  ;;  %19565 = vmatpush1.bf16.msra.mxu0 %v23176_v19  ;;  %vm22213_vm2 = vmmov 0  }
  0x5c   : > { %v936_v39 = vand.u32 4294901760, %v935_v30  ;;  %v23203_v23 = vsub.f32 %v22977_v5, %v29671_v31  ;;  %v29673_v49 = vand.u32 4294901760, %v23148_v27  ;;  %v29674_v22 = vand.u32 4294901760, %v23153_v28 }
  0x5d   : > { %29668 = vst [vmem:[#allocation97_spill] sm:$0xff] %v23193_v52  ;;  %v23198_v47 = vsub.f32 %v22972_v9, %v29669_v14  ;;  %v948_v30 = vand.u32 4294901760, %v947_v59  ;;  %19515 = vmatprep.subr.bf16.mxu1 %v23193_v52  ;;  %v29675_v31 = vand.u32 4294901760, %v23010_v32  ;;  %v23231_v9 = vld [vmem:[%s28788_s5 + $0x2c0] sm:$0xff]  ;;  %v29678_v59 = vand.u32 4294901760, %v23022_v41 }
  0x5e   : > { %29672 = vst [vmem:[#allocation99_spill] sm:$0xff] %v23203_v23  ;;  %v941_v8 = vsub.f32 %v23148_v27, %v29673_v49  ;;  %v953_v6 = vsub.f32 %v23153_v28, %v29674_v22  ;;  %v23226_v22 = vld [vmem:[%s28788_s5 + $0x2a8] sm:$0xff]  ;;  %v29681_v28 = vand.u32 4294901760, %v23203_v23 }
  0x5f   : > { %29670 = vst [vmem:[#allocation98_spill] sm:$0xff] %v23198_v47  ;;  %v23221_v49 = vsub.f32 %v23010_v32, %v29675_v31  ;;  %v23233_v5 = vpack.c.bf16 %v948_v30, %v936_v39  ;;  %v23238_v52 = vsub.f32 %v23022_v41, %v29678_v59  ;;  %v29680_v32 = vand.u32 4294901760, %v23198_v47  ;;  %v23256_v41 = vld [vmem:[%s28788_s5 + $0x2a0] sm:$0xff] }
  0x60   : > { %v942_v14 = vand.u32 4294901760, %v941_v8  ;;  %v954_v19 = vand.u32 4294901760, %v953_v6  ;;  %v971_v27 = vsub.f32 %v23203_v23, %v29681_v28  ;;  %v29683_v39 = vand.u32 4294901760, %v23186_v43 }
  0x61   : > { %29676 = vst [vmem:[#allocation100_spill] sm:$0xff] %v23221_v49  ;;  %29677 = vst [vmem:[#allocation101_spill] sm:$0xff] %v23233_v5  ;;  %v959_v31 = vsub.f32 %v23198_v47, %v29680_v32  ;;  %19567 = vmatprep.subr.bf16.mxu0 %v23233_v5  ;;  %v28929_v28 = vand.u32 4294901760, %v23238_v52  ;;  %v23272_v32 = vld [vmem:[%s28788_s5 + $0x2b8] sm:$0xff]  ;;  %v29686_v5 = vand.u32 4294901760, %v23221_v49  ;;  %v29692_v23 = vand.u32 4294901760, %v23066_v50 }
  0x62   : > { %29679 = vst [vmem:[#allocation102_spill] sm:$0xff] %v23238_v52  ;;  %v23250_v30 = vpack.c.bf16 %v29683_v39, %v29682_v56  ;;  %v23264_v6 = vpack.c.bf16 %v954_v19, %v942_v14  ;;  %v972_v8 = vand.u32 4294901760, %v971_v27  ;;  %v29687_v14 = vand.u32 4294901760, %v23061_v58 }
  0x63   : > { %v960_v39 = vand.u32 4294901760, %v959_v31  ;;  %v965_v19 = vsub.f32 %v23221_v49, %v29686_v5  ;;  %v977_v56 = vsub.f32 %v23238_v52, %v28929_v28  ;;  %v29689_v31 = vand.u32 4294901760, %v23226_v22  ;;  %v23307_v28 = vld [vmem:[%s28788_s5 + $0x2f0] sm:$0xff] }
  0x64   : > { %29684 = vst [vmem:[#allocation103_spill] sm:$0xff] %v23250_v30  ;;  %29685 = vst [vmem:[#allocation104_spill] sm:$0xff] %v23264_v6  ;;  %19517 = vmatpush1.bf16.msra.mxu1 %v23250_v30  ;;  %v23281_v59 = vsub.f32 %v23061_v58, %v29687_v14  ;;  %19569 = vmatpush1.bf16.msra.mxu0 %v23264_v6  ;;  %v29690_v27 = vand.u32 4294901760, %v23231_v9  ;;  %v23296_v5 = vsub.f32 %v23066_v50, %v29692_v23  ;;  %v23302_v14 = vld [vmem:[%s28788_s5 + $0x2d8] sm:$0xff] }
  0x65   : > { %v23309_v6 = vpack.c.bf16 %v972_v8, %v960_v39  ;;  %v28939_v23 = vand.u32 4294901760, %v23272_v32  ;;  %v978_v50 = vand.u32 4294901760, %v977_v56  ;;  %v29695_v52 = vand.u32 4294901760, %v23091_v51 }
  0x66   : > { %29688 = vst [vmem:[#allocation105_spill] sm:$0xff] %v23281_v59  ;;  %v23291_v30 = vpack.c.bf16 %v29690_v27, %v29689_v31  ;;  %29693 = vst [vmem:[#allocation107_spill] sm:$0xff] %v23296_v5  ;;  %v966_v31 = vand.u32 4294901760, %v965_v19  ;;  %v28936_v27 = vand.u32 4294901760, %v23281_v59  ;;  %v29697_v8 = vand.u32 4294901760, %v23102_v15 }
  0x67   : > { %29694 = vst [vmem:[#allocation108_spill] sm:$0xff] %v23309_v6  ;;  %v23319_v49 = vsub.f32 %v23091_v51, %v29695_v52  ;;  %19571 = vmatprep.subr.bf16.mxu0 %v23309_v6  ;;  %v29699_v19 = vand.u32 4294901760, %v23256_v41  ;;  %v28947_v51 = vand.u32 4294901760, %v23302_v14  ;;  %v28946_v52 = vand.u32 4294901760, %v23307_v28 }
  0x68   : > { %29691 = vst [vmem:[#allocation106_spill] sm:$0xff] %v23291_v30  ;;  %19519 = vmatprep.subr.bf16.mxu1 %v23291_v30  ;;  %v23324_v39 = vsub.f32 %v23102_v15, %v29697_v8  ;;  %v983_v56 = vsub.f32 %v23281_v59, %v28936_v27  ;;  %v23341_v15 = vld [vmem:[%s28788_s5 + $0x2d0] sm:$0xff]  ;;  %v23343_v8 = vpack.c.bf16 %v978_v50, %v966_v31  ;;  %v29702_v6 = vand.u32 4294901760, %v23296_v5 }
  0x69   : > { %29696 = vst [vmem:[#allocation109_spill] sm:$0xff] %v23319_v49  ;;  %v23334_v58 = vpack.c.bf16 %v28939_v23, %v29699_v19  ;;  %v23353_v23 = vld [vmem:[%s28788_s5 + $0x2e8] sm:$0xff]  ;;  %v29704_v50 = vand.u32 4294901760, %v23132_v20  ;;  %v29706_v30 = vand.u32 4294901760, %v23137_v61  ;;  %v29713_v47 = vand.u32 4294901760, %v23186_v43 }
  0x6a   : > { %29698 = vst [vmem:[#allocation110_spill] sm:$0xff] %v23324_v39  ;;  %29701 = vst [vmem:[#allocation112_spill] sm:$0xff] %v23343_v8  ;;  %v995_v27 = vsub.f32 %v23296_v5, %v29702_v6  ;;  %v984_v31 = vand.u32 4294901760, %v983_v56  ;;  %v23367_v6 = vpack.c.bf16 %v28946_v52, %v28947_v51  ;;  %19573 = vmatpush1.bf16.msra.mxu0 %v23343_v8  ;;  %v29709_v52 = vand.u32 4294901760, %v23324_v39 }
  0x6b   : > { %29700 = vst [vmem:[#allocation111_spill] sm:$0xff] %v23334_v58  ;;  %19521 = vmatpush1.bf16.msra.mxu1 %v23334_v58  ;;  %v23372_v19 = vsub.f32 %v23132_v20, %v29704_v50  ;;  %v23377_v5 = vsub.f32 %v23137_v61, %v29706_v30  ;;  %v29708_v58 = vand.u32 4294901760, %v23319_v49 }
  0x6c   : > { %29703 = vst [vmem:[#allocation113_spill] sm:$0xff] %v23367_v6  ;;  %v996_v56 = vand.u32 4294901760, %v995_v27  ;;  %v1001_v51 = vsub.f32 %v23324_v39, %v29709_v52  ;;  %19523 = vmatprep.subr.bf16.mxu1 %v23367_v6  ;;  %v29710_v27 = vand.u32 4294901760, %v23174_v18  ;;  %v23402_v6 = vsub.f32 %v23186_v43, %v29713_v47 }
  0x6d   : > { %29705 = vst [vmem:[#allocation114_spill] sm:$0xff] %v23372_v19  ;;  %29707 = vst [vmem:[#allocation115_spill] sm:$0xff] %v23377_v5  ;;  %v989_v59 = vsub.f32 %v23319_v49, %v29708_v58  ;;  %v28957_v20 = vand.u32 4294901760, %v23372_v19  ;;  %v543_v58 = vld [vmem:[%s23360_s20] sm:$0xff]  ;;  %v29715_v30 = vand.u32 4294901760, %v23377_v5 }
  0x6e   : > { %v23394_v50 = vsub.f32 %v23174_v18, %v29710_v27  ;;  %v23397_v8 = vpack.c.bf16 %v996_v56, %v984_v31  ;;  %v1002_v52 = vand.u32 4294901760, %v1001_v51  ;;  %29714 = vst [vmem:[#allocation118_spill] sm:$0xff] %v23402_v6  ;;  %v29716_v18 = vand.u32 4294901760, %v23341_v15  ;;  %v23424_v27 = vld [vmem:[%s28788_s5 + $0x190] sm:$0xff] }
  0x6f   : > { %v990_v49 = vand.u32 4294901760, %v989_v59  ;;  %v1007_v61 = vsub.f32 %v23372_v19, %v28957_v20  ;;  %v1019_v39 = vsub.f32 %v23377_v5, %v29715_v30  ;;  %v29717_v31 = vand.u32 4294901760, %v23353_v23  ;;  %v23429_v30 = vld [vmem:[%s28788_s5 + $0x1a8] sm:$0xff] }
  0x70   : > { %29711 = vst [vmem:[#allocation116_spill] sm:$0xff] %v23394_v50  ;;  %29712 = vst [vmem:[#allocation117_spill] sm:$0xff] %v23397_v8  ;;  %v28963_v59 = vand.u32 4294901760, %v23394_v50  ;;  %19575 = vmatprep.subr.bf16.mxu0 %v23397_v8  ;;  %v28969_v43 = vand.u32 4294901760, %v23402_v6  ;;  %v545_v51 = vcombine.high %v543_v58, %v543_v58  ;;  %v29722_v5 = vand.u32 4294901760, %v23226_v22 }
  0x71   : > { %v23414_v56 = vpack.c.bf16 %v29717_v31, %v29716_v18  ;;  %v23418_v47 = vpack.c.bf16 %v1002_v52, %v990_v49  ;;  %v1008_v18 = vand.u32 4294901760, %v1007_v61  ;;  %v1020_v31 = vand.u32 4294901760, %v1019_v39 }
  0x72   : > { %v1013_v49 = vsub.f32 %v23394_v50, %v28963_v59  ;;  %v23435_v52 = vand.u32 4294901760, %v543_v58  ;;  %v1025_v20 = vsub.f32 %v23402_v6, %v28969_v43  ;;  %v23441_v8 = vand.u32 4294901760, %v545_v51 }
  0x73   : > { %29718 = vst [vmem:[#allocation119_spill] sm:$0xff] %v23414_v56  ;;  %29719 = vst [vmem:[#allocation120_spill] sm:$0xff] %v23418_v47  ;;  %19525 = vmatpush1.bf16.msra.mxu1 %v23414_v56  ;;  %19577 = vmatpush1.bf16.msra.mxu0 %v23418_v47  ;;  %v23446_v39 = vsub.f32 %v23226_v22, %v29722_v5  ;;  %v29724_v61 = vand.u32 4294901760, %v23231_v9  ;;  %v23453_v59 = vpack.c.bf16 %v1020_v31, %v1008_v18 }
  0x74   : > { %29720 = vst [vmem:[#allocation121_spill] sm:$0xff] %v23435_v52  ;;  %29721 = vst [vmem:[#allocation122_spill] sm:$0xff] %v23441_v8  ;;  %v1014_v50 = vand.u32 4294901760, %v1013_v49  ;;  %v28976_v47 = vand.u32 4294901760, %v23424_v27  ;;  %v28974_v19 = vand.u32 4294901760, %v23429_v30  ;;  %v1026_v43 = vand.u32 4294901760, %v1025_v20  ;;  %1077 = vmatprep.mubr.f32.mxu0 %v23441_v8 }
  0x75   : > { %29723 = vst [vmem:[#allocation123_spill] sm:$0xff] %v23446_v39  ;;  %v23451_v56 = vsub.f32 %v23231_v9, %v29724_v61  ;;  %29726 = vst [vmem:[#allocation125_spill] sm:$0xff] %v23453_v59  ;;  %v23458_v6 = vsub.f32 %v545_v51, %v23441_v8  ;;  %v28975_v24 = vand.u32 4294901760, %v23446_v39  ;;  %v23465_v9 = vld [vmem:[%s28788_s5 + $0x10] sm:$0xff]  ;;  %19579 = vmatprep.subr.bf16.mxu0 %v23453_v59  ;;  %v29729_v51 = vand.u32 4294901760, %v23256_v41  ;;  %v23491_v61 = vld [vmem:[%s28788_s5 + $0x28] sm:$0xff] }
  0x76   : > { %v23473_v5 = vpack.c.bf16 %v28974_v19, %v28976_v47  ;;  %v23476_v20 = vsub.f32 %v543_v58, %v23435_v52  ;;  %v29731_v31 = vand.u32 4294901760, %v23272_v32  ;;  %v23493_v19 = vpack.c.bf16 %v1026_v43, %v1014_v50 }
  0x77   : > { %29725 = vst [vmem:[#allocation124_spill] sm:$0xff] %v23451_v56  ;;  %v28978_v22 = vand.u32 4294901760, %v23451_v56  ;;  %v23481_v18 = vsub.f32 %v23256_v41, %v29729_v51  ;;  %v23496_v58 = vand.u32 4294901760, %v23458_v6  ;;  %v1031_v41 = vsub.f32 %v23446_v39, %v28975_v24 }
  0x78   : > { %29727 = vst [vmem:[#allocation126_spill] sm:$0xff] %v23473_v5  ;;  %29728 = vst [vmem:[#allocation127_spill] sm:$0xff] %v23476_v20  ;;  %v23486_v49 = vsub.f32 %v23272_v32, %v29731_v31  ;;  %19847 = vmatprep.subr.bf16.mxu1 %v23473_v5  ;;  %v23506_v32 = vand.u32 4294901760, %v23476_v20  ;;  %19581 = vmatpush1.bf16.msra.mxu0 %v23493_v19 }
  0x79   : > { %29730 = vst [vmem:[#allocation128_spill] sm:$0xff] %v23481_v18  ;;  %29733 = vst [vmem:[#allocation130_spill] sm:$0xff] %v23493_v19  ;;  %v1043_v51 = vsub.f32 %v23451_v56, %v28978_v22  ;;  %v28986_v31 = vand.u32 4294901760, %v23481_v18  ;;  %v678_v24 = vsub.f32 %v23458_v6, %v23496_v58  ;;  %v1032_v47 = vand.u32 4294901760, %v1031_v41  ;;  %v23531_v41 = vld [vmem:[%s28788_s5 + $0x1c0] sm:$0xff] }
  0x7a   : > { %29732 = vst [vmem:[#allocation129_spill] sm:$0xff] %v23486_v49  ;;  %29734 = vst [vmem:[#allocation131_spill] sm:$0xff] %v23496_v58  ;;  %v28987_v50 = vand.u32 4294901760, %v23486_v49  ;;  %v684_v5 = vsub.f32 %v23476_v20, %v23506_v32  ;;  %v29736_v19 = vand.u32 4294901760, %v23302_v14  ;;  %v23554_v20 = vld [vmem:[%s28788_s5 + $0x40] sm:$0xff] }
  0x7b   : > { %29735 = vst [vmem:[#allocation132_spill] sm:$0xff] %v23506_v32  ;;  %v1044_v59 = vand.u32 4294901760, %v1043_v51  ;;  %v1037_v56 = vsub.f32 %v23481_v18, %v28986_v31  ;;  %v23536_v51 = vld [vmem:[%s28788_s5 + $0x1d8] sm:$0xff]  ;;  %v679_v31 = vand.u32 4294901760, %v678_v24  ;;  %v29740_v32 = vand.u32 4294901760, %v23491_v61 }
  0x7c   : > { %v1049_v43 = vsub.f32 %v23486_v49, %v28987_v50  ;;  %v23526_v39 = vsub.f32 %v23302_v14, %v29736_v19  ;;  %v29739_v50 = vand.u32 4294901760, %v23465_v9  ;;  %v29742_v14 = vand.u32 4294901760, %v23307_v28 }
  0x7d   : > { %v23538_v22 = vpack.c.bf16 %v1044_v59, %v1032_v47  ;;  %v23556_v49 = vand.u32 4294901760, %v684_v5  ;;  %v1038_v24 = vand.u32 4294901760, %v1037_v56  ;;  %680 = vmatprep.mubr.f32.mxu1 %v679_v31  ;;  %v29745_v5 = vand.u32 4294901760, %v23341_v15 }
  0x7e   : > { %29737 = vst [vmem:[#allocation133_spill] sm:$0xff] %v23526_v39  ;;  %v23544_v58 = vpack.c.bf16 %v29740_v32, %v29739_v50  ;;  %v23549_v19 = vsub.f32 %v23307_v28, %v29742_v14  ;;  %v1050_v59 = vand.u32 4294901760, %v1049_v43  ;;  %v23562_v32 = vld [vmem:[%s28788_s5 + $0x58] sm:$0xff]  ;;  %v23576_v43 = vld [vmem:[%s28788_s5 + $0x1f0] sm:$0xff]  ;;  %v29748_v28 = vand.u32 4294901760, %v23526_v39 }
  0x7f   : > { %29738 = vst [vmem:[#allocation134_spill] sm:$0xff] %v23538_v22  ;;  %29744 = vst [vmem:[#allocation137_spill] sm:$0xff] %v23556_v49  ;;  %19583 = vmatprep.subr.bf16.mxu0 %v23538_v22  ;;  %v23571_v56 = vsub.f32 %v23341_v15, %v29745_v5  ;;  %686 = vmatmul.mubr.f32.vlgmr.msra.gmra.mrb[0].mxu1 %v23556_v49  ;;  %v29749_v14 = vand.u32 4294901760, %v23353_v23  ;;  %v23593_v5 = vld [vmem:[%s28788_s5 + $0x208] sm:$0xff]  ;;  %v23610_v15 = vld [vmem:[%s28788_s5 + $0x70] sm:$0xff]  ;;  %v29756_v8 = vand.u32 4294901760, %v23554_v20 }
  0x80   : > { %29741 = vst [vmem:[#allocation135_spill] sm:$0xff] %v23544_v58  ;;  %29743 = vst [vmem:[#allocation136_spill] sm:$0xff] %v23549_v19  ;;  %v23579_v47 = vpack.c.bf16 %v1050_v59, %v1038_v24  ;;  %v1055_v50 = vsub.f32 %v23526_v39, %v29748_v28  ;;  %19849 = vmatpush3.bf16.msra.mxu1 %v23544_v58  ;;  %v29751_v24 = vand.u32 4294901760, %v23549_v19  ;;  %v29752_v28 = vand.u32 4294901760, %v23531_v41  ;;  %v23615_v58 = vld [vmem:[%s28788_s5 + $0x88] sm:$0xff] }
  0x81   : > { %29746 = vst [vmem:[#allocation138_spill] sm:$0xff] %v23571_v56  ;;  %v23587_v22 = vsub.f32 %v23353_v23, %v29749_v14  ;;  %v29753_v39 = vand.u32 4294901760, %v23536_v51  ;;  %1932 = vmatprep.mubr.f32.mxu1 %v679_v31  ;;  %v29755_v14 = vand.u32 4294901760, %v23571_v56  ;;  %v29757_v49 = vand.u32 4294901760, %v23562_v32 }
  0x82   : > { %29747 = vst [vmem:[#allocation139_spill] sm:$0xff] %v23579_v47  ;;  %v1067_v59 = vsub.f32 %v23549_v19, %v29751_v24  ;;  %19585 = vmatpush1.bf16.msra.mxu0 %v23579_v47  ;;  %v1056_v24 = vand.u32 4294901760, %v1055_v50  ;;  %v23634_v50 = vld [vmem:[%s28788_s5 + $0x220] sm:$0xff]  ;;  %v23658_v47 = vld [vmem:[%s28788_s5 + $0xb8] sm:$0xff] }
  0x83   : > { %29750 = vst [vmem:[#allocation140_spill] sm:$0xff] %v23587_v22  ;;  %v23603_v18 = vpack.c.bf16 %v29753_v39, %v29752_v28  ;;  %v29013_v39 = vand.u32 4294901760, %v23587_v22  ;;  %v1061_v19 = vsub.f32 %v23571_v56, %v29755_v14  ;;  %v23628_v38 = vpack.c.bf16 %v29757_v49, %v29756_v8  ;;  %29759 = vst [vmem:[#allocation143_spill] sm:$0xff] %v23634_v50  ;;  %v23653_v28 = vld [vmem:[%s28788_s5 + $0xa0] sm:$0xff]  ;;  %v23699_v56 = vld [vmem:[%s28788_s5 + $0xe8] sm:$0xff] }
  0x84   : > { %v1068_v23 = vand.u32 4294901760, %v1067_v59  ;;  %v23639_v59 = vld [vmem:[%s28788_s5 + $0x238] sm:$0xff]  ;;  %v23646_v8 = vpack.c.bf16 %v22351_v29, %v22336_v25  ;;  %v29763_v29 = vand.u32 4294901760, %v23576_v43  ;;  %v29764_v49 = vand.u32 4294901760, %v23593_v5  ;;  %29771 = vst [vmem:[#allocation151_spill] sm:$0xff] %v23699_v56 }
  0x85   : > { %29754 = vst [vmem:[#allocation141_spill] sm:$0xff] %v23603_v18  ;;  %19851 = vmatprep.subr.bf16.mxu1 %v23603_v18  ;;  %29758 = vst [vmem:[#allocation142_spill] sm:$0xff] %v23628_v38  ;;  %v1073_v14 = vsub.f32 %v23587_v22, %v29013_v39  ;;  %v1062_v39 = vand.u32 4294901760, %v1061_v19  ;;  %v23671_v25 = vpack.c.bf16 %v22365_v35, %v22363_v34  ;;  %v23676_v22 = vld [vmem:[%s28788_s5 + $0x250] sm:$0xff]  ;;  %v23681_v19 = vld [vmem:[%s28788_s5 + $0x268] sm:$0xff] }
  0x86   : > { %29760 = vst [vmem:[#allocation144_spill] sm:$0xff] %v23639_v59  ;;  %29761 = vst [vmem:[#allocation145_spill] sm:$0xff] %v23646_v8  ;;  %v23660_v18 = vpack.c.bf16 %v1068_v23, %v1056_v24  ;;  %19853 = vmatpush3.bf16.msra.mxu1 %v23628_v38  ;;  %v23667_v31 = vpack.c.bf16 %v29764_v49, %v29763_v29  ;;  %v29768_v24 = vand.u32 4294901760, %v23610_v15  ;;  %v29769_v29 = vand.u32 4294901760, %v23615_v58  ;;  %v23694_v38 = vld [vmem:[%s28788_s5 + $0xd0] sm:$0xff]  ;;  %v23716_v35 = vld [vmem:[%s28788_s5 + $0x280] sm:$0xff] }
  0x87   : > { %29766 = vst [vmem:[#allocation148_spill] sm:$0xff] %v23671_v25  ;;  %29767 = vst [vmem:[#allocation149_spill] sm:$0xff] %v23681_v19  ;;  %v1074_v23 = vand.u32 4294901760, %v1073_v14  ;;  %v23705_v14 = vpack.c.bf16 %v22403_v48, %v22387_v44  ;;  %v29776_v44 = vand.u32 4294901760, %v23634_v50  ;;  %v23759_v50 = vld [vmem:[%s28788_s5 + $0x2b0] sm:$0xff] }
  0x88   : > { %29762 = vst [vmem:[#allocation146_spill] sm:$0xff] %v23660_v18  ;;  %29765 = vst [vmem:[#allocation147_spill] sm:$0xff] %v23667_v31  ;;  %v23687_v49 = vpack.c.bf16 %v29769_v29, %v29768_v24  ;;  %19587 = vmatprep.subr.bf16.mxu0 %v23660_v18  ;;  %19855 = vmatprep.subr.bf16.mxu1 %v23667_v31  ;;  %v23709_v24 = vpack.c.bf16 %v22427_v62, %v22417_v57  ;;  %v23721_v18 = vld [vmem:[%s28788_s5 + $0x298] sm:$0xff]  ;;  %v29777_v62 = vand.u32 4294901760, %v23639_v59  ;;  %v23736_v31 = vld [vmem:[%s28788_s5 + $0x100] sm:$0xff] }
  0x89   : > { %29772 = vst [vmem:[#allocation152_spill] sm:$0xff] %v23705_v14  ;;  %29774 = vst [vmem:[#allocation154_spill] sm:$0xff] %v23716_v35  ;;  %v23723_v48 = vpack.c.bf16 %v1074_v23, %v1062_v39  ;;  %v23741_v39 = vld [vmem:[%s28788_s5 + $0x118] sm:$0xff]  ;;  %v29780_v23 = vand.u32 4294901760, %v23653_v28  ;;  %v23752_v29 = vpack.c.bf16 %v22479_v17, %v22470_v13  ;;  %v23776_v59 = vpack.c.bf16 %v22523_v1, %v22513_v60 }
  0x8a   : > { %29770 = vst [vmem:[#allocation150_spill] sm:$0xff] %v23687_v49  ;;  %29773 = vst [vmem:[#allocation153_spill] sm:$0xff] %v23709_v24  ;;  %v23729_v57 = vpack.c.bf16 %v29777_v62, %v29776_v44  ;;  %19857 = vmatpush3.bf16.msra.mxu1 %v23687_v49  ;;  %v29781_v44 = vand.u32 4294901760, %v23658_v47  ;;  %v23764_v49 = vld [vmem:[%s28788_s5 + $0x2c8] sm:$0xff]  ;;  %v23799_v13 = vpack.c.bf16 %v22558_v54, %v22541_v21 }
  0x8b   : > { %29775 = vst [vmem:[#allocation155_spill] sm:$0xff] %v23723_v48  ;;  %29779 = vst [vmem:[#allocation157_spill] sm:$0xff] %v23736_v31  ;;  %19589 = vmatpush1.bf16.msra.mxu0 %v23723_v48  ;;  %v23783_v48 = vld [vmem:[%s28788_s5 + $0x130] sm:$0xff]  ;;  %v23821_v17 = vpack.c.bf16 %v22596_v36, %v22576_v11  ;;  %v23845_v21 = vpack.c.bf16 %v22645_v53, %v22631_v40 }
  0x8c   : > { %29778 = vst [vmem:[#allocation156_spill] sm:$0xff] %v23729_v57  ;;  %v23748_v62 = vpack.c.bf16 %v29781_v44, %v29780_v23  ;;  %29783 = vst [vmem:[#allocation159_spill] sm:$0xff] %v23752_v29  ;;  %19859 = vmatprep.subr.bf16.mxu1 %v23729_v57  ;;  %v29784_v23 = vand.u32 4294901760, %v23676_v22  ;;  %v29785_v44 = vand.u32 4294901760, %v23681_v19  ;;  %v23788_v57 = vld [vmem:[%s28788_s5 + $0x148] sm:$0xff]  ;;  %19591 = vmatprep.subr.bf16.mxu0 %v23646_v8  ;;  %v23806_v19 = vld [vmem:[%s28788_s5 + $0x2e0] sm:$0xff] }
  0x8d   : > { %29787 = vst [vmem:[#allocation161_spill] sm:$0xff] %v23776_v59  ;;  %29791 = vst [vmem:[#allocation163_spill] sm:$0xff] %v23799_v13  ;;  %v23811_v8 = vld [vmem:[%s28788_s5 + $0x2f8] sm:$0xff]  ;;  %v29804_v11 = vand.u32 4294901760, %v23783_v48 }
  0x8e   : > { %29782 = vst [vmem:[#allocation158_spill] sm:$0xff] %v23748_v62  ;;  %v23772_v34 = vpack.c.bf16 %v29785_v44, %v29784_v23  ;;  %v29788_v23 = vand.u32 4294901760, %v23694_v38  ;;  %v29789_v44 = vand.u32 4294901760, %v23699_v56  ;;  %29795 = vst [vmem:[#allocation165_spill] sm:$0xff] %v23821_v17  ;;  %v23828_v56 = vld [vmem:[%s28788_s5 + $0x160] sm:$0xff]  ;;  %1079 = vmatmul.mubr.f32.vlgmr.msra.gmra.mrb[0].mxu0 %v23435_v52  ;;  %19861 = vmatpush3.bf16.msra.mxu1 %v23748_v62  ;;  %v29800_v62 = vand.u32 4294901760, %v23759_v50 }
  0x8f   : > { %29799 = vst [vmem:[#allocation167_spill] sm:$0xff] %v23845_v21  ;;  %19593 = vmatpush1.bf16.msra.mxu0 %v23671_v25  ;;  %v29801_v52 = vand.u32 4294901760, %v23764_v49  ;;  %v29067_v36 = vand.u32 4294901760, %v23811_v8  ;;  %v29805_v25 = vand.u32 4294901760, %v23788_v57  ;;  %1279 = vmatprep.mubr.f32.mxu0 %v23458_v6  ;;  %v29859_v40 = vld [vmem:[#allocation122_spill] sm:$0xff] }
  0x90   : > { %29786 = vst [vmem:[#allocation160_spill] sm:$0xff] %v23772_v34  ;;  %v23795_v1 = vpack.c.bf16 %v29789_v44, %v29788_v23  ;;  %v29792_v23 = vand.u32 4294901760, %v23716_v35  ;;  %v29793_v44 = vand.u32 4294901760, %v23721_v18  ;;  %v23833_v35 = vld [vmem:[%s28788_s5 + $0x178] sm:$0xff]  ;;  %19863 = vmatprep.subr.bf16.mxu1 %v23772_v34  ;;  %19595 = vmatprep.subr.bf16.mxu0 %v23705_v14 }
  0x91   : > { %v23868_v53 = vpack.c.bf16 %v29805_v25, %v29804_v11  ;;  %v23885_v25 = vpack.c.bf16 %v22753_v46, %v22736_v26  ;;  %v29810_v11 = vand.u32 4294901760, %v23424_v27  ;;  %v23906_v46 = vpack.c.bf16 %v22806_v0, %v22791_v12 }
  0x92   : > { %29790 = vst [vmem:[#allocation162_spill] sm:$0xff] %v23795_v1  ;;  %v23817_v54 = vpack.c.bf16 %v29793_v44, %v29792_v23  ;;  %v29796_v23 = vand.u32 4294901760, %v23736_v31  ;;  %v29797_v44 = vand.u32 4294901760, %v23741_v39  ;;  %v23855_v31 = vpack.c.bf16 %v29801_v52, %v29800_v62  ;;  %19865 = vmatpush3.bf16.msra.mxu1 %v23795_v1 }
  0x93   : > { %29806 = vst [vmem:[#allocation170_spill] sm:$0xff] %v23868_v53  ;;  %v23872_v52 = vpack.c.bf16 %v22719_v63, %v22714_v3  ;;  %29809 = vst [vmem:[#allocation173_spill] sm:$0xff] %v23885_v25  ;;  %v23890_v63 = vsub.f32 %v23424_v27, %v29810_v11  ;;  %v29811_v62 = vand.u32 4294901760, %v23429_v30  ;;  %v29812_v3 = vand.u32 4294901760, %v23828_v56  ;;  %19597 = vmatpush1.bf16.msra.mxu0 %v23709_v24 }
  0x94   : > { %29794 = vst [vmem:[#allocation164_spill] sm:$0xff] %v23817_v54  ;;  %v23841_v60 = vpack.c.bf16 %v29797_v44, %v29796_v23  ;;  %29802 = vst [vmem:[#allocation168_spill] sm:$0xff] %v23855_v31  ;;  %v23859_v23 = vpack.c.bf16 %v22673_v33, %v22668_v10  ;;  %v29068_v44 = vand.u32 4294901760, %v23806_v19  ;;  %v29816_v27 = vand.u32 4294901760, %v23465_v9  ;;  %19867 = vmatprep.subr.bf16.mxu1 %v23817_v54 }
  0x95   : > { %29807 = vst [vmem:[#allocation171_spill] sm:$0xff] %v23872_v52  ;;  %v23895_v33 = vsub.f32 %v23429_v30, %v29811_v62  ;;  %29815 = vst [vmem:[#allocation175_spill] sm:$0xff] %v23906_v46  ;;  %v29817_v30 = vand.u32 4294901760, %v23491_v61  ;;  %v23924_v0 = vpack.c.bf16 %v22833_v37, %v22828_v45  ;;  %19599 = vmatprep.subr.bf16.mxu0 %v23752_v29  ;;  %v29822_v37 = vand.u32 4294901760, %v23890_v63 }
  0x96   : > { %29798 = vst [vmem:[#allocation166_spill] sm:$0xff] %v23841_v60  ;;  %29803 = vst [vmem:[#allocation169_spill] sm:$0xff] %v23859_v23  ;;  %v23881_v14 = vpack.c.bf16 %v29067_v36, %v29068_v44  ;;  %v29813_v36 = vand.u32 4294901760, %v23833_v35  ;;  %v23911_v11 = vsub.f32 %v23465_v9, %v29816_v27  ;;  %v29819_v9 = vand.u32 4294901760, %v23531_v41  ;;  %19869 = vmatpush3.bf16.msra.mxu1 %v23841_v60 }
  0x97   : > { %v23916_v62 = vsub.f32 %v23491_v61, %v29817_v30  ;;  %29818 = vst [vmem:[#allocation176_spill] sm:$0xff] %v23924_v0  ;;  %v29824_v30 = vand.u32 4294901760, %v23554_v20  ;;  %19601 = vmatpush1.bf16.msra.mxu0 %v23776_v59  ;;  %19871 = vmatprep.subr.bf16.mxu1 %v23855_v31 }
  0x98   : > { %29808 = vst [vmem:[#allocation172_spill] sm:$0xff] %v23881_v14  ;;  %v23902_v44 = vpack.c.bf16 %v29813_v36, %v29812_v3  ;;  %v23929_v27 = vsub.f32 %v23531_v41, %v29819_v9  ;;  %v23936_v36 = vpack.c.bf16 %v22879_v55, %v22874_v4  ;;  %v29821_v3 = vand.u32 4294901760, %v23536_v51  ;;  %19603 = vmatprep.subr.bf16.mxu0 %v23799_v13 }
  0x99   : > { %v2059_v41 = vsub.f32 %v23890_v63, %v29822_v37  ;;  %v29823_v9 = vand.u32 4294901760, %v23895_v33  ;;  %v23953_v55 = vsub.f32 %v23554_v20, %v29824_v30  ;;  %v29826_v4 = vand.u32 4294901760, %v23916_v62 }
  0x9a   : > { %29814 = vst [vmem:[#allocation174_spill] sm:$0xff] %v23902_v44  ;;  %29820 = vst [vmem:[#allocation177_spill] sm:$0xff] %v23936_v36  ;;  %v23941_v24 = vsub.f32 %v23536_v51, %v29821_v3  ;;  %v29825_v51 = vand.u32 4294901760, %v23911_v11  ;;  %v29828_v12 = vand.u32 4294901760, %v23929_v27  ;;  %19873 = vmatpush3.bf16.msra.mxu1 %v23868_v53  ;;  %v29836_v13 = vand.u32 4294901760, %v23610_v15 }
  0x9b   : > { %v2066_v29 = vsub.f32 %v23895_v33, %v29823_v9  ;;  %v1954_v37 = vsub.f32 %v23916_v62, %v29826_v4  ;;  %v29827_v9 = vand.u32 4294901760, %v23562_v32  ;;  %v2060_v20 = vand.u32 4294901760, %v2059_v41  ;;  %19605 = vmatpush1.bf16.msra.mxu0 %v23821_v17  ;;  %19875 = vmatprep.subr.bf16.mxu1 %v23881_v14  ;;  %v29837_v17 = vld [vmem:[#allocation77_spill] sm:$0xff] }
  0x9c   : > { %v1947_v3 = vsub.f32 %v23911_v11, %v29825_v51  ;;  %v2073_v51 = vsub.f32 %v23929_v27, %v29828_v12  ;;  %v29081_v26 = vand.u32 4294901760, %v23953_v55  ;;  %v29829_v10 = vand.u32 4294901760, %v23941_v24  ;;  %19607 = vmatprep.subr.bf16.mxu0 %v23845_v21 }
  0x9d   : > { %v23966_v61 = vsub.f32 %v23562_v32, %v29827_v9  ;;  %v2067_v30 = vand.u32 4294901760, %v2066_v29  ;;  %v1955_v45 = vand.u32 4294901760, %v1954_v37  ;;  %v23983_v29 = vpack.c.bf16 %v22913_v42, %v22896_v7 }
  0x9e   : > { %v1948_v4 = vand.u32 4294901760, %v1947_v3  ;;  %v2080_v32 = vsub.f32 %v23941_v24, %v29829_v10  ;;  %v2074_v41 = vand.u32 4294901760, %v2073_v51  ;;  %v1961_v12 = vsub.f32 %v23953_v55, %v29081_v26  ;;  %19877 = vmatpush3.bf16.msra.mxu1 %v23902_v44 }
  0x9f   : > { %v29082_v9 = vand.u32 4294901760, %v23966_v61  ;;  %v23979_v59 = vpack.c.bf16 %v2067_v30, %v2060_v20  ;;  %29831 = vst [vmem:[#allocation179_spill] sm:$0xff] %v23983_v29  ;;  %v23994_v37 = vpack.c.bf16 %v22966_v2, %v22951_v16  ;;  %v29833_v20 = vand.u32 4294901760, %v23576_v43  ;;  %v29838_v16 = vld [vmem:[#allocation78_spill] sm:$0xff]  ;;  %19609 = vmatpush1.bf16.msra.mxu0 %v23859_v23 }
  0xa0   : > { %v2081_v3 = vand.u32 4294901760, %v2080_v32  ;;  %v24003_v51 = vpack.c.bf16 %v1955_v45, %v1948_v4  ;;  %v1962_v32 = vand.u32 4294901760, %v1961_v12  ;;  %v29835_v26 = vand.u32 4294901760, %v23593_v5  ;;  %19611 = vmatprep.subr.bf16.mxu0 %v23872_v52 }
  0xa1   : > { %29830 = vst [vmem:[#allocation178_spill] sm:$0xff] %v23979_v59  ;;  %v1968_v10 = vsub.f32 %v23966_v61, %v29082_v9  ;;  %29832 = vst [vmem:[#allocation180_spill] sm:$0xff] %v23994_v37  ;;  %v23999_v30 = vsub.f32 %v23576_v43, %v29833_v20  ;;  %v24013_v2 = vsub.f32 %v23610_v15, %v29836_v13  ;;  %v29840_v4 = vand.u32 4294901760, %v23615_v58  ;;  %v29842_v15 = vld [vmem:[#allocation143_spill] sm:$0xff] }
  0xa2   : > { %29834 = vst [vmem:[#allocation181_spill] sm:$0xff] %v24003_v51  ;;  %v24008_v9 = vsub.f32 %v23593_v5, %v29835_v26  ;;  %v24019_v45 = vpack.c.bf16 %v29838_v16, %v29837_v17  ;;  %v24026_v26 = vpack.c.bf16 %v2081_v3, %v2074_v41  ;;  %v29843_v21 = vand.u32 4294901760, %v29842_v15  ;;  %v29845_v41 = vld [vmem:[#allocation83_spill] sm:$0xff]  ;;  %v29847_v5 = vld [vmem:[#allocation144_spill] sm:$0xff]  ;;  %19879 = vmatprep.subr.bf16.mxu1 %v23979_v59 }
  0xa3   : > { %v1969_v43 = vand.u32 4294901760, %v1968_v10  ;;  %v29088_v20 = vand.u32 4294901760, %v23999_v30  ;;  %v24024_v12 = vsub.f32 %v23615_v58, %v29840_v4  ;;  %v29844_v4 = vld [vmem:[#allocation82_spill] sm:$0xff]  ;;  %v29848_v17 = vand.u32 4294901760, %v29847_v5  ;;  %19613 = vmatpush1.bf16.msra.mxu0 %v23885_v25  ;;  %v29862_v25 = vld [vmem:[#allocation89_spill] sm:$0xff] }
  0xa4   : > { %29839 = vst [vmem:[#allocation182_spill] sm:$0xff] %v24019_v45  ;;  %29841 = vst [vmem:[#allocation183_spill] sm:$0xff] %v24026_v26  ;;  %v24033_v10 = vsub.f32 %v29842_v15, %v29843_v21  ;;  %v24042_v3 = vpack.c.bf16 %v29845_v41, %v29844_v4  ;;  %v29850_v15 = vand.u32 4294901760, %v24008_v9  ;;  %v29851_v58 = vand.u32 4294901760, %v24013_v2  ;;  %19615 = vmatprep.subr.bf16.mxu0 %v23906_v46 }
  0xa5   : > { %v2087_v16 = vsub.f32 %v23999_v30, %v29088_v20  ;;  %v24047_v13 = vsub.f32 %v29847_v5, %v29848_v17  ;;  %v24051_v21 = vpack.c.bf16 %v1969_v43, %v1962_v32  ;;  %v29852_v5 = vand.u32 4294901760, %v24024_v12 }
  0xa6   : > { %29846 = vst [vmem:[#allocation143_spill] sm:$0xff] %v24042_v3  ;;  %v2094_v20 = vsub.f32 %v24008_v9, %v29850_v15  ;;  %v1975_v41 = vsub.f32 %v24013_v2, %v29851_v58  ;;  %v29095_v4 = vand.u32 4294901760, %v24033_v10  ;;  %v29853_v43 = vand.u32 4294901760, %v23653_v28  ;;  %v29854_v15 = vld [vmem:[#allocation137_spill] sm:$0xff] }
  0xa7   : > { %29849 = vst [vmem:[#allocation144_spill] sm:$0xff] %v24051_v21  ;;  %v2088_v17 = vand.u32 4294901760, %v2087_v16  ;;  %v1982_v23 = vsub.f32 %v24024_v12, %v29852_v5  ;;  %v29096_v32 = vand.u32 4294901760, %v24047_v13  ;;  %1938 = vmatmul.mubr.f32.vlgmr.msra.gmra.mrb[2].mxu1 %v29854_v15  ;;  %v29855_v16 = vand.u32 4294901760, %v23658_v47  ;;  %v29857_v15 = vld [vmem:[#allocation86_spill] sm:$0xff]  ;;  %19617 = vmatpush1.bf16.msra.mxu0 %v23924_v0 }
  0xa8   : > { %v24068_v59 = vsub.f32 %v23653_v28, %v29853_v43  ;;  %v2095_v42 = vand.u32 4294901760, %v2094_v20  ;;  %v1976_v58 = vand.u32 4294901760, %v1975_v41  ;;  %v2101_v52 = vsub.f32 %v24033_v10, %v29095_v4  ;;  %19881 = vmatpush3.bf16.msra.mxu1 %v24003_v51  ;;  %v29856_v43 = vld [vmem:[#allocation84_spill] sm:$0xff]  ;;  %2168 = vmatprep.mubr.f32.mxu1 %v29859_v40  ;;  %v29877_v0 = vld [vmem:[#allocation154_spill] sm:$0xff] }
  0xa9   : > { %v24077_v7 = vsub.f32 %v23658_v47, %v29855_v16  ;;  %v1983_v5 = vand.u32 4294901760, %v1982_v23  ;;  %v2108_v28 = vsub.f32 %v24047_v13, %v29096_v32  ;;  %v24085_v20 = vpack.c.bf16 %v29857_v15, %v29856_v43  ;;  %19883 = vmatprep.subr.bf16.mxu1 %v24026_v26  ;;  %v29863_v43 = vld [vmem:[#allocation91_spill] sm:$0xff]  ;;  %19619 = vmatprep.subr.bf16.mxu0 %v23936_v36 }
  0xaa   : > { %v29101_v41 = vand.u32 4294901760, %v24068_v59  ;;  %v24091_v47 = vpack.c.bf16 %v2095_v42, %v2088_v17  ;;  %v2102_v16 = vand.u32 4294901760, %v2101_v52  ;;  %v29861_v4 = vand.u32 4294901760, %v23676_v22  ;;  %v29865_v42 = vld [vmem:[#allocation149_spill] sm:$0xff] }
  0xab   : > { %29858 = vst [vmem:[#allocation137_spill] sm:$0xff] %v24085_v20  ;;  %v2109_v51 = vand.u32 4294901760, %v2108_v28  ;;  %v24105_v26 = vpack.c.bf16 %v29863_v43, %v29862_v25  ;;  %v29866_v52 = vand.u32 4294901760, %v29865_v42  ;;  %v24112_v23 = vpack.c.bf16 %v1983_v5, %v1976_v58  ;;  %v29873_v5 = vld [vmem:[#allocation151_spill] sm:$0xff]  ;;  %19621 = vmatpush1.bf16.msra.mxu0 %v23983_v29 }
  0xac   : > { %29860 = vst [vmem:[#allocation184_spill] sm:$0xff] %v24091_v47  ;;  %v24097_v32 = vsub.f32 %v23676_v22, %v29861_v4  ;;  %v1989_v15 = vsub.f32 %v24068_v59, %v29101_v41  ;;  %v29868_v22 = vand.u32 4294901760, %v24077_v7  ;;  %v29869_v46 = vand.u32 4294901760, %v23694_v38  ;;  %19885 = vmatpush3.bf16.msra.mxu1 %v24051_v21  ;;  %19623 = vmatprep.subr.bf16.mxu0 %v23994_v37  ;;  %v29898_v37 = vld [vmem:[#allocation109_spill] sm:$0xff] }
  0xad   : > { %29864 = vst [vmem:[#allocation185_spill] sm:$0xff] %v24105_v26  ;;  %v24110_v17 = vsub.f32 %v29865_v42, %v29866_v52  ;;  %29867 = vst [vmem:[#allocation149_spill] sm:$0xff] %v24112_v23  ;;  %v29870_v42 = vld [vmem:[#allocation93_spill] sm:$0xff]  ;;  %v29871_v52 = vld [vmem:[#allocation94_spill] sm:$0xff]  ;;  %v29874_v40 = vand.u32 4294901760, %v29873_v5  ;;  %19887 = vmatprep.subr.bf16.mxu1 %v24091_v47 }
  0xae   : > { %v1996_v4 = vsub.f32 %v24077_v7, %v29868_v22  ;;  %v29104_v28 = vand.u32 4294901760, %v24097_v32  ;;  %v24121_v41 = vsub.f32 %v23694_v38, %v29869_v46  ;;  %v1990_v43 = vand.u32 4294901760, %v1989_v15 }
  0xaf   : > { %v24127_v58 = vpack.c.bf16 %v29871_v52, %v29870_v42  ;;  %v24132_v22 = vsub.f32 %v29873_v5, %v29874_v40  ;;  %v24136_v38 = vpack.c.bf16 %v2109_v51, %v2102_v16  ;;  %v29876_v21 = vand.u32 4294901760, %v24110_v17  ;;  %v29883_v42 = vld [vmem:[#allocation99_spill] sm:$0xff]  ;;  %19625 = vmatpush1.bf16.msra.mxu0 %v24019_v45 }
  0xb0   : > { %v1997_v46 = vand.u32 4294901760, %v1996_v4  ;;  %v2115_v15 = vsub.f32 %v24097_v32, %v29104_v28  ;;  %v29878_v52 = vand.u32 4294901760, %v29877_v0  ;;  %v29879_v16 = vand.u32 4294901760, %v23721_v18  ;;  %19889 = vmatpush3.bf16.msra.mxu1 %v24112_v23  ;;  %19627 = vmatprep.subr.bf16.mxu0 %v24042_v3 }
  0xb1   : > { %29872 = vst [vmem:[#allocation186_spill] sm:$0xff] %v24127_v58  ;;  %29875 = vst [vmem:[#allocation151_spill] sm:$0xff] %v24136_v38  ;;  %v2122_v40 = vsub.f32 %v24110_v17, %v29876_v21  ;;  %v29881_v47 = vand.u32 4294901760, %v24121_v41  ;;  %v29882_v21 = vld [vmem:[#allocation98_spill] sm:$0xff]  ;;  %19891 = vmatprep.subr.bf16.mxu1 %v24136_v38 }
  0xb2   : > { %v24150_v51 = vsub.f32 %v29877_v0, %v29878_v52  ;;  %v24155_v4 = vsub.f32 %v23721_v18, %v29879_v16  ;;  %v24157_v28 = vpack.c.bf16 %v1997_v46, %v1990_v43  ;;  %v2116_v25 = vand.u32 4294901760, %v2115_v15  ;;  %v29886_v46 = vld [vmem:[#allocation157_spill] sm:$0xff] }
  0xb3   : > { %v2003_v36 = vsub.f32 %v24121_v41, %v29881_v47  ;;  %v24164_v5 = vpack.c.bf16 %v29883_v42, %v29882_v21  ;;  %v2123_v0 = vand.u32 4294901760, %v2122_v40  ;;  %v29885_v52 = vand.u32 4294901760, %v24132_v22  ;;  %v29890_v42 = vld [vmem:[#allocation107_spill] sm:$0xff]  ;;  %19629 = vmatpush1.bf16.msra.mxu0 %v24085_v20 }
  0xb4   : > { %29880 = vst [vmem:[#allocation154_spill] sm:$0xff] %v24157_v28  ;;  %v29887_v15 = vand.u32 4294901760, %v29886_v46  ;;  %v29888_v40 = vand.u32 4294901760, %v23741_v39  ;;  %19893 = vmatpush3.bf16.msra.mxu1 %v24157_v28  ;;  %v29905_v28 = vld [vmem:[#allocation114_spill] sm:$0xff]  ;;  %19631 = vmatprep.subr.bf16.mxu0 %v24105_v26  ;;  %v29920_v26 = vand.u32 4294901760, %v23833_v35 }
  0xb5   : > { %29884 = vst [vmem:[#allocation187_spill] sm:$0xff] %v24164_v5  ;;  %v2010_v44 = vsub.f32 %v24132_v22, %v29885_v52  ;;  %v2004_v47 = vand.u32 4294901760, %v2003_v36  ;;  %v29889_v52 = vld [vmem:[#allocation105_spill] sm:$0xff]  ;;  %v24189_v43 = vpack.c.bf16 %v2123_v0, %v2116_v25  ;;  %v29893_v36 = vand.u32 4294901760, %v24150_v51 }
  0xb6   : > { %v24177_v16 = vsub.f32 %v29886_v46, %v29887_v15  ;;  %v24182_v23 = vsub.f32 %v23741_v39, %v29888_v40  ;;  %v24186_v18 = vpack.c.bf16 %v29890_v42, %v29889_v52  ;;  %v29894_v46 = vand.u32 4294901760, %v24155_v4  ;;  %v29899_v39 = vld [vmem:[#allocation110_spill] sm:$0xff] }
  0xb7   : > { %29892 = vst [vmem:[#allocation188_spill] sm:$0xff] %v24189_v43  ;;  %v2011_v38 = vand.u32 4294901760, %v2010_v44  ;;  %v2129_v29 = vsub.f32 %v24150_v51, %v29893_v36  ;;  %v29895_v42 = vand.u32 4294901760, %v23759_v50  ;;  %v29896_v25 = vand.u32 4294901760, %v23764_v49  ;;  %19895 = vmatprep.subr.bf16.mxu1 %v24189_v43  ;;  %19633 = vmatpush1.bf16.msra.mxu0 %v24127_v58 }
  0xb8   : > { %29891 = vst [vmem:[#allocation157_spill] sm:$0xff] %v24186_v18  ;;  %v2136_v15 = vsub.f32 %v24155_v4, %v29894_v46  ;;  %v29115_v40 = vand.u32 4294901760, %v24182_v23  ;;  %v24214_v21 = vpack.c.bf16 %v29899_v39, %v29898_v37  ;;  %v29904_v43 = vand.u32 4294901760, %v23788_v57  ;;  %19635 = vmatprep.subr.bf16.mxu0 %v24164_v5  ;;  %v30041_v5 = vld [vmem:[#allocation97_spill] sm:$0xff] }
  0xb9   : > { %v24202_v52 = vsub.f32 %v23759_v50, %v29895_v42  ;;  %v24207_v44 = vsub.f32 %v23764_v49, %v29896_v25  ;;  %v24210_v0 = vpack.c.bf16 %v2011_v38, %v2004_v47  ;;  %v2130_v36 = vand.u32 4294901760, %v2129_v29 }
  0xba   : > { %v2137_v46 = vand.u32 4294901760, %v2136_v15  ;;  %29900 = vst [vmem:[#allocation190_spill] sm:$0xff] %v24214_v21  ;;  %v29901_v50 = vand.u32 4294901760, %v24177_v16  ;;  %v2024_v49 = vsub.f32 %v24182_v23, %v29115_v40  ;;  %v29903_v15 = vand.u32 4294901760, %v23783_v48  ;;  %v29906_v40 = vld [vmem:[#allocation115_spill] sm:$0xff] }
  0xbb   : > { %29897 = vst [vmem:[#allocation189_spill] sm:$0xff] %v24210_v0  ;;  %v24241_v45 = vpack.c.bf16 %v29906_v40, %v29905_v28  ;;  %v29908_v3 = vand.u32 4294901760, %v24202_v52  ;;  %19897 = vmatpush3.bf16.msra.mxu1 %v24210_v0  ;;  %v29913_v0 = vld [vmem:[#allocation116_spill] sm:$0xff]  ;;  %v24289_v20 = vsub.f32 %v23833_v35, %v29920_v26 }
  0xbc   : > { %v2017_v42 = vsub.f32 %v24177_v16, %v29901_v50  ;;  %v24227_v47 = vpack.c.bf16 %v2137_v46, %v2130_v36  ;;  %v24232_v25 = vsub.f32 %v23783_v48, %v29903_v15  ;;  %v24237_v50 = vsub.f32 %v23788_v57, %v29904_v43  ;;  %v29914_v57 = vld [vmem:[#allocation118_spill] sm:$0xff] }
  0xbd   : > { %29907 = vst [vmem:[#allocation192_spill] sm:$0xff] %v24241_v45  ;;  %v2025_v29 = vand.u32 4294901760, %v2024_v49  ;;  %v2143_v36 = vsub.f32 %v24202_v52, %v29908_v3  ;;  %v29909_v46 = vand.u32 4294901760, %v24207_v44  ;;  %v29910_v43 = vand.u32 4294901760, %v23806_v19 }
  0xbe   : > { %29902 = vst [vmem:[#allocation191_spill] sm:$0xff] %v24227_v47  ;;  %v2018_v38 = vand.u32 4294901760, %v2017_v42  ;;  %v29911_v42 = vand.u32 4294901760, %v23811_v8  ;;  %19899 = vmatprep.subr.bf16.mxu1 %v24227_v47  ;;  %v24268_v28 = vpack.c.bf16 %v29914_v57, %v29913_v0  ;;  %v29922_v57 = vld [vmem:[#allocation124_spill] sm:$0xff]  ;;  %v2051_v26 = vand.u32 4294901760, %v24289_v20 }
  0xbf   : > { %v2150_v48 = vsub.f32 %v24207_v44, %v29909_v46  ;;  %v24255_v40 = vsub.f32 %v23806_v19, %v29910_v43  ;;  %v2144_v46 = vand.u32 4294901760, %v2143_v36  ;;  %v29916_v19 = vand.u32 4294901760, %v24232_v25 }
  0xc0   : > { %v24260_v49 = vsub.f32 %v23811_v8, %v29911_v42  ;;  %v24264_v3 = vpack.c.bf16 %v2025_v29, %v2018_v38  ;;  %29915 = vst [vmem:[#allocation194_spill] sm:$0xff] %v24268_v28  ;;  %v29917_v8 = vand.u32 4294901760, %v24237_v50  ;;  %v29919_v36 = vand.u32 4294901760, %v23828_v56 }
  0xc1   : > { %v2151_v15 = vand.u32 4294901760, %v2150_v48  ;;  %v2031_v43 = vsub.f32 %v24232_v25, %v29916_v19  ;;  %v2156_v47 = vand.u32 4294901760, %v24255_v40  ;;  %v29921_v19 = vld [vmem:[#allocation123_spill] sm:$0xff] }
  0xc2   : > { %29912 = vst [vmem:[#allocation193_spill] sm:$0xff] %v24264_v3  ;;  %v2038_v42 = vsub.f32 %v24237_v50, %v29917_v8  ;;  %v2163_v38 = vand.u32 4294901760, %v24260_v49  ;;  %v24284_v48 = vsub.f32 %v23828_v56, %v29919_v36  ;;  %v24293_v0 = vpack.c.bf16 %v29922_v57, %v29921_v19  ;;  %19901 = vmatpush3.bf16.msra.mxu1 %v24264_v3  ;;  %v29924_v56 = vld [vmem:[#allocation100_spill] sm:$0xff]  ;;  %v29925_v36 = vld [vmem:[#allocation102_spill] sm:$0xff]  ;;  %v29928_v3 = vld [vmem:[#allocation129_spill] sm:$0xff] }
  0xc3   : > { %v24279_v29 = vpack.c.bf16 %v2151_v15, %v2144_v46  ;;  %v2032_v8 = vand.u32 4294901760, %v2031_v43  ;;  %v2157_v15 = vsub.f32 %v24255_v40, %v2156_v47  ;;  %v24301_v37 = vpack.c.bf16 %v29925_v36, %v29924_v56  ;;  %v29927_v57 = vld [vmem:[#allocation128_spill] sm:$0xff]  ;;  %v29931_v56 = vld [vmem:[#allocation133_spill] sm:$0xff] }
  0xc4   : > { %29923 = vst [vmem:[#allocation196_spill] sm:$0xff] %v24293_v0  ;;  %v2039_v39 = vand.u32 4294901760, %v2038_v42  ;;  %v2164_v46 = vsub.f32 %v24260_v49, %v2163_v38  ;;  %v2044_v35 = vand.u32 4294901760, %v24284_v48  ;;  %v24308_v43 = vpack.c.bf16 %v29928_v3, %v29927_v57  ;;  %v29935_v3 = vld [vmem:[#allocation138_spill] sm:$0xff]  ;;  %v29936_v57 = vld [vmem:[#allocation140_spill] sm:$0xff] }
  0xc5   : > { %29918 = vst [vmem:[#allocation195_spill] sm:$0xff] %v24279_v29  ;;  %29926 = vst [vmem:[#allocation197_spill] sm:$0xff] %v24301_v37  ;;  %19903 = vmatprep.subr.bf16.mxu1 %v24279_v29  ;;  %v2158_v19 = vand.u32 4294901760, %v2157_v15  ;;  %v2052_v36 = vsub.f32 %v24289_v20, %v2051_v26  ;;  %v29932_v29 = vld [vmem:[#allocation136_spill] sm:$0xff]  ;;  %v24324_v60 = vpack.c.bf16 %v29936_v57, %v29935_v3  ;;  %19637 = vmatpush1.bf16.msra.mxu0 %v24301_v37 }
  0xc6   : > { %29929 = vst [vmem:[#allocation198_spill] sm:$0xff] %v24308_v43  ;;  %v24311_v42 = vpack.c.bf16 %v2039_v39, %v2032_v8  ;;  %v2165_v58 = vand.u32 4294901760, %v2164_v46  ;;  %v2045_v14 = vsub.f32 %v24284_v48, %v2044_v35  ;;  %v24317_v53 = vpack.c.bf16 %v29932_v29, %v29931_v56  ;;  %19639 = vmatprep.subr.bf16.mxu0 %v24186_v18 }
  0xc7   : > { %29937 = vst [vmem:[#allocation138_spill] sm:$0xff] %v24324_v60  ;;  %v2053_v8 = vand.u32 4294901760, %v2052_v36  ;;  %v24331_v15 = vpack.c.bf16 %v23895_v33, %v23890_v63  ;;  %v29944_v36 = vand.u32 4294901760, %v23911_v11  ;;  %v29948_v18 = vand.u32 4294901760, %v23941_v24 }
  0xc8   : > { %29930 = vst [vmem:[#allocation199_spill] sm:$0xff] %v24311_v42  ;;  %29933 = vst [vmem:[#allocation133_spill] sm:$0xff] %v24317_v53  ;;  %19905 = vmatpush3.bf16.msra.mxu1 %v24311_v42  ;;  %v24320_v31 = vpack.c.bf16 %v2165_v58, %v2158_v19  ;;  %v2046_v39 = vand.u32 4294901760, %v2045_v14  ;;  %v24337_v58 = vpack.c.bf16 %v23916_v62, %v23911_v11  ;;  %v29941_v19 = vand.u32 4294901760, %v23890_v63 }
  0xc9   : > { %29938 = vst [vmem:[#allocation140_spill] sm:$0xff] %v24331_v15  ;;  %v29942_v42 = vand.u32 4294901760, %v23895_v33  ;;  %19641 = vmatpush1.bf16.msra.mxu0 %v24214_v21  ;;  %v29950_v63 = vand.u32 4294901760, %v23953_v55  ;;  %v29951_v33 = vand.u32 4294901760, %v23966_v61  ;;  %v29954_v11 = vand.u32 4294901760, %v23999_v30 }
  0xca   : > { %29934 = vst [vmem:[#allocation136_spill] sm:$0xff] %v24320_v31  ;;  %19907 = vmatprep.subr.bf16.mxu1 %v24320_v31  ;;  %v24333_v46 = vpack.c.bf16 %v2053_v8, %v2046_v39  ;;  %29940 = vst [vmem:[#allocation201_spill] sm:$0xff] %v24337_v58  ;;  %v29945_v31 = vand.u32 4294901760, %v23916_v62  ;;  %v29947_v8 = vand.u32 4294901760, %v23929_v27  ;;  %19643 = vmatprep.subr.bf16.mxu0 %v24241_v45  ;;  %v29955_v62 = vand.u32 4294901760, %v24008_v9 }
  0xcb   : > { %v24343_v14 = vpack.c.bf16 %v29942_v42, %v29941_v19  ;;  %v24363_v42 = vpack.c.bf16 %v29951_v33, %v29950_v63  ;;  %v29957_v19 = vand.u32 4294901760, %v24013_v2  ;;  %v29960_v63 = vand.u32 4294901760, %v24033_v10 }
  0xcc   : > { %29939 = vst [vmem:[#allocation200_spill] sm:$0xff] %v24333_v46  ;;  %19909 = vmatpush3.bf16.msra.mxu1 %v24333_v46  ;;  %v24351_v39 = vpack.c.bf16 %v29945_v31, %v29944_v36  ;;  %v24357_v37 = vpack.c.bf16 %v29948_v18, %v29947_v8  ;;  %v24369_v31 = vpack.c.bf16 %v23941_v24, %v23929_v27  ;;  %v29958_v36 = vand.u32 4294901760, %v24024_v12  ;;  %v29963_v24 = vld [vmem:[#allocation121_spill] sm:$0xff] }
  0xcd   : > { %29943 = vst [vmem:[#allocation202_spill] sm:$0xff] %v24343_v14  ;;  %29952 = vst [vmem:[#allocation205_spill] sm:$0xff] %v24363_v42  ;;  %19911 = vmatprep.subr.bf16.mxu1 %v24331_v15  ;;  %v24375_v18 = vpack.c.bf16 %v29955_v62, %v29954_v11  ;;  %v29961_v33 = vand.u32 4294901760, %v24047_v13  ;;  %v29964_v27 = vand.u32 4294901760, %v24068_v59  ;;  %v29965_v46 = vand.u32 4294901760, %v24077_v7  ;;  %19645 = vmatpush1.bf16.msra.mxu0 %v24268_v28  ;;  %v30040_v28 = vld [vmem:[#allocation174_spill] sm:$0xff] }
  0xce   : > { %29946 = vst [vmem:[#allocation203_spill] sm:$0xff] %v24351_v39  ;;  %29949 = vst [vmem:[#allocation204_spill] sm:$0xff] %v24357_v37  ;;  %v24381_v8 = vpack.c.bf16 %v29958_v36, %v29957_v19  ;;  %v29967_v62 = vand.u32 4294901760, %v24097_v32  ;;  %v29968_v45 = vand.u32 4294901760, %v24110_v17  ;;  %v24406_v36 = vpack.c.bf16 %v23966_v61, %v23953_v55  ;;  %19647 = vmatprep.subr.bf16.mxu0 %v24293_v0 }
  0xcf   : > { %29953 = vst [vmem:[#allocation206_spill] sm:$0xff] %v24369_v31  ;;  %29956 = vst [vmem:[#allocation207_spill] sm:$0xff] %v24375_v18  ;;  %v24387_v15 = vpack.c.bf16 %v29961_v33, %v29960_v63  ;;  %2170 = vmatmul.mubr.f32.vlgmr.msra.gmra.mrb[4].mxu1 %v29963_v24  ;;  %v24394_v11 = vpack.c.bf16 %v29965_v46, %v29964_v27  ;;  %v29971_v63 = vand.u32 4294901760, %v24121_v41  ;;  %v29972_v33 = vand.u32 4294901760, %v24132_v22 }
  0xd0   : > { %29959 = vst [vmem:[#allocation208_spill] sm:$0xff] %v24381_v8  ;;  %v24400_v19 = vpack.c.bf16 %v29968_v45, %v29967_v62  ;;  %19913 = vmatpush3.bf16.msra.mxu1 %v24337_v58  ;;  %29970 = vst [vmem:[#allocation211_spill] sm:$0xff] %v24406_v36  ;;  %v29974_v27 = vand.u32 4294901760, %v24150_v51  ;;  %v29975_v21 = vand.u32 4294901760, %v24155_v4  ;;  %v24424_v55 = vpack.c.bf16 %v24008_v9, %v23999_v30 }
  0xd1   : > { %29962 = vst [vmem:[#allocation209_spill] sm:$0xff] %v24387_v15  ;;  %29966 = vst [vmem:[#allocation121_spill] sm:$0xff] %v24394_v11  ;;  %v24412_v46 = vpack.c.bf16 %v29972_v33, %v29971_v63  ;;  %19915 = vmatprep.subr.bf16.mxu1 %v24369_v31  ;;  %v29978_v61 = vand.u32 4294901760, %v24177_v16  ;;  %v29979_v62 = vand.u32 4294901760, %v24182_v23  ;;  %2305 = vmatprep.mubr.f32.mxu1 %v23458_v6  ;;  %v29981_v33 = vand.u32 4294901760, %v24202_v52 }
  0xd2   : > { %29969 = vst [vmem:[#allocation210_spill] sm:$0xff] %v24400_v19  ;;  %v24418_v45 = vpack.c.bf16 %v29975_v21, %v29974_v27  ;;  %29977 = vst [vmem:[#allocation214_spill] sm:$0xff] %v24424_v55  ;;  %v29982_v21 = vand.u32 4294901760, %v24207_v44  ;;  %v29984_v31 = vand.u32 4294901760, %v24232_v25  ;;  %v29985_v58 = vand.u32 4294901760, %v24237_v50  ;;  %19649 = vmatpush1.bf16.msra.mxu0 %v24308_v43  ;;  %v30039_v43 = vld [vmem:[#allocation95_spill] sm:$0xff] }
  0xd3   : > { %29973 = vst [vmem:[#allocation212_spill] sm:$0xff] %v24412_v46  ;;  %v24430_v63 = vpack.c.bf16 %v29979_v62, %v29978_v61  ;;  %v24445_v30 = vpack.c.bf16 %v2163_v38, %v2156_v47  ;;  %v24447_v0 = vpack.c.bf16 %v2051_v26, %v2044_v35  ;;  %v24453_v6 = vpack.c.bf16 %v24024_v12, %v24013_v2  ;;  %v29992_v38 = vld [vmem:[#allocation7_spill] sm:$0xff]  ;;  %v30006_v26 = vld [vmem:[#allocation18_spill] sm:$0xff] }
  0xd4   : > { %29976 = vst [vmem:[#allocation213_spill] sm:$0xff] %v24418_v45  ;;  %v24437_v27 = vpack.c.bf16 %v29982_v21, %v29981_v33  ;;  %v24443_v9 = vpack.c.bf16 %v29985_v58, %v29984_v31  ;;  %19917 = vmatpush3.bf16.msra.mxu1 %v24406_v36  ;;  %19651 = vmatprep.subr.bf16.mxu0 %v24317_v53  ;;  %v29994_v12 = vld [vmem:[#allocation127_spill] sm:$0xff]  ;;  %v30019_v62 = vld [vmem:[#allocation142_spill] sm:$0xff]  ;;  %v30020_v33 = vld [vmem:[#allocation49_spill] sm:$0xff] }
  0xd5   : > { %29980 = vst [vmem:[#allocation215_spill] sm:$0xff] %v24430_v63  ;;  %29987 = vst [vmem:[#allocation218_spill] sm:$0xff] %v24445_v30  ;;  %19919 = vmatprep.subr.bf16.mxu1 %v24424_v55  ;;  %v24459_v58 = vpack.c.bf16 %v24047_v13, %v24033_v10  ;;  %v24465_v47 = vpack.c.bf16 %v24077_v7, %v24068_v59  ;;  %v24471_v2 = vpack.c.bf16 %v24110_v17, %v24097_v32  ;;  %v29995_v13 = vld [vmem:[#allocation8_spill] sm:$0xff]  ;;  %v29997_v7 = vld [vmem:[#allocation9_spill] sm:$0xff] }
  0xd6   : > { %29983 = vst [vmem:[#allocation216_spill] sm:$0xff] %v24437_v27  ;;  %29986 = vst [vmem:[#allocation217_spill] sm:$0xff] %v24443_v9  ;;  %19653 = vmatpush1.bf16.msra.mxu0 %v24324_v60  ;;  %v24478_v10 = vpack.c.bf16 %v24132_v22, %v24121_v41  ;;  %v24484_v59 = vpack.c.bf16 %v24155_v4, %v24150_v51  ;;  %v29999_v32 = vld [vmem:[#allocation131_spill] sm:$0xff]  ;;  %v24491_v35 = vpack.c.bf16 %v24182_v23, %v24177_v16  ;;  %v30002_v41 = vld [vmem:[#allocation13_spill] sm:$0xff] }
  0xd7   : > { %29988 = vst [vmem:[#allocation219_spill] sm:$0xff] %v24447_v0  ;;  %29989 = vst [vmem:[#allocation220_spill] sm:$0xff] %v24453_v6  ;;  %19655 = vmatprep.subr.bf16.mxu0 %v29992_v38  ;;  %v30000_v17 = vld [vmem:[#allocation11_spill] sm:$0xff]  ;;  %v24497_v22 = vpack.c.bf16 %v24207_v44, %v24202_v52  ;;  %v30004_v51 = vld [vmem:[#allocation16_spill] sm:$0xff]  ;;  %v24503_v4 = vpack.c.bf16 %v24237_v50, %v24232_v25  ;;  %v24509_v23 = vpack.c.bf16 %v24260_v49, %v24255_v40 }
  0xd8   : > { %29990 = vst [vmem:[#allocation221_spill] sm:$0xff] %v24459_v58  ;;  %19921 = vmatpush3.bf16.msra.mxu1 %v24453_v6  ;;  %29991 = vst [vmem:[#allocation222_spill] sm:$0xff] %v24465_v47  ;;  %v30008_v16 = vld [vmem:[#allocation23_spill] sm:$0xff]  ;;  %v24515_v52 = vpack.c.bf16 %v24289_v20, %v24284_v48  ;;  %v30010_v44 = vld [vmem:[#allocation28_spill] sm:$0xff] }
  0xd9   : > { %19923 = vmatprep.subr.bf16.mxu1 %v24459_v58  ;;  %29993 = vst [vmem:[#allocation223_spill] sm:$0xff] %v24471_v2  ;;  %1282 = vmatmul.mubr.f32.vlgmr.msra.gmra.mrb[0].mxu0 %v29994_v12  ;;  %29996 = vst [vmem:[#allocation127_spill] sm:$0xff] %v24478_v10  ;;  %v30011_v25 = vld [vmem:[#allocation29_spill] sm:$0xff]  ;;  %v30012_v50 = vld [vmem:[#allocation34_spill] sm:$0xff] }
  0xda   : > { %19657 = vmatpush1.bf16.msra.mxu0 %v29995_v13  ;;  %29998 = vst [vmem:[#allocation224_spill] sm:$0xff] %v24484_v59  ;;  %1419 = vmatprep.mubr.f32.mxu0 %v29999_v32  ;;  %30001 = vst [vmem:[#allocation131_spill] sm:$0xff] %v24491_v35  ;;  %v30013_v40 = vld [vmem:[#allocation126_spill] sm:$0xff]  ;;  %v30014_v49 = vld [vmem:[#allocation39_spill] sm:$0xff] }
  0xdb   : > { %19659 = vmatprep.subr.bf16.mxu0 %v29997_v7  ;;  %30003 = vst [vmem:[#allocation225_spill] sm:$0xff] %v24497_v22  ;;  %30005 = vst [vmem:[#allocation226_spill] sm:$0xff] %v24503_v4  ;;  %v30015_v31 = vld [vmem:[#allocation135_spill] sm:$0xff]  ;;  %v30016_v20 = vld [vmem:[#allocation42_spill] sm:$0xff] }
  0xdc   : > { %19925 = vmatpush3.bf16.msra.mxu1 %v24465_v47  ;;  %30007 = vst [vmem:[#allocation227_spill] sm:$0xff] %v24509_v23  ;;  %30009 = vst [vmem:[#allocation228_spill] sm:$0xff] %v24515_v52  ;;  %v30017_v48 = vld [vmem:[#allocation141_spill] sm:$0xff]  ;;  %v30018_v61 = vld [vmem:[#allocation47_spill] sm:$0xff] }
  0xdd   : > { %19927 = vmatprep.subr.bf16.mxu1 %v24471_v2  ;;  %v30021_v21 = vld [vmem:[#allocation147_spill] sm:$0xff]  ;;  %v30032_v47 = vld [vmem:[#allocation166_spill] sm:$0xff]  ;;  %v30033_v58 = vld [vmem:[#allocation81_spill] sm:$0xff] }
  0xde   : > { %19661 = vmatpush1.bf16.msra.mxu0 %v30000_v17  ;;  %v30031_v2 = vld [vmem:[#allocation79_spill] sm:$0xff]  ;;  %v30034_v6 = vld [vmem:[#allocation168_spill] sm:$0xff]  ;;  %v30036_v36 = vld [vmem:[#allocation170_spill] sm:$0xff] }
  0xdf   : > { %19663 = vmatprep.subr.bf16.mxu0 %v30002_v41  ;;  %v30035_v55 = vld [vmem:[#allocation87_spill] sm:$0xff]  ;;  %v30037_v60 = vld [vmem:[#allocation90_spill] sm:$0xff]  ;;  %v30038_v53 = vld [vmem:[#allocation172_spill] sm:$0xff] }
  0xe0   : > { %19929 = vmatpush3.bf16.msra.mxu1 %v24478_v10  ;;  %v30030_v10 = vld [vmem:[#allocation74_spill] sm:$0xff] }
  0xe1   : > { %19931 = vmatprep.subr.bf16.mxu1 %v24484_v59  ;;  %v30029_v59 = vld [vmem:[#allocation71_spill] sm:$0xff] }
  0xe2   : > { %19665 = vmatpush1.bf16.msra.mxu0 %v30004_v51 }
  0xe3   : > { %19667 = vmatprep.subr.bf16.mxu0 %v30006_v26 }
  0xe4   : > { %19933 = vmatpush3.bf16.msra.mxu1 %v24491_v35  ;;  %v30027_v35 = vld [vmem:[#allocation158_spill] sm:$0xff] }
  0xe5   : > { %19935 = vmatprep.subr.bf16.mxu1 %v24497_v22  ;;  %v30026_v22 = vld [vmem:[#allocation63_spill] sm:$0xff] }
  0xe6   : > { %19669 = vmatpush1.bf16.msra.mxu0 %v30008_v16 }
  0xe7   : > { %19671 = vmatprep.subr.bf16.mxu0 %v30010_v44 }
  0xe8   : > { %19937 = vmatpush3.bf16.msra.mxu1 %v24503_v4  ;;  %v30025_v4 = vld [vmem:[#allocation156_spill] sm:$0xff] }
  0xe9   : > { %19939 = vmatprep.subr.bf16.mxu1 %v24509_v23  ;;  %v30024_v23 = vld [vmem:[#allocation58_spill] sm:$0xff] }
  0xea   : > { %19673 = vmatpush1.bf16.msra.mxu0 %v30011_v25 }
  0xeb   : > { %19675 = vmatprep.subr.bf16.mxu0 %v30012_v50 }
  0xec   : > { %19941 = vmatpush3.bf16.msra.mxu1 %v24515_v52  ;;  %v30022_v52 = vld [vmem:[#allocation55_spill] sm:$0xff] }
  0xed   : > { %19943 = vmatprep.subr.bf16.mxu1 %v30013_v40 }
  0xee   : > { %19677 = vmatpush1.bf16.msra.mxu0 %v30014_v49 }
  0xef   : > { %2308 = vmatmul.mubr.f32.vlgmr.msra.gmra.mrb[6].mxu1 %v29994_v12  ;;  %19679 = vmatprep.subr.bf16.mxu0 %v30016_v20  ;;  %v30023_v12 = vld [vmem:[#allocation150_spill] sm:$0xff] }
  0xf0   : > { %19945 = vmatpush3.bf16.msra.mxu1 %v30015_v31  ;;  %2412 = vmatprep.mubr.f32.mxu1 %v29999_v32  ;;  %v30028_v32 = vld [vmem:[#allocation65_spill] sm:$0xff] }
  0xf1   : > { %19947 = vmatprep.subr.bf16.mxu1 %v30017_v48 }
  0xf2   : > { %19681 = vmatpush1.bf16.msra.mxu0 %v30018_v61 }
  0xf3   : > { %19683 = vmatprep.subr.bf16.mxu0 %v30020_v33 }
  0xf4   : > { %19949 = vmatpush3.bf16.msra.mxu1 %v30019_v62 }
  0xf5   : > { %19951 = vmatprep.subr.bf16.mxu1 %v30021_v21 }
  0xf6   : > { %19685 = vmatpush1.bf16.msra.mxu0 %v30022_v52 }
  0xf7   : > { %19687 = vmatprep.subr.bf16.mxu0 %v30024_v23 }
  0xf8   : > { %19953 = vmatpush3.bf16.msra.mxu1 %v30023_v12 }
  0xf9   : > { %19955 = vmatprep.subr.bf16.mxu1 %v30025_v4 }
  0xfa   : > { %19689 = vmatpush1.bf16.msra.mxu0 %v30026_v22 }
  0xfb   : > { %19691 = vmatprep.subr.bf16.mxu0 %v30028_v32 }
  0xfc   : > { %19957 = vmatpush3.bf16.msra.mxu1 %v30027_v35 }
  0xfd   : > { %19959 = vmatprep.subr.bf16.mxu1 %v23772_v34 }
  0xfe   : > { %19693 = vmatpush1.bf16.msra.mxu0 %v30029_v59  ;;  %v30050_v59 = vld [vmem:[#allocation12_spill] sm:$0xff] }
  0xff   : > { %19695 = vmatprep.subr.bf16.mxu0 %v30030_v10  ;;  %v30046_v10 = vld [vmem:[#allocation111_spill] sm:$0xff]  ;;  %v30051_v32 = vand.u32 4294901760, %v30050_v59 }
 0x100   : > { %19961 = vmatpush3.bf16.msra.mxu1 %v23795_v1 }
 0x101   : > { %19963 = vmatprep.subr.bf16.mxu1 %v23817_v54 }
 0x102   : > { %19697 = vmatpush1.bf16.msra.mxu0 %v30031_v2  ;;  %v30042_v2 = vld [vmem:[#allocation132_spill] sm:$0xff] }
 0x103   : > { %19699 = vmatprep.subr.bf16.mxu0 %v30033_v58  ;;  %v30043_v58 = vld [vmem:[#allocation103_spill] sm:$0xff] }
 0x104   : > { %19965 = vmatpush3.bf16.msra.mxu1 %v30032_v47 }
 0x105   : > { %19967 = vmatprep.subr.bf16.mxu1 %v30034_v6 }
 0x106   : > { %19701 = vmatpush1.bf16.msra.mxu0 %v30035_v55  ;;  %v30044_v55 = vld [vmem:[#allocation106_spill] sm:$0xff] }
 0x107   : > { %19703 = vmatprep.subr.bf16.mxu0 %v30037_v60  ;;  %v30045_v60 = vld [vmem:[#allocation122_spill] sm:$0xff] }
 0x108   : > { %19969 = vmatpush3.bf16.msra.mxu1 %v30036_v36 }
 0x109   : > { %19971 = vmatprep.subr.bf16.mxu1 %v30038_v53 }
 0x10a   : > { %19705 = vmatpush1.bf16.msra.mxu0 %v30039_v43  ;;  %v30047_v43 = vld [vmem:[#allocation113_spill] sm:$0xff] }
 0x10b   : > { %19707 = vmatprep.subr.bf16.mxu0 %v30041_v5  ;;  %v30048_v5 = vld [vmem:[#allocation10_spill] sm:$0xff] }
 0x10c   : > { %19973 = vmatpush3.bf16.msra.mxu1 %v30040_v28 }
 0x10d   : > { %19975 = vmatprep.subr.bf16.mxu1 %v24343_v14  ;;  %v30049_v14 = vand.u32 4294901760, %v30048_v5 }
 0x10e   : > { %19709 = vmatpush1.bf16.msra.mxu0 %v30043_v58  ;;  %v30056_v58 = vld [vmem:[#allocation15_spill] sm:$0xff] }
 0x10f   : > { %2416 = vmatmul.mubr.f32.vlgmr.msra.gmra.mrb[8].mxu1 %v30042_v2  ;;  %19711 = vmatprep.subr.bf16.mxu0 %v30044_v55  ;;  %v24570_v22 = vpack.c.bf16 %v30051_v32, %v30049_v14  ;;  %v30054_v55 = vld [vmem:[#allocation14_spill] sm:$0xff]  ;;  %v30057_v23 = vand.u32 4294901760, %v30056_v58 }
 0x110   : > { %19977 = vmatpush3.bf16.msra.mxu1 %v24351_v39  ;;  %2582 = vmatprep.mubr.f32.mxu1 %v30045_v60  ;;  %v30053_v39 = vld [vmem:[#allocation119_spill] sm:$0xff] }
 0x111   : > { %19979 = vmatprep.subr.bf16.mxu1 %v24357_v37  ;;  %30052 = vst [vmem:[#allocation132_spill] sm:$0xff] %v24570_v22  ;;  %v30055_v37 = vand.u32 4294901760, %v30054_v55  ;;  %v30064_v55 = vld [vmem:[#allocation20_spill] sm:$0xff] }
 0x112   : > { %19713 = vmatpush1.bf16.msra.mxu0 %v30046_v10  ;;  %v30065_v58 = vand.u32 4294901760, %v30064_v55 }
 0x113   : > { %19715 = vmatprep.subr.bf16.mxu0 %v30047_v43  ;;  %v24578_v52 = vpack.c.bf16 %v30057_v23, %v30055_v37  ;;  %v30061_v43 = vld [vmem:[#allocation19_spill] sm:$0xff]  ;;  %v30066_v37 = vld [vmem:[#allocation21_spill] sm:$0xff] }
 0x114   : > { %19981 = vmatpush3.bf16.msra.mxu1 %v24363_v42  ;;  %v30059_v42 = vld [vmem:[#allocation17_spill] sm:$0xff]  ;;  %v30062_v59 = vand.u32 4294901760, %v30061_v43  ;;  %v30067_v23 = vand.u32 4294901760, %v30066_v37 }
 0x115   : > { %19983 = vmatprep.subr.bf16.mxu1 %v24375_v18  ;;  %30058 = vst [vmem:[#allocation122_spill] sm:$0xff] %v24578_v52  ;;  %v30060_v5 = vand.u32 4294901760, %v30059_v42  ;;  %v30069_v42 = vld [vmem:[#allocation25_spill] sm:$0xff] }
 0x116   : > { %19717 = vmatpush1.bf16.msra.mxu0 %v30053_v39  ;;  %v24595_v32 = vpack.c.bf16 %v30067_v23, %v30065_v58  ;;  %v30070_v43 = vand.u32 4294901760, %v30069_v42  ;;  %v30076_v58 = vld [vmem:[#allocation31_spill] sm:$0xff]  ;;  %v30079_v42 = vld [vmem:[#allocation33_spill] sm:$0xff] }
 0x117   : > { %19719 = vmatprep.subr.bf16.mxu0 %v24570_v22  ;;  %v24586_v14 = vpack.c.bf16 %v30062_v59, %v30060_v5  ;;  %v30071_v5 = vld [vmem:[#allocation26_spill] sm:$0xff]  ;;  %v30077_v37 = vand.u32 4294901760, %v30076_v58 }
 0x118   : > { %19985 = vmatpush3.bf16.msra.mxu1 %v24381_v8  ;;  %30068 = vst [vmem:[#allocation12_spill] sm:$0xff] %v24595_v32  ;;  %v30072_v59 = vand.u32 4294901760, %v30071_v5  ;;  %v30080_v5 = vand.u32 4294901760, %v30079_v42 }
 0x119   : > { %30063 = vst [vmem:[#allocation10_spill] sm:$0xff] %v24586_v14  ;;  %19987 = vmatprep.subr.bf16.mxu1 %v24387_v15  ;;  %1423 = vmatmul.mubr.f32.vlgmr.msra.gmra.mrb[0].mxu0 %v30042_v2  ;;  %v30074_v2 = vld [vmem:[#allocation30_spill] sm:$0xff] }
 0x11a   : > { %19721 = vmatpush1.bf16.msra.mxu0 %v24578_v52  ;;  %v24603_v8 = vpack.c.bf16 %v30072_v59, %v30070_v43  ;;  %1686 = vmatprep.mubr.f32.mxu0 %v30045_v60  ;;  %v30075_v55 = vand.u32 4294901760, %v30074_v2  ;;  %v30081_v43 = vld [vmem:[#allocation35_spill] sm:$0xff]  ;;  %v30086_v15 = vld [vmem:[#allocation38_spill] sm:$0xff] }
 0x11b   : > { %19723 = vmatprep.subr.bf16.mxu0 %v24586_v14  ;;  %v30082_v59 = vand.u32 4294901760, %v30081_v43  ;;  %v30087_v58 = vand.u32 4294901760, %v30086_v15 }
 0x11c   : > { %19989 = vmatpush3.bf16.msra.mxu1 %v24394_v11  ;;  %30073 = vst [vmem:[#allocation14_spill] sm:$0xff] %v24603_v8  ;;  %v24612_v23 = vpack.c.bf16 %v30077_v37, %v30075_v55  ;;  %v30089_v37 = vld [vmem:[#allocation41_spill] sm:$0xff] }
 0x11d   : > { %19991 = vmatprep.subr.bf16.mxu1 %v24400_v19  ;;  %v24620_v11 = vpack.c.bf16 %v30082_v59, %v30080_v5  ;;  %v30084_v19 = vld [vmem:[#allocation36_spill] sm:$0xff]  ;;  %v30090_v42 = vand.u32 4294901760, %v30089_v37  ;;  %v30094_v59 = vld [vmem:[#allocation45_spill] sm:$0xff] }
 0x11e   : > { %19725 = vmatpush1.bf16.msra.mxu0 %v24595_v32  ;;  %30078 = vst [vmem:[#allocation15_spill] sm:$0xff] %v24612_v23  ;;  %v30085_v2 = vand.u32 4294901760, %v30084_v19  ;;  %v30095_v19 = vand.u32 4294901760, %v30094_v59 }
 0x11f   : > { %19727 = vmatprep.subr.bf16.mxu0 %v24603_v8  ;;  %30083 = vst [vmem:[#allocation17_spill] sm:$0xff] %v24620_v11 }
 0x120   : > { %19993 = vmatpush3.bf16.msra.mxu1 %v24412_v46  ;;  %v24628_v55 = vpack.c.bf16 %v30087_v58, %v30085_v2  ;;  %v30091_v46 = vld [vmem:[#allocation43_spill] sm:$0xff]  ;;  %v30099_v58 = vld [vmem:[#allocation50_spill] sm:$0xff] }
 0x121   : > { %19995 = vmatprep.subr.bf16.mxu1 %v24418_v45  ;;  %v30092_v43 = vand.u32 4294901760, %v30091_v46  ;;  %v30096_v45 = vld [vmem:[#allocation46_spill] sm:$0xff]  ;;  %v30100_v37 = vand.u32 4294901760, %v30099_v58 }
 0x122   : > { %19729 = vmatpush1.bf16.msra.mxu0 %v24612_v23  ;;  %30088 = vst [vmem:[#allocation19_spill] sm:$0xff] %v24628_v55  ;;  %v30097_v15 = vand.u32 4294901760, %v30096_v45 }
 0x123   : > { %19731 = vmatprep.subr.bf16.mxu0 %v24620_v11  ;;  %v24636_v5 = vpack.c.bf16 %v30092_v43, %v30090_v42  ;;  %v30104_v43 = vld [vmem:[#allocation52_spill] sm:$0xff] }
 0x124   : > { %19997 = vmatpush3.bf16.msra.mxu1 %v24430_v63  ;;  %v24644_v2 = vpack.c.bf16 %v30097_v15, %v30095_v19  ;;  %v30101_v63 = vld [vmem:[#allocation51_spill] sm:$0xff]  ;;  %v30105_v59 = vand.u32 4294901760, %v30104_v43  ;;  %v30109_v15 = vld [vmem:[#allocation57_spill] sm:$0xff]  ;;  %v30116_v43 = vld [vmem:[#allocation62_spill] sm:$0xff] }
 0x125   : > { %30093 = vst [vmem:[#allocation20_spill] sm:$0xff] %v24636_v5  ;;  %19999 = vmatprep.subr.bf16.mxu1 %v24437_v27  ;;  %v30102_v46 = vand.u32 4294901760, %v30101_v63  ;;  %v30106_v27 = vld [vmem:[#allocation54_spill] sm:$0xff]  ;;  %v30110_v58 = vand.u32 4294901760, %v30109_v15 }
 0x126   : > { %19733 = vmatpush1.bf16.msra.mxu0 %v24628_v55  ;;  %30098 = vst [vmem:[#allocation21_spill] sm:$0xff] %v24644_v2  ;;  %v30107_v45 = vand.u32 4294901760, %v30106_v27  ;;  %v30119_v15 = vld [vmem:[#allocation66_spill] sm:$0xff] }
 0x127   : > { %19735 = vmatprep.subr.bf16.mxu0 %v24636_v5  ;;  %v24652_v42 = vpack.c.bf16 %v30102_v46, %v30100_v37  ;;  %v30114_v46 = vld [vmem:[#allocation61_spill] sm:$0xff] }
 0x128   : > { %20001 = vmatpush3.bf16.msra.mxu1 %v24443_v9  ;;  %v24660_v19 = vpack.c.bf16 %v30107_v45, %v30105_v59  ;;  %v30111_v9 = vld [vmem:[#allocation59_spill] sm:$0xff]  ;;  %v30115_v27 = vand.u32 4294901760, %v30114_v46  ;;  %v30117_v59 = vand.u32 4294901760, %v30116_v43  ;;  %v30124_v46 = vld [vmem:[#allocation68_spill] sm:$0xff] }
 0x129   : > { %30103 = vst [vmem:[#allocation25_spill] sm:$0xff] %v24652_v42  ;;  %20003 = vmatprep.subr.bf16.mxu1 %v24445_v30  ;;  %v30112_v63 = vand.u32 4294901760, %v30111_v9  ;;  %v30120_v9 = vand.u32 4294901760, %v30119_v15  ;;  %v30125_v43 = vand.u32 4294901760, %v30124_v46  ;;  %v30129_v15 = vld [vmem:[#allocation73_spill] sm:$0xff] }
 0x12a   : > { %19737 = vmatpush1.bf16.msra.mxu0 %v24644_v2  ;;  %30108 = vst [vmem:[#allocation26_spill] sm:$0xff] %v24660_v19  ;;  %v24677_v45 = vpack.c.bf16 %v30117_v59, %v30115_v27  ;;  %v30126_v27 = vld [vmem:[#allocation70_spill] sm:$0xff] }
 0x12b   : > { %19739 = vmatprep.subr.bf16.mxu0 %v24652_v42  ;;  %v24668_v37 = vpack.c.bf16 %v30112_v63, %v30110_v58  ;;  %v30121_v58 = vld [vmem:[#allocation67_spill] sm:$0xff]  ;;  %v30127_v59 = vand.u32 4294901760, %v30126_v27 }
 0x12c   : > { %20005 = vmatpush3.bf16.msra.mxu1 %v24447_v0  ;;  %30118 = vst [vmem:[#allocation31_spill] sm:$0xff] %v24677_v45  ;;  %v30122_v63 = vand.u32 4294901760, %v30121_v58  ;;  %v30130_v58 = vand.u32 4294901760, %v30129_v15 }
 0x12d   : > { %30113 = vst [vmem:[#allocation30_spill] sm:$0xff] %v24668_v37  ;;  %20007 = vmatprep.subr.bf16.mxu1 %v30013_v40  ;;  %v24694_v30 = vpack.c.bf16 %v30127_v59, %v30125_v43  ;;  %v30139_v59 = vld [vmem:[#allocation82_spill] sm:$0xff]  ;;  %v30213_v40 = vld [vmem:[#allocation87_spill] sm:$0xff] }
 0x12e   : > { %19741 = vmatpush1.bf16.msra.mxu0 %v24660_v19  ;;  %v24685_v0 = vpack.c.bf16 %v30122_v63, %v30120_v9  ;;  %v30131_v9 = vld [vmem:[#allocation75_spill] sm:$0xff]  ;;  %v30140_v15 = vand.u32 4294901760, %v30139_v59 }
 0x12f   : > { %2584 = vmatmul.mubr.f32.vlgmr.msra.gmra.mrb[10].mxu1 %v29963_v24  ;;  %19743 = vmatprep.subr.bf16.mxu0 %v24668_v37  ;;  %30128 = vst [vmem:[#allocation35_spill] sm:$0xff] %v24694_v30  ;;  %v30132_v63 = vand.u32 4294901760, %v30131_v9 }
 0x130   : > { %20009 = vmatpush3.bf16.msra.mxu1 %v30015_v31  ;;  %30123 = vst [vmem:[#allocation33_spill] sm:$0xff] %v24685_v0  ;;  %2686 = vmatprep.mubr.f32.mxu1 %v30045_v60  ;;  %v30136_v31 = vld [vmem:[#allocation78_spill] sm:$0xff] }
 0x131   : > { %20011 = vmatprep.subr.bf16.mxu1 %v30017_v48  ;;  %v24702_v18 = vpack.c.bf16 %v30132_v63, %v30130_v58  ;;  %v30134_v48 = vld [vmem:[#allocation77_spill] sm:$0xff]  ;;  %v30137_v27 = vand.u32 4294901760, %v30136_v31  ;;  %v30144_v63 = vld [vmem:[#allocation84_spill] sm:$0xff] }
 0x132   : > { %19745 = vmatpush1.bf16.msra.mxu0 %v24677_v45  ;;  %v30135_v46 = vand.u32 4294901760, %v30134_v48  ;;  %v30145_v48 = vand.u32 4294901760, %v30144_v63 }
 0x133   : > { %19747 = vmatprep.subr.bf16.mxu0 %v24685_v0  ;;  %30133 = vst [vmem:[#allocation36_spill] sm:$0xff] %v24702_v18 }
 0x134   : > { %20013 = vmatpush3.bf16.msra.mxu1 %v30019_v62  ;;  %v24710_v43 = vpack.c.bf16 %v30137_v27, %v30135_v46  ;;  %v30141_v62 = vld [vmem:[#allocation83_spill] sm:$0xff]  ;;  %v30149_v27 = vld [vmem:[#allocation89_spill] sm:$0xff] }
 0x135   : > { %20015 = vmatprep.subr.bf16.mxu1 %v30021_v21  ;;  %v30142_v9 = vand.u32 4294901760, %v30141_v62  ;;  %v30146_v21 = vld [vmem:[#allocation86_spill] sm:$0xff]  ;;  %v30150_v59 = vand.u32 4294901760, %v30149_v27 }
 0x136   : > { %19749 = vmatpush1.bf16.msra.mxu0 %v24694_v30  ;;  %30138 = vst [vmem:[#allocation38_spill] sm:$0xff] %v24710_v43  ;;  %v30147_v31 = vand.u32 4294901760, %v30146_v21  ;;  %v29215_v30 = vmov 0.0  }
 0x137   : > { %19751 = vmatprep.subr.bf16.mxu0 %v24702_v18  ;;  %v24718_v58 = vpack.c.bf16 %v30142_v9, %v30140_v15  ;;  %v30154_v9 = vld [vmem:[#allocation93_spill] sm:$0xff]  ;;  %367 = vst.msk [vmem:[#allocation2] sm:$0xf] %vm366_vm0, %v29215_v30  ;;  %vm29242_vm0 = vcmask 990208  }
 0x138   : > { %20017 = vmatpush3.bf16.msra.mxu1 %v30023_v12  ;;  %v24726_v46 = vpack.c.bf16 %v30147_v31, %v30145_v48  ;;  %v30151_v12 = vld [vmem:[#allocation91_spill] sm:$0xff]  ;;  %v30155_v63 = vand.u32 4294901760, %v30154_v9  ;;  %v30159_v31 = vld [vmem:[#allocation98_spill] sm:$0xff]  ;;  %369 = vst.msk [vmem:[#allocation2 + $0x8] sm:$0xf] %vm368_vm1, %v29215_v30  ;;  %vm2896_vm1 = vcmask 293888  }
 0x139   : > { %30143 = vst [vmem:[#allocation41_spill] sm:$0xff] %v24718_v58  ;;  %20019 = vmatprep.subr.bf16.mxu1 %v30025_v4  ;;  %v30152_v62 = vand.u32 4294901760, %v30151_v12  ;;  %v30156_v4 = vld [vmem:[#allocation94_spill] sm:$0xff]  ;;  %v30160_v27 = vand.u32 4294901760, %v30159_v31 }
 0x13a   : > { %19753 = vmatpush1.bf16.msra.mxu0 %v24710_v43  ;;  %30148 = vst [vmem:[#allocation43_spill] sm:$0xff] %v24726_v46  ;;  %v30157_v21 = vand.u32 4294901760, %v30156_v4 }
 0x13b   : > { %19755 = vmatprep.subr.bf16.mxu0 %v24718_v58  ;;  %v24734_v15 = vpack.c.bf16 %v30152_v62, %v30150_v59  ;;  %v30164_v62 = vld [vmem:[#allocation100_spill] sm:$0xff] }
 0x13c   : > { %20021 = vmatpush3.bf16.msra.mxu1 %v30027_v35  ;;  %v24742_v48 = vpack.c.bf16 %v30157_v21, %v30155_v63  ;;  %v30161_v35 = vld [vmem:[#allocation99_spill] sm:$0xff]  ;;  %v30165_v9 = vand.u32 4294901760, %v30164_v62  ;;  %v30169_v21 = vld [vmem:[#allocation105_spill] sm:$0xff] }
 0x13d   : > { %30153 = vst [vmem:[#allocation45_spill] sm:$0xff] %v24734_v15  ;;  %20023 = vmatprep.subr.bf16.mxu1 %v23772_v34  ;;  %v30162_v12 = vand.u32 4294901760, %v30161_v35  ;;  %v30166_v34 = vld [vmem:[#allocation102_spill] sm:$0xff]  ;;  %v30170_v31 = vand.u32 4294901760, %v30169_v21 }
 0x13e   : > { %19757 = vmatpush1.bf16.msra.mxu0 %v24726_v46  ;;  %30158 = vst [vmem:[#allocation46_spill] sm:$0xff] %v24742_v48  ;;  %v30167_v4 = vand.u32 4294901760, %v30166_v34 }
 0x13f   : > { %19759 = vmatprep.subr.bf16.mxu0 %v24734_v15  ;;  %v24750_v59 = vpack.c.bf16 %v30162_v12, %v30160_v27  ;;  %v30174_v12 = vld [vmem:[#allocation109_spill] sm:$0xff] }
 0x140   : > { %20025 = vmatpush3.bf16.msra.mxu1 %v23795_v1  ;;  %v24758_v63 = vpack.c.bf16 %v30167_v4, %v30165_v9  ;;  %v30171_v1 = vld [vmem:[#allocation107_spill] sm:$0xff]  ;;  %v30175_v62 = vand.u32 4294901760, %v30174_v12  ;;  %v30179_v4 = vld [vmem:[#allocation114_spill] sm:$0xff] }
 0x141   : > { %30163 = vst [vmem:[#allocation50_spill] sm:$0xff] %v24750_v59  ;;  %20027 = vmatprep.subr.bf16.mxu1 %v23817_v54  ;;  %v30172_v35 = vand.u32 4294901760, %v30171_v1  ;;  %v30176_v54 = vld [vmem:[#allocation110_spill] sm:$0xff]  ;;  %v30180_v21 = vand.u32 4294901760, %v30179_v4 }
 0x142   : > { %19761 = vmatpush1.bf16.msra.mxu0 %v24742_v48  ;;  %30168 = vst [vmem:[#allocation51_spill] sm:$0xff] %v24758_v63  ;;  %v30177_v34 = vand.u32 4294901760, %v30176_v54 }
 0x143   : > { %19763 = vmatprep.subr.bf16.mxu0 %v24750_v59  ;;  %v24766_v27 = vpack.c.bf16 %v30172_v35, %v30170_v31  ;;  %v30184_v35 = vld [vmem:[#allocation116_spill] sm:$0xff] }
 0x144   : > { %20029 = vmatpush3.bf16.msra.mxu1 %v30032_v47  ;;  %v24774_v9 = vpack.c.bf16 %v30177_v34, %v30175_v62  ;;  %v30181_v47 = vld [vmem:[#allocation115_spill] sm:$0xff]  ;;  %v30185_v12 = vand.u32 4294901760, %v30184_v35 }
 0x145   : > { %30173 = vst [vmem:[#allocation52_spill] sm:$0xff] %v24766_v27  ;;  %20031 = vmatprep.subr.bf16.mxu1 %v30034_v6  ;;  %v30182_v1 = vand.u32 4294901760, %v30181_v47  ;;  %v30186_v6 = vld [vmem:[#allocation118_spill] sm:$0xff]  ;;  %v30189_v34 = vld [vmem:[#allocation123_spill] sm:$0xff] }
 0x146   : > { %19765 = vmatpush1.bf16.msra.mxu0 %v24758_v63  ;;  %30178 = vst [vmem:[#allocation54_spill] sm:$0xff] %v24774_v9  ;;  %v30187_v54 = vand.u32 4294901760, %v30186_v6  ;;  %v30190_v4 = vand.u32 4294901760, %v30189_v34  ;;  %v30200_v34 = vand.u32 4294901760, %v29932_v29  ;;  %v30207_v29 = vld [vmem:[#allocation63_spill] sm:$0xff] }
 0x147   : > { %19767 = vmatprep.subr.bf16.mxu0 %v24766_v27  ;;  %v24782_v31 = vpack.c.bf16 %v30182_v1, %v30180_v21  ;;  %v30194_v1 = vld [vmem:[#allocation128_spill] sm:$0xff] }
 0x148   : > { %20033 = vmatpush3.bf16.msra.mxu1 %v30036_v36  ;;  %v24790_v62 = vpack.c.bf16 %v30187_v54, %v30185_v12  ;;  %v30191_v36 = vld [vmem:[#allocation124_spill] sm:$0xff]  ;;  %v30195_v35 = vand.u32 4294901760, %v30194_v1  ;;  %v30199_v54 = vand.u32 4294901760, %v29931_v56  ;;  %v30208_v56 = vld [vmem:[#allocation65_spill] sm:$0xff]  ;;  %v30209_v1 = vld [vmem:[#allocation71_spill] sm:$0xff] }
 0x149   : > { %30183 = vst [vmem:[#allocation57_spill] sm:$0xff] %v24782_v31  ;;  %20035 = vmatprep.subr.bf16.mxu1 %v30038_v53  ;;  %v30192_v47 = vand.u32 4294901760, %v30191_v36  ;;  %v30196_v53 = vld [vmem:[#allocation129_spill] sm:$0xff]  ;;  %v30202_v36 = vand.u32 4294901760, %v29935_v3  ;;  %v30206_v3 = vld [vmem:[#allocation58_spill] sm:$0xff] }
 0x14a   : > { %19769 = vmatpush1.bf16.msra.mxu0 %v24774_v9  ;;  %30188 = vst [vmem:[#allocation59_spill] sm:$0xff] %v24790_v62  ;;  %v30197_v6 = vand.u32 4294901760, %v30196_v53 }
 0x14b   : > { %19771 = vmatprep.subr.bf16.mxu0 %v24782_v31  ;;  %v24798_v21 = vpack.c.bf16 %v30192_v47, %v30190_v4  ;;  %v30203_v4 = vand.u32 4294901760, %v29936_v57  ;;  %v30219_v31 = vld [vmem:[#allocation113_spill] sm:$0xff] }
 0x14c   : > { %20037 = vmatpush3.bf16.msra.mxu1 %v30040_v28  ;;  %v24806_v12 = vpack.c.bf16 %v30197_v6, %v30195_v35  ;;  %v24813_v28 = vpack.c.bf16 %v30200_v34, %v30199_v54  ;;  %v30210_v35 = vld [vmem:[#allocation74_spill] sm:$0xff] }
 0x14d   : > { %30193 = vst [vmem:[#allocation61_spill] sm:$0xff] %v24798_v21  ;;  %v24820_v47 = vpack.c.bf16 %v30203_v4, %v30202_v36  ;;  %v30211_v36 = vld [vmem:[#allocation79_spill] sm:$0xff]  ;;  %v30212_v4 = vld [vmem:[#allocation81_spill] sm:$0xff] }
 0x14e   : > { %19773 = vmatpush1.bf16.msra.mxu0 %v24790_v62  ;;  %30198 = vst [vmem:[#allocation62_spill] sm:$0xff] %v24806_v12  ;;  %30201 = vst [vmem:[#allocation66_spill] sm:$0xff] %v24813_v28  ;;  %v30218_v62 = vld [vmem:[#allocation106_spill] sm:$0xff] }
 0x14f   : > { %2688 = vmatmul.mubr.f32.vlgmr.msra.gmra.mrb[12].mxu1 %v29963_v24  ;;  %19775 = vmatprep.subr.bf16.mxu0 %v24798_v21  ;;  %30204 = vst [vmem:[#allocation67_spill] sm:$0xff] %v24820_v47  ;;  %v30217_v21 = vld [vmem:[#allocation103_spill] sm:$0xff] }
 0x150   : > { %3106 = vmatprep.mubr.f32.mxu1 %v29215_v30 }
 0x152   : > { %19777 = vmatpush1.bf16.msra.mxu0 %v24806_v12  ;;  %v687_v53 = vpop.f32.mrb[0].mxu1  ;;  %v30216_v12 = vld [vmem:[#allocation97_spill] sm:$0xff] }
 0x153   : > { %19779 = vmatprep.subr.bf16.mxu0 %v24813_v28  ;;  %v689_v57 = vpop.f32.mrb[1].mxu1  ;;  %v30215_v28 = vld [vmem:[#allocation95_spill] sm:$0xff] }
 0x156   : > { %19781 = vmatpush1.bf16.msra.mxu0 %v24820_v47  ;;  %v30214_v47 = vld [vmem:[#allocation90_spill] sm:$0xff] }
 0x157   : > { %19783 = vmatprep.subr.bf16.mxu0 %v29992_v38 }
 0x159   : > { %1688 = vmatmul.mubr.f32.vlgmr.msra.gmra.mrb[0].mxu0 %v29963_v24 }
 0x15a   : > { %19785 = vmatpush1.bf16.msra.mxu0 %v29995_v13  ;;  %1823 = vmatprep.mubr.f32.mxu0 %v30045_v60  ;;  %v30205_v60 = vld [vmem:[#allocation55_spill] sm:$0xff] }
 0x15b   : > { %19787 = vmatprep.subr.bf16.mxu0 %v29997_v7 }
 0x15e   : > { %19789 = vmatpush1.bf16.msra.mxu0 %v30000_v17 }
 0x15f   : > { %19791 = vmatprep.subr.bf16.mxu0 %v30002_v41 }
 0x162   : > { %19793 = vmatpush1.bf16.msra.mxu0 %v30004_v51 }
 0x163   : > { %19795 = vmatprep.subr.bf16.mxu0 %v30006_v26 }
 0x166   : > { %19797 = vmatpush1.bf16.msra.mxu0 %v30008_v16 }
 0x167   : > { %19799 = vmatprep.subr.bf16.mxu0 %v30010_v44 }
 0x16a   : > { %19801 = vmatpush1.bf16.msra.mxu0 %v30011_v25 }
 0x16b   : > { %19803 = vmatprep.subr.bf16.mxu0 %v30012_v50 }
 0x16e   : > { %19805 = vmatpush1.bf16.msra.mxu0 %v30014_v49  ;;  %v25547_v49 = vld [vmem:[%s28789_s6 + $0x78] sm:$0xff] }
 0x16f   : > { %19807 = vmatprep.subr.bf16.mxu0 %v30016_v20  ;;  %v29297_v44 = vand.u32 4294901760, %v25547_v49 }
 0x172   : > { %19809 = vmatpush1.bf16.msra.mxu0 %v30018_v61 }
 0x173   : > { %19811 = vmatprep.subr.bf16.mxu0 %v30020_v33 }
 0x176   : > { %19813 = vmatpush1.bf16.msra.mxu0 %v30205_v60 }
 0x177   : > { %19815 = vmatprep.subr.bf16.mxu0 %v30206_v3 }
 0x17a   : > { %19817 = vmatpush1.bf16.msra.mxu0 %v30207_v29  ;;  %v16374_v6 = vpop.f32.mrb[2].mxu1 }
 0x17b   : > { %19819 = vmatprep.subr.bf16.mxu0 %v30208_v56  ;;  %v16375_v54 = vpop.f32.mrb[3].mxu1 }
 0x17c   : > { %v16376_v34 = vadd.f32 %v16375_v54, %v16374_v6 }
 0x17e   : > { %19821 = vmatpush1.bf16.msra.mxu0 %v30209_v1 }
 0x17f   : > { %19823 = vmatprep.subr.bf16.mxu0 %v30210_v35 }
 0x182   : > { %19825 = vmatpush1.bf16.msra.mxu0 %v30211_v36 }
 0x183   : > { %19827 = vmatprep.subr.bf16.mxu0 %v30212_v4 }
 0x186   : > { %19829 = vmatpush1.bf16.msra.mxu0 %v30213_v40 }
 0x187   : > { %19831 = vmatprep.subr.bf16.mxu0 %v30214_v47 }
 0x18a   : > { %19833 = vmatpush1.bf16.msra.mxu0 %v30215_v28 }
 0x18b   : > { %19835 = vmatprep.subr.bf16.mxu0 %v30216_v12 }
 0x18e   : > { %19837 = vmatpush1.bf16.msra.mxu0 %v30217_v21 }
 0x18f   : > { %19839 = vmatprep.subr.bf16.mxu0 %v30218_v62 }
 0x192   : > { %19841 = vmatpush1.bf16.msra.mxu0 %v30046_v10 }
 0x193   : > { %19843 = vmatprep.subr.bf16.mxu0 %v30219_v31 }
 0x196   : > { %19845 = vmatpush1.bf16.msra.mxu0 %v30053_v39 }
 0x199   : > { %1825 = vmatmul.mubr.f32.vlgmr.msra.gmra.mrb[0].mxu0 %v29963_v24 }
 0x19a   : > { %2980 = vmatprep.mubr.f32.mxu0 %v29215_v30 }
 0x1a2   : > { %v16409_v6 = vpop.f32.mrb[4].mxu1 }
 0x1a3   : > { %v16410_v54 = vpop.f32.mrb[5].mxu1 }
 0x1a4   : > { %v16411_v9 = vadd.f32 %v16410_v54, %v16409_v6 }
 0x1a6   : > { %v2172_v27 = vadd.f32 %v16411_v9, %v16376_v34 }
 0x1c2   : > { %v16444_v63 = vpop.f32.mrb[6].mxu1 }
 0x1c3   : > { %v16445_v59 = vpop.f32.mrb[7].mxu1 }
 0x1c4   : > { %v16446_v48 = vadd.f32 %v16445_v59, %v16444_v63 }
 0x1c6   : > { %v2310_v15 = vadd.f32 %v16446_v48, %v2172_v27 }
 0x1e2   : > { %v16479_v46 = vpop.f32.mrb[8].mxu1 }
 0x1e3   : > { %v16480_v58 = vpop.f32.mrb[9].mxu1 }
 0x1e4   : > { %v16481_v43 = vadd.f32 %v16480_v58, %v16479_v46 }
 0x1e6   : > { %v2418_v18 = vadd.f32 %v16481_v43, %v2310_v15 }
 0x202   : > { %v16514_v24 = vpop.f32.mrb[10].mxu1 }
 0x203   : > { %v16515_v0 = vpop.f32.mrb[11].mxu1 }
 0x204   : > { %v16516_v6 = vadd.f32 %v16515_v0, %v16514_v24 }
 0x206   : > { %v2586_v9 = vadd.f32 %v16516_v6, %v2418_v18  ;;  %v30220_v18 = vmov 0 }
 0x207   : > { %v30221_v18 = vsel %vm24865_vm5, 4294967295, %v30220_v18 }
 0x208   : > { %30222 = vst [vmem:[#allocation68_spill] sm:$0xff] %v30221_v18 }
 0x222   : > { %v16549_v34 = vpop.f32.mrb[12].mxu1 }
 0x223   : > { %v16550_v54 = vpop.f32.mrb[13].mxu1 }
 0x224   : > { %v16551_v59 = vadd.f32 %v16550_v54, %v16549_v34 }
 0x226   : > { %v2690_v48 = vadd.f32 %v16551_v59, %v2586_v9 }
 0x26c   : > { %v1826_v43 = vpop.f32.mrb[0].mxu0 }
 0x26d   : > { %v21958_v58 = vadd.f32 %v1826_v43, %v687_v53  ;;  %v1828_v46 = vpop.f32.mrb[1].mxu0 }
 0x26e   : > { %v21959_v15 = vadd.f32 %v1828_v46, %v689_v57 }
 0x270   : > { %v2696_v63 = vcombine.low %v21958_v58, %v21959_v15 }
 0x272   : > { %2697 = vrot.lane.b32.xlu0 %v2696_v63, %s22201_s21 }
 0x276   : > { %2699 = vrot.lane.b32.xlu0 %v2690_v48, %s22201_s21 }
 0x2e4   : > { %v2698_v0 = vpop.permute.xlu0 %2697 }
 0x2e5   : > { %v2701_v27 = vrot.slane %v2698_v0, 4 }
 0x2e7   : > { %v2702_v24 = vsel %vm370_vm4, %v2701_v27, %v2698_v0 }
 0x2e8   : > { %2709 = vst.msk [vmem:[#allocation2] sm:$0xff] %vm24865_vm5, %v2702_v24  ;;  %v2700_v53 = vpop.permute.xlu0 %2699 }
 0x2e9   : > { %v2703_v57 = vsel %vm370_vm4, %v2701_v27, %v2700_v53 }
 0x2ea   : > { %2711 = vst.msk [vmem:[#allocation2 + $0x8] sm:$0xf] %vm2710_vm6, %v2703_v57 }
 0x2ef   : > { %v24874_v6 = vld [vmem:[#allocation2] sm:$0xff] }
 0x2f0   : > { %2746 = vrot.lane.b32.xlu0 %v24874_v6, %s22202_s22  ;;  %2722 = vrot.lane.b32.xlu1 %v24874_v6, %s22203_s23  ;;  %v2716_v34 = vcombine.high %v24874_v6, %v24874_v6  ;;  %v2718_v54 = vcombine.low %v24874_v6, %v24874_v6 }
 0x2f1   : > { %v2713_v9 = vld [vmem:[#allocation2 + $0x8] sm:$0xf] }
 0x2f2   : > { %v2719_v59 = vcombine.low %v2713_v9, %v2713_v9 }
 0x2f4   : > { %2760 = vrot.lane.b32.xlu0 %v2713_v9, %s29389_s24  ;;  %2736 = vrot.lane.b32.xlu1 %v2713_v9, %s22205_s25 }
 0x2f8   : > { %2784 = vrot.lane.b32.xlu0 %v2713_v9, %s29387_s26  ;;  %2732 = vrot.lane.b32.xlu1 %v24874_v6, %s22205_s25 }
 0x2fc   : > { %2734 = vrot.lane.b32.xlu0 %v2716_v34, %s22205_s25  ;;  %2770 = vrot.lane.b32.xlu1 %v24874_v6, %s22207_s27 }
 0x300   : > { %2720 = vrot.lane.b32.xlu0 %v2718_v54, %s22203_s23  ;;  %2794 = vrot.lane.b32.xlu1 %v24874_v6, %s29247_s28 }
 0x304   : > { %2744 = vrot.lane.b32.xlu0 %v2718_v54, %s22202_s22  ;;  %2756 = vrot.lane.b32.xlu1 %v24874_v6, %s29389_s24 }
 0x308   : > { %2780 = vrot.lane.b32.xlu1 %v24874_v6, %s29387_s26  ;;  %2772 = vrot.lane.b32.xlu0 %v2719_v59, %s22207_s27 }
 0x30c   : > { %2796 = vrot.lane.b32.xlu0 %v2719_v59, %s29247_s28  ;;  %2724 = vrot.lane.b32.xlu1 %v2719_v59, %s22203_s23 }
 0x310   : > { %2768 = vrot.lane.b32.xlu0 %v2718_v54, %s22207_s27  ;;  %2748 = vrot.lane.b32.xlu1 %v2719_v59, %s22202_s22 }
 0x314   : > { %2792 = vrot.lane.b32.xlu0 %v2718_v54, %s29247_s28  ;;  %2758 = vrot.lane.b32.xlu1 %v2716_v34, %s29389_s24  ;;  %s27559_s28 = scalar_lea.vmem %s28793_s10, %s16341_s11  ;;  %s30734_s11 = smov 92  }
 0x318   : > { %2808 = vrot.lane.b32.xlu0 %v2713_v9, %s29245_s29  ;;  %2782 = vrot.lane.b32.xlu1 %v2716_v34, %s29387_s26 }
 0x31c   : > { %2806 = vrot.lane.b32.xlu1 %v2716_v34, %s29245_s29 }
 0x320   : > { %2804 = vrot.lane.b32.xlu1 %v24874_v6, %s29245_s29  ;;  %s30735_s29 = smov 91  }
 0x362   : > { %v2723_v48 = vpop.permute.xlu1 %2722  ;;  %v2747_v43 = vpop.permute.xlu0 %2746 }
 0x366   : > { %v2737_v58 = vpop.permute.xlu1 %2736  ;;  %v2761_v46 = vpop.permute.xlu0 %2760 }
 0x36a   : > { %v2733_v15 = vpop.permute.xlu1 %2732  ;;  %v2785_v63 = vpop.permute.xlu0 %2784 }
 0x36e   : > { %v2771_v0 = vpop.permute.xlu1 %2770  ;;  %v2735_v27 = vpop.permute.xlu0 %2734 }
 0x36f   : > { %v2740_v2 = vsel %vm2738_vm9, %v2735_v27, %v2737_v58 }
 0x372   : > { %v2795_v24 = vpop.permute.xlu1 %2794  ;;  %v2721_v53 = vpop.permute.xlu0 %2720 }
 0x376   : > { %v2757_v57 = vpop.permute.xlu1 %2756  ;;  %v2745_v54 = vpop.permute.xlu0 %2744 }
 0x37a   : > { %v2781_v59 = vpop.permute.xlu1 %2780  ;;  %v2773_v30 = vpop.permute.xlu0 %2772 }
 0x37e   : > { %v2725_v18 = vpop.permute.xlu1 %2724  ;;  %v2797_v5 = vpop.permute.xlu0 %2796 }
 0x37f   : > { %v2728_v45 = vsel %vm2726_vm7, %v2723_v48, %v2725_v18  ;;  %v2816_v37 = vsel %vm2813_vm8, %v2713_v9, %v2725_v18  ;;  %v2727_v9 = vsel %vm2726_vm7, %v2721_v53, %v2723_v48  ;;  %v2751_v48 = vsel %vm2750_vm10, %v2745_v54, %v2747_v43 }
 0x380   : > { %2847 = vrot.lane.b32.xlu1 %v2816_v37, %s22210_s30  ;;  %v2815_v19 = vsel %vm2813_vm8, %v2716_v34, %v2728_v45  ;;  %v2814_v45 = vsel %vm2813_vm8, %v24874_v6, %v2727_v9  ;;  %v2800_v53 = vsel %vm2798_vm14, %v2795_v24, %v2797_v5 }
 0x381   : > { %2845 = vrot.lane.b32.xlu0 %v2815_v19, %s22210_s30  ;;  %v2822_v19 = vsel %vm2813_vm8, %v2761_v46, %v2773_v30 }
 0x382   : > { %v2749_v42 = vpop.permute.xlu1 %2748  ;;  %v2769_v34 = vpop.permute.xlu0 %2768 }
 0x383   : > { %v2752_v55 = vsel %vm2750_vm10, %v2747_v43, %v2749_v42  ;;  %v2819_v11 = vsel %vm2813_vm8, %v2737_v58, %v2749_v42 }
 0x384   : > { %2853 = vrot.lane.b32.xlu1 %v2819_v11, %s22210_s30  ;;  %v2818_v18 = vsel %vm2813_vm8, %v2740_v2, %v2752_v55  ;;  %v2776_v55 = vsel %vm2774_vm12, %v2771_v0, %v2773_v30  ;;  %v2825_v2 = vsel %vm2813_vm8, %v2785_v63, %v2797_v5 }
 0x385   : > { %2851 = vrot.lane.b32.xlu0 %v2818_v18, %s22210_s30 }
 0x386   : > { %v2759_v37 = vpop.permute.xlu1 %2758  ;;  %v2793_v18 = vpop.permute.xlu0 %2792 }
 0x387   : > { %v2764_v42 = vsel %vm2762_vm11, %v2759_v37, %v2761_v46  ;;  %v2739_v46 = vsel %vm2738_vm9, %v2733_v15, %v2735_v27  ;;  %v2763_v54 = vsel %vm2762_vm11, %v2757_v57, %v2759_v37 }
 0x388   : > { %2859 = vrot.lane.b32.xlu1 %v2822_v19, %s22210_s30  ;;  %v2821_v58 = vsel %vm2813_vm8, %v2764_v42, %v2776_v55  ;;  %v2817_v30 = vsel %vm2813_vm8, %v2739_v46, %v2751_v48  ;;  %v2775_v19 = vsel %vm2774_vm12, %v2769_v34, %v2771_v0 }
 0x389   : > { %2843 = vrot.lane.b32.xlu0 %v2814_v45, %s22210_s30  ;;  %v2820_v27 = vsel %vm2813_vm8, %v2763_v54, %v2775_v19 }
 0x38a   : > { %v2783_v11 = vpop.permute.xlu1 %2782 }
 0x38b   : > { %v2788_v6 = vsel %vm2786_vm13, %v2783_v11, %v2785_v63  ;;  %v2787_v9 = vsel %vm2786_vm13, %v2781_v59, %v2783_v11  ;;  %v2799_v63 = vsel %vm2798_vm14, %v2793_v18, %v2795_v24  ;;  %v2809_v59 = vpop.permute.xlu0 %2808 }
 0x38c   : > { %2865 = vrot.lane.b32.xlu1 %v2825_v2, %s22210_s30  ;;  %v2824_v43 = vsel %vm2813_vm8, %v2788_v6, %v2800_v53  ;;  %v2823_v5 = vsel %vm2813_vm8, %v2787_v9, %v2799_v63 }
 0x38d   : > { %2857 = vrot.lane.b32.xlu0 %v2821_v58, %s22210_s30 }
 0x38e   : > { %v2807_v15 = vpop.permute.xlu1 %2806 }
 0x38f   : > { %v2812_v57 = vsel %vm29243_vm15, %v2807_v15, %v2809_v59 }
 0x390   : > { %2849 = vrot.lane.b32.xlu1 %v2817_v30, %s22210_s30 }
 0x391   : > { %2863 = vrot.lane.b32.xlu0 %v2824_v43, %s22210_s30 }
 0x392   : > { %v2805_v37 = vpop.permute.xlu1 %2804 }
 0x393   : > { %v2811_v0 = vsel %vm29243_vm15, %v2805_v37, %v2807_v15 }
 0x394   : > { %2861 = vrot.lane.b32.xlu1 %v2823_v5, %s22210_s30 }
 0x395   : > { %2855 = vrot.lane.b32.xlu0 %v2820_v27, %s22210_s30  ;;  %v382_v27 = vld [vmem:[%s28784_s1] sm:$0xff] }
 0x398   : > { %2871 = vrot.lane.b32.xlu1 %v2809_v59, %s22210_s30 }
 0x399   : > { %2869 = vrot.lane.b32.xlu0 %v2812_v57, %s22210_s30 }
 0x39d   : > { %2867 = vrot.lane.b32.xlu0 %v2811_v0, %s22210_s30 }
 0x3f2   : > { %v24956_v24 = vpop.permute.xlu1 %2847 }
 0x3f3   : > { %v2846_v45 = vpop.permute.xlu0 %2845 }
 0x3f4   : > { %v2875_v34 = vsel %vm29242_vm0, %v2846_v45, %v24956_v24 }
 0x3f5   : > { %v2906_v42 = vand.u32 4294901760, %v2875_v34 }
 0x3f6   : > { %v24960_v11 = vpop.permute.xlu1 %2853 }
 0x3f7   : > { %v24962_v55 = vsub.f32 %v2875_v34, %v2906_v42  ;;  %v2852_v2 = vpop.permute.xlu0 %2851 }
 0x3f8   : > { %v2877_v48 = vsel %vm29242_vm0, %v2852_v2, %v24960_v11 }
 0x3f9   : > { %v2910_v58 = vand.u32 4294901760, %v2877_v48  ;;  %v29227_v46 = vand.u32 4294901760, %v24962_v55 }
 0x3fa   : > { %v24966_v6 = vpop.permute.xlu1 %2859 }
 0x3fb   : > { %v24969_v53 = vsub.f32 %v2877_v48, %v2910_v58  ;;  %v2844_v18 = vpop.permute.xlu0 %2843  ;;  %v24971_v30 = vpack.c.bf16 %v2910_v58, %v2906_v42  ;;  %v2995_v19 = vsub.f32 %v24962_v55, %v29227_v46  ;;  %v2898_v48 = vsel %vm2896_vm1, %v382_v27, 0 }
 0x3fc   : > { %v2874_v9 = vsel %vm29242_vm0, %v2844_v18, %v2846_v45  ;;  %v383_v45 = vld [vmem:[%s28785_s2] sm:$0xff]  ;;  %v29231_v46 = vmov 0  }
 0x3fd   : > { %v2908_v43 = vand.u32 4294901760, %v2874_v9  ;;  %20039 = vmatprep.subr.bf16.mxu0 %v24971_v30  ;;  %v29226_v54 = vand.u32 4294901760, %v24969_v53  ;;  %v2996_v42 = vand.u32 4294901760, %v2995_v19  ;;  %22183 = vset.pattern.permute.xlu1 %v29231_v46 }
 0x3fe   : > { %v24976_v63 = vpop.permute.xlu1 %2865  ;;  %22184 = vset.pattern.permute.xlu0 %v29231_v46  ;;  %2828 = vperm.xlu1 %22183, %v383_v45  }
 0x3ff   : > { %v2858_v15 = vpop.permute.xlu0 %2857  ;;  %v3007_v5 = vsub.f32 %v24969_v53, %v29226_v54  ;;  %v24987_v59 = vsub.f32 %v2874_v9, %v2908_v43 }
 0x400   : > { %v2879_v57 = vsel %vm29242_vm0, %v2858_v15, %v24966_v6 }
 0x401   : > { %v2914_v37 = vand.u32 4294901760, %v2879_v57  ;;  %v3008_v0 = vand.u32 4294901760, %v3007_v5  ;;  %v30225_v45 = vand.u32 4294901760, %v24987_v59 }
 0x402   : > { %v2850_v34 = vpop.permute.xlu1 %2849 }
 0x403   : > { %v24994_v58 = vsub.f32 %v2879_v57, %v2914_v37  ;;  %v2876_v18 = vsel %vm29242_vm0, %v2850_v34, %v2852_v2  ;;  %v2864_v54 = vpop.permute.xlu0 %2863  ;;  %v20046_v8 = vpack.c.bf16 %v3008_v0, %v2996_v42  ;;  %v25003_v57 = vand.u32 4294901760, %v2898_v48 }
 0x404   : > { %v2912_v5 = vand.u32 4294901760, %v2876_v18  ;;  %v2881_v23 = vsel %vm29242_vm0, %v2864_v54, %v24976_v63  ;;  %v3001_v42 = vsub.f32 %v24987_v59, %v30225_v45 }
 0x405   : > { %v2918_v19 = vand.u32 4294901760, %v2881_v23  ;;  %v29235_v27 = vand.u32 4294901760, %v24994_v58  ;;  %30223 = vst [vmem:[#allocation70_spill] sm:$0xff] %v25003_v57  ;;  %20047 = vmatprep.subr.bf16.mxu1 %v20046_v8  ;;  %v25015_v0 = vsub.f32 %v2898_v48, %v25003_v57 }
 0x406   : > { %v25005_v2 = vpack.c.bf16 %v2912_v5, %v2908_v43  ;;  %v25007_v34 = vsub.f32 %v2876_v18, %v2912_v5  ;;  %v2862_v32 = vpop.permute.xlu1 %2861  ;;  %v3002_v39 = vand.u32 4294901760, %v3001_v42 }
 0x407   : > { %v25009_v46 = vsub.f32 %v2881_v23, %v2918_v19  ;;  %v2880_v9 = vsel %vm29242_vm0, %v2862_v32, %v2864_v54  ;;  %v2856_v14 = vpop.permute.xlu0 %2855  ;;  %v25012_v52 = vpack.c.bf16 %v2918_v19, %v2914_v37  ;;  %30224 = vst [vmem:[#allocation73_spill] sm:$0xff] %v25015_v0  ;;  %v3019_v32 = vsub.f32 %v24994_v58, %v29235_v27 }
 0x408   : > { %v29238_v43 = vand.u32 4294901760, %v25007_v34  ;;  %v2920_v18 = vand.u32 4294901760, %v2880_v9  ;;  %v2878_v8 = vsel %vm29242_vm0, %v2856_v14, %v2858_v15  ;;  %20041 = vmatpush1.bf16.msra.mxu0 %v25005_v2  ;;  %v25029_v37 = vand.u32 4294901760, %v25015_v0 }
 0x409   : > { %v2916_v23 = vand.u32 4294901760, %v2878_v8  ;;  %20043 = vmatprep.subr.bf16.mxu0 %v25012_v52  ;;  %v29240_v54 = vand.u32 4294901760, %v25009_v46 }
 0x40a   : > { %30226 = vst [vmem:[#allocation75_spill] sm:$0xff] %v25029_v37  ;;  %v3013_v48 = vsub.f32 %v25007_v34, %v29238_v43  ;;  %v25034_v5 = vsub.f32 %v2880_v9, %v2920_v18  ;;  %v25036_v14 = vpop.permute.xlu1 %2871  ;;  %v2984_v22 = vsub.f32 %v25015_v0, %v25029_v37 }
 0x40b   : > { %v25038_v15 = vpack.c.bf16 %v2920_v18, %v2916_v23  ;;  %v25040_v19 = vsub.f32 %v2878_v8, %v2916_v23  ;;  %v2870_v45 = vpop.permute.xlu0 %2869  ;;  %v3031_v27 = vsub.f32 %v25009_v46, %v29240_v54  ;;  %v3020_v23 = vand.u32 4294901760, %v3019_v32 }
 0x40c   : > { %v3014_v31 = vand.u32 4294901760, %v3013_v48  ;;  %v29241_v43 = vand.u32 4294901760, %v25034_v5  ;;  %v2883_v9 = vsel %vm29242_vm0, %v2870_v45, %v25036_v14 }
 0x40d   : > { %v3024_v18 = vand.u32 4294901760, %v25040_v19  ;;  %v2902_v8 = vsel %vm2813_vm8, %v2883_v9, 0  ;;  %20045 = vmatpush1.bf16.msra.mxu0 %v25038_v15  ;;  %v3032_v10 = vand.u32 4294901760, %v3031_v27 }
 0x40e   : > { %v3037_v54 = vsub.f32 %v25034_v5, %v29241_v43  ;;  %v25056_v62 = vand.u32 4294901760, %v2902_v8  ;;  %v20048_v42 = vpack.c.bf16 %v3014_v31, %v3002_v39  ;;  %v25063_v43 = vand.u32 4294901760, %v2984_v22 }
 0x40f   : > { %v3025_v48 = vsub.f32 %v25040_v19, %v3024_v18  ;;  %v2868_v21 = vpop.permute.xlu0 %2867  ;;  %v20050_v12 = vpack.c.bf16 %v3032_v10, %v3020_v23  ;;  %v20054_v22 = vpack.c.bf16 %v24969_v53, %v24962_v55 }
 0x410   : > { %v3038_v28 = vand.u32 4294901760, %v3037_v54  ;;  %v3041_v47 = vsub.f32 %v2902_v8, %v25056_v62  ;;  %v2882_v9 = vsel %vm29242_vm0, %v2868_v21, %v2870_v45  ;;  %2923 = vmatprep.subr.mxu0 %v25056_v62  ;;  %20049 = vmatpush1.bf16.msra.mxu1 %v20048_v42  ;;  %30227 = vst [vmem:[#allocation77_spill] sm:$0xff] %v25063_v43  ;;  %v30228_v42 = vmov 0.0  }
 0x411   : > { %v3026_v27 = vand.u32 4294901760, %v3025_v48  ;;  %v2900_v32 = vsel %vm2813_vm8, %v2882_v9, 0  ;;  %20051 = vmatprep.subr.bf16.mxu1 %v20050_v12  ;;  %v20056_v12 = vpack.c.bf16 %v25007_v34, %v24987_v59  ;;  %v20060_v48 = vpack.c.bf16 %v25034_v5, %v25040_v19 }
 0x412   : > { %v25065_v40 = vand.u32 4294901760, %v2900_v32  ;;  %v3042_v39 = vand.u32 4294901760, %v3041_v47  ;;  %v30229_v9 = vand.u32 4294901760, %v24962_v55  ;;  %v30230_v19 = vand.u32 4294901760, %v24969_v53 }
 0x413   : > { %v20052_v31 = vpack.c.bf16 %v3038_v28, %v3026_v27  ;;  %v20058_v28 = vpack.c.bf16 %v25009_v46, %v24994_v58  ;;  %v30231_v27 = vand.u32 4294901760, %v24987_v59  ;;  %v30235_v55 = vand.u32 4294901760, %v25034_v5 }
 0x414   : > { %v3047_v10 = vsub.f32 %v2900_v32, %v25065_v40  ;;  %2925 = vmatpush1.msra.mxu0 %v25065_v40  ;;  %v3043_v54 = vsub.f32 %v3041_v47, %v3042_v39  ;;  %v30232_v32 = vand.u32 4294901760, %v25007_v34  ;;  %v3479_v59 = vand.u32 4294901760, %v24960_v11 }
 0x415   : > { %20053 = vmatpush1.bf16.msra.mxu1 %v20052_v31  ;;  %2986 = vmatmul.mubr.f32.vlgmr.msra.gmra.mrb[2].mxu0 %v25063_v43  ;;  %v20076_v53 = vpack.c.bf16 %v30235_v55, %v3024_v18  ;;  %v3485_v34 = vand.u32 4294901760, %v24976_v63  ;;  %vm372_vm0 = vcmask 769488  }
 0x416   : > { %v3048_v21 = vand.u32 4294901760, %v3047_v10  ;;  %v3044_v45 = vand.u32 4294901760, %v3043_v54  ;;  %v20072_v31 = vpack.c.bf16 %v30232_v32, %v30231_v27  ;;  %v30234_v54 = vand.u32 4294901760, %v25009_v46 }
 0x417   : > { %v25112_v46 = vsub.f32 %v24960_v11, %v3479_v59  ;;  %v25123_v18 = vsub.f32 %v24976_v63, %v3485_v34 }
 0x418   : > { %3045 = vmatprep.subr.mxu1 %v3044_v45  ;;  %v3049_v8 = vsub.f32 %v3047_v10, %v3048_v21 }
 0x419   : > { %v3579_v63 = vand.u32 4294901760, %v25123_v18 }
 0x41a   : > { %v3050_v23 = vand.u32 4294901760, %v3049_v8 }
 0x41c   : > { %3051 = vmatpush1.msra.mxu1 %v3050_v23 }
 0x41d   : > { %20055 = vmatprep.subr.bf16.mxu1 %v20054_v22  ;;  %3108 = vmatmul.mubr.f32.vlgmr.msra.gmra.mrb[14].mxu1 %v25003_v57  ;;  %v3580_v22 = vsub.f32 %v25123_v18, %v3579_v63 }
 0x41e   : > { %20057 = vmatpush1.bf16.msra.mxu1 %v20056_v12  ;;  %3198 = vmatprep.mubr.f32.mxu1 %v30228_v42 }
 0x41f   : > { %20059 = vmatprep.subr.bf16.mxu1 %v20058_v28 }
 0x422   : > { %20061 = vmatpush1.bf16.msra.mxu1 %v20060_v48 }
 0x423   : > { %3140 = vmatprep.subr.mxu1 %v3041_v47  ;;  %v20070_v47 = vpack.c.bf16 %v30230_v19, %v30229_v9  ;;  %v3581_v19 = vand.u32 4294901760, %v3580_v22 }
 0x426   : > { %3143 = vmatpush1.msra.mxu1 %v3047_v10  ;;  %v30233_v10 = vand.u32 4294901760, %v24994_v58  ;;  %v3476_v58 = vand.u32 4294901760, %v24956_v24 }
 0x427   : > { %20063 = vmatprep.subr.bf16.mxu1 %v24971_v30  ;;  %3201 = vmatmul.mubr.f32.vlgmr.msra.gmra.mrb[14].mxu1 %v25015_v0 }
 0x428   : > { %20065 = vmatpush1.bf16.msra.mxu1 %v25005_v2  ;;  %3281 = vmatprep.mubr.f32.mxu1 %v30228_v42  ;;  %v20074_v45 = vpack.c.bf16 %v30234_v54, %v30233_v10  ;;  %v25116_v5 = vsub.f32 %v24956_v24, %v3476_v58  ;;  %v25132_v24 = vpack.c.bf16 %v3479_v59, %v3476_v58 }
 0x429   : > { %20067 = vmatprep.subr.bf16.mxu1 %v25012_v52 }
 0x42a   : > { %v3558_v11 = vand.u32 4294901760, %v25116_v5  ;;  %v20099_v10 = vpack.c.bf16 %v25112_v46, %v25116_v5 }
 0x42c   : > { %20069 = vmatpush1.bf16.msra.mxu1 %v25038_v15 }
 0x42d   : > { %3224 = vmatprep.subr.mxu1 %v25056_v62 }
 0x430   : > { %3226 = vmatpush1.msra.mxu1 %v25065_v40 }
 0x431   : > { %20071 = vmatprep.subr.bf16.mxu1 %v20070_v47  ;;  %3285 = vmatmul.mubr.f32.vlgmr.msra.gmra.mrb[14].mxu1 %v25029_v37 }
 0x432   : > { %20073 = vmatpush1.bf16.msra.mxu1 %v20072_v31  ;;  %3385 = vmatprep.mubr.f32.mxu1 %v30228_v42 }
 0x433   : > { %20075 = vmatprep.subr.bf16.mxu1 %v20074_v45 }
 0x436   : > { %20077 = vmatpush1.bf16.msra.mxu1 %v20076_v53  ;;  %v22214_v53 = vmov -3e+38  }
 0x437   : > { %3326 = vmatprep.subr.mxu1 %v3042_v39  ;;  %371 = vst.msk [vmem:[#allocation3] sm:$0xff] %vm370_vm4, %v22214_v53 }
 0x438   : > { %373 = vst.msk [vmem:[#allocation3 + $0x10] sm:$0xff] %vm372_vm0, %v22214_v53  ;;  %vm29365_vm0 = vcmask 474112   ;;  %v25253_v53 = vld [vmem:[%s28789_s6 + $0x88] sm:$0xff] }
 0x43a   : > { %3330 = vmatpush1.msra.mxu1 %v3048_v21  ;;  %v3559_v21 = vsub.f32 %v25116_v5, %v3558_v11 }
 0x43b   : > { %20079 = vmatprep.subr.bf16.mxu1 %v24971_v30  ;;  %3387 = vmatmul.mubr.f32.vlgmr.msra.gmra.mrb[14].mxu1 %v25003_v57  ;;  %v3482_v30 = vand.u32 4294901760, %v24966_v6 }
 0x43c   : > { %20081 = vmatpush1.bf16.msra.mxu1 %v25005_v2  ;;  %3467 = vmatprep.mubr.f32.mxu1 %v30228_v42  ;;  %v3565_v2 = vand.u32 4294901760, %v25112_v46  ;;  %v3560_v12 = vand.u32 4294901760, %v3559_v21 }
 0x43d   : > { %20083 = vmatprep.subr.bf16.mxu1 %v25012_v52  ;;  %v2904_v52 = vsel %vm2813_vm8, %v25036_v14, 0  ;;  %v25129_v39 = vsub.f32 %v24966_v6, %v3482_v30  ;;  %v20090_v14 = vpack.c.bf16 %v3485_v34, %v3482_v30  ;;  %v539_v34 = vld [vmem:[%s28791_s8] sm:$0x7] }
 0x43e   : > { %v3566_v6 = vsub.f32 %v25112_v46, %v3565_v2  ;;  %v20111_v45 = vpack.c.bf16 %v3565_v2, %v3558_v11  ;;  %v3974_v46 = vlaneseq  ;;  %vm540_vm3 = vcmp.ne.f32.partialorder %v539_v34, 0.0  ;;  %v25265_v34 = vld [vmem:[%s28789_s6 + $0x8] sm:$0xff] }
 0x43f   : > { %v20102_v54 = vpack.c.bf16 %v25123_v18, %v25129_v39  ;;  %v30237_v2 = vmov 0  }
 0x440   : > { %20085 = vmatpush1.bf16.msra.mxu1 %v25038_v15  ;;  %v25137_v15 = vand.u32 4294901760, %v2904_v52  ;;  %v3567_v23 = vand.u32 4294901760, %v3566_v6  ;;  %v25194_v5 = vshrl.u32 %v3974_v46, 7  ;;  %v3973_v18 = vsel %vm540_vm3, 1, %v30237_v2 }
 0x441   : > { %3410 = vmatprep.subr.mxu1 %v25056_v62  ;;  %v29250_v62 = vmov 0.0|0.0   ;;  %v29262_v46 = vand.u32 4294901760, %v25253_v53 }
 0x442   : > { %v3585_v8 = vsub.f32 %v2904_v52, %v25137_v15  ;;  %v20093_v9 = vpack.c.bf16 %v3567_v23, %v3560_v12  ;;  %30236 = vst [vmem:[#allocation78_spill] sm:$0xff] %v25194_v5  ;;  %v29249_v30 = vsub.s32 0, %v25194_v5  ;;  %v3980_v52 = vsub.s32 1, %v25194_v5 }
 0x443   : > { %v3984_v22 = vsub.s32 2, %v25194_v5 }
 0x444   : > { %3412 = vmatpush1.msra.mxu1 %v25065_v40  ;;  %v3572_v40 = vand.u32 4294901760, %v25129_v39  ;;  %v3586_v48 = vand.u32 4294901760, %v3585_v8 }
 0x445   : > { %3469 = vmatmul.mubr.f32.vlgmr.msra.gmra.mrb[14].mxu1 %v25003_v57  ;;  %20086 = vmatprep.subr.bf16.mxu1 %v29250_v62  ;;  %v25218_v12 = vrot.slane %v3973_v18, %v3984_v22 }
 0x446   : > { %20088 = vmatpush3.bf16.msra.mxu1 %v25132_v24  ;;  %17924 = vmatprep.mubr.msk.f32.mxu1 %vm22213_vm2, %v30228_v42  ;;  %v3573_v28 = vsub.f32 %v25129_v39, %v3572_v40  ;;  %v3587_v32 = vsub.f32 %v3585_v8, %v3586_v48  ;;  %v20114_v55 = vpack.c.bf16 %v3579_v63, %v3572_v40 }
 0x447   : > { %20089 = vmatprep.subr.bf16.mxu1 %v29250_v62  ;;  %v25203_v39 = vrot.slane %v3973_v18, %v29249_v30  ;;  %v25206_v63 = vrot.slane %v3973_v18, %v3980_v52  ;;  %30241 = vst [vmem:[#allocation86_spill] sm:$0xff] %v25218_v12  ;;  %vm29401_vm15 = vcmp.eq.s32.totalorder %v25218_v12, 1  ;;  %v25271_v52 = vld [vmem:[%s28789_s6 + $0x90] sm:$0xff] }
 0x448   : > { %v3574_v47 = vand.u32 4294901760, %v3573_v28  ;;  %v3588_v31 = vand.u32 4294901760, %v3587_v32 }
 0x449   : > { %30239 = vst [vmem:[#allocation83_spill] sm:$0xff] %v25203_v39  ;;  %30240 = vst [vmem:[#allocation84_spill] sm:$0xff] %v25206_v63  ;;  %vm29244_vm1 = vcmp.eq.s32.totalorder %v25203_v39, 1  ;;  %vm29402_vm3 = vcmp.eq.s32.totalorder %v25206_v63, 1  ;;  %v25400_v63 = vld [vmem:[%s28789_s6 + $0xc0] sm:$0xff]  ;;  %v25405_v39 = vld [vmem:[%s28789_s6 + $0xc8] sm:$0xff] }
 0x44a   : > { %20091 = vmatpush3.bf16.msra.mxu1 %v20090_v14  ;;  %v20096_v27 = vpack.c.bf16 %v3581_v19, %v3574_v47 }
 0x44b   : > { %17922 = vmatprep.subr.mxu1 %v30228_v42 }
 0x44e   : > { %17923 = vmatpush3.msra.mxu1 %v25137_v15 }
 0x44f   : > { %20092 = vmatprep.subr.bf16.mxu1 %v29250_v62  ;;  %17925 = vmatmul.mubr.f32.vlgmr.msra.gmra.mrb[16].mxu1 %v25063_v43 }
 0x450   : > { %20094 = vmatpush3.bf16.msra.mxu1 %v20093_v9  ;;  %17937 = vmatprep.mubr.msk.f32.mxu1 %vm22213_vm2, %v30228_v42 }
 0x451   : > { %20095 = vmatprep.subr.bf16.mxu1 %v29250_v62 }
 0x454   : > { %20097 = vmatpush3.bf16.msra.mxu1 %v20096_v27 }
 0x455   : > { %17935 = vmatprep.subr.mxu1 %v30228_v42 }
 0x458   : > { %17936 = vmatpush3.msra.mxu1 %v3588_v31 }
 0x459   : > { %20098 = vmatprep.subr.bf16.mxu1 %v29250_v62  ;;  %17938 = vmatmul.mubr.f32.vlgmr.msra.gmra.mrb[16].mxu1 %v25003_v57 }
 0x45a   : > { %20100 = vmatpush3.bf16.msra.mxu1 %v20099_v10  ;;  %17950 = vmatprep.mubr.msk.f32.mxu1 %vm22213_vm2, %v30228_v42 }
 0x45b   : > { %20101 = vmatprep.subr.bf16.mxu1 %v29250_v62 }
 0x45e   : > { %20103 = vmatpush3.bf16.msra.mxu1 %v20102_v54 }
 0x45f   : > { %17948 = vmatprep.subr.mxu1 %v30228_v42 }
 0x462   : > { %17949 = vmatpush3.msra.mxu1 %v3585_v8 }
 0x463   : > { %20104 = vmatprep.subr.bf16.mxu1 %v29250_v62  ;;  %17951 = vmatmul.mubr.f32.vlgmr.msra.gmra.mrb[16].mxu1 %v25015_v0  ;;  %v29279_v0 = vand.u32 4294901760, %v25405_v39 }
 0x464   : > { %20106 = vmatpush3.bf16.msra.mxu1 %v25132_v24  ;;  %17963 = vmatprep.mubr.msk.f32.mxu1 %vm22213_vm2, %v30228_v42 }
 0x465   : > { %20107 = vmatprep.subr.bf16.mxu1 %v29250_v62 }
 0x468   : > { %20109 = vmatpush3.bf16.msra.mxu1 %v20090_v14 }
 0x469   : > { %17961 = vmatprep.subr.mxu1 %v30228_v42 }
 0x46c   : > { %17962 = vmatpush3.msra.mxu1 %v25137_v15 }
 0x46d   : > { %20110 = vmatprep.subr.bf16.mxu1 %v29250_v62  ;;  %17964 = vmatmul.mubr.f32.vlgmr.msra.gmra.mrb[16].mxu1 %v25029_v37  ;;  %v29280_v37 = vand.u32 4294901760, %v25400_v63 }
 0x46e   : > { %20112 = vmatpush3.bf16.msra.mxu1 %v20111_v45  ;;  %17976 = vmatprep.mubr.msk.f32.mxu1 %vm22213_vm2, %v30228_v42 }
 0x46f   : > { %20113 = vmatprep.subr.bf16.mxu1 %v29250_v62 }
 0x472   : > { %20115 = vmatpush3.bf16.msra.mxu1 %v20114_v55  ;;  %v25248_v55 = vld [vmem:[%s28789_s6 + $0x80] sm:$0xff] }
 0x473   : > { %17974 = vmatprep.subr.mxu1 %v30228_v42 }
 0x476   : > { %17975 = vmatpush3.msra.mxu1 %v3586_v48 }
 0x477   : > { %20116 = vmatprep.subr.bf16.mxu1 %v29250_v62  ;;  %17977 = vmatmul.mubr.f32.vlgmr.msra.gmra.mrb[16].mxu1 %v25003_v57 }
 0x478   : > { %20118 = vmatpush3.bf16.msra.mxu1 %v25132_v24  ;;  %17989 = vmatprep.mubr.msk.f32.mxu1 %vm22213_vm2, %v30228_v42 }
 0x479   : > { %20119 = vmatprep.subr.bf16.mxu1 %v29250_v62 }
 0x47c   : > { %20121 = vmatpush3.bf16.msra.mxu1 %v20090_v14 }
 0x47d   : > { %17987 = vmatprep.subr.mxu1 %v30228_v42  ;;  %v25199_v11 = vpop.permute.xlu1 %2828 }
 0x47e   : > { %30238 = vst [vmem:[#allocation82_spill] sm:$0xff] %v25199_v11 }
 0x480   : > { %17988 = vmatpush3.msra.mxu1 %v25137_v15 }
 0x481   : > { %17990 = vmatmul.mubr.f32.vlgmr.msra.gmra.mrb[16].mxu1 %v25003_v57  ;;  %v25423_v57 = vld [vmem:[%s28789_s6 + $0x48] sm:$0xff] }
 0x482   : > { %v29281_v4 = vand.u32 4294901760, %v25423_v57 }
 0x4e8   : > { %v2987_v59 = vpop.f32.mrb[2].mxu0 }
 0x4e9   : > { %v2989_v58 = vpop.f32.mrb[3].mxu0  ;;  %v2988_v24 = vadd.f32 %v2987_v59, %v25199_v11  ;;  %v25258_v59 = vld [vmem:[%s28789_s6] sm:$0xff] }
 0x4ea   : > { %v2990_v15 = vadd.f32 %v2989_v58, %v25199_v11  ;;  %v29263_v58 = vand.u32 4294901760, %v25248_v55  ;;  %v29261_v18 = vand.u32 4294901760, %v25258_v59 }
 0x518   : > { %v3470_v6 = vpop.f32.mrb[14].mxu1 }
 0x519   : > { %v21961_v40 = vadd.f32 %v3470_v6, %v2988_v24  ;;  %v3472_v14 = vpop.f32.mrb[15].mxu1  ;;  %v25276_v24 = vld [vmem:[%s28789_s6 + $0x98] sm:$0xff]  ;;  %v29253_v6 = vand.u32 4294901760, %v25271_v52 }
 0x51a   : > { %v21963_v21 = vadd.f32 %v3472_v14, %v2990_v15  ;;  %v29260_v15 = vand.u32 4294901760, %v25265_v34  ;;  %v25286_v14 = vld [vmem:[%s28789_s6 + $0x10] sm:$0xff] }
 0x51b   : > { %v3989_v8 = vsel %vm29244_vm1, %v21961_v40, -3e+38  ;;  %vm29367_vm1 = vcmask 1047760   ;;  %v29252_v40 = vand.u32 4294901760, %v25276_v24  ;;  %v29257_v22 = vand.u32 4294901760, %v25286_v14 }
 0x51c   : > { %3995 = vrot.lane.b32.xlu0 %v3989_v8, %s22201_s21  ;;  %v3990_v23 = vsel %vm29402_vm3, %v21963_v21, -3e+38  ;;  %v25291_v21 = vld [vmem:[%s28789_s6 + $0x18] sm:$0xff]  ;;  %v25296_v8 = vld [vmem:[%s28789_s6 + $0xa0] sm:$0xff] }
 0x51d   : > { %3997 = vrot.lane.b32.xlu1 %v3990_v23, %s22201_s21  ;;  %v25302_v23 = vpack.c.bf16 %v29262_v46, %v29263_v58  ;;  %v25410_v58 = vld [vmem:[%s28789_s6 + $0x40] sm:$0xff] }
 0x51e   : > { %v29282_v43 = vand.u32 4294901760, %v25410_v58 }
 0x51f   : > { %30242 = vst [vmem:[#allocation89_spill] sm:$0xff] %v25302_v23  ;;  %20219 = vmatprep.subr.bf16.mxu0 %v25302_v23  ;;  %20123 = vmatprep.subr.bf16.mxu1 %v25302_v23 }
 0x554   : > { %v3969_v28 = vpop.f32.mrb[16].mxu1 }
 0x555   : > { %v21964_v48 = vadd.f32 %v3969_v28, %v25199_v11  ;;  %v17991_v9 = vpop.f32.mrb[17].mxu1  ;;  %v29254_v28 = vand.u32 4294901760, %v25291_v21 }
 0x556   : > { %v29256_v9 = vand.u32 4294901760, %v25296_v8 }
 0x557   : > { %v3991_v19 = vsel %vm29401_vm15, %v21964_v48, -3e+38  ;;  %v25309_v48 = vld [vmem:[%s28789_s6 + $0xa8] sm:$0xff]  ;;  %v25343_v30 = vpack.c.bf16 %v29254_v28, %v29257_v22  ;;  %v25375_v22 = vld [vmem:[%s28789_s6 + $0xb8] sm:$0xff] }
 0x558   : > { %3999 = vrot.lane.b32.xlu0 %v3991_v19, %s22201_s21  ;;  %v25315_v19 = vld [vmem:[%s28789_s6 + $0x20] sm:$0xff]  ;;  %v30272_v13 = vand.u32 4294901760, %v25375_v22 }
 0x559   : > { %30245 = vst [vmem:[#allocation94_spill] sm:$0xff] %v25343_v30  ;;  %v29259_v62 = vand.u32 4294901760, %v25315_v19 }
 0x58e   : > { %v3996_v47 = vpop.permute.xlu0 %3995 }
 0x58f   : > { %4007 = vst.msk [vmem:[#allocation3] sm:$0xff] %vm29367_vm1, %v3996_v47  ;;  %v3998_v27 = vpop.permute.xlu1 %3997  ;;  %vm4080_vm1 = vcmask 1042432  }
 0x590   : > { %v25227_v32 = vsel %vm370_vm4, %v3996_v47, %v3998_v27  ;;  %v25320_v47 = vld [vmem:[%s28789_s6 + $0x28] sm:$0xff] }
 0x591   : > { %4033 = vrot.lane.b32.xlu0 %v25227_v32, %s22205_s25 }
 0x596   : > { %v25231_v31 = vld [vmem:[#allocation3] sm:$0xff] }
 0x597   : > { %4017 = vrot.lane.b32.xlu1 %v25231_v31, %s22203_s23 }
 0x59b   : > { %4019 = vrot.lane.b32.xlu1 %v25227_v32, %s22203_s23 }
 0x5ca   : > { %v4000_v10 = vpop.permute.xlu0 %3999 }
 0x5cb   : > { %v4002_v54 = vsel %vm370_vm4, %v3998_v27, %v4000_v10  ;;  %v25326_v27 = vpack.c.bf16 %v29260_v15, %v29261_v18  ;;  %v25332_v10 = vpack.c.bf16 %v29252_v40, %v29253_v6  ;;  %v29258_v40 = vand.u32 4294901760, %v25320_v47  ;;  %v25387_v18 = vld [vmem:[%s28789_s6 + $0x38] sm:$0xff] }
 0x5cc   : > { %4010 = vst.msk [vmem:[#allocation3 + $0x10] sm:$0xff] %vm29365_vm0, %v4002_v54  ;;  %v29255_v54 = vand.u32 4294901760, %v25309_v48  ;;  %v29269_v15 = vand.u32 4294901760, %v25375_v22  ;;  %vm29374_vm0 = vcmask 154624  }
 0x5cd   : > { %30243 = vst [vmem:[#allocation91_spill] sm:$0xff] %v25326_v27  ;;  %30244 = vst [vmem:[#allocation93_spill] sm:$0xff] %v25332_v10  ;;  %20221 = vmatpush3.bf16.msra.mxu0 %v25326_v27  ;;  %20125 = vmatpush3.bf16.msra.mxu1 %v25326_v27  ;;  %v25361_v28 = vpack.c.bf16 %v29258_v40, %v29259_v62  ;;  %v25380_v40 = vld [vmem:[%s28789_s6 + $0x30] sm:$0xff] }
 0x5ce   : > { %20223 = vmatprep.subr.bf16.mxu0 %v25332_v10  ;;  %20127 = vmatprep.subr.bf16.mxu1 %v25332_v10  ;;  %v25353_v6 = vpack.c.bf16 %v29255_v54, %v29256_v9  ;;  %v25370_v9 = vld [vmem:[%s28789_s6 + $0xb0] sm:$0xff]  ;;  %v30249_v11 = vand.u32 4294901760, %v25380_v40  ;;  %v30273_v38 = vand.u32 4294901760, %v25380_v40 }
 0x5cf   : > { %30247 = vst [vmem:[#allocation99_spill] sm:$0xff] %v25361_v28  ;;  %v29270_v62 = vand.u32 4294901760, %v25370_v9  ;;  %v30271_v7 = vand.u32 4294901760, %v25370_v9 }
 0x5d0   : > { %30246 = vst [vmem:[#allocation98_spill] sm:$0xff] %v25353_v6 }
 0x5d1   : > { %20225 = vmatpush3.bf16.msra.mxu0 %v25343_v30  ;;  %20129 = vmatpush3.bf16.msra.mxu1 %v25343_v30  ;;  %v25395_v12 = vpack.c.bf16 %v29269_v15, %v29270_v62  ;;  %v30250_v15 = vand.u32 4294901760, %v25387_v18 }
 0x5d2   : > { %20227 = vmatprep.subr.bf16.mxu0 %v25353_v6  ;;  %20131 = vmatprep.subr.bf16.mxu1 %v25353_v6 }
 0x5d3   : > { %v25239_v45 = vld [vmem:[#allocation3 + $0x10] sm:$0xff]  ;;  %30248 = vst [vmem:[#allocation100_spill] sm:$0xff] %v25395_v12  ;;  %v25416_v62 = vpack.c.bf16 %v30250_v15, %v30249_v11  ;;  %v25434_v11 = vpack.c.bf16 %v29279_v0, %v29280_v37  ;;  %v25441_v15 = vpack.c.bf16 %v29281_v4, %v29282_v43  ;;  %v25456_v43 = vld [vmem:[%s28789_s6 + $0xd0] sm:$0xff] }
 0x5d4   : > { %4035 = vrot.lane.b32.xlu1 %v25239_v45, %s22205_s25  ;;  %4021 = vrot.lane.b32.xlu0 %v25239_v45, %s22203_s23  ;;  %v30255_v60 = vand.u32 4294901760, %v25456_v43 }
 0x5d5   : > { %20229 = vmatpush3.bf16.msra.mxu0 %v25361_v28  ;;  %20133 = vmatpush3.bf16.msra.mxu1 %v25361_v28  ;;  %30251 = vst [vmem:[#allocation102_spill] sm:$0xff] %v25416_v62  ;;  %30252 = vst [vmem:[#allocation105_spill] sm:$0xff] %v25434_v11 }
 0x5d6   : > { %20231 = vmatprep.subr.bf16.mxu0 %v25395_v12  ;;  %20135 = vmatprep.subr.bf16.mxu1 %v25395_v12  ;;  %30253 = vst [vmem:[#allocation107_spill] sm:$0xff] %v25441_v15 }
 0x5d8   : > { %4031 = vrot.lane.b32.xlu0 %v25231_v31, %s22205_s25 }
 0x5d9   : > { %20233 = vmatpush3.bf16.msra.mxu0 %v25416_v62  ;;  %20137 = vmatpush3.bf16.msra.mxu1 %v25416_v62 }
 0x5da   : > { %20235 = vmatprep.subr.bf16.mxu0 %v25434_v11  ;;  %20139 = vmatprep.subr.bf16.mxu1 %v25434_v11 }
 0x5dd   : > { %20237 = vmatpush3.bf16.msra.mxu0 %v25441_v15  ;;  %20141 = vmatpush3.bf16.msra.mxu1 %v25441_v15 }
 0x603   : > { %v4034_v46 = vpop.permute.xlu0 %4033 }
 0x609   : > { %v4018_v54 = vpop.permute.xlu1 %4017 }
 0x60d   : > { %v4020_v36 = vpop.permute.xlu1 %4019 }
 0x60e   : > { %v4023_v1 = vsel %vm2726_vm7, %v4018_v54, %v4020_v36 }
 0x646   : > { %v4022_v35 = vpop.permute.xlu0 %4021  ;;  %v4036_v37 = vpop.permute.xlu1 %4035 }
 0x647   : > { %v4024_v56 = vsel %vm2726_vm7, %v4020_v36, %v4022_v35  ;;  %v4030_v0 = vmax.f32 %v25239_v45, %v4022_v35  ;;  %v25461_v36 = vld [vmem:[%s28789_s6 + $0xd8] sm:$0xff]  ;;  %v4028_v35 = vmax.f32 %v25231_v31, %v4023_v1  ;;  %v4038_v3 = vsel %vm2738_vm9, %v4034_v46, %v4036_v37 }
 0x648   : > { %v4029_v29 = vmax.f32 %v25227_v32, %v4024_v56  ;;  %v25469_v56 = vld [vmem:[%s28789_s6 + $0x50] sm:$0xff]  ;;  %v30256_v33 = vand.u32 4294901760, %v25461_v36 }
 0x649   : > { %v25451_v4 = vmax.f32 %v4030_v0, %v4036_v37  ;;  %v25474_v0 = vld [vmem:[%s28789_s6 + $0x58] sm:$0xff]  ;;  %v29287_v1 = vand.u32 4294901760, %v25469_v56  ;;  %v25501_v37 = vld [vmem:[%s28789_s6 + $0xe0] sm:$0xff] }
 0x64a   : > { %v4032_v45 = vpop.permute.xlu0 %4031  ;;  %v29286_v31 = vand.u32 4294901760, %v25474_v0  ;;  %v25488_v61 = vpack.c.bf16 %v30256_v33, %v30255_v60  ;;  %v25490_v20 = vmax.f32 %v4029_v29, %v4038_v3  ;;  %v25516_v3 = vld [vmem:[%s28789_s6 + $0x60] sm:$0xff]  ;;  %v25521_v29 = vld [vmem:[%s28789_s6 + $0x68] sm:$0xff]  ;;  %v25542_v33 = vld [vmem:[%s28789_s6 + $0x70] sm:$0xff] }
 0x64b   : > { %30254 = vst [vmem:[#allocation109_spill] sm:$0xff] %v25451_v4  ;;  %v4037_v32 = vsel %vm2738_vm9, %v4032_v45, %v4034_v46  ;;  %4052 = vrot.lane.b32.xlu0 %v25451_v4, %s22202_s22  ;;  %v25506_v46 = vld [vmem:[%s28789_s6 + $0xe8] sm:$0xff]  ;;  %v29298_v25 = vand.u32 4294901760, %v25542_v33  ;;  %v30262_v16 = vand.u32 4294901760, %v25516_v3  ;;  %v30263_v26 = vand.u32 4294901760, %v25521_v29 }
 0x64c   : > { %v25482_v54 = vmax.f32 %v4028_v35, %v4037_v32  ;;  %30257 = vst [vmem:[#allocation110_spill] sm:$0xff] %v25488_v61  ;;  %v25496_v45 = vpack.c.bf16 %v29286_v31, %v29287_v1  ;;  %20239 = vmatprep.subr.bf16.mxu0 %v25488_v61  ;;  %v25526_v35 = vld [vmem:[%s28789_s6 + $0xf0] sm:$0xff]  ;;  %v25536_v1 = vld [vmem:[%s28789_s6 + $0xf8] sm:$0xff]  ;;  %20143 = vmatprep.subr.bf16.mxu1 %v25488_v61  ;;  %v30259_v31 = vand.u32 4294901760, %v25501_v37  ;;  %v30260_v32 = vand.u32 4294901760, %v25506_v46 }
 0x64d   : > { %v29295_v60 = vand.u32 4294901760, %v25536_v1  ;;  %v25564_v51 = vpack.c.bf16 %v30263_v26, %v30262_v16  ;;  %v25582_v26 = vpack.c.bf16 %v29297_v44, %v29298_v25  ;;  %v30268_v16 = vand.u32 4294901760, %v25248_v55 }
 0x64e   : > { %30258 = vst [vmem:[#allocation114_spill] sm:$0xff] %v25496_v45  ;;  %4048 = vrot.lane.b32.xlu1 %v25482_v54, %s22202_s22  ;;  %20241 = vmatpush3.bf16.msra.mxu0 %v25496_v45  ;;  %v25554_v50 = vpack.c.bf16 %v30260_v32, %v30259_v31  ;;  %v30265_v31 = vand.u32 4294901760, %v25526_v35 }
 0x64f   : > { %4064 = vrot.lane.b32.xlu0 %v25490_v20, %s29387_s26  ;;  %20145 = vmatpush3.bf16.msra.mxu1 %v25496_v45  ;;  %30264 = vst [vmem:[#allocation116_spill] sm:$0xff] %v25564_v51  ;;  %30267 = vst [vmem:[#allocation123_spill] sm:$0xff] %v25582_v26 }
 0x650   : > { %30261 = vst [vmem:[#allocation115_spill] sm:$0xff] %v25554_v50  ;;  %20243 = vmatprep.subr.bf16.mxu0 %v25554_v50  ;;  %v25573_v32 = vpack.c.bf16 %v29295_v60, %v30265_v31  ;;  %20147 = vmatprep.subr.bf16.mxu1 %v25554_v50  ;;  %v25589_v31 = vsub.f32 %v25248_v55, %v30268_v16  ;;  %v30269_v60 = vand.u32 4294901760, %v25253_v53  ;;  %v30288_v50 = vand.u32 4294901760, %v25506_v46 }
 0x652   : > { %4050 = vrot.lane.b32.xlu1 %v25490_v20, %s22202_s22  ;;  %30266 = vst [vmem:[#allocation118_spill] sm:$0xff] %v25573_v32  ;;  %20245 = vmatpush3.bf16.msra.mxu0 %v25564_v51  ;;  %v25594_v41 = vsub.f32 %v25253_v53, %v30269_v60  ;;  %v29304_v44 = vand.u32 4294901760, %v25589_v31 }
 0x653   : > { %4062 = vrot.lane.b32.xlu0 %v25482_v54, %s29387_s26  ;;  %20247 = vmatprep.subr.bf16.mxu0 %v25573_v32 }
 0x654   : > { %20149 = vmatpush3.bf16.msra.mxu1 %v25564_v51  ;;  %v29305_v25 = vand.u32 4294901760, %v25594_v41  ;;  %v4312_v55 = vsub.f32 %v25589_v31, %v29304_v44  ;;  %v25622_v44 = vsub.f32 %v25375_v22, %v30272_v13  ;;  %v30275_v22 = vand.u32 4294901760, %v25400_v63 }
 0x655   : > { %20151 = vmatprep.subr.bf16.mxu1 %v25573_v32 }
 0x656   : > { %4066 = vrot.lane.b32.xlu1 %v25451_v4, %s29387_s26  ;;  %20249 = vmatpush3.bf16.msra.mxu0 %v25582_v26  ;;  %v4319_v53 = vsub.f32 %v25594_v41, %v29305_v25  ;;  %v4313_v60 = vand.u32 4294901760, %v4312_v55  ;;  %v25628_v55 = vsub.f32 %v25380_v40, %v30273_v38 }
 0x657   : > { %20283 = vmatprep.subr.bf16.mxu0 %v25302_v23  ;;  %v25617_v23 = vsub.f32 %v25370_v9, %v30271_v7  ;;  %v25643_v9 = vsub.f32 %v25400_v63, %v30275_v22 }
 0x658   : > { %20153 = vmatpush3.bf16.msra.mxu1 %v25582_v26  ;;  %v4320_v16 = vand.u32 4294901760, %v4319_v53  ;;  %v29310_v53 = vand.u32 4294901760, %v25622_v44  ;;  %v29311_v13 = vand.u32 4294901760, %v25628_v55 }
 0x659   : > { %v29308_v25 = vand.u32 4294901760, %v25617_v23 }
 0x65a   : > { %v25611_v17 = vpack.c.bf16 %v4320_v16, %v4313_v60  ;;  %v30274_v60 = vand.u32 4294901760, %v25387_v18  ;;  %v4361_v38 = vsub.f32 %v25622_v44, %v29310_v53  ;;  %v30277_v53 = vand.u32 4294901760, %v25410_v58 }
 0x65b   : > { %v4354_v7 = vsub.f32 %v25617_v23, %v29308_v25  ;;  %v30276_v25 = vand.u32 4294901760, %v25405_v39 }
 0x65c   : > { %30270 = vst [vmem:[#allocation124_spill] sm:$0xff] %v25611_v17  ;;  %20155 = vmatprep.subr.bf16.mxu1 %v25611_v17  ;;  %v25634_v16 = vsub.f32 %v25387_v18, %v30274_v60  ;;  %v4242_v18 = vsub.f32 %v25628_v55, %v29311_v13  ;;  %v29315_v60 = vand.u32 4294901760, %v25643_v9  ;;  %v4362_v63 = vand.u32 4294901760, %v4361_v38 }
 0x65d   : > { %v4355_v17 = vand.u32 4294901760, %v4354_v7  ;;  %v25656_v5 = vsub.f32 %v25405_v39, %v30276_v25  ;;  %v25664_v7 = vsub.f32 %v25410_v58, %v30277_v53  ;;  %v30278_v25 = vand.u32 4294901760, %v25423_v57 }
 0x65e   : > { %v29313_v40 = vand.u32 4294901760, %v25634_v16  ;;  %v4243_v2 = vand.u32 4294901760, %v4242_v18  ;;  %v4368_v13 = vsub.f32 %v25643_v9, %v29315_v60  ;;  %v30280_v58 = vand.u32 4294901760, %v25456_v43 }
 0x65f   : > { %v29318_v4 = vand.u32 4294901760, %v25656_v5  ;;  %v25673_v39 = vsub.f32 %v25423_v57, %v30278_v25  ;;  %v25675_v38 = vpack.c.bf16 %v4362_v63, %v4355_v17  ;;  %v29319_v42 = vand.u32 4294901760, %v25664_v7 }
 0x660   : > { %v4249_v22 = vsub.f32 %v25634_v16, %v29313_v40  ;;  %v25681_v53 = vsub.f32 %v25456_v43, %v30280_v58  ;;  %v4369_v18 = vand.u32 4294901760, %v4368_v13  ;;  %v30281_v57 = vand.u32 4294901760, %v25461_v36 }
 0x661   : > { %30279 = vst [vmem:[#allocation128_spill] sm:$0xff] %v25675_v38  ;;  %v4375_v60 = vsub.f32 %v25656_v5, %v29318_v4  ;;  %v29320_v26 = vand.u32 4294901760, %v25673_v39  ;;  %v30283_v13 = vand.u32 4294901760, %v25469_v56  ;;  %v30338_v61 = vand.u32 4294901760, %v25656_v5 }
 0x662   : > { %v4250_v40 = vand.u32 4294901760, %v4249_v22  ;;  %v25690_v17 = vsub.f32 %v25461_v36, %v30281_v57  ;;  %v4256_v22 = vsub.f32 %v25664_v7, %v29319_v42  ;;  %v29323_v43 = vand.u32 4294901760, %v25681_v53 }
 0x663   : > { %v25701_v25 = vsub.f32 %v25469_v56, %v30283_v13  ;;  %v4376_v58 = vand.u32 4294901760, %v4375_v60  ;;  %v4263_v4 = vsub.f32 %v25673_v39, %v29320_v26  ;;  %v30285_v60 = vand.u32 4294901760, %v25501_v37 }
 0x664   : > { %v25692_v63 = vpack.c.bf16 %v4250_v40, %v4243_v2  ;;  %v30284_v2 = vand.u32 4294901760, %v25474_v0  ;;  %v4257_v57 = vand.u32 4294901760, %v4256_v22  ;;  %v4382_v42 = vsub.f32 %v25681_v53, %v29323_v43 }
 0x665   : > { %v29328_v56 = vand.u32 4294901760, %v25701_v25  ;;  %v25719_v13 = vsub.f32 %v25501_v37, %v30285_v60  ;;  %v25721_v26 = vpack.c.bf16 %v4376_v58, %v4369_v18  ;;  %v4264_v36 = vand.u32 4294901760, %v4263_v4 }
 0x666   : > { %30282 = vst [vmem:[#allocation129_spill] sm:$0xff] %v25692_v63  ;;  %v25710_v40 = vsub.f32 %v25474_v0, %v30284_v2  ;;  %v30287_v32 = vand.u32 4294901760, %v25690_v17  ;;  %v4383_v2 = vand.u32 4294901760, %v4382_v42  ;;  %v25734_v37 = vsub.f32 %v25506_v46, %v30288_v50 }
 0x667   : > { %30286 = vst [vmem:[#allocation229_spill] sm:$0xff] %v25721_v26  ;;  %v4270_v43 = vsub.f32 %v25701_v25, %v29328_v56  ;;  %v29330_v51 = vand.u32 4294901760, %v25719_v13  ;;  %v25736_v18 = vpack.c.bf16 %v4264_v36, %v4257_v57  ;;  %v30290_v42 = vand.u32 4294901760, %v25516_v3 }
 0x668   : > { %v4389_v0 = vsub.f32 %v25690_v17, %v30287_v32  ;;  %v29329_v22 = vand.u32 4294901760, %v25710_v40  ;;  %v29333_v50 = vand.u32 4294901760, %v25734_v37  ;;  %v30291_v46 = vand.u32 4294901760, %v25521_v29 }
 0x669   : > { %30289 = vst [vmem:[#allocation230_spill] sm:$0xff] %v25736_v18  ;;  %v25744_v58 = vsub.f32 %v25516_v3, %v30290_v42  ;;  %v4271_v60 = vand.u32 4294901760, %v4270_v43  ;;  %v4396_v56 = vsub.f32 %v25719_v13, %v29330_v51  ;;  %v30293_v3 = vand.u32 4294901760, %v25526_v35 }
 0x66a   : > { %v4390_v4 = vand.u32 4294901760, %v4389_v0  ;;  %v4277_v32 = vsub.f32 %v25710_v40, %v29329_v22  ;;  %v25753_v36 = vsub.f32 %v25521_v29, %v30291_v46  ;;  %v4403_v51 = vsub.f32 %v25734_v37, %v29333_v50 }
 0x66b   : > { %v29334_v22 = vand.u32 4294901760, %v25744_v58  ;;  %v25761_v43 = vsub.f32 %v25526_v35, %v30293_v3  ;;  %v4397_v42 = vand.u32 4294901760, %v4396_v56  ;;  %v30294_v29 = vand.u32 4294901760, %v25536_v1 }
 0x66c   : > { %v25755_v57 = vpack.c.bf16 %v4390_v4, %v4383_v2  ;;  %v4278_v0 = vand.u32 4294901760, %v4277_v32  ;;  %v29335_v45 = vand.u32 4294901760, %v25753_v36  ;;  %v30296_v56 = vand.u32 4294901760, %v25542_v33 }
 0x66d   : > { %v25770_v2 = vsub.f32 %v25536_v1, %v30294_v29  ;;  %v4284_v32 = vsub.f32 %v25744_v58, %v29334_v22  ;;  %v29338_v35 = vand.u32 4294901760, %v25761_v43  ;;  %v4404_v3 = vand.u32 4294901760, %v4403_v51 }
 0x66e   : > { %30292 = vst [vmem:[#allocation231_spill] sm:$0xff] %v25755_v57  ;;  %v25772_v4 = vpack.c.bf16 %v4278_v0, %v4271_v60  ;;  %v25781_v46 = vsub.f32 %v25542_v33, %v30296_v56  ;;  %v4291_v50 = vsub.f32 %v25753_v36, %v29335_v45  ;;  %v30297_v60 = vand.u32 4294901760, %v25547_v49 }
 0x66f   : > { %v29341_v1 = vand.u32 4294901760, %v25770_v2  ;;  %v4285_v29 = vand.u32 4294901760, %v4284_v32  ;;  %v4410_v22 = vsub.f32 %v25761_v43, %v29338_v35  ;;  %v25796_v56 = vpack.c.bf16 %v4404_v3, %v4397_v42 }
 0x670   : > { %30295 = vst [vmem:[#allocation232_spill] sm:$0xff] %v25772_v4  ;;  %v25790_v0 = vsub.f32 %v25547_v49, %v30297_v60  ;;  %v4297_v33 = vand.u32 4294901760, %v25781_v46  ;;  %v4292_v51 = vand.u32 4294901760, %v4291_v50  ;;  %v25805_v32 = vpack.c.bf16 %v25594_v41, %v25589_v31 }
 0x671   : > { %30298 = vst [vmem:[#allocation233_spill] sm:$0xff] %v25796_v56  ;;  %v4417_v45 = vsub.f32 %v25770_v2, %v29341_v1  ;;  %v4411_v57 = vand.u32 4294901760, %v4410_v22  ;;  %v25816_v22 = vpack.c.bf16 %v25622_v44, %v25617_v23  ;;  %v25820_v1 = vpack.c.bf16 %v25634_v16, %v25628_v55 }
 0x672   : > { %v4304_v4 = vand.u32 4294901760, %v25790_v0  ;;  %v4298_v49 = vsub.f32 %v25781_v46, %v4297_v33  ;;  %30299 = vst [vmem:[#allocation234_spill] sm:$0xff] %v25805_v32  ;;  %v25807_v60 = vpack.c.bf16 %v4292_v51, %v4285_v29  ;;  %v25824_v29 = vpack.c.bf16 %v25656_v5, %v25643_v9 }
 0x673   : > { %v4418_v35 = vand.u32 4294901760, %v4417_v45  ;;  %30303 = vst [vmem:[#allocation238_spill] sm:$0xff] %v25816_v22  ;;  %30304 = vst [vmem:[#allocation239_spill] sm:$0xff] %v25820_v1  ;;  %v25828_v45 = vpack.c.bf16 %v25673_v39, %v25664_v7  ;;  %v25844_v51 = vpack.c.bf16 %v25753_v36, %v25744_v58  ;;  %v30322_v22 = vand.u32 4294901760, %v25320_v47 }
 0x674   : > { %30300 = vst [vmem:[#allocation235_spill] sm:$0xff] %v25807_v60  ;;  %v4305_v42 = vsub.f32 %v25790_v0, %v4304_v4  ;;  %v4299_v3 = vand.u32 4294901760, %v4298_v49  ;;  %30305 = vst [vmem:[#allocation240_spill] sm:$0xff] %v25824_v29  ;;  %v30311_v49 = vand.u32 4294901760, %v25258_v59  ;;  %v30350_v5 = vand.u32 4294901760, %v25734_v37 }
 0x675   : > { %v25810_v50 = vpack.c.bf16 %v4418_v35, %v4411_v57  ;;  %30306 = vst [vmem:[#allocation241_spill] sm:$0xff] %v25828_v45  ;;  %v25832_v57 = vpack.c.bf16 %v25690_v17, %v25681_v53  ;;  %v25836_v35 = vpack.c.bf16 %v25710_v40, %v25701_v25  ;;  %30310 = vst [vmem:[#allocation245_spill] sm:$0xff] %v25844_v51  ;;  %v30315_v51 = vand.u32 4294901760, %v25276_v24 }
 0x676   : > { %v4306_v56 = vand.u32 4294901760, %v4305_v42  ;;  %v25849_v42 = vsub.f32 %v25258_v59, %v30311_v49  ;;  %v25872_v59 = vpack.c.bf16 %v25790_v0, %v25781_v46  ;;  %v30317_v49 = vand.u32 4294901760, %v25286_v14 }
 0x677   : > { %30301 = vst [vmem:[#allocation236_spill] sm:$0xff] %v25810_v50  ;;  %30307 = vst [vmem:[#allocation242_spill] sm:$0xff] %v25832_v57  ;;  %v30313_v57 = vand.u32 4294901760, %v25265_v34  ;;  %v25868_v29 = vsub.f32 %v25276_v24, %v30315_v51  ;;  %v25908_v32 = vsub.f32 %v25320_v47, %v30322_v22 }
 0x678   : > { %v25812_v18 = vpack.c.bf16 %v4306_v56, %v4299_v3  ;;  %30308 = vst [vmem:[#allocation243_spill] sm:$0xff] %v25836_v35  ;;  %v25840_v56 = vpack.c.bf16 %v25734_v37, %v25719_v13  ;;  %v25853_v3 = vpack.c.bf16 %v25770_v2, %v25761_v43  ;;  %30316 = vst [vmem:[#allocation247_spill] sm:$0xff] %v25872_v59  ;;  %v30321_v59 = vand.u32 4294901760, %v25315_v19 }
 0x679   : > { %v25858_v35 = vsub.f32 %v25265_v34, %v30313_v57  ;;  %v30318_v34 = vand.u32 4294901760, %v25291_v21  ;;  %v4332_v51 = vand.u32 4294901760, %v25868_v29  ;;  %v4234_v47 = vand.u32 4294901760, %v25908_v32 }
 0x67a   : > { %30302 = vst [vmem:[#allocation237_spill] sm:$0xff] %v25812_v18  ;;  %30309 = vst [vmem:[#allocation244_spill] sm:$0xff] %v25840_v56  ;;  %v30314_v56 = vand.u32 4294901760, %v25271_v52  ;;  %v25903_v1 = vsub.f32 %v25315_v19, %v30321_v59  ;;  %v30323_v18 = vand.u32 4294901760, %v25589_v31 }
 0x67b   : > { %30312 = vst [vmem:[#allocation246_spill] sm:$0xff] %v25853_v3  ;;  %v25877_v3 = vsub.f32 %v25286_v14, %v30317_v49  ;;  %v25882_v57 = vsub.f32 %v25291_v21, %v30318_v34  ;;  %v30319_v14 = vand.u32 4294901760, %v25296_v8  ;;  %v30320_v21 = vand.u32 4294901760, %v25309_v48 }
 0x67c   : > { %v25863_v45 = vsub.f32 %v25271_v52, %v30314_v56  ;;  %v4199_v52 = vand.u32 4294901760, %v25849_v42  ;;  %v4206_v56 = vand.u32 4294901760, %v25858_v35  ;;  %v4227_v60 = vand.u32 4294901760, %v25903_v1 }
 0x67d   : > { %v4213_v46 = vand.u32 4294901760, %v25877_v3  ;;  %v4220_v0 = vand.u32 4294901760, %v25882_v57  ;;  %v25893_v49 = vsub.f32 %v25296_v8, %v30319_v14  ;;  %v25898_v34 = vsub.f32 %v25309_v48, %v30320_v21 }
 0x67e   : > { %v4325_v24 = vand.u32 4294901760, %v25863_v45  ;;  %v30324_v8 = vand.u32 4294901760, %v25594_v41  ;;  %v25916_v50 = vpack.c.bf16 %v4206_v56, %v4199_v52  ;;  %v25928_v31 = vpack.c.bf16 %v4234_v47, %v4227_v60 }
 0x67f   : > { %v25920_v21 = vpack.c.bf16 %v4220_v0, %v4213_v46  ;;  %v4339_v19 = vand.u32 4294901760, %v25893_v49  ;;  %v4346_v59 = vand.u32 4294901760, %v25898_v34  ;;  %v30331_v41 = vand.u32 4294901760, %v25617_v23 }
 0x680   : > { %v25914_v14 = vpack.c.bf16 %v30324_v8, %v30323_v18  ;;  %30326 = vst [vmem:[#allocation249_spill] sm:$0xff] %v25916_v50  ;;  %v25918_v48 = vpack.c.bf16 %v4332_v51, %v4325_v24  ;;  %30330 = vst [vmem:[#allocation253_spill] sm:$0xff] %v25928_v31  ;;  %v30332_v18 = vand.u32 4294901760, %v25622_v44  ;;  %v30340_v31 = vand.u32 4294901760, %v25664_v7 }
 0x681   : > { %30328 = vst [vmem:[#allocation251_spill] sm:$0xff] %v25920_v21  ;;  %v25926_v22 = vpack.c.bf16 %v4346_v59, %v4339_v19  ;;  %v30334_v21 = vand.u32 4294901760, %v25628_v55  ;;  %v30341_v23 = vand.u32 4294901760, %v25673_v39  ;;  %v30343_v44 = vand.u32 4294901760, %v25681_v53 }
 0x682   : > { %30325 = vst [vmem:[#allocation248_spill] sm:$0xff] %v25914_v14  ;;  %30327 = vst [vmem:[#allocation250_spill] sm:$0xff] %v25918_v48  ;;  %v25934_v8 = vpack.c.bf16 %v30332_v18, %v30331_v41  ;;  %v30335_v48 = vand.u32 4294901760, %v25634_v16  ;;  %v30337_v14 = vand.u32 4294901760, %v25643_v9  ;;  %v30344_v55 = vand.u32 4294901760, %v25690_v17 }
 0x683   : > { %30329 = vst [vmem:[#allocation252_spill] sm:$0xff] %v25926_v22  ;;  %v25952_v22 = vpack.c.bf16 %v30341_v23, %v30340_v31  ;;  %v30346_v16 = vand.u32 4294901760, %v25701_v25  ;;  %v30347_v9 = vand.u32 4294901760, %v25710_v40  ;;  %v30352_v39 = vand.u32 4294901760, %v25744_v58 }
 0x684   : > { %30333 = vst [vmem:[#allocation254_spill] sm:$0xff] %v25934_v8  ;;  %v25940_v50 = vpack.c.bf16 %v30335_v48, %v30334_v21  ;;  %v25946_v26 = vpack.c.bf16 %v30338_v61, %v30337_v14  ;;  %v25958_v41 = vpack.c.bf16 %v30344_v55, %v30343_v44  ;;  %v30349_v61 = vand.u32 4294901760, %v25719_v13 }
 0x685   : > { %30342 = vst [vmem:[#allocation257_spill] sm:$0xff] %v25952_v22  ;;  %v25964_v48 = vpack.c.bf16 %v30347_v9, %v30346_v16  ;;  %v30353_v53 = vand.u32 4294901760, %v25753_v36  ;;  %v30355_v17 = vand.u32 4294901760, %v25761_v43  ;;  %v30356_v25 = vand.u32 4294901760, %v25770_v2 }
 0x686   : > { %30336 = vst [vmem:[#allocation255_spill] sm:$0xff] %v25940_v50  ;;  %30339 = vst [vmem:[#allocation256_spill] sm:$0xff] %v25946_v26  ;;  %v25970_v7 = vpack.c.bf16 %v30350_v5, %v30349_v61  ;;  %v25984_v40 = vpack.c.bf16 %v4304_v4, %v4297_v33  ;;  %v4200_v61 = vsub.f32 %v25849_v42, %v4199_v52 }
 0x687   : > { %30345 = vst [vmem:[#allocation258_spill] sm:$0xff] %v25958_v41  ;;  %30348 = vst [vmem:[#allocation259_spill] sm:$0xff] %v25964_v48  ;;  %v25976_v14 = vpack.c.bf16 %v30353_v53, %v30352_v39  ;;  %v25982_v21 = vpack.c.bf16 %v30356_v25, %v30355_v17  ;;  %v4207_v5 = vsub.f32 %v25858_v35, %v4206_v56 }
 0x688   : > { %30351 = vst [vmem:[#allocation260_spill] sm:$0xff] %v25970_v7  ;;  %30358 = vst [vmem:[#allocation263_spill] sm:$0xff] %v25984_v40  ;;  %v4333_v53 = vsub.f32 %v25868_v29, %v4332_v51  ;;  %v4214_v52 = vsub.f32 %v25877_v3, %v4213_v46  ;;  %v4347_v51 = vsub.f32 %v25898_v34, %v4346_v59 }
 0x689   : > { %30354 = vst [vmem:[#allocation261_spill] sm:$0xff] %v25976_v14  ;;  %30357 = vst [vmem:[#allocation262_spill] sm:$0xff] %v25982_v21 }
 0x6bd   : > { %v25986_v31 = vpop.permute.xlu0 %4052 }
 0x6c0   : > { %v4049_v13 = vpop.permute.xlu1 %4048 }
 0x6c1   : > { %v4065_v37 = vpop.permute.xlu0 %4064 }
 0x6c4   : > { %v4051_v18 = vpop.permute.xlu1 %4050 }
 0x6c5   : > { %v4054_v23 = vsel %vm2750_vm10, %v4049_v13, %v4051_v18  ;;  %v4055_v58 = vsel %vm2750_vm10, %v4051_v18, %v25986_v31  ;;  %v4063_v36 = vpop.permute.xlu0 %4062  ;;  %v4201_v13 = vand.u32 4294901760, %v4200_v61  ;;  %v4348_v61 = vand.u32 4294901760, %v4347_v51  ;;  %v30374_v51 = vld [vmem:[#allocation235_spill] sm:$0xff] }
 0x6c6   : > { %v4059_v44 = vmax.f32 %v25482_v54, %v4054_v23  ;;  %v4068_v43 = vsel %vm2786_vm13, %v4063_v36, %v4065_v37  ;;  %v4060_v2 = vmax.f32 %v25490_v20, %v4055_v58  ;;  %v4326_v20 = vsub.f32 %v25863_v45, %v4325_v24 }
 0x6c7   : > { %v4221_v23 = vsub.f32 %v25882_v57, %v4220_v0  ;;  %v4334_v36 = vand.u32 4294901760, %v4333_v53  ;;  %v4340_v24 = vsub.f32 %v25893_v49, %v4339_v19 }
 0x6c8   : > { %v4073_v55 = vmax.f32 %v4059_v44, %v4068_v43  ;;  %v25994_v4 = vpop.permute.xlu1 %4066  ;;  %v4327_v18 = vand.u32 4294901760, %v4326_v20 }
 0x6c9   : > { %v4069_v33 = vsel %vm2786_vm13, %v4065_v37, %v25994_v4  ;;  %v4208_v37 = vand.u32 4294901760, %v4207_v5  ;;  %v4222_v0 = vand.u32 4294901760, %v4221_v23  ;;  %v30370_v23 = vld [vmem:[#allocation232_spill] sm:$0xff] }
 0x6ca   : > { %v25998_v16 = vand.u32 4294901760, %v4073_v55  ;;  %v4074_v9 = vmax.f32 %v4060_v2, %v4069_v33  ;;  %v4215_v2 = vand.u32 4294901760, %v4214_v52  ;;  %v4235_v33 = vsub.f32 %v25908_v32, %v4234_v47  ;;  %v30367_v52 = vld [vmem:[#allocation114_spill] sm:$0xff] }
 0x6cb   : > { %v26020_v43 = vpack.c.bf16 %v4208_v37, %v4201_v13  ;;  %v26027_v59 = vpack.c.bf16 %v4334_v36, %v4327_v18  ;;  %v30365_v13 = vld [vmem:[#allocation110_spill] sm:$0xff]  ;;  %v30369_v18 = vld [vmem:[#allocation115_spill] sm:$0xff]  ;;  %v30372_v36 = vld [vmem:[#allocation233_spill] sm:$0xff] }
 0x6cc   : > { %v26003_v39 = vsub.f32 %v4073_v55, %v25998_v16  ;;  %v26005_v54 = vand.u32 4294901760, %v4074_v9  ;;  %v4228_v55 = vsub.f32 %v25903_v1, %v4227_v60  ;;  %v26031_v5 = vpack.c.bf16 %v4222_v0, %v4215_v2  ;;  %v30366_v37 = vld [vmem:[#allocation230_spill] sm:$0xff]  ;;  %v30376_v2 = vld [vmem:[#allocation236_spill] sm:$0xff]  ;;  %v30378_v0 = vld [vmem:[#allocation237_spill] sm:$0xff] }
 0x6cd   : > { %30359 = vst [vmem:[#allocation264_spill] sm:$0xff] %v26020_v43  ;;  %30360 = vst [vmem:[#allocation265_spill] sm:$0xff] %v26027_v59  ;;  %v4236_v53 = vand.u32 4294901760, %v4235_v33  ;;  %v30380_v33 = vmov 0.0  }
 0x6ce   : > { %v26010_v17 = vsub.f32 %v4074_v9, %v26005_v54  ;;  %v4188_v25 = vand.u32 4294901760, %v26003_v39  ;;  %v4341_v9 = vand.u32 4294901760, %v4340_v24  ;;  %30361 = vst [vmem:[#allocation266_spill] sm:$0xff] %v26031_v5  ;;  %v4229_v20 = vand.u32 4294901760, %v4228_v55  ;;  %v30373_v24 = vld [vmem:[#allocation118_spill] sm:$0xff] }
 0x6cf   : > { %v26068_v55 = vpack.c.bf16 %v25858_v35, %v25849_v42  ;;  %v26087_v35 = vpack.c.bf16 %v25898_v34, %v25893_v49  ;;  %v30387_v42 = vld [vmem:[#allocation239_spill] sm:$0xff]  ;;  %v30390_v49 = vld [vmem:[#allocation242_spill] sm:$0xff] }
 0x6d0   : > { %v4182_v56 = vand.u32 4294901760, %v26010_v17  ;;  %v4189_v58 = vsub.f32 %v26003_v39, %v4188_v25  ;;  %v26035_v60 = vpack.c.bf16 %v4348_v61, %v4341_v9  ;;  %v26040_v47 = vpack.c.bf16 %v4236_v53, %v4229_v20  ;;  %v30391_v34 = vld [vmem:[#allocation243_spill] sm:$0xff]  ;;  %v30396_v53 = vld [vmem:[#allocation248_spill] sm:$0xff] }
 0x6d1   : > { %30379 = vst [vmem:[#allocation269_spill] sm:$0xff] %v26068_v55  ;;  %v26075_v9 = vpack.c.bf16 %v25868_v29, %v25863_v45  ;;  %v26082_v61 = vpack.c.bf16 %v25882_v57, %v25877_v3  ;;  %30384 = vst [vmem:[#allocation272_spill] sm:$0xff] %v26087_v35  ;;  %v26092_v29 = vpack.c.bf16 %v25908_v32, %v25903_v1  ;;  %v30386_v45 = vld [vmem:[#allocation238_spill] sm:$0xff]  ;;  %v30388_v3 = vld [vmem:[#allocation240_spill] sm:$0xff] }
 0x6d2   : > { %4665 = vmatprep.mubr.f32.mxu0 %v4182_v56  ;;  %v4183_v44 = vsub.f32 %v26010_v17, %v4182_v56  ;;  %v4190_v19 = vand.u32 4294901760, %v4189_v58  ;;  %30362 = vst [vmem:[#allocation267_spill] sm:$0xff] %v26035_v60  ;;  %30363 = vst [vmem:[#allocation268_spill] sm:$0xff] %v26040_v47  ;;  %v30368_v56 = vld [vmem:[#allocation231_spill] sm:$0xff]  ;;  %v30371_v58 = vld [vmem:[#allocation116_spill] sm:$0xff] }
 0x6d3   : > { %4669 = vmatmul.mubr.f32.vlgmr.msra.gmra.mrb[4].mxu0 %v4188_v25  ;;  %v30364_v25 = vld [vmem:[#allocation229_spill] sm:$0xff]  ;;  %30382 = vst [vmem:[#allocation270_spill] sm:$0xff] %v26075_v9  ;;  %30383 = vst [vmem:[#allocation271_spill] sm:$0xff] %v26082_v61  ;;  %v30394_v32 = vld [vmem:[#allocation246_spill] sm:$0xff] }
 0x6d4   : > { %20285 = vmatpush3.bf16.msra.mxu0 %v25326_v27  ;;  %4939 = vmatprep.mubr.f32.mxu0 %v26005_v54  ;;  %v4184_v46 = vand.u32 4294901760, %v4183_v44  ;;  %v30375_v44 = vld [vmem:[#allocation123_spill] sm:$0xff]  ;;  %30385 = vst [vmem:[#allocation273_spill] sm:$0xff] %v26092_v29  ;;  %v30389_v57 = vld [vmem:[#allocation241_spill] sm:$0xff] }
 0x6d5   : > { %20287 = vmatprep.subr.bf16.mxu0 %v25332_v10  ;;  %v30393_v1 = vld [vmem:[#allocation245_spill] sm:$0xff]  ;;  %v30395_v20 = vld [vmem:[#allocation247_spill] sm:$0xff] }
 0x6d6   : > { %4185 = vmatprep.mubr.f32.mxu1 %v4184_v46  ;;  %v30377_v46 = vmov 0.0|0.0   ;;  %v537_v27 = vld [vmem:[%s28790_s7 + $0x40] sm:$0xff] }
 0x6d7   : > { %4191 = vmatmul.mubr.f32.vlgmr.msra.gmra.mrb[18].mxu1 %v4190_v19  ;;  %v30381_v19 = vld [vmem:[#allocation234_spill] sm:$0xff] }
 0x6d8   : > { %20157 = vmatpush3.bf16.msra.mxu1 %v26020_v43  ;;  %20289 = vmatpush3.bf16.msra.mxu0 %v25343_v30  ;;  %v30511_v43 = vld [vmem:[#allocation32_spill] sm:$0xff] }
 0x6d9   : > { %4421 = vmatprep.mubr.f32.mxu1 %v26005_v54  ;;  %20159 = vmatprep.subr.bf16.mxu1 %v26027_v59  ;;  %v30510_v59 = vld [vmem:[#allocation27_spill] sm:$0xff] }
 0x6da   : > { %20291 = vmatprep.subr.bf16.mxu0 %v25353_v6 }
 0x6dc   : > { %20161 = vmatpush3.bf16.msra.mxu1 %v26031_v5  ;;  %20293 = vmatpush3.bf16.msra.mxu0 %v25361_v28  ;;  %v30509_v5 = vld [vmem:[#allocation24_spill] sm:$0xff] }
 0x6dd   : > { %20163 = vmatprep.subr.bf16.mxu1 %v26035_v60  ;;  %20295 = vmatprep.subr.bf16.mxu0 %v25395_v12  ;;  %v30508_v60 = vld [vmem:[#allocation22_spill] sm:$0xff]  ;;  %v30525_v28 = vld [vmem:[#allocation80_spill] sm:$0xff] }
 0x6e0   : > { %20165 = vmatpush3.bf16.msra.mxu1 %v26040_v47  ;;  %20297 = vmatpush3.bf16.msra.mxu0 %v25416_v62  ;;  %v30507_v47 = vld [vmem:[#allocation119_spill] sm:$0xff] }
 0x6e1   : > { %20167 = vmatprep.subr.bf16.mxu1 %v25675_v38  ;;  %20299 = vmatprep.subr.bf16.mxu0 %v25434_v11  ;;  %v30505_v38 = vld [vmem:[#allocation113_spill] sm:$0xff]  ;;  %v30524_v11 = vld [vmem:[#allocation76_spill] sm:$0xff] }
 0x6e4   : > { %20169 = vmatpush3.bf16.msra.mxu1 %v25692_v63  ;;  %20301 = vmatpush3.bf16.msra.mxu0 %v25441_v15  ;;  %v30504_v63 = vld [vmem:[#allocation111_spill] sm:$0xff]  ;;  %v30522_v15 = vld [vmem:[#allocation72_spill] sm:$0xff] }
 0x6e5   : > { %20171 = vmatprep.subr.bf16.mxu1 %v30364_v25  ;;  %20303 = vmatprep.subr.bf16.mxu0 %v30365_v13 }
 0x6e8   : > { %20173 = vmatpush3.bf16.msra.mxu1 %v30366_v37  ;;  %20305 = vmatpush3.bf16.msra.mxu0 %v30367_v52  ;;  %v30503_v37 = vld [vmem:[#allocation106_spill] sm:$0xff] }
 0x6e9   : > { %20175 = vmatprep.subr.bf16.mxu1 %v30368_v56  ;;  %20307 = vmatprep.subr.bf16.mxu0 %v30369_v18  ;;  %v30502_v56 = vld [vmem:[#allocation103_spill] sm:$0xff] }
 0x6ea   : > { %v532_v52 = vld [vmem:[%s28790_s7 + $0x18] sm:$0xff] }
 0x6ec   : > { %20177 = vmatpush3.bf16.msra.mxu1 %v30370_v23  ;;  %20309 = vmatpush3.bf16.msra.mxu0 %v30371_v58  ;;  %v30516_v58 = vld [vmem:[#allocation53_spill] sm:$0xff] }
 0x6ed   : > { %20179 = vmatprep.subr.bf16.mxu1 %v30372_v36  ;;  %20311 = vmatprep.subr.bf16.mxu0 %v30373_v24  ;;  %v30515_v24 = vld [vmem:[#allocation48_spill] sm:$0xff] }
 0x6f0   : > { %20181 = vmatpush3.bf16.msra.mxu1 %v30374_v51  ;;  %20313 = vmatpush3.bf16.msra.mxu0 %v30375_v44  ;;  %v30513_v44 = vld [vmem:[#allocation40_spill] sm:$0xff] }
 0x6f1   : > { %20183 = vmatprep.subr.bf16.mxu1 %v30376_v2  ;;  %20332 = vmatprep.subr.bf16.mxu0 %v30377_v46 }
 0x6f3   : > { %4941 = vmatmul.mubr.f32.vlgmr.msra.gmra.mrb[6].mxu0 %v25998_v16 }
 0x6f4   : > { %20185 = vmatpush3.bf16.msra.mxu1 %v30378_v0  ;;  %18064 = vmatprep.mubr.msk.f32.mxu0 %vm22213_vm2, %v30380_v33 }
 0x6f5   : > { %20187 = vmatprep.subr.bf16.mxu1 %v30381_v19  ;;  %v30512_v19 = vld [vmem:[#allocation37_spill] sm:$0xff] }
 0x6f7   : > { %4423 = vmatmul.mubr.f32.vlgmr.msra.gmra.mrb[20].mxu1 %v25998_v16 }
 0x6f8   : > { %20189 = vmatpush3.bf16.msra.mxu1 %v26068_v55  ;;  %4558 = vmatprep.mubr.f32.mxu1 %v26010_v17  ;;  %v30392_v17 = vld [vmem:[#allocation244_spill] sm:$0xff] }
 0x6f9   : > { %20191 = vmatprep.subr.bf16.mxu1 %v26075_v9 }
 0x6fc   : > { %20193 = vmatpush3.bf16.msra.mxu1 %v26082_v61 }
 0x6fd   : > { %20195 = vmatprep.subr.bf16.mxu1 %v26087_v35 }
 0x700   : > { %20197 = vmatpush3.bf16.msra.mxu1 %v26092_v29 }
 0x701   : > { %20199 = vmatprep.subr.bf16.mxu1 %v30386_v45 }
 0x704   : > { %20201 = vmatpush3.bf16.msra.mxu1 %v30387_v42  ;;  %v30397_v42 = vld [vmem:[#allocation249_spill] sm:$0xff] }
 0x705   : > { %20203 = vmatprep.subr.bf16.mxu1 %v30388_v3 }
 0x708   : > { %20205 = vmatpush3.bf16.msra.mxu1 %v30389_v57  ;;  %v30398_v57 = vld [vmem:[#allocation250_spill] sm:$0xff] }
 0x709   : > { %20207 = vmatprep.subr.bf16.mxu1 %v30390_v49  ;;  %v30399_v49 = vld [vmem:[#allocation251_spill] sm:$0xff] }
 0x70c   : > { %20209 = vmatpush3.bf16.msra.mxu1 %v30391_v34  ;;  %v30400_v34 = vld [vmem:[#allocation252_spill] sm:$0xff] }
 0x70d   : > { %20211 = vmatprep.subr.bf16.mxu1 %v30392_v17  ;;  %v30401_v17 = vld [vmem:[#allocation253_spill] sm:$0xff] }
 0x710   : > { %20213 = vmatpush3.bf16.msra.mxu1 %v30393_v1 }
 0x711   : > { %20215 = vmatprep.subr.bf16.mxu1 %v30394_v32 }
 0x714   : > { %20217 = vmatpush3.bf16.msra.mxu1 %v30395_v20  ;;  %v30402_v20 = vld [vmem:[#allocation109_spill] sm:$0xff] }
 0x715   : > { %20251 = vmatprep.subr.bf16.mxu1 %v30396_v53  ;;  %v4061_v32 = vmax.f32 %v30402_v20, %v25986_v31  ;;  %v528_v31 = vld [vmem:[%s28789_s6 + $0x110] sm:$0x7] }
 0x717   : > { %4561 = vmatmul.mubr.f32.vlgmr.msra.gmra.mrb[22].mxu1 %v26003_v39  ;;  %v526_v39 = vld [vmem:[%s28789_s6 + $0x100] sm:$0xff] }
 0x718   : > { %20253 = vmatpush3.bf16.msra.mxu1 %v30397_v42  ;;  %4835 = vmatprep.mubr.f32.mxu1 %v26005_v54  ;;  %v527_v54 = vld [vmem:[%s28789_s6 + $0x108] sm:$0xff] }
 0x719   : > { %20255 = vmatprep.subr.bf16.mxu1 %v30398_v57  ;;  %v4075_v57 = vmax.f32 %v4061_v32, %v25994_v4 }
 0x71c   : > { %20257 = vmatpush3.bf16.msra.mxu1 %v30399_v49 }
 0x71d   : > { %20259 = vmatprep.subr.bf16.mxu1 %v30400_v34  ;;  %v4078_v34 = vsel %vm29374_vm0, %v4075_v57, 0  ;;  %vm376_vm0 = vcmask 966416  }
 0x71e   : > { %v5014_v32 = vand.u32 4294901760, %v4078_v34 }
 0x720   : > { %20261 = vmatpush3.bf16.msra.mxu1 %v30401_v17  ;;  %v4947_v17 = vand.u32 4294901760, %v526_v39 }
 0x721   : > { %20263 = vmatprep.subr.bf16.mxu1 %v25934_v8  ;;  %v4950_v8 = vand.u32 4294901760, %v527_v54 }
 0x722   : > { %v5026_v20 = vsub.f32 %v526_v39, %v4947_v17 }
 0x723   : > { %v5033_v4 = vsub.f32 %v527_v54, %v4950_v8 }
 0x724   : > { %20265 = vmatpush3.bf16.msra.mxu1 %v25940_v50  ;;  %v4082_v50 = vsel %vm4080_vm1, %v528_v31, 0  ;;  %v5027_v57 = vand.u32 4294901760, %v5026_v20  ;;  %v26142_v31 = vpack.c.bf16 %v4950_v8, %v4947_v17  ;;  %vm374_vm1 = vcmask 146432  }
 0x725   : > { %20267 = vmatprep.subr.bf16.mxu1 %v25946_v26  ;;  %v26134_v26 = vand.u32 4294901760, %v4082_v50  ;;  %v5034_v49 = vand.u32 4294901760, %v5033_v4  ;;  %375 = vst.msk [vmem:[#allocation4] sm:$0xff] %vm374_vm1, %v30380_v33  ;;  %378 = vst.msk [vmem:[#allocation5] sm:$0xff] %vm374_vm1, %v30380_v33 }
 0x726   : > { %v5028_v42 = vsub.f32 %v5026_v20, %v5027_v57  ;;  %30405 = vst [vmem:[#allocation275_spill] sm:$0xff] %v26142_v31  ;;  %380 = vst.msk [vmem:[#allocation6] sm:$0xff] %vm374_vm1, %v30380_v33  ;;  %vm5475_vm1 = vcmask 588800  }
 0x727   : > { %30403 = vst [vmem:[#allocation109_spill] sm:$0xff] %v26134_v26  ;;  %v5035_v53 = vsub.f32 %v5033_v4, %v5034_v49  ;;  %v26139_v39 = vsub.f32 %v4082_v50, %v26134_v26  ;;  %377 = vst.msk [vmem:[#allocation4] sm:$0xff] %vm376_vm0, %v30380_v33 }
 0x728   : > { %20269 = vmatpush3.bf16.msra.mxu1 %v25952_v22  ;;  %v5015_v22 = vsub.f32 %v4078_v34, %v5014_v32  ;;  %379 = vst.msk [vmem:[#allocation5] sm:$0xff] %vm376_vm0, %v30380_v33  ;;  %381 = vst.msk [vmem:[#allocation6] sm:$0xff] %vm376_vm0, %v30380_v33  ;;  %vm5422_vm0 = vcmask 801936  }
 0x729   : > { %20271 = vmatprep.subr.bf16.mxu1 %v25958_v41  ;;  %30404 = vst [vmem:[#allocation274_spill] sm:$0xff] %v26139_v39  ;;  %v26146_v34 = vand.u32 4294901760, %v26139_v39 }
 0x72a   : > { %v5016_v54 = vand.u32 4294901760, %v5015_v22 }
 0x72b   : > { %30406 = vst [vmem:[#allocation276_spill] sm:$0xff] %v26146_v34  ;;  %v5042_v8 = vsub.f32 %v26139_v39, %v26146_v34 }
 0x72c   : > { %20273 = vmatpush3.bf16.msra.mxu1 %v25964_v48  ;;  %v5036_v48 = vand.u32 4294901760, %v5035_v53 }
 0x72d   : > { %20275 = vmatprep.subr.bf16.mxu1 %v25970_v7  ;;  %v5029_v7 = vand.u32 4294901760, %v5028_v42 }
 0x72f   : > { %v26153_v50 = vpack.c.bf16 %v5036_v48, %v5029_v7  ;;  %v26166_v48 = vpack.c.bf16 %v5033_v4, %v5026_v20  ;;  %v26180_v7 = vpack.c.bf16 %v5034_v49, %v5027_v57 }
 0x730   : > { %20277 = vmatpush3.bf16.msra.mxu1 %v25976_v14 }
 0x731   : > { %20279 = vmatprep.subr.bf16.mxu1 %v25982_v21  ;;  %v5017_v21 = vsub.f32 %v5015_v22, %v5016_v54  ;;  %30407 = vst [vmem:[#allocation277_spill] sm:$0xff] %v26153_v50  ;;  %30409 = vst [vmem:[#allocation279_spill] sm:$0xff] %v26166_v48 }
 0x732   : > { %30410 = vst [vmem:[#allocation280_spill] sm:$0xff] %v26180_v7 }
 0x733   : > { %v5018_v42 = vand.u32 4294901760, %v5017_v21 }
 0x734   : > { %20281 = vmatpush3.bf16.msra.mxu1 %v25984_v40 }
 0x735   : > { %20314 = vmatprep.subr.bf16.mxu1 %v30377_v46 }
 0x737   : > { %4837 = vmatmul.mubr.f32.vlgmr.msra.gmra.mrb[24].mxu1 %v25998_v16  ;;  %v26160_v16 = vand.u32 4294901760, %v5042_v8 }
 0x738   : > { %20316 = vmatpush3.bf16.msra.mxu1 %v26142_v31  ;;  %17998 = vmatprep.mubr.msk.f32.mxu1 %vm22213_vm2, %v30380_v33 }
 0x739   : > { %17996 = vmatprep.subr.mxu1 %v30380_v33  ;;  %30408 = vst [vmem:[#allocation278_spill] sm:$0xff] %v26160_v16 }
 0x73c   : > { %17997 = vmatpush3.msra.mxu1 %v26134_v26 }
 0x73d   : > { %17999 = vmatmul.mubr.f32.vlgmr.msra.gmra.mrb[26].mxu1 %v5018_v42  ;;  %20317 = vmatprep.subr.bf16.mxu1 %v30377_v46 }
 0x73e   : > { %20319 = vmatpush3.bf16.msra.mxu1 %v26153_v50  ;;  %18007 = vmatprep.mubr.msk.f32.mxu1 %vm22213_vm2, %v30380_v33 }
 0x73f   : > { %18005 = vmatprep.subr.mxu1 %v30380_v33 }
 0x742   : > { %18006 = vmatpush3.msra.mxu1 %v26160_v16 }
 0x743   : > { %20320 = vmatprep.subr.bf16.mxu1 %v30377_v46 }
 0x745   : > { %18008 = vmatmul.mubr.f32.vlgmr.msra.gmra.mrb[26].mxu1 %v5014_v32 }
 0x746   : > { %20322 = vmatpush3.bf16.msra.mxu1 %v26166_v48  ;;  %18016 = vmatprep.mubr.msk.f32.mxu1 %vm22213_vm2, %v30380_v33 }
 0x747   : > { %18014 = vmatprep.subr.mxu1 %v30380_v33 }
 0x74a   : > { %18015 = vmatpush3.msra.mxu1 %v26139_v39 }
 0x74b   : > { %20323 = vmatprep.subr.bf16.mxu1 %v30377_v46 }
 0x74d   : > { %18017 = vmatmul.mubr.f32.vlgmr.msra.gmra.mrb[26].mxu1 %v5015_v22 }
 0x74e   : > { %20325 = vmatpush3.bf16.msra.mxu1 %v26142_v31  ;;  %18025 = vmatprep.mubr.msk.f32.mxu1 %vm22213_vm2, %v30380_v33 }
 0x74f   : > { %18023 = vmatprep.subr.mxu1 %v30380_v33 }
 0x752   : > { %18024 = vmatpush3.msra.mxu1 %v26134_v26 }
 0x753   : > { %20326 = vmatprep.subr.bf16.mxu1 %v30377_v46 }
 0x755   : > { %18026 = vmatmul.mubr.f32.vlgmr.msra.gmra.mrb[26].mxu1 %v5016_v54 }
 0x756   : > { %20328 = vmatpush3.bf16.msra.mxu1 %v26180_v7  ;;  %18034 = vmatprep.mubr.msk.f32.mxu1 %vm22213_vm2, %v30380_v33 }
 0x757   : > { %18032 = vmatprep.subr.mxu1 %v30380_v33 }
 0x75a   : > { %18033 = vmatpush3.msra.mxu1 %v26146_v34 }
 0x75b   : > { %20329 = vmatprep.subr.bf16.mxu1 %v30377_v46 }
 0x75d   : > { %18035 = vmatmul.mubr.f32.vlgmr.msra.gmra.mrb[26].mxu1 %v5014_v32 }
 0x75e   : > { %20331 = vmatpush3.bf16.msra.mxu1 %v26142_v31  ;;  %18043 = vmatprep.mubr.msk.f32.mxu1 %vm22213_vm2, %v30380_v33 }
 0x75f   : > { %18041 = vmatprep.subr.mxu1 %v30380_v33 }
 0x762   : > { %18042 = vmatpush3.msra.mxu1 %v26134_v26 }
 0x763   : > { %20404 = vmatprep.subr.bf16.mxu1 %v30377_v46 }
 0x765   : > { %18044 = vmatmul.mubr.f32.vlgmr.msra.gmra.mrb[26].mxu1 %v5014_v32 }
 0x766   : > { %18190 = vmatprep.mubr.msk.f32.mxu1 %vm22213_vm2, %v30380_v33 }
 0x7a6   : > { %v16725_v22 = vpop.f32.mrb[4].mxu0 }
 0x7a7   : > { %v16726_v21 = vpop.f32.mrb[5].mxu0 }
 0x7a8   : > { %v16727_v49 = vadd.f32 %v16726_v21, %v16725_v22 }
 0x7aa   : > { %v16620_v17 = vpop.f32.mrb[18].mxu1 }
 0x7ab   : > { %v16621_v53 = vpop.f32.mrb[19].mxu1 }
 0x7ac   : > { %v16622_v20 = vadd.f32 %v16621_v53, %v16620_v17 }
 0x7c6   : > { %v16795_v4 = vpop.f32.mrb[6].mxu0 }
 0x7c7   : > { %v16796_v32 = vpop.f32.mrb[7].mxu0 }
 0x7c8   : > { %v16797_v57 = vadd.f32 %v16796_v32, %v16795_v4 }
 0x7ca   : > { %v16655_v54 = vpop.f32.mrb[20].mxu1 }
 0x7cb   : > { %v16656_v8 = vpop.f32.mrb[21].mxu1 }
 0x7cc   : > { %v16657_v42 = vadd.f32 %v16656_v8, %v16655_v54 }
 0x7ce   : > { %v4425_v22 = vadd.f32 %v16657_v42, %v16622_v20 }
 0x7ea   : > { %v16690_v21 = vpop.f32.mrb[22].mxu1 }
 0x7eb   : > { %v16691_v17 = vpop.f32.mrb[23].mxu1 }
 0x7ec   : > { %v16692_v53 = vadd.f32 %v16691_v17, %v16690_v21 }
 0x7ee   : > { %v4563_v34 = vadd.f32 %v16692_v53, %v4425_v22 }
 0x7f0   : > { %v4671_v7 = vadd.f32 %v16727_v49, %v4563_v34  ;;  %v384_v49 = vld [vmem:[%s28786_s3] sm:$0xff] }
 0x80a   : > { %v16760_v39 = vpop.f32.mrb[24].mxu1 }
 0x80b   : > { %v16761_v48 = vpop.f32.mrb[25].mxu1 }
 0x80c   : > { %v16762_v16 = vadd.f32 %v16761_v48, %v16760_v39  ;;  %v391_v48 = vld [vmem:[%s28787_s4] sm:$0xff] }
 0x80e   : > { %v4839_v50 = vadd.f32 %v16762_v16, %v4671_v7 }
 0x810   : > { %v4943_v26 = vadd.f32 %v16797_v57, %v4839_v50  ;;  %v5477_v57 = vsel %vm5475_vm1, %v384_v49, 0 }
 0x811   : > { %v26232_v21 = vand.u32 4294901760, %v5477_v57 }
 0x813   : > { %30411 = vst [vmem:[#allocation281_spill] sm:$0xff] %v26232_v21 }
 0x838   : > { %v5414_v31 = vpop.f32.mrb[26].mxu1 }
 0x839   : > { %v21965_v40 = vadd.f32 %v5414_v31, %v4943_v26  ;;  %v18045_v14 = vpop.f32.mrb[27].mxu1 }
 0x83b   : > { %5419 = vrot.lane.b32.xlu1 %v21965_v40, %s22215_s18 }
 0x8ad   : > { %v5420_v4 = vpop.permute.xlu1 %5419 }
 0x8ae   : > { %5423 = vst.msk [vmem:[#allocation4] sm:$0xff] %vm5422_vm0, %v5420_v4 }
 0x8b5   : > { %v26205_v20 = vld [vmem:[#allocation4] sm:$0xff] }
 0x8b6   : > { %v5425_v32 = vmax.f32 %v26205_v20, 0.0 }
 0x8b8   : > { %5429 = vrot.lane.b32.xlu1 %v5425_v32, %s22205_s25  ;;  %5427 = vrot.lane.b32.xlu0 %v5425_v32, %s22203_s23 }
 0x8bc   : > { %5433 = vrot.lane.b32.xlu1 %v5425_v32, %s22216_s19  ;;  %5431 = vrot.lane.b32.xlu0 %v5425_v32, %s22217_s12 }
 0x8c0   : > { %5437 = vrot.lane.b32.xlu1 %v5425_v32, %s22207_s27  ;;  %5435 = vrot.lane.b32.xlu0 %v5425_v32, %s29455_s16 }
 0x8c4   : > { %5441 = vrot.lane.b32.xlu1 %v5425_v32, %s29453_s14  ;;  %5439 = vrot.lane.b32.xlu0 %v5425_v32, %s29451_s17 }
 0x8c8   : > { %5448 = vrot.lane.b32.xlu0 %v5425_v32, %s22210_s30 }
 0x92a   : > { %v5430_v26 = vpop.permute.xlu1 %5429  ;;  %v5428_v14 = vpop.permute.xlu0 %5427 }
 0x92b   : > { %5452 = vrot.lane.b32.xlu0 %v5430_v26, %s22210_s30  ;;  %5450 = vrot.lane.b32.xlu1 %v5428_v14, %s22210_s30 }
 0x92e   : > { %v5434_v40 = vpop.permute.xlu1 %5433  ;;  %v5432_v39 = vpop.permute.xlu0 %5431 }
 0x92f   : > { %5456 = vrot.lane.b32.xlu0 %v5434_v40, %s22210_s30  ;;  %5454 = vrot.lane.b32.xlu1 %v5432_v39, %s22210_s30  ;;  %v26243_v39 = vsub.f32 %v5477_v57, %v26232_v21 }
 0x931   : > { %30412 = vst [vmem:[#allocation282_spill] sm:$0xff] %v26243_v39 }
 0x932   : > { %v5438_v31 = vpop.permute.xlu1 %5437  ;;  %v5436_v34 = vpop.permute.xlu0 %5435 }
 0x933   : > { %5460 = vrot.lane.b32.xlu0 %v5438_v31, %s22210_s30  ;;  %5458 = vrot.lane.b32.xlu1 %v5436_v34, %s22210_s30 }
 0x936   : > { %v5442_v50 = vpop.permute.xlu1 %5441  ;;  %v5440_v16 = vpop.permute.xlu0 %5439 }
 0x937   : > { %5464 = vrot.lane.b32.xlu0 %v5442_v50, %s22210_s30  ;;  %5462 = vrot.lane.b32.xlu1 %v5440_v16, %s22210_s30 }
 0x93a   : > { %v5449_v7 = vpop.permute.xlu0 %5448 }
 0x93b   : > { %5445 = vperm.xlu1 %22183, %v391_v48   ;;  %v5480_v42 = vand.u32 4294901760, %v5449_v7 }
 0x93d   : > { %v26239_v40 = vsub.f32 %v5449_v7, %v5480_v42 }
 0x93f   : > { %v30414_v45 = vand.u32 4294901760, %v26239_v40 }
 0x99d   : > { %v5451_v54 = vpop.permute.xlu1 %5450  ;;  %v5453_v8 = vpop.permute.xlu0 %5452 }
 0x99e   : > { %v5483_v22 = vand.u32 4294901760, %v5451_v54  ;;  %v5486_v26 = vand.u32 4294901760, %v5453_v8 }
 0x9a0   : > { %v26234_v17 = vpack.c.bf16 %v5483_v22, %v5480_v42  ;;  %v26236_v53 = vsub.f32 %v5451_v54, %v5483_v22  ;;  %v26254_v42 = vand.u32 4294901760, %v26243_v39  ;;  %v26256_v57 = vsub.f32 %v5453_v8, %v5486_v26 }
 0x9a1   : > { %v5455_v4 = vpop.permute.xlu1 %5454  ;;  %v5457_v32 = vpop.permute.xlu0 %5456  ;;  %v5567_v8 = vsub.f32 %v26239_v40, %v30414_v45 }
 0x9a2   : > { %v5489_v14 = vand.u32 4294901760, %v5455_v4  ;;  %20334 = vmatpush3.bf16.msra.mxu0 %v26234_v17  ;;  %v29392_v34 = vand.u32 4294901760, %v26236_v53  ;;  %v5492_v48 = vand.u32 4294901760, %v5457_v32  ;;  %30413 = vst [vmem:[#allocation283_spill] sm:$0xff] %v26254_v42 }
 0x9a3   : > { %20335 = vmatprep.subr.bf16.mxu0 %v30377_v46  ;;  %v5568_v55 = vand.u32 4294901760, %v5567_v8 }
 0x9a4   : > { %v26245_v31 = vpack.c.bf16 %v5489_v14, %v5486_v26  ;;  %v26248_v16 = vsub.f32 %v5455_v4, %v5489_v14  ;;  %v5574_v4 = vsub.f32 %v26236_v53, %v29392_v34  ;;  %v5556_v26 = vsub.f32 %v26243_v39, %v26254_v42 }
 0x9a5   : > { %v5459_v50 = vpop.permute.xlu1 %5458  ;;  %v5461_v7 = vpop.permute.xlu0 %5460  ;;  %v26274_v29 = vsub.f32 %v5457_v32, %v5492_v48  ;;  %v30417_v32 = vand.u32 4294901760, %v26256_v57 }
 0x9a6   : > { %v5495_v49 = vand.u32 4294901760, %v5459_v50  ;;  %20337 = vmatpush3.bf16.msra.mxu0 %v26245_v31  ;;  %v5498_v54 = vand.u32 4294901760, %v5461_v7  ;;  %v30415_v35 = vand.u32 4294901760, %v26248_v16  ;;  %v26286_v34 = vand.u32 4294901760, %v5556_v26 }
 0x9a7   : > { %20338 = vmatprep.subr.bf16.mxu0 %v30377_v46 }
 0x9a8   : > { %v26258_v22 = vpack.c.bf16 %v5495_v49, %v5492_v48  ;;  %v26264_v1 = vsub.f32 %v5459_v50, %v5495_v49  ;;  %v5575_v49 = vand.u32 4294901760, %v5574_v4  ;;  %v5588_v61 = vsub.f32 %v26248_v16, %v30415_v35  ;;  %30416 = vst [vmem:[#allocation284_spill] sm:$0xff] %v26286_v34 }
 0x9a9   : > { %v5463_v14 = vpop.permute.xlu1 %5462  ;;  %v5465_v50 = vpop.permute.xlu0 %5464  ;;  %v5581_v48 = vsub.f32 %v26256_v57, %v30417_v32  ;;  %v29398_v4 = vand.u32 4294901760, %v26274_v29  ;;  %v26292_v0 = vsub.f32 %v5461_v7, %v5498_v54 }
 0x9aa   : > { %v5501_v3 = vand.u32 4294901760, %v5463_v14  ;;  %20340 = vmatpush3.bf16.msra.mxu0 %v26258_v22  ;;  %v26294_v35 = vand.u32 4294901760, %v5465_v50  ;;  %v5589_v9 = vand.u32 4294901760, %v5588_v61  ;;  %v20345_v26 = vpack.c.bf16 %v5575_v49, %v5568_v55 }
 0x9ab   : > { %20341 = vmatprep.subr.bf16.mxu0 %v30377_v46  ;;  %v5582_v32 = vand.u32 4294901760, %v5581_v48  ;;  %v5608_v61 = vand.u32 4294901760, %v26292_v0 }
 0x9ac   : > { %v26276_v41 = vpack.c.bf16 %v5501_v3, %v5498_v54  ;;  %v26282_v45 = vsub.f32 %v5463_v14, %v5501_v3  ;;  %v30418_v3 = vand.u32 4294901760, %v26264_v1  ;;  %v5595_v54 = vsub.f32 %v26274_v29, %v29398_v4 }
 0x9ad   : > { %v5621_v49 = vsub.f32 %v5465_v50, %v26294_v35  ;;  %v20348_v48 = vpack.c.bf16 %v5589_v9, %v5582_v32  ;;  %v5609_v4 = vsub.f32 %v26292_v0, %v5608_v61  ;;  %v20357_v50 = vpack.c.bf16 %v26236_v53, %v26239_v40 }
 0x9ae   : > { %20343 = vmatpush3.bf16.msra.mxu0 %v26276_v41  ;;  %v5602_v14 = vsub.f32 %v26264_v1, %v30418_v3  ;;  %v29400_v8 = vand.u32 4294901760, %v26282_v45  ;;  %v5596_v3 = vand.u32 4294901760, %v5595_v54  ;;  %v30420_v32 = vand.u32 4294901760, %v26236_v53 }
 0x9af   : > { %18062 = vmatprep.subr.mxu0 %v30380_v33  ;;  %v5610_v51 = vand.u32 4294901760, %v5609_v4  ;;  %v20366_v4 = vpack.c.bf16 %v26282_v45, %v26292_v0  ;;  %v30423_v53 = vand.u32 4294901760, %v26274_v29  ;;  %v541_v0 = vld [vmem:[%s28792_s9] sm:$0x1] }
 0x9b0   : > { %v5603_v7 = vand.u32 4294901760, %v5602_v14  ;;  %v5616_v55 = vsub.f32 %v26282_v45, %v29400_v8  ;;  %vm542_vm15 = vcmp.ne.f32.partialorder %v541_v0, 0.0 }
 0x9b2   : > { %18063 = vmatpush3.msra.mxu0 %v26294_v35  ;;  %v20351_v2 = vpack.c.bf16 %v5603_v7, %v5596_v3  ;;  %v30421_v7 = vand.u32 4294901760, %v26256_v57  ;;  %v30425_v3 = vand.u32 4294901760, %v26282_v45 }
 0x9b3   : > { %20344 = vmatprep.subr.bf16.mxu0 %v30377_v46  ;;  %18065 = vmatmul.mubr.f32.vlgmr.msra.gmra.mrb[8].mxu0 %v26286_v34  ;;  %v5622_v34 = vand.u32 4294901760, %v5621_v49 }
 0x9b4   : > { %20346 = vmatpush3.bf16.msra.mxu0 %v20345_v26  ;;  %18085 = vmatprep.mubr.msk.f32.mxu0 %vm22213_vm2, %v30380_v33  ;;  %v5617_v26 = vand.u32 4294901760, %v5616_v55  ;;  %v30422_v55 = vand.u32 4294901760, %v26248_v16 }
 0x9b5   : > { %20347 = vmatprep.subr.bf16.mxu0 %v30377_v46  ;;  %v5623_v8 = vsub.f32 %v5621_v49, %v5622_v34 }
 0x9b6   : > { %v20354_v14 = vpack.c.bf16 %v5617_v26, %v5610_v51  ;;  %v20360_v51 = vpack.c.bf16 %v26248_v16, %v26256_v57  ;;  %v20390_v26 = vpack.c.bf16 %v30425_v3, %v5608_v61 }
 0x9b7   : > { %v5624_v9 = vand.u32 4294901760, %v5623_v8  ;;  %v30419_v8 = vand.u32 4294901760, %v26239_v40  ;;  %v30424_v40 = vand.u32 4294901760, %v26264_v1 }
 0x9b8   : > { %20349 = vmatpush3.bf16.msra.mxu0 %v20348_v48 }
 0x9b9   : > { %20350 = vmatprep.subr.bf16.mxu0 %v30377_v46  ;;  %v20381_v54 = vpack.c.bf16 %v30420_v32, %v30419_v8  ;;  %v20387_v48 = vpack.c.bf16 %v30424_v40, %v30423_v53 }
 0x9bc   : > { %20352 = vmatpush3.bf16.msra.mxu0 %v20351_v2  ;;  %v20363_v2 = vpack.c.bf16 %v26264_v1, %v26274_v29  ;;  %v30426_v29 = vmov 0  }
 0x9bd   : > { %20353 = vmatprep.subr.bf16.mxu0 %v30377_v46  ;;  %v6029_v1 = vsel %vm542_vm15, 1, %v30426_v29  ;;  %vm7878_vm15 = vcmask 654336  }
 0x9c0   : > { %20355 = vmatpush3.bf16.msra.mxu0 %v20354_v14 }
 0x9c1   : > { %18083 = vmatprep.subr.mxu0 %v30380_v33 }
 0x9c4   : > { %18084 = vmatpush3.msra.mxu0 %v5624_v9 }
 0x9c5   : > { %20356 = vmatprep.subr.bf16.mxu0 %v30377_v46  ;;  %18086 = vmatmul.mubr.f32.vlgmr.msra.gmra.mrb[8].mxu0 %v26232_v21 }
 0x9c6   : > { %20358 = vmatpush3.bf16.msra.mxu0 %v20357_v50  ;;  %18106 = vmatprep.mubr.msk.f32.mxu0 %vm22213_vm2, %v30380_v33 }
 0x9c7   : > { %20359 = vmatprep.subr.bf16.mxu0 %v30377_v46 }
 0x9ca   : > { %20361 = vmatpush3.bf16.msra.mxu0 %v20360_v51 }
 0x9cb   : > { %20362 = vmatprep.subr.bf16.mxu0 %v30377_v46 }
 0x9ce   : > { %20364 = vmatpush3.bf16.msra.mxu0 %v20363_v2 }
 0x9cf   : > { %20365 = vmatprep.subr.bf16.mxu0 %v30377_v46 }
 0x9d2   : > { %20367 = vmatpush3.bf16.msra.mxu0 %v20366_v4 }
 0x9d3   : > { %18104 = vmatprep.subr.mxu0 %v30380_v33 }
 0x9d6   : > { %18105 = vmatpush3.msra.mxu0 %v5621_v49  ;;  %v20384_v49 = vpack.c.bf16 %v30422_v55, %v30421_v7  ;;  %v16334_v7 = vld [vmem:[%s28787_s4 + $0x8] sm:$0xff] }
 0x9d7   : > { %20368 = vmatprep.subr.bf16.mxu0 %v30377_v46  ;;  %18107 = vmatmul.mubr.f32.vlgmr.msra.gmra.mrb[8].mxu0 %v26243_v39 }
 0x9d8   : > { %20370 = vmatpush3.bf16.msra.mxu0 %v26234_v17  ;;  %18127 = vmatprep.mubr.msk.f32.mxu0 %vm22213_vm2, %v30380_v33 }
 0x9d9   : > { %20371 = vmatprep.subr.bf16.mxu0 %v30377_v46 }
 0x9dc   : > { %20373 = vmatpush3.bf16.msra.mxu0 %v26245_v31 }
 0x9dd   : > { %20374 = vmatprep.subr.bf16.mxu0 %v30377_v46 }
 0x9e0   : > { %20376 = vmatpush3.bf16.msra.mxu0 %v26258_v22 }
 0x9e1   : > { %20377 = vmatprep.subr.bf16.mxu0 %v30377_v46 }
 0x9e4   : > { %20379 = vmatpush3.bf16.msra.mxu0 %v26276_v41 }
 0x9e5   : > { %18125 = vmatprep.subr.mxu0 %v30380_v33 }
 0x9e8   : > { %18126 = vmatpush3.msra.mxu0 %v26294_v35 }
 0x9e9   : > { %20380 = vmatprep.subr.bf16.mxu0 %v30377_v46  ;;  %18128 = vmatmul.mubr.f32.vlgmr.msra.gmra.mrb[8].mxu0 %v26254_v42 }
 0x9ea   : > { %20382 = vmatpush3.bf16.msra.mxu0 %v20381_v54  ;;  %18148 = vmatprep.mubr.msk.f32.mxu0 %vm22213_vm2, %v30380_v33 }
 0x9eb   : > { %20383 = vmatprep.subr.bf16.mxu0 %v30377_v46 }
 0x9ee   : > { %20385 = vmatpush3.bf16.msra.mxu0 %v20384_v49  ;;  %v16331_v49 = vld [vmem:[%s28786_s3 + $0x8] sm:$0xff] }
 0x9ef   : > { %20386 = vmatprep.subr.bf16.mxu0 %v30377_v46  ;;  %v6093_v53 = vsel %vm5475_vm1, %v16331_v49, 0 }
 0x9f0   : > { %v26432_v0 = vand.u32 4294901760, %v6093_v53 }
 0x9f2   : > { %20388 = vmatpush3.bf16.msra.mxu0 %v20387_v48  ;;  %30431 = vst [vmem:[#allocation286_spill] sm:$0xff] %v26432_v0 }
 0x9f3   : > { %20389 = vmatprep.subr.bf16.mxu0 %v30377_v46 }
 0x9f6   : > { %20391 = vmatpush3.bf16.msra.mxu0 %v20390_v26 }
 0x9f7   : > { %18146 = vmatprep.subr.mxu0 %v30380_v33 }
 0x9fa   : > { %18147 = vmatpush3.msra.mxu0 %v5622_v34  ;;  %v26399_v34 = vpop.permute.xlu1 %5445 }
 0x9fb   : > { %20392 = vmatprep.subr.bf16.mxu0 %v30377_v46  ;;  %18149 = vmatmul.mubr.f32.vlgmr.msra.gmra.mrb[8].mxu0 %v26232_v21  ;;  %30430 = vst [vmem:[#allocation285_spill] sm:$0xff] %v26399_v34 }
 0x9fc   : > { %20394 = vmatpush3.bf16.msra.mxu0 %v26234_v17  ;;  %18169 = vmatprep.mubr.msk.f32.mxu0 %vm22213_vm2, %v30380_v33  ;;  %v30427_v17 = vld [vmem:[#allocation78_spill] sm:$0xff] }
 0x9fd   : > { %20395 = vmatprep.subr.bf16.mxu0 %v30377_v46 }
 0xa00   : > { %20397 = vmatpush3.bf16.msra.mxu0 %v26245_v31 }
 0xa01   : > { %20398 = vmatprep.subr.bf16.mxu0 %v30377_v46 }
 0xa04   : > { %20400 = vmatpush3.bf16.msra.mxu0 %v26258_v22 }
 0xa05   : > { %20401 = vmatprep.subr.bf16.mxu0 %v30377_v46 }
 0xa08   : > { %20403 = vmatpush3.bf16.msra.mxu0 %v26276_v41  ;;  %v30428_v41 = vsub.s32 0, %v30427_v17 }
 0xa09   : > { %18167 = vmatprep.subr.mxu0 %v30380_v33 }
 0xa0a   : > { %v26396_v31 = vrot.slane %v6029_v1, %v30428_v41 }
 0xa0c   : > { %18168 = vmatpush3.msra.mxu0 %v26294_v35  ;;  %30429 = vst [vmem:[#allocation78_spill] sm:$0xff] %v26396_v31  ;;  %vm6034_vm3 = vcmp.eq.s32.totalorder %v26396_v31, 1 }
 0xa0d   : > { %18170 = vmatmul.mubr.f32.vlgmr.msra.gmra.mrb[8].mxu0 %v26232_v21  ;;  %20476 = vmatprep.subr.bf16.mxu0 %v30377_v46 }
 0xa0e   : > { %18316 = vmatprep.mubr.msk.f32.mxu0 %vm22213_vm2, %v30380_v33 }
 0xae0   : > { %v6025_v16 = vpop.f32.mrb[8].mxu0 }
 0xae1   : > { %v21966_v57 = vadd.f32 %v6025_v16, %v26399_v34  ;;  %v18171_v22 = vpop.f32.mrb[9].mxu0 }
 0xae2   : > { %v26443_v22 = vsub.f32 %v6093_v53, %v26432_v0 }
 0xae3   : > { %v6035_v45 = vsel %vm6034_vm3, %v21966_v57, 0.0 }
 0xae4   : > { %6037 = vrot.lane.b32.xlu0 %v6035_v45, %s22215_s18  ;;  %30432 = vst [vmem:[#allocation287_spill] sm:$0xff] %v26443_v22 }
 0xb56   : > { %v6038_v35 = vpop.permute.xlu0 %6037 }
 0xb57   : > { %6040 = vst.msk [vmem:[#allocation5] sm:$0xff] %vm5422_vm0, %v6038_v35 }
 0xb5e   : > { %v6041_v61 = vld [vmem:[#allocation5] sm:$0xff] }
 0xb5f   : > { %v6042_v14 = vmax.f32 %v6041_v61, 0.0 }
 0xb61   : > { %6046 = vrot.lane.b32.xlu0 %v6042_v14, %s22205_s25  ;;  %6044 = vrot.lane.b32.xlu1 %v6042_v14, %s22203_s23 }
 0xb65   : > { %6050 = vrot.lane.b32.xlu0 %v6042_v14, %s22216_s19  ;;  %6048 = vrot.lane.b32.xlu1 %v6042_v14, %s22217_s12 }
 0xb69   : > { %6054 = vrot.lane.b32.xlu0 %v6042_v14, %s22207_s27  ;;  %6052 = vrot.lane.b32.xlu1 %v6042_v14, %s29455_s16 }
 0xb6d   : > { %6058 = vrot.lane.b32.xlu0 %v6042_v14, %s29453_s14  ;;  %6056 = vrot.lane.b32.xlu1 %v6042_v14, %s29451_s17 }
 0xb71   : > { %6065 = vrot.lane.b32.xlu1 %v6042_v14, %s22210_s30 }
 0xbd3   : > { %v6047_v9 = vpop.permute.xlu0 %6046  ;;  %v6045_v50 = vpop.permute.xlu1 %6044 }
 0xbd4   : > { %6069 = vrot.lane.b32.xlu1 %v6047_v9, %s22210_s30  ;;  %6067 = vrot.lane.b32.xlu0 %v6045_v50, %s22210_s30 }
 0xbd7   : > { %v6051_v51 = vpop.permute.xlu0 %6050  ;;  %v6049_v2 = vpop.permute.xlu1 %6048 }
 0xbd8   : > { %6073 = vrot.lane.b32.xlu1 %v6051_v51, %s22210_s30  ;;  %6071 = vrot.lane.b32.xlu0 %v6049_v2, %s22210_s30 }
 0xbdb   : > { %v6055_v4 = vpop.permute.xlu0 %6054  ;;  %v6053_v8 = vpop.permute.xlu1 %6052 }
 0xbdc   : > { %6077 = vrot.lane.b32.xlu1 %v6055_v4, %s22210_s30  ;;  %6075 = vrot.lane.b32.xlu0 %v6053_v8, %s22210_s30  ;;  %v26454_v4 = vand.u32 4294901760, %v26443_v22 }
 0xbde   : > { %30433 = vst [vmem:[#allocation288_spill] sm:$0xff] %v26454_v4 }
 0xbdf   : > { %v6059_v32 = vpop.permute.xlu0 %6058  ;;  %v6057_v54 = vpop.permute.xlu1 %6056 }
 0xbe0   : > { %6081 = vrot.lane.b32.xlu1 %v6059_v32, %s22210_s30  ;;  %6079 = vrot.lane.b32.xlu0 %v6057_v54, %s22210_s30 }
 0xbe3   : > { %v6066_v55 = vpop.permute.xlu1 %6065 }
 0xbe4   : > { %6648 = vrot.lane.b32.xlu1 %v26205_v20, %s22202_s22  ;;  %6062 = vperm.xlu0 %22184, %v16334_v7   ;;  %v6096_v3 = vand.u32 4294901760, %v6066_v55 }
 0xbe6   : > { %v26439_v57 = vsub.f32 %v6066_v55, %v6096_v3 }
 0xbe8   : > { %v29404_v51 = vand.u32 4294901760, %v26439_v57 }
 0xc46   : > { %v6068_v40 = vpop.permute.xlu0 %6067  ;;  %v6070_v48 = vpop.permute.xlu1 %6069 }
 0xc47   : > { %v6099_v26 = vand.u32 4294901760, %v6068_v40  ;;  %v6102_v41 = vand.u32 4294901760, %v6070_v48 }
 0xc49   : > { %v26434_v29 = vpack.c.bf16 %v6099_v26, %v6096_v3  ;;  %v26436_v20 = vsub.f32 %v6068_v40, %v6099_v26  ;;  %v26456_v8 = vsub.f32 %v6070_v48, %v6102_v41  ;;  %v6183_v48 = vsub.f32 %v26439_v57, %v29404_v51 }
 0xc4a   : > { %v6072_v1 = vpop.permute.xlu0 %6071  ;;  %v6074_v17 = vpop.permute.xlu1 %6073  ;;  %v6172_v3 = vsub.f32 %v26443_v22, %v26454_v4 }
 0xc4b   : > { %v6105_v16 = vand.u32 4294901760, %v6072_v1  ;;  %20406 = vmatpush3.bf16.msra.mxu1 %v26434_v29  ;;  %v29403_v35 = vand.u32 4294901760, %v26436_v20  ;;  %v6108_v9 = vand.u32 4294901760, %v6074_v17  ;;  %v6184_v34 = vand.u32 4294901760, %v6183_v48 }
 0xc4c   : > { %20407 = vmatprep.subr.bf16.mxu1 %v30377_v46  ;;  %v26486_v26 = vand.u32 4294901760, %v6172_v3 }
 0xc4d   : > { %v26445_v45 = vpack.c.bf16 %v6105_v16, %v6102_v41  ;;  %v26448_v14 = vsub.f32 %v6072_v1, %v6105_v16  ;;  %v6190_v54 = vsub.f32 %v26436_v20, %v29403_v35  ;;  %v26474_v1 = vsub.f32 %v6074_v17, %v6108_v9 }
 0xc4e   : > { %v6076_v61 = vpop.permute.xlu0 %6075  ;;  %v6078_v2 = vpop.permute.xlu1 %6077  ;;  %30434 = vst [vmem:[#allocation289_spill] sm:$0xff] %v26486_v26  ;;  %v30435_v17 = vand.u32 4294901760, %v26456_v8 }
 0xc4f   : > { %v6111_v50 = vand.u32 4294901760, %v6076_v61  ;;  %20409 = vmatpush3.bf16.msra.mxu1 %v26445_v45  ;;  %v29407_v55 = vand.u32 4294901760, %v26448_v14  ;;  %v6114_v53 = vand.u32 4294901760, %v6078_v2 }
 0xc50   : > { %20410 = vmatprep.subr.bf16.mxu1 %v30377_v46 }
 0xc51   : > { %v26458_v32 = vpack.c.bf16 %v6111_v50, %v6108_v9  ;;  %v26464_v49 = vsub.f32 %v6076_v61, %v6111_v50  ;;  %v6191_v61 = vand.u32 4294901760, %v6190_v54  ;;  %v6204_v50 = vsub.f32 %v26448_v14, %v29407_v55 }
 0xc52   : > { %v6080_v7 = vpop.permute.xlu0 %6079  ;;  %v6082_v16 = vpop.permute.xlu1 %6081  ;;  %v6197_v9 = vsub.f32 %v26456_v8, %v30435_v17  ;;  %v29408_v54 = vand.u32 4294901760, %v26474_v1  ;;  %v26492_v42 = vsub.f32 %v6078_v2, %v6114_v53 }
 0xc53   : > { %v6117_v40 = vand.u32 4294901760, %v6080_v7  ;;  %20412 = vmatpush3.bf16.msra.mxu1 %v26458_v32  ;;  %v26494_v55 = vand.u32 4294901760, %v6082_v16  ;;  %v6205_v35 = vand.u32 4294901760, %v6204_v50  ;;  %v20417_v3 = vpack.c.bf16 %v6191_v61, %v6184_v34 }
 0xc54   : > { %20413 = vmatprep.subr.bf16.mxu1 %v30377_v46  ;;  %v6198_v17 = vand.u32 4294901760, %v6197_v9  ;;  %v6211_v2 = vsub.f32 %v26474_v1, %v29408_v54 }
 0xc55   : > { %v26476_v41 = vpack.c.bf16 %v6117_v40, %v6114_v53  ;;  %v26482_v51 = vsub.f32 %v6080_v7, %v6117_v40  ;;  %v30436_v7 = vand.u32 4294901760, %v26464_v49  ;;  %v6224_v53 = vand.u32 4294901760, %v26492_v42 }
 0xc56   : > { %v6237_v61 = vsub.f32 %v6082_v16, %v26494_v55  ;;  %v20420_v9 = vpack.c.bf16 %v6205_v35, %v6198_v17  ;;  %v20429_v16 = vpack.c.bf16 %v26436_v20, %v26439_v57  ;;  %v30438_v17 = vand.u32 4294901760, %v26436_v20 }
 0xc57   : > { %20415 = vmatpush3.bf16.msra.mxu1 %v26476_v41  ;;  %v6218_v40 = vsub.f32 %v26464_v49, %v30436_v7  ;;  %v29413_v48 = vand.u32 4294901760, %v26482_v51  ;;  %v6212_v7 = vand.u32 4294901760, %v6211_v2  ;;  %v6225_v54 = vsub.f32 %v26492_v42, %v6224_v53 }
 0xc58   : > { %18188 = vmatprep.subr.mxu1 %v30380_v33  ;;  %v30441_v20 = vand.u32 4294901760, %v26474_v1 }
 0xc59   : > { %v6219_v50 = vand.u32 4294901760, %v6218_v40  ;;  %v6232_v34 = vsub.f32 %v26482_v51, %v29413_v48  ;;  %v6226_v21 = vand.u32 4294901760, %v6225_v54  ;;  %v20438_v54 = vpack.c.bf16 %v26482_v51, %v26492_v42 }
 0xc5b   : > { %18189 = vmatpush3.msra.mxu1 %v26494_v55  ;;  %v20423_v39 = vpack.c.bf16 %v6219_v50, %v6212_v7  ;;  %v30439_v50 = vand.u32 4294901760, %v26456_v8  ;;  %v30443_v7 = vand.u32 4294901760, %v26482_v51  ;;  %v6649_v51 = vpop.permute.xlu1 %6648 }
 0xc5c   : > { %20416 = vmatprep.subr.bf16.mxu1 %v30377_v46  ;;  %18191 = vmatmul.mubr.f32.vlgmr.msra.gmra.mrb[28].mxu1 %v26486_v26  ;;  %v6238_v26 = vand.u32 4294901760, %v6237_v61 }
 0xc5d   : > { %20418 = vmatpush3.bf16.msra.mxu1 %v20417_v3  ;;  %18211 = vmatprep.mubr.msk.f32.mxu1 %vm22213_vm2, %v30380_v33  ;;  %v6233_v3 = vand.u32 4294901760, %v6232_v34  ;;  %v30440_v34 = vand.u32 4294901760, %v26448_v14 }
 0xc5e   : > { %20419 = vmatprep.subr.bf16.mxu1 %v30377_v46  ;;  %v6239_v48 = vsub.f32 %v6237_v61, %v6238_v26 }
 0xc5f   : > { %v20426_v40 = vpack.c.bf16 %v6233_v3, %v6226_v21  ;;  %v20432_v21 = vpack.c.bf16 %v26448_v14, %v26456_v8  ;;  %v20462_v3 = vpack.c.bf16 %v30443_v7, %v6224_v53 }
 0xc60   : > { %v6240_v35 = vand.u32 4294901760, %v6239_v48  ;;  %v30437_v48 = vand.u32 4294901760, %v26439_v57  ;;  %v30442_v57 = vand.u32 4294901760, %v26464_v49 }
 0xc61   : > { %20421 = vmatpush3.bf16.msra.mxu1 %v20420_v9 }
 0xc62   : > { %20422 = vmatprep.subr.bf16.mxu1 %v30377_v46  ;;  %v20453_v2 = vpack.c.bf16 %v30438_v17, %v30437_v48  ;;  %v20459_v9 = vpack.c.bf16 %v30442_v57, %v30441_v20  ;;  %v16332_v17 = vld [vmem:[%s28786_s3 + $0x10] sm:$0xff] }
 0xc63   : > { %v26590_v42 = vpop.permute.xlu0 %6062 }
 0xc64   : > { %30444 = vst [vmem:[#allocation290_spill] sm:$0xff] %v26590_v42 }
 0xc65   : > { %20424 = vmatpush3.bf16.msra.mxu1 %v20423_v39  ;;  %v20435_v39 = vpack.c.bf16 %v26464_v49, %v26474_v1 }
 0xc66   : > { %20425 = vmatprep.subr.bf16.mxu1 %v30377_v46 }
 0xc69   : > { %20427 = vmatpush3.bf16.msra.mxu1 %v20426_v40 }
 0xc6a   : > { %18209 = vmatprep.subr.mxu1 %v30380_v33 }
 0xc6d   : > { %18210 = vmatpush3.msra.mxu1 %v6240_v35 }
 0xc6e   : > { %20428 = vmatprep.subr.bf16.mxu1 %v30377_v46  ;;  %18212 = vmatmul.mubr.f32.vlgmr.msra.gmra.mrb[28].mxu1 %v26432_v0 }
 0xc6f   : > { %20430 = vmatpush3.bf16.msra.mxu1 %v20429_v16  ;;  %18232 = vmatprep.mubr.msk.f32.mxu1 %vm22213_vm2, %v30380_v33 }
 0xc70   : > { %20431 = vmatprep.subr.bf16.mxu1 %v30377_v46 }
 0xc73   : > { %20433 = vmatpush3.bf16.msra.mxu1 %v20432_v21 }
 0xc74   : > { %20434 = vmatprep.subr.bf16.mxu1 %v30377_v46 }
 0xc77   : > { %20436 = vmatpush3.bf16.msra.mxu1 %v20435_v39 }
 0xc78   : > { %20437 = vmatprep.subr.bf16.mxu1 %v30377_v46 }
 0xc7b   : > { %20439 = vmatpush3.bf16.msra.mxu1 %v20438_v54  ;;  %v16335_v54 = vld [vmem:[%s28787_s4 + $0x10] sm:$0xff] }
 0xc7c   : > { %18230 = vmatprep.subr.mxu1 %v30380_v33 }
 0xc7f   : > { %18231 = vmatpush3.msra.mxu1 %v6237_v61  ;;  %v20456_v61 = vpack.c.bf16 %v30440_v34, %v30439_v50 }
 0xc80   : > { %20440 = vmatprep.subr.bf16.mxu1 %v30377_v46  ;;  %18233 = vmatmul.mubr.f32.vlgmr.msra.gmra.mrb[28].mxu1 %v26443_v22 }
 0xc81   : > { %20442 = vmatpush3.bf16.msra.mxu1 %v26434_v29  ;;  %18253 = vmatprep.mubr.msk.f32.mxu1 %vm22213_vm2, %v30380_v33 }
 0xc82   : > { %20443 = vmatprep.subr.bf16.mxu1 %v30377_v46 }
 0xc85   : > { %20445 = vmatpush3.bf16.msra.mxu1 %v26445_v45 }
 0xc86   : > { %20446 = vmatprep.subr.bf16.mxu1 %v30377_v46 }
 0xc89   : > { %20448 = vmatpush3.bf16.msra.mxu1 %v26458_v32 }
 0xc8a   : > { %20449 = vmatprep.subr.bf16.mxu1 %v30377_v46 }
 0xc8d   : > { %20451 = vmatpush3.bf16.msra.mxu1 %v26476_v41 }
 0xc8e   : > { %18251 = vmatprep.subr.mxu1 %v30380_v33 }
 0xc91   : > { %18252 = vmatpush3.msra.mxu1 %v26494_v55 }
 0xc92   : > { %20452 = vmatprep.subr.bf16.mxu1 %v30377_v46  ;;  %18254 = vmatmul.mubr.f32.vlgmr.msra.gmra.mrb[28].mxu1 %v26454_v4 }
 0xc93   : > { %20454 = vmatpush3.bf16.msra.mxu1 %v20453_v2  ;;  %18274 = vmatprep.mubr.msk.f32.mxu1 %vm22213_vm2, %v30380_v33  ;;  %v6709_v2 = vsel %vm5475_vm1, %v16332_v17, 0 }
 0xc94   : > { %20455 = vmatprep.subr.bf16.mxu1 %v30377_v46  ;;  %v26624_v57 = vand.u32 4294901760, %v6709_v2 }
 0xc96   : > { %30445 = vst [vmem:[#allocation291_spill] sm:$0xff] %v26624_v57 }
 0xc97   : > { %20457 = vmatpush3.bf16.msra.mxu1 %v20456_v61 }
 0xc98   : > { %20458 = vmatprep.subr.bf16.mxu1 %v30377_v46 }
 0xc9b   : > { %20460 = vmatpush3.bf16.msra.mxu1 %v20459_v9 }
 0xc9c   : > { %20461 = vmatprep.subr.bf16.mxu1 %v30377_v46 }
 0xc9f   : > { %20463 = vmatpush3.bf16.msra.mxu1 %v20462_v3 }
 0xca0   : > { %18272 = vmatprep.subr.mxu1 %v30380_v33 }
 0xca3   : > { %18273 = vmatpush3.msra.mxu1 %v6238_v26 }
 0xca4   : > { %20464 = vmatprep.subr.bf16.mxu1 %v30377_v46  ;;  %18275 = vmatmul.mubr.f32.vlgmr.msra.gmra.mrb[28].mxu1 %v26432_v0 }
 0xca5   : > { %20466 = vmatpush3.bf16.msra.mxu1 %v26434_v29  ;;  %18295 = vmatprep.mubr.msk.f32.mxu1 %vm22213_vm2, %v30380_v33 }
 0xca6   : > { %20467 = vmatprep.subr.bf16.mxu1 %v30377_v46 }
 0xca9   : > { %20469 = vmatpush3.bf16.msra.mxu1 %v26445_v45 }
 0xcaa   : > { %20470 = vmatprep.subr.bf16.mxu1 %v30377_v46 }
 0xcad   : > { %20472 = vmatpush3.bf16.msra.mxu1 %v26458_v32 }
 0xcae   : > { %20473 = vmatprep.subr.bf16.mxu1 %v30377_v46 }
 0xcb1   : > { %20475 = vmatpush3.bf16.msra.mxu1 %v26476_v41 }
 0xcb2   : > { %18293 = vmatprep.subr.mxu1 %v30380_v33 }
 0xcb5   : > { %18294 = vmatpush3.msra.mxu1 %v26494_v55 }
 0xcb6   : > { %18296 = vmatmul.mubr.f32.vlgmr.msra.gmra.mrb[28].mxu1 %v26432_v0  ;;  %20548 = vmatprep.subr.bf16.mxu1 %v30377_v46 }
 0xcb7   : > { %18442 = vmatprep.mubr.msk.f32.mxu1 %vm22213_vm2, %v30380_v33 }
 0xd89   : > { %v6641_v29 = vpop.f32.mrb[28].mxu1 }
 0xd8a   : > { %v21967_v45 = vadd.f32 %v6641_v29, %v26590_v42  ;;  %v18297_v14 = vpop.f32.mrb[29].mxu1 }
 0xd8c   : > { %v6645_v8 = vsel %vm6034_vm3, %v21967_v45, 0.0 }
 0xd8d   : > { %v6651_v32 = vadd.f32 %v6649_v51, %v6645_v8  ;;  %v26635_v8 = vsub.f32 %v6709_v2, %v26624_v57 }
 0xd8f   : > { %6653 = vrot.lane.b32.xlu1 %v6651_v32, %s22215_s18  ;;  %30446 = vst [vmem:[#allocation292_spill] sm:$0xff] %v26635_v8 }
 0xe01   : > { %v6654_v55 = vpop.permute.xlu1 %6653 }
 0xe02   : > { %6656 = vst.msk [vmem:[#allocation6] sm:$0xff] %vm5422_vm0, %v6654_v55 }
 0xe09   : > { %v26597_v49 = vld [vmem:[#allocation6] sm:$0xff] }
 0xe0a   : > { %v6658_v26 = vmax.f32 %v26597_v49, 0.0 }
 0xe0c   : > { %6662 = vrot.lane.b32.xlu1 %v6658_v26, %s22205_s25  ;;  %6660 = vrot.lane.b32.xlu0 %v6658_v26, %s22203_s23 }
 0xe10   : > { %6666 = vrot.lane.b32.xlu1 %v6658_v26, %s22216_s19  ;;  %6664 = vrot.lane.b32.xlu0 %v6658_v26, %s22217_s12 }
 0xe14   : > { %6670 = vrot.lane.b32.xlu1 %v6658_v26, %s22207_s27  ;;  %6668 = vrot.lane.b32.xlu0 %v6658_v26, %s29455_s16 }
 0xe18   : > { %6674 = vrot.lane.b32.xlu1 %v6658_v26, %s29453_s14  ;;  %6672 = vrot.lane.b32.xlu0 %v6658_v26, %s29451_s17 }
 0xe1c   : > { %6681 = vrot.lane.b32.xlu0 %v6658_v26, %s22210_s30 }
 0xe7e   : > { %v6663_v1 = vpop.permute.xlu1 %6662  ;;  %v6661_v41 = vpop.permute.xlu0 %6660 }
 0xe7f   : > { %6685 = vrot.lane.b32.xlu0 %v6663_v1, %s22210_s30  ;;  %6683 = vrot.lane.b32.xlu1 %v6661_v41, %s22210_s30 }
 0xe82   : > { %v6667_v53 = vpop.permute.xlu1 %6666  ;;  %v6665_v40 = vpop.permute.xlu0 %6664 }
 0xe83   : > { %6689 = vrot.lane.b32.xlu0 %v6667_v53, %s22210_s30  ;;  %6687 = vrot.lane.b32.xlu1 %v6665_v40, %s22210_s30 }
 0xe86   : > { %v6671_v35 = vpop.permute.xlu1 %6670  ;;  %v6669_v16 = vpop.permute.xlu0 %6668 }
 0xe87   : > { %6693 = vrot.lane.b32.xlu0 %v6671_v35, %s22210_s30  ;;  %6691 = vrot.lane.b32.xlu1 %v6669_v16, %s22210_s30  ;;  %v26646_v16 = vand.u32 4294901760, %v26635_v8 }
 0xe89   : > { %30447 = vst [vmem:[#allocation293_spill] sm:$0xff] %v26646_v16 }
 0xe8a   : > { %v6675_v21 = vpop.permute.xlu1 %6674  ;;  %v6673_v39 = vpop.permute.xlu0 %6672 }
 0xe8b   : > { %6697 = vrot.lane.b32.xlu0 %v6675_v21, %s22210_s30  ;;  %6695 = vrot.lane.b32.xlu1 %v6673_v39, %s22210_s30 }
 0xe8e   : > { %v6682_v48 = vpop.permute.xlu0 %6681 }
 0xe8f   : > { %6678 = vperm.xlu1 %22183, %v16335_v54   ;;  %v6712_v61 = vand.u32 4294901760, %v6682_v48 }
 0xe91   : > { %v26631_v51 = vsub.f32 %v6682_v48, %v6712_v61 }
 0xe93   : > { %v29416_v40 = vand.u32 4294901760, %v26631_v51 }
 0xef1   : > { %v6684_v50 = vpop.permute.xlu1 %6683  ;;  %v6686_v34 = vpop.permute.xlu0 %6685 }
 0xef2   : > { %v6715_v20 = vand.u32 4294901760, %v6684_v50  ;;  %v6718_v45 = vand.u32 4294901760, %v6686_v34 }
 0xef4   : > { %v26626_v9 = vpack.c.bf16 %v6715_v20, %v6712_v61  ;;  %v26628_v7 = vsub.f32 %v6684_v50, %v6715_v20  ;;  %v26648_v21 = vsub.f32 %v6686_v34, %v6718_v45  ;;  %v6799_v34 = vsub.f32 %v26631_v51, %v29416_v40 }
 0xef5   : > { %v6688_v3 = vpop.permute.xlu1 %6687  ;;  %v6690_v29 = vpop.permute.xlu0 %6689  ;;  %v6788_v20 = vsub.f32 %v26635_v8, %v26646_v16 }
 0xef6   : > { %v6721_v14 = vand.u32 4294901760, %v6688_v3  ;;  %20478 = vmatpush3.bf16.msra.mxu0 %v26626_v9  ;;  %v29414_v55 = vand.u32 4294901760, %v26628_v7  ;;  %v6724_v41 = vand.u32 4294901760, %v6690_v29  ;;  %v6800_v4 = vand.u32 4294901760, %v6799_v34 }
 0xef7   : > { %20479 = vmatprep.subr.bf16.mxu0 %v30377_v46 }
 0xef8   : > { %v26637_v32 = vpack.c.bf16 %v6721_v14, %v6718_v45  ;;  %v26640_v1 = vsub.f32 %v6688_v3, %v6721_v14  ;;  %v6806_v54 = vsub.f32 %v26628_v7, %v29414_v55  ;;  %v26666_v45 = vsub.f32 %v6690_v29, %v6724_v41 }
 0xef9   : > { %v6692_v26 = vpop.permute.xlu1 %6691  ;;  %v6694_v35 = vpop.permute.xlu0 %6693  ;;  %v26678_v3 = vand.u32 4294901760, %v6788_v20  ;;  %v30449_v29 = vand.u32 4294901760, %v26648_v21 }
 0xefa   : > { %v6727_v53 = vand.u32 4294901760, %v6692_v26  ;;  %20481 = vmatpush3.bf16.msra.mxu0 %v26637_v32  ;;  %v29419_v17 = vand.u32 4294901760, %v26640_v1  ;;  %v6730_v50 = vand.u32 4294901760, %v6694_v35 }
 0xefb   : > { %20482 = vmatprep.subr.bf16.mxu0 %v30377_v46  ;;  %30448 = vst [vmem:[#allocation294_spill] sm:$0xff] %v26678_v3 }
 0xefc   : > { %v26650_v39 = vpack.c.bf16 %v6727_v53, %v6724_v41  ;;  %v26656_v2 = vsub.f32 %v6692_v26, %v6727_v53  ;;  %v6807_v53 = vand.u32 4294901760, %v6806_v54  ;;  %v6820_v55 = vsub.f32 %v26640_v1, %v29419_v17 }
 0xefd   : > { %v6696_v48 = vpop.permute.xlu1 %6695  ;;  %v6698_v26 = vpop.permute.xlu0 %6697  ;;  %v6813_v41 = vsub.f32 %v26648_v21, %v30449_v29  ;;  %v29420_v54 = vand.u32 4294901760, %v26666_v45  ;;  %v26684_v22 = vsub.f32 %v6694_v35, %v6730_v50 }
 0xefe   : > { %v6733_v61 = vand.u32 4294901760, %v6696_v48  ;;  %20484 = vmatpush3.bf16.msra.mxu0 %v26650_v39  ;;  %v26686_v17 = vand.u32 4294901760, %v6698_v26  ;;  %v6821_v42 = vand.u32 4294901760, %v6820_v55  ;;  %v20489_v20 = vpack.c.bf16 %v6807_v53, %v6800_v4 }
 0xeff   : > { %20485 = vmatprep.subr.bf16.mxu0 %v30377_v46  ;;  %v6814_v29 = vand.u32 4294901760, %v6813_v41  ;;  %v6827_v35 = vsub.f32 %v26666_v45, %v29420_v54  ;;  %v6840_v55 = vand.u32 4294901760, %v26684_v22 }
 0xf00   : > { %v26668_v14 = vpack.c.bf16 %v6733_v61, %v6730_v50  ;;  %v26674_v40 = vsub.f32 %v6696_v48, %v6733_v61  ;;  %v30450_v48 = vand.u32 4294901760, %v26656_v2  ;;  %v6853_v53 = vsub.f32 %v6698_v26, %v26686_v17 }
 0xf01   : > { %v20492_v41 = vpack.c.bf16 %v6821_v42, %v6814_v29  ;;  %v6841_v54 = vsub.f32 %v26684_v22, %v6840_v55  ;;  %v20501_v26 = vpack.c.bf16 %v26628_v7, %v26631_v51  ;;  %v30452_v29 = vand.u32 4294901760, %v26628_v7 }
 0xf02   : > { %20487 = vmatpush3.bf16.msra.mxu0 %v26668_v14  ;;  %v6834_v61 = vsub.f32 %v26656_v2, %v30450_v48  ;;  %v29424_v34 = vand.u32 4294901760, %v26674_v40  ;;  %v6828_v48 = vand.u32 4294901760, %v6827_v35  ;;  %v30455_v7 = vand.u32 4294901760, %v26666_v45 }
 0xf03   : > { %18314 = vmatprep.subr.mxu0 %v30380_v33  ;;  %v6842_v36 = vand.u32 4294901760, %v6841_v54  ;;  %v20510_v54 = vpack.c.bf16 %v26674_v40, %v26684_v22 }
 0xf04   : > { %v6835_v50 = vand.u32 4294901760, %v6834_v61  ;;  %v6848_v4 = vsub.f32 %v26674_v40, %v29424_v34 }
 0xf06   : > { %18315 = vmatpush3.msra.mxu0 %v26686_v17  ;;  %v20495_v0 = vpack.c.bf16 %v6835_v50, %v6828_v48  ;;  %v30453_v50 = vand.u32 4294901760, %v26648_v21  ;;  %v30457_v48 = vand.u32 4294901760, %v26674_v40 }
 0xf07   : > { %20488 = vmatprep.subr.bf16.mxu0 %v30377_v46  ;;  %18317 = vmatmul.mubr.f32.vlgmr.msra.gmra.mrb[10].mxu0 %v26678_v3  ;;  %v6854_v3 = vand.u32 4294901760, %v6853_v53 }
 0xf08   : > { %20490 = vmatpush3.bf16.msra.mxu0 %v20489_v20  ;;  %18337 = vmatprep.mubr.msk.f32.mxu0 %vm22213_vm2, %v30380_v33  ;;  %v6849_v20 = vand.u32 4294901760, %v6848_v4  ;;  %v30454_v4 = vand.u32 4294901760, %v26640_v1 }
 0xf09   : > { %20491 = vmatprep.subr.bf16.mxu0 %v30377_v46  ;;  %v6855_v34 = vsub.f32 %v6853_v53, %v6854_v3 }
 0xf0a   : > { %v20498_v61 = vpack.c.bf16 %v6849_v20, %v6842_v36  ;;  %v20504_v36 = vpack.c.bf16 %v26640_v1, %v26648_v21  ;;  %v20534_v20 = vpack.c.bf16 %v30457_v48, %v6840_v55 }
 0xf0b   : > { %v6856_v42 = vand.u32 4294901760, %v6855_v34  ;;  %v30451_v34 = vand.u32 4294901760, %v26631_v51  ;;  %v30456_v51 = vand.u32 4294901760, %v26656_v2 }
 0xf0c   : > { %20493 = vmatpush3.bf16.msra.mxu0 %v20492_v41 }
 0xf0d   : > { %20494 = vmatprep.subr.bf16.mxu0 %v30377_v46  ;;  %v20525_v35 = vpack.c.bf16 %v30452_v29, %v30451_v34  ;;  %v20531_v41 = vpack.c.bf16 %v30456_v51, %v30455_v7 }
 0xf0e   : > { %v26782_v22 = vpop.permute.xlu1 %6678 }
 0xf0f   : > { %30458 = vst [vmem:[#allocation295_spill] sm:$0xff] %v26782_v22 }
 0xf10   : > { %20496 = vmatpush3.bf16.msra.mxu0 %v20495_v0  ;;  %v20507_v0 = vpack.c.bf16 %v26656_v2, %v26666_v45 }
 0xf11   : > { %20497 = vmatprep.subr.bf16.mxu0 %v30377_v46 }
 0xf14   : > { %20499 = vmatpush3.bf16.msra.mxu0 %v20498_v61 }
 0xf15   : > { %18335 = vmatprep.subr.mxu0 %v30380_v33 }
 0xf18   : > { %18336 = vmatpush3.msra.mxu0 %v6856_v42 }
 0xf19   : > { %20500 = vmatprep.subr.bf16.mxu0 %v30377_v46  ;;  %18338 = vmatmul.mubr.f32.vlgmr.msra.gmra.mrb[10].mxu0 %v26624_v57 }
 0xf1a   : > { %20502 = vmatpush3.bf16.msra.mxu0 %v20501_v26  ;;  %18358 = vmatprep.mubr.msk.f32.mxu0 %vm22213_vm2, %v30380_v33 }
 0xf1b   : > { %20503 = vmatprep.subr.bf16.mxu0 %v30377_v46 }
 0xf1e   : > { %20505 = vmatpush3.bf16.msra.mxu0 %v20504_v36  ;;  %v16336_v36 = vld [vmem:[%s28787_s4 + $0x18] sm:$0xff] }
 0xf1f   : > { %20506 = vmatprep.subr.bf16.mxu0 %v30377_v46 }
 0xf22   : > { %20508 = vmatpush3.bf16.msra.mxu0 %v20507_v0 }
 0xf23   : > { %20509 = vmatprep.subr.bf16.mxu0 %v30377_v46 }
 0xf26   : > { %20511 = vmatpush3.bf16.msra.mxu0 %v20510_v54  ;;  %v16333_v54 = vld [vmem:[%s28786_s3 + $0x18] sm:$0xff] }
 0xf27   : > { %18356 = vmatprep.subr.mxu0 %v30380_v33  ;;  %v7319_v34 = vsel %vm5475_vm1, %v16333_v54, 0  ;;  %vm8445_vm1 = vcmask 523264  }
 0xf2a   : > { %18357 = vmatpush3.msra.mxu0 %v6853_v53  ;;  %v20528_v53 = vpack.c.bf16 %v30454_v4, %v30453_v50 }
 0xf2b   : > { %20512 = vmatprep.subr.bf16.mxu0 %v30377_v46  ;;  %18359 = vmatmul.mubr.f32.vlgmr.msra.gmra.mrb[10].mxu0 %v26635_v8  ;;  %v30499_v8 = vld [vmem:[#allocation95_spill] sm:$0xff] }
 0xf2c   : > { %20514 = vmatpush3.bf16.msra.mxu0 %v26626_v9  ;;  %18379 = vmatprep.mubr.msk.f32.mxu0 %vm22213_vm2, %v30380_v33 }
 0xf2d   : > { %20515 = vmatprep.subr.bf16.mxu0 %v30377_v46 }
 0xf30   : > { %20517 = vmatpush3.bf16.msra.mxu0 %v26637_v32 }
 0xf31   : > { %20518 = vmatprep.subr.bf16.mxu0 %v30377_v46 }
 0xf34   : > { %20520 = vmatpush3.bf16.msra.mxu0 %v26650_v39 }
 0xf35   : > { %20521 = vmatprep.subr.bf16.mxu0 %v30377_v46 }
 0xf38   : > { %20523 = vmatpush3.bf16.msra.mxu0 %v26668_v14 }
 0xf39   : > { %18377 = vmatprep.subr.mxu0 %v30380_v33 }
 0xf3c   : > { %18378 = vmatpush3.msra.mxu0 %v26686_v17 }
 0xf3d   : > { %20524 = vmatprep.subr.bf16.mxu0 %v30377_v46  ;;  %18380 = vmatmul.mubr.f32.vlgmr.msra.gmra.mrb[10].mxu0 %v26646_v16 }
 0xf3e   : > { %20526 = vmatpush3.bf16.msra.mxu0 %v20525_v35  ;;  %18400 = vmatprep.mubr.msk.f32.mxu0 %vm22213_vm2, %v30380_v33 }
 0xf3f   : > { %20527 = vmatprep.subr.bf16.mxu0 %v30377_v46 }
 0xf42   : > { %20529 = vmatpush3.bf16.msra.mxu0 %v20528_v53  ;;  %v26815_v53 = vand.u32 4294901760, %v7319_v34 }
 0xf43   : > { %20530 = vmatprep.subr.bf16.mxu0 %v30377_v46 }
 0xf44   : > { %30459 = vst [vmem:[#allocation296_spill] sm:$0xff] %v26815_v53 }
 0xf46   : > { %20532 = vmatpush3.bf16.msra.mxu0 %v20531_v41 }
 0xf47   : > { %20533 = vmatprep.subr.bf16.mxu0 %v30377_v46 }
 0xf4a   : > { %20535 = vmatpush3.bf16.msra.mxu0 %v20534_v20 }
 0xf4b   : > { %18398 = vmatprep.subr.mxu0 %v30380_v33 }
 0xf4e   : > { %18399 = vmatpush3.msra.mxu0 %v6854_v3 }
 0xf4f   : > { %20536 = vmatprep.subr.bf16.mxu0 %v30377_v46  ;;  %18401 = vmatmul.mubr.f32.vlgmr.msra.gmra.mrb[10].mxu0 %v26624_v57 }
 0xf50   : > { %20538 = vmatpush3.bf16.msra.mxu0 %v26626_v9  ;;  %18421 = vmatprep.mubr.msk.f32.mxu0 %vm22213_vm2, %v30380_v33 }
 0xf51   : > { %20539 = vmatprep.subr.bf16.mxu0 %v30377_v46 }
 0xf54   : > { %20541 = vmatpush3.bf16.msra.mxu0 %v26637_v32 }
 0xf55   : > { %20542 = vmatprep.subr.bf16.mxu0 %v30377_v46 }
 0xf58   : > { %20544 = vmatpush3.bf16.msra.mxu0 %v26650_v39 }
 0xf59   : > { %20545 = vmatprep.subr.bf16.mxu0 %v30377_v46 }
 0xf5c   : > { %20547 = vmatpush3.bf16.msra.mxu0 %v26668_v14 }
 0xf5d   : > { %18419 = vmatprep.subr.mxu0 %v30380_v33 }
 0xf60   : > { %18420 = vmatpush3.msra.mxu0 %v26686_v17 }
 0xf61   : > { %18422 = vmatmul.mubr.f32.vlgmr.msra.gmra.mrb[10].mxu0 %v26624_v57  ;;  %20620 = vmatprep.subr.bf16.mxu0 %v30377_v46  ;;  %v30500_v57 = vld [vmem:[#allocation97_spill] sm:$0xff] }
 0xf62   : > { %18570 = vmatprep.mubr.msk.f32.mxu0 %vm22213_vm2, %v30380_v33 }
0x1034   : > { %v7257_v9 = vpop.f32.mrb[10].mxu0 }
0x1035   : > { %v21968_v32 = vadd.f32 %v7257_v9, %v26782_v22  ;;  %v18423_v1 = vpop.f32.mrb[11].mxu0 }
0x1037   : > { %v7261_v40 = vsel %vm6034_vm3, %v21968_v32, 0.0  ;;  %v26826_v32 = vsub.f32 %v7319_v34, %v26815_v53 }
0x1038   : > { %7263 = vrot.lane.b32.xlu0 %v7261_v40, %s22215_s18 }
0x1039   : > { %30460 = vst [vmem:[#allocation297_spill] sm:$0xff] %v26826_v32 }
0x10aa   : > { %v7264_v21 = vpop.permute.xlu0 %7263 }
0x10ab   : > { %7266 = vst.msk [vmem:[#allocation5] sm:$0xff] %vm5422_vm0, %v7264_v21 }
0x10b2   : > { %v7267_v39 = vld [vmem:[#allocation5] sm:$0xff] }
0x10b3   : > { %v7268_v17 = vmax.f32 %v7267_v39, 0.0 }
0x10b5   : > { %7272 = vrot.lane.b32.xlu0 %v7268_v17, %s22205_s25  ;;  %7270 = vrot.lane.b32.xlu1 %v7268_v17, %s22203_s23 }
0x10b9   : > { %7276 = vrot.lane.b32.xlu0 %v7268_v17, %s22216_s19  ;;  %7274 = vrot.lane.b32.xlu1 %v7268_v17, %s22217_s12 }
0x10bd   : > { %7280 = vrot.lane.b32.xlu0 %v7268_v17, %s22207_s27  ;;  %7278 = vrot.lane.b32.xlu1 %v7268_v17, %s29455_s16  ;;  %s30736_s16 = smov 90  }
0x10c1   : > { %7284 = vrot.lane.b32.xlu0 %v7268_v17, %s29453_s14  ;;  %7282 = vrot.lane.b32.xlu1 %v7268_v17, %s29451_s17  ;;  %s30834_s14 = smov 106   ;;  %s30835_s17 = smov 107  }
0x10c5   : > { %7291 = vrot.lane.b32.xlu1 %v7268_v17, %s22210_s30 }
0x1127   : > { %v7273_v2 = vpop.permute.xlu0 %7272  ;;  %v7271_v3 = vpop.permute.xlu1 %7270 }
0x1128   : > { %7295 = vrot.lane.b32.xlu1 %v7273_v2, %s22210_s30  ;;  %7293 = vrot.lane.b32.xlu0 %v7271_v3, %s22210_s30 }
0x112b   : > { %v7277_v45 = vpop.permute.xlu0 %7276  ;;  %v7275_v14 = vpop.permute.xlu1 %7274 }
0x112c   : > { %7299 = vrot.lane.b32.xlu1 %v7277_v45, %s22210_s30  ;;  %7297 = vrot.lane.b32.xlu0 %v7275_v14, %s22210_s30  ;;  %v26837_v14 = vand.u32 4294901760, %v26826_v32 }
0x112e   : > { %30461 = vst [vmem:[#allocation298_spill] sm:$0xff] %v26837_v14 }
0x112f   : > { %v7281_v55 = vpop.permute.xlu0 %7280  ;;  %v7279_v61 = vpop.permute.xlu1 %7278 }
0x1130   : > { %7303 = vrot.lane.b32.xlu1 %v7281_v55, %s22210_s30  ;;  %7301 = vrot.lane.b32.xlu0 %v7279_v61, %s22210_s30 }
0x1133   : > { %v7285_v42 = vpop.permute.xlu0 %7284  ;;  %v7283_v26 = vpop.permute.xlu1 %7282 }
0x1134   : > { %7307 = vrot.lane.b32.xlu1 %v7285_v42, %s22210_s30  ;;  %7305 = vrot.lane.b32.xlu0 %v7283_v26, %s22210_s30 }
0x1137   : > { %v7292_v0 = vpop.permute.xlu1 %7291 }
0x1138   : > { %7874 = vrot.lane.b32.xlu1 %v26597_v49, %s22202_s22  ;;  %7288 = vperm.xlu0 %22184, %v16336_v36   ;;  %v7322_v50 = vand.u32 4294901760, %v7292_v0 }
0x113a   : > { %v26822_v9 = vsub.f32 %v7292_v0, %v7322_v50 }
0x113c   : > { %v29426_v3 = vand.u32 4294901760, %v26822_v9 }
0x119a   : > { %v7294_v29 = vpop.permute.xlu0 %7293  ;;  %v7296_v35 = vpop.permute.xlu1 %7295 }
0x119b   : > { %v7325_v4 = vand.u32 4294901760, %v7294_v29  ;;  %v7328_v48 = vand.u32 4294901760, %v7296_v35 }
0x119d   : > { %v26817_v7 = vpack.c.bf16 %v7325_v4, %v7322_v50  ;;  %v26819_v51 = vsub.f32 %v7294_v29, %v7325_v4  ;;  %v26839_v55 = vsub.f32 %v7296_v35, %v7328_v48  ;;  %v7409_v29 = vsub.f32 %v26822_v9, %v29426_v3 }
0x119e   : > { %v7298_v41 = vpop.permute.xlu0 %7297  ;;  %v7300_v49 = vpop.permute.xlu1 %7299  ;;  %v7398_v35 = vsub.f32 %v26826_v32, %v26837_v14 }
0x119f   : > { %v7331_v20 = vand.u32 4294901760, %v7298_v41  ;;  %20550 = vmatpush3.bf16.msra.mxu1 %v26817_v7  ;;  %v29425_v40 = vand.u32 4294901760, %v26819_v51  ;;  %v7334_v17 = vand.u32 4294901760, %v7300_v49  ;;  %v7410_v3 = vand.u32 4294901760, %v7409_v29 }
0x11a0   : > { %20551 = vmatprep.subr.bf16.mxu1 %v30377_v46  ;;  %v26869_v50 = vand.u32 4294901760, %v7398_v35 }
0x11a1   : > { %v26828_v1 = vpack.c.bf16 %v7331_v20, %v7328_v48  ;;  %v26831_v39 = vsub.f32 %v7298_v41, %v7331_v20  ;;  %v7416_v42 = vsub.f32 %v26819_v51, %v29425_v40  ;;  %v26857_v4 = vsub.f32 %v7300_v49, %v7334_v17 }
0x11a2   : > { %v7302_v21 = vpop.permute.xlu0 %7301  ;;  %v7304_v45 = vpop.permute.xlu1 %7303  ;;  %30462 = vst [vmem:[#allocation299_spill] sm:$0xff] %v26869_v50  ;;  %v30463_v49 = vand.u32 4294901760, %v26839_v55 }
0x11a3   : > { %v7337_v2 = vand.u32 4294901760, %v7302_v21  ;;  %20553 = vmatpush3.bf16.msra.mxu1 %v26828_v1  ;;  %v29428_v36 = vand.u32 4294901760, %v26831_v39  ;;  %v7340_v54 = vand.u32 4294901760, %v7304_v45  ;;  %v7417_v20 = vand.u32 4294901760, %v7416_v42 }
0x11a4   : > { %20554 = vmatprep.subr.bf16.mxu1 %v30377_v46  ;;  %v29429_v42 = vand.u32 4294901760, %v26857_v4 }
0x11a5   : > { %v26841_v61 = vpack.c.bf16 %v7337_v2, %v7334_v17  ;;  %v26847_v0 = vsub.f32 %v7302_v21, %v7337_v2  ;;  %v7430_v21 = vsub.f32 %v26831_v39, %v29428_v36  ;;  %v7423_v17 = vsub.f32 %v26839_v55, %v30463_v49 }
0x11a6   : > { %v7306_v26 = vpop.permute.xlu0 %7305  ;;  %v7308_v48 = vpop.permute.xlu1 %7307  ;;  %v26875_v22 = vsub.f32 %v7304_v45, %v7340_v54  ;;  %v20561_v35 = vpack.c.bf16 %v7417_v20, %v7410_v3  ;;  %v7437_v45 = vsub.f32 %v26857_v4, %v29429_v42 }
0x11a7   : > { %v7343_v34 = vand.u32 4294901760, %v7306_v26  ;;  %20556 = vmatpush3.bf16.msra.mxu1 %v26841_v61  ;;  %v26877_v36 = vand.u32 4294901760, %v7308_v48  ;;  %v7431_v2 = vand.u32 4294901760, %v7430_v21  ;;  %v7424_v49 = vand.u32 4294901760, %v7423_v17 }
0x11a8   : > { %20557 = vmatprep.subr.bf16.mxu1 %v30377_v46 }
0x11a9   : > { %v26859_v41 = vpack.c.bf16 %v7343_v34, %v7340_v54  ;;  %v26865_v40 = vsub.f32 %v7306_v26, %v7343_v34  ;;  %v30464_v26 = vand.u32 4294901760, %v26847_v0  ;;  %v7450_v54 = vand.u32 4294901760, %v26875_v22 }
0x11aa   : > { %v26897_v20 = vsub.f32 %v7308_v48, %v26877_v36  ;;  %v20564_v17 = vpack.c.bf16 %v7431_v2, %v7424_v49  ;;  %v20573_v49 = vpack.c.bf16 %v26819_v51, %v26822_v9 }
0x11ab   : > { %20559 = vmatpush3.bf16.msra.mxu1 %v26859_v41  ;;  %v7444_v34 = vsub.f32 %v26847_v0, %v30464_v26  ;;  %v29432_v29 = vand.u32 4294901760, %v26865_v40  ;;  %v7438_v26 = vand.u32 4294901760, %v7437_v45  ;;  %v7451_v42 = vsub.f32 %v26875_v22, %v7450_v54 }
0x11ac   : > { %18440 = vmatprep.subr.mxu1 %v30380_v33  ;;  %v30465_v45 = vand.u32 4294901760, %v26822_v9  ;;  %v30470_v9 = vand.u32 4294901760, %v26847_v0 }
0x11ad   : > { %v7445_v21 = vand.u32 4294901760, %v7444_v34  ;;  %v7458_v3 = vsub.f32 %v26865_v40, %v29432_v29  ;;  %v7452_v16 = vand.u32 4294901760, %v7451_v42  ;;  %v20579_v42 = vpack.c.bf16 %v26847_v0, %v26857_v4 }
0x11af   : > { %18441 = vmatpush3.msra.mxu1 %v26877_v36  ;;  %v20567_v34 = vpack.c.bf16 %v7445_v21, %v7438_v26  ;;  %v30466_v21 = vand.u32 4294901760, %v26819_v51  ;;  %v30469_v51 = vand.u32 4294901760, %v26857_v4  ;;  %v30477_v4 = vld [vmem:[#allocation11_spill] sm:$0xff] }
0x11b0   : > { %20560 = vmatprep.subr.bf16.mxu1 %v30377_v46  ;;  %18443 = vmatmul.mubr.f32.vlgmr.msra.gmra.mrb[30].mxu1 %v26869_v50  ;;  %v7464_v50 = vand.u32 4294901760, %v26897_v20 }
0x11b1   : > { %20562 = vmatpush3.bf16.msra.mxu1 %v20561_v35  ;;  %18463 = vmatprep.mubr.msk.f32.mxu1 %vm22213_vm2, %v30380_v33  ;;  %v7459_v35 = vand.u32 4294901760, %v7458_v3  ;;  %v20597_v3 = vpack.c.bf16 %v30466_v21, %v30465_v45  ;;  %v30485_v45 = vld [vmem:[#allocation39_spill] sm:$0xff]  ;;  %v30486_v21 = vld [vmem:[#allocation42_spill] sm:$0xff] }
0x11b2   : > { %20563 = vmatprep.subr.bf16.mxu1 %v30377_v46  ;;  %v7465_v48 = vsub.f32 %v26897_v20, %v7464_v50 }
0x11b3   : > { %v20570_v29 = vpack.c.bf16 %v7459_v35, %v7452_v16  ;;  %v20576_v16 = vpack.c.bf16 %v26831_v39, %v26839_v55  ;;  %v20603_v35 = vpack.c.bf16 %v30470_v9, %v30469_v51  ;;  %v30491_v51 = vld [vmem:[#allocation63_spill] sm:$0xff]  ;;  %v30492_v9 = vld [vmem:[#allocation65_spill] sm:$0xff] }
0x11b4   : > { %v7466_v2 = vand.u32 4294901760, %v7465_v48  ;;  %v30471_v48 = vand.u32 4294901760, %v26865_v40 }
0x11b5   : > { %20565 = vmatpush3.bf16.msra.mxu1 %v20564_v17  ;;  %v30468_v17 = vand.u32 4294901760, %v26831_v39 }
0x11b6   : > { %20566 = vmatprep.subr.bf16.mxu1 %v30377_v46 }
0x11b9   : > { %20568 = vmatpush3.bf16.msra.mxu1 %v20567_v34  ;;  %v16337_v34 = vld [vmem:[%s23360_s20 + $0x8] sm:$0xff] }
0x11ba   : > { %20569 = vmatprep.subr.bf16.mxu1 %v30377_v46  ;;  %v8450_v39 = vcombine.high %v16337_v34, %v16337_v34 }
0x11bd   : > { %20571 = vmatpush3.bf16.msra.mxu1 %v20570_v29  ;;  %v20582_v29 = vpack.c.bf16 %v26865_v40, %v26875_v22 }
0x11be   : > { %18461 = vmatprep.subr.mxu1 %v30380_v33 }
0x11c1   : > { %18462 = vmatpush3.msra.mxu1 %v7466_v2  ;;  %v26962_v2 = vand.u32 4294901760, %v8450_v39 }
0x11c2   : > { %20572 = vmatprep.subr.bf16.mxu1 %v30377_v46  ;;  %18464 = vmatmul.mubr.f32.vlgmr.msra.gmra.mrb[30].mxu1 %v26815_v53 }
0x11c3   : > { %20574 = vmatpush3.bf16.msra.mxu1 %v20573_v49  ;;  %18484 = vmatprep.mubr.msk.f32.mxu1 %vm22213_vm2, %v30380_v33  ;;  %30472 = vst [vmem:[#allocation300_spill] sm:$0xff] %v26962_v2  ;;  %v26971_v22 = vsub.f32 %v8450_v39, %v26962_v2  ;;  %v30480_v49 = vld [vmem:[#allocation18_spill] sm:$0xff]  ;;  %v30496_v39 = vld [vmem:[#allocation81_spill] sm:$0xff] }
0x11c4   : > { %20575 = vmatprep.subr.bf16.mxu1 %v30377_v46 }
0x11c5   : > { %v26976_v40 = vand.u32 4294901760, %v26971_v22 }
0x11c7   : > { %20577 = vmatpush3.bf16.msra.mxu1 %v20576_v16  ;;  %v30481_v16 = vld [vmem:[#allocation23_spill] sm:$0xff] }
0x11c8   : > { %20578 = vmatprep.subr.bf16.mxu1 %v30377_v46 }
0x11cb   : > { %20580 = vmatpush3.bf16.msra.mxu1 %v20579_v42  ;;  %v30483_v42 = vld [vmem:[#allocation29_spill] sm:$0xff] }
0x11cc   : > { %20581 = vmatprep.subr.bf16.mxu1 %v30377_v46 }
0x11cf   : > { %20583 = vmatpush3.bf16.msra.mxu1 %v20582_v29  ;;  %v30484_v29 = vld [vmem:[#allocation34_spill] sm:$0xff] }
0x11d0   : > { %18482 = vmatprep.subr.mxu1 %v30380_v33 }
0x11d3   : > { %18483 = vmatpush3.msra.mxu1 %v26897_v20  ;;  %v30467_v20 = vand.u32 4294901760, %v26839_v55  ;;  %v20606_v55 = vpack.c.bf16 %v30471_v48, %v7450_v54  ;;  %v30478_v54 = vld [vmem:[#allocation13_spill] sm:$0xff]  ;;  %v30494_v48 = vld [vmem:[#allocation74_spill] sm:$0xff] }
0x11d4   : > { %20584 = vmatprep.subr.bf16.mxu1 %v30377_v46  ;;  %18485 = vmatmul.mubr.f32.vlgmr.msra.gmra.mrb[30].mxu1 %v26826_v32  ;;  %v30498_v32 = vld [vmem:[#allocation90_spill] sm:$0xff] }
0x11d5   : > { %20586 = vmatpush3.bf16.msra.mxu1 %v26817_v7  ;;  %18505 = vmatprep.mubr.msk.f32.mxu1 %vm22213_vm2, %v30380_v33  ;;  %v20600_v26 = vpack.c.bf16 %v30468_v17, %v30467_v20  ;;  %v30488_v20 = vld [vmem:[#allocation49_spill] sm:$0xff]  ;;  %v30489_v17 = vld [vmem:[#allocation55_spill] sm:$0xff] }
0x11d6   : > { %20587 = vmatprep.subr.bf16.mxu1 %v30377_v46 }
0x11d9   : > { %20589 = vmatpush3.bf16.msra.mxu1 %v26828_v1 }
0x11da   : > { %20590 = vmatprep.subr.bf16.mxu1 %v30377_v46 }
0x11dd   : > { %20592 = vmatpush3.bf16.msra.mxu1 %v26841_v61 }
0x11de   : > { %20593 = vmatprep.subr.bf16.mxu1 %v30377_v46 }
0x11e1   : > { %20595 = vmatpush3.bf16.msra.mxu1 %v26859_v41 }
0x11e2   : > { %18503 = vmatprep.subr.mxu1 %v30380_v33 }
0x11e5   : > { %18504 = vmatpush3.msra.mxu1 %v26877_v36 }
0x11e6   : > { %20596 = vmatprep.subr.bf16.mxu1 %v30377_v46  ;;  %18506 = vmatmul.mubr.f32.vlgmr.msra.gmra.mrb[30].mxu1 %v26837_v14  ;;  %v30497_v14 = vld [vmem:[#allocation87_spill] sm:$0xff] }
0x11e7   : > { %20598 = vmatpush3.bf16.msra.mxu1 %v20597_v3  ;;  %18526 = vmatprep.mubr.msk.f32.mxu1 %vm22213_vm2, %v30380_v33  ;;  %v30487_v3 = vld [vmem:[#allocation47_spill] sm:$0xff] }
0x11e8   : > { %20599 = vmatprep.subr.bf16.mxu1 %v30377_v46 }
0x11eb   : > { %20601 = vmatpush3.bf16.msra.mxu1 %v20600_v26  ;;  %v30490_v26 = vld [vmem:[#allocation58_spill] sm:$0xff] }
0x11ec   : > { %20602 = vmatprep.subr.bf16.mxu1 %v30377_v46 }
0x11ef   : > { %20604 = vmatpush3.bf16.msra.mxu1 %v20603_v35  ;;  %v30493_v35 = vld [vmem:[#allocation71_spill] sm:$0xff] }
0x11f0   : > { %20605 = vmatprep.subr.bf16.mxu1 %v30377_v46 }
0x11f3   : > { %20607 = vmatpush3.bf16.msra.mxu1 %v20606_v55  ;;  %v30495_v55 = vld [vmem:[#allocation79_spill] sm:$0xff] }
0x11f4   : > { %18524 = vmatprep.subr.mxu1 %v30380_v33 }
0x11f7   : > { %18525 = vmatpush3.msra.mxu1 %v7464_v50  ;;  %v30475_v50 = vld [vmem:[#allocation8_spill] sm:$0xff] }
0x11f8   : > { %20608 = vmatprep.subr.bf16.mxu1 %v30377_v46  ;;  %18527 = vmatmul.mubr.f32.vlgmr.msra.gmra.mrb[30].mxu1 %v26815_v53 }
0x11f9   : > { %20610 = vmatpush3.bf16.msra.mxu1 %v26817_v7  ;;  %18547 = vmatprep.mubr.msk.f32.mxu1 %vm22213_vm2, %v30380_v33  ;;  %v8583_v7 = vsub.f32 %v26971_v22, %v26976_v40 }
0x11fa   : > { %20611 = vmatprep.subr.bf16.mxu1 %v30377_v46 }
0x11fb   : > { %v26984_v0 = vand.u32 4294901760, %v8583_v7  ;;  %v27012_v7 = vand.u32 4294901760, %v16337_v34 }
0x11fd   : > { %20613 = vmatpush3.bf16.msra.mxu1 %v26828_v1  ;;  %30473 = vst [vmem:[#allocation301_spill] sm:$0xff] %v26984_v0  ;;  %v30474_v1 = vld [vmem:[#allocation7_spill] sm:$0xff] }
0x11fe   : > { %20614 = vmatprep.subr.bf16.mxu1 %v30377_v46 }
0x1201   : > { %20616 = vmatpush3.bf16.msra.mxu1 %v26841_v61  ;;  %v30476_v61 = vld [vmem:[#allocation9_spill] sm:$0xff] }
0x1202   : > { %20617 = vmatprep.subr.bf16.mxu1 %v30377_v46 }
0x1205   : > { %20619 = vmatpush3.bf16.msra.mxu1 %v26859_v41  ;;  %v30479_v41 = vld [vmem:[#allocation16_spill] sm:$0xff] }
0x1206   : > { %18545 = vmatprep.subr.mxu1 %v30380_v33 }
0x1209   : > { %18546 = vmatpush3.msra.mxu1 %v26877_v36  ;;  %v30482_v36 = vld [vmem:[#allocation28_spill] sm:$0xff] }
0x120a   : > { %18548 = vmatmul.mubr.f32.vlgmr.msra.gmra.mrb[30].mxu1 %v26815_v53  ;;  %20711 = vmatprep.subr.bf16.mxu1 %v30474_v1  ;;  %v27017_v53 = vsub.f32 %v16337_v34, %v27012_v7 }
0x120b   : > { %20713 = vmatpush1.bf16.msra.mxu1 %v30475_v50  ;;  %8585 = vmatprep.mubr.f32.mxu1 %v26984_v0  ;;  %v30527_v0 = vld [vmem:[#allocation85_spill] sm:$0xff] }
0x120c   : > { %20715 = vmatprep.subr.bf16.mxu1 %v30476_v61  ;;  %v27022_v23 = vand.u32 4294901760, %v27017_v53 }
0x120e   : > { %30501 = vst [vmem:[#allocation7_spill] sm:$0xff] %v27022_v23  ;;  %v8589_v25 = vsub.f32 %v27017_v53, %v27022_v23 }
0x120f   : > { %20717 = vmatpush1.bf16.msra.mxu1 %v30477_v4 }
0x1210   : > { %20719 = vmatprep.subr.bf16.mxu1 %v30478_v54  ;;  %v27030_v34 = vand.u32 4294901760, %v8589_v25  ;;  %v30514_v25 = vld [vmem:[#allocation44_spill] sm:$0xff] }
0x1212   : > { %30506 = vst [vmem:[#allocation8_spill] sm:$0xff] %v27030_v34 }
0x1213   : > { %20721 = vmatpush1.bf16.msra.mxu1 %v30479_v41 }
0x1214   : > { %20723 = vmatprep.subr.bf16.mxu1 %v30480_v49 }
0x1217   : > { %20725 = vmatpush1.bf16.msra.mxu1 %v30481_v16 }
0x1218   : > { %20727 = vmatprep.subr.bf16.mxu1 %v30482_v36 }
0x121b   : > { %20729 = vmatpush1.bf16.msra.mxu1 %v30483_v42 }
0x121c   : > { %20731 = vmatprep.subr.bf16.mxu1 %v30484_v29 }
0x121f   : > { %20733 = vmatpush1.bf16.msra.mxu1 %v30485_v45 }
0x1220   : > { %20735 = vmatprep.subr.bf16.mxu1 %v30486_v21 }
0x1223   : > { %20737 = vmatpush1.bf16.msra.mxu1 %v30487_v3 }
0x1224   : > { %20739 = vmatprep.subr.bf16.mxu1 %v30488_v20 }
0x1227   : > { %20741 = vmatpush1.bf16.msra.mxu1 %v30489_v17 }
0x1228   : > { %20743 = vmatprep.subr.bf16.mxu1 %v30490_v26 }
0x122b   : > { %20745 = vmatpush1.bf16.msra.mxu1 %v30491_v51 }
0x122c   : > { %20747 = vmatprep.subr.bf16.mxu1 %v30492_v9 }
0x122f   : > { %20749 = vmatpush1.bf16.msra.mxu1 %v30493_v35 }
0x1230   : > { %20751 = vmatprep.subr.bf16.mxu1 %v30494_v48 }
0x1233   : > { %20753 = vmatpush1.bf16.msra.mxu1 %v30495_v55 }
0x1234   : > { %20755 = vmatprep.subr.bf16.mxu1 %v30496_v39 }
0x1237   : > { %20757 = vmatpush1.bf16.msra.mxu1 %v30497_v14 }
0x1238   : > { %20759 = vmatprep.subr.bf16.mxu1 %v30498_v32  ;;  %v30545_v32 = vld [vmem:[#allocation134_spill] sm:$0xff] }
0x123b   : > { %20761 = vmatpush1.bf16.msra.mxu1 %v30499_v8 }
0x123c   : > { %20763 = vmatprep.subr.bf16.mxu1 %v30500_v57 }
0x123f   : > { %20765 = vmatpush1.bf16.msra.mxu1 %v30502_v56 }
0x1240   : > { %20767 = vmatprep.subr.bf16.mxu1 %v30503_v37  ;;  %v30532_v37 = vld [vmem:[#allocation96_spill] sm:$0xff] }
0x1243   : > { %20769 = vmatpush1.bf16.msra.mxu1 %v30504_v63 }
0x1244   : > { %20771 = vmatprep.subr.bf16.mxu1 %v30505_v38  ;;  %v30530_v38 = vld [vmem:[#allocation92_spill] sm:$0xff] }
0x1247   : > { %20773 = vmatpush1.bf16.msra.mxu1 %v30507_v47 }
0x1248   : > { %20775 = vmatprep.subr.bf16.mxu1 %v30508_v60  ;;  %v529_v60 = vld [vmem:[%s28790_s7] sm:$0xff] }
0x124a   : > { %8591 = vmatmul.mubr.f32.vlgmr.msra.gmra.mrb[32].mxu1 %v27030_v34  ;;  %v538_v34 = vld [vmem:[%s28790_s7 + $0x48] sm:$0xff] }
0x124b   : > { %20777 = vmatpush1.bf16.msra.mxu1 %v30509_v5  ;;  %8982 = vmatprep.mubr.f32.mxu1 %v26962_v2  ;;  %v530_v5 = vld [vmem:[%s28790_s7 + $0x8] sm:$0xff] }
0x124c   : > { %20779 = vmatprep.subr.bf16.mxu1 %v30510_v59  ;;  %v7883_v59 = vand.u32 4294901760, %v529_v60  ;;  %v30529_v2 = vld [vmem:[#allocation88_spill] sm:$0xff] }
0x124e   : > { %v27097_v23 = vsub.f32 %v529_v60, %v7883_v59 }
0x124f   : > { %20781 = vmatpush1.bf16.msra.mxu1 %v30511_v43  ;;  %v7886_v43 = vand.u32 4294901760, %v530_v5 }
0x1250   : > { %20783 = vmatprep.subr.bf16.mxu1 %v30512_v19  ;;  %v30518_v19 = vld [vmem:[#allocation56_spill] sm:$0xff] }
0x1251   : > { %v27050_v18 = vpack.c.bf16 %v7886_v43, %v7883_v59  ;;  %v27099_v47 = vsub.f32 %v530_v5, %v7886_v43  ;;  %v30533_v59 = vld [vmem:[#allocation101_spill] sm:$0xff] }
0x1253   : > { %20785 = vmatpush1.bf16.msra.mxu1 %v30513_v44  ;;  %30517 = vst [vmem:[#allocation9_spill] sm:$0xff] %v27050_v18  ;;  %v30519_v44 = vld [vmem:[#allocation60_spill] sm:$0xff]  ;;  %20622 = vmatpush3.bf16.msra.mxu0 %v27050_v18  ;;  %v7907_v18 = vand.u32 4294901760, %v537_v27 }
0x1254   : > { %20787 = vmatprep.subr.bf16.mxu1 %v30514_v25  ;;  %20623 = vmatprep.subr.bf16.mxu0 %v30377_v46  ;;  %v30521_v25 = vld [vmem:[#allocation69_spill] sm:$0xff] }
0x1257   : > { %20789 = vmatpush1.bf16.msra.mxu1 %v30515_v24  ;;  %v30520_v24 = vld [vmem:[#allocation64_spill] sm:$0xff] }
0x1258   : > { %20791 = vmatprep.subr.bf16.mxu1 %v30516_v58  ;;  %v531_v58 = vld [vmem:[%s28790_s7 + $0x10] sm:$0xff] }
0x1259   : > { %v7889_v13 = vand.u32 4294901760, %v531_v58 }
0x125b   : > { %20793 = vmatpush1.bf16.msra.mxu1 %v30518_v19  ;;  %v7892_v19 = vand.u32 4294901760, %v532_v52  ;;  %v27115_v60 = vsub.f32 %v531_v58, %v7889_v13 }
0x125c   : > { %20795 = vmatprep.subr.bf16.mxu1 %v30519_v44 }
0x125d   : > { %v27065_v44 = vpack.c.bf16 %v7892_v19, %v7889_v13  ;;  %v27117_v5 = vsub.f32 %v532_v52, %v7892_v19  ;;  %v30536_v19 = vld [vmem:[#allocation108_spill] sm:$0xff] }
0x125f   : > { %20797 = vmatpush1.bf16.msra.mxu1 %v30520_v24  ;;  %30523 = vst [vmem:[#allocation11_spill] sm:$0xff] %v27065_v44  ;;  %v533_v24 = vld [vmem:[%s28790_s7 + $0x20] sm:$0xff]  ;;  %20625 = vmatpush3.bf16.msra.mxu0 %v27065_v44  ;;  %v29487_v56 = vand.u32 4294901760, %v27117_v5 }
0x1260   : > { %20799 = vmatprep.subr.bf16.mxu1 %v30521_v25  ;;  %v534_v25 = vld [vmem:[%s28790_s7 + $0x28] sm:$0xff]  ;;  %v7895_v62 = vand.u32 4294901760, %v533_v24  ;;  %20626 = vmatprep.subr.bf16.mxu0 %v30377_v46 }
0x1261   : > { %v7898_v12 = vand.u32 4294901760, %v534_v25  ;;  %v7992_v52 = vsub.f32 %v27117_v5, %v29487_v56 }
0x1262   : > { %v27133_v58 = vsub.f32 %v533_v24, %v7895_v62 }
0x1263   : > { %20801 = vmatpush1.bf16.msra.mxu1 %v30522_v15  ;;  %v535_v15 = vld [vmem:[%s28790_s7 + $0x30] sm:$0xff]  ;;  %v27083_v6 = vpack.c.bf16 %v7898_v12, %v7895_v62 }
0x1264   : > { %20803 = vmatprep.subr.bf16.mxu1 %v30524_v11  ;;  %v536_v11 = vld [vmem:[%s28790_s7 + $0x38] sm:$0xff]  ;;  %v7901_v30 = vand.u32 4294901760, %v535_v15 }
0x1265   : > { %30526 = vst [vmem:[#allocation13_spill] sm:$0xff] %v27083_v6  ;;  %v7904_v10 = vand.u32 4294901760, %v536_v11  ;;  %20628 = vmatpush3.bf16.msra.mxu0 %v27083_v6  ;;  %v29486_v6 = vand.u32 4294901760, %v27099_v47 }
0x1266   : > { %20629 = vmatprep.subr.bf16.mxu0 %v30377_v46  ;;  %v27146_v62 = vsub.f32 %v535_v15, %v7901_v30 }
0x1267   : > { %20805 = vmatpush1.bf16.msra.mxu1 %v30525_v28  ;;  %v27093_v44 = vpack.c.bf16 %v7904_v10, %v7901_v30  ;;  %v7910_v28 = vand.u32 4294901760, %v538_v34  ;;  %v27148_v24 = vsub.f32 %v536_v11, %v7904_v10  ;;  %v8025_v10 = vsub.f32 %v537_v27, %v7907_v18  ;;  %v30541_v11 = vld [vmem:[#allocation125_spill] sm:$0xff] }
0x1268   : > { %20807 = vmatprep.subr.bf16.mxu1 %v30527_v0  ;;  %v29485_v0 = vand.u32 4294901760, %v27097_v23  ;;  %v27168_v27 = vpack.c.bf16 %v27099_v47, %v27097_v23 }
0x1269   : > { %30528 = vst [vmem:[#allocation16_spill] sm:$0xff] %v27093_v44  ;;  %20631 = vmatpush3.bf16.msra.mxu0 %v27093_v44  ;;  %v27103_v63 = vpack.c.bf16 %v7910_v28, %v7907_v18  ;;  %v8032_v15 = vsub.f32 %v538_v34, %v7910_v28  ;;  %v30547_v18 = vld [vmem:[#allocation139_spill] sm:$0xff]  ;;  %v30549_v28 = vld [vmem:[#allocation146_spill] sm:$0xff] }
0x126a   : > { %20632 = vmatprep.subr.bf16.mxu0 %v30377_v46  ;;  %30546 = vst [vmem:[#allocation39_spill] sm:$0xff] %v27168_v27 }
0x126b   : > { %20809 = vmatpush1.bf16.msra.mxu1 %v30529_v2  ;;  %30531 = vst [vmem:[#allocation18_spill] sm:$0xff] %v27103_v63  ;;  %v7971_v2 = vsub.f32 %v27097_v23, %v29485_v0  ;;  %v30534_v0 = vld [vmem:[#allocation104_spill] sm:$0xff] }
0x126c   : > { %20811 = vmatprep.subr.bf16.mxu1 %v30530_v38  ;;  %v7978_v38 = vsub.f32 %v27099_v47, %v29486_v6 }
0x126d   : > { %20634 = vmatpush3.bf16.msra.mxu0 %v27103_v63  ;;  %v7972_v43 = vand.u32 4294901760, %v7971_v2  ;;  %v27136_v2 = vsub.f32 %v534_v25, %v7898_v12  ;;  %v30539_v12 = vld [vmem:[#allocation117_spill] sm:$0xff]  ;;  %v30543_v63 = vld [vmem:[#allocation130_spill] sm:$0xff] }
0x126e   : > { %v7979_v44 = vand.u32 4294901760, %v7978_v38  ;;  %20635 = vmatprep.subr.bf16.mxu0 %v30377_v46 }
0x126f   : > { %20813 = vmatpush1.bf16.msra.mxu1 %v30532_v37  ;;  %v29490_v37 = vand.u32 4294901760, %v27115_v60 }
0x1270   : > { %20815 = vmatprep.subr.bf16.mxu1 %v30533_v59  ;;  %v27125_v57 = vpack.c.bf16 %v7979_v44, %v7972_v43  ;;  %v7993_v59 = vand.u32 4294901760, %v7992_v52  ;;  %v29489_v44 = vand.u32 4294901760, %v27136_v2  ;;  %v30537_v43 = vld [vmem:[#allocation112_spill] sm:$0xff]  ;;  %v8012_v52 = vand.u32 4294901760, %v27146_v62 }
0x1271   : > { %v7985_v13 = vsub.f32 %v27115_v60, %v29490_v37  ;;  %v8033_v37 = vand.u32 4294901760, %v8032_v15 }
0x1272   : > { %30535 = vst [vmem:[#allocation23_spill] sm:$0xff] %v27125_v57  ;;  %v8006_v25 = vsub.f32 %v27136_v2, %v29489_v44 }
0x1273   : > { %20817 = vmatpush1.bf16.msra.mxu1 %v30534_v0  ;;  %v7986_v38 = vand.u32 4294901760, %v7985_v13  ;;  %v29488_v0 = vand.u32 4294901760, %v27133_v58 }
0x1274   : > { %20819 = vmatprep.subr.bf16.mxu1 %v30536_v19  ;;  %v8019_v19 = vand.u32 4294901760, %v27148_v24 }
0x1275   : > { %v27141_v6 = vpack.c.bf16 %v7993_v59, %v7986_v38  ;;  %v7999_v56 = vsub.f32 %v27133_v58, %v29488_v0  ;;  %v8007_v38 = vand.u32 4294901760, %v8006_v25  ;;  %v30540_v59 = vld [vmem:[#allocation120_spill] sm:$0xff] }
0x1276   : > { %v8020_v30 = vsub.f32 %v27148_v24, %v8019_v19 }
0x1277   : > { %20821 = vmatpush1.bf16.msra.mxu1 %v30537_v43  ;;  %30538 = vst [vmem:[#allocation28_spill] sm:$0xff] %v27141_v6  ;;  %v8000_v13 = vand.u32 4294901760, %v7999_v56  ;;  %v8013_v43 = vsub.f32 %v27146_v62, %v8012_v52  ;;  %v8026_v56 = vand.u32 4294901760, %v8025_v10 }
0x1278   : > { %20823 = vmatprep.subr.bf16.mxu1 %v30539_v12  ;;  %v8021_v44 = vand.u32 4294901760, %v8020_v30  ;;  %v27194_v30 = vpack.c.bf16 %v8032_v15, %v8025_v10 }
0x1279   : > { %v27160_v12 = vpack.c.bf16 %v8007_v38, %v8000_v13  ;;  %v8014_v0 = vand.u32 4294901760, %v8013_v43  ;;  %v8027_v25 = vsub.f32 %v8025_v10, %v8026_v56  ;;  %v30554_v13 = vld [vmem:[#allocation148_spill] sm:$0xff]  ;;  %v30557_v38 = vld [vmem:[#allocation153_spill] sm:$0xff]  ;;  %v30558_v43 = vld [vmem:[#allocation159_spill] sm:$0xff] }
0x127a   : > { %30559 = vst [vmem:[#allocation58_spill] sm:$0xff] %v27194_v30  ;;  %v30569_v10 = vld [vmem:[#allocation177_spill] sm:$0xff] }
0x127b   : > { %20825 = vmatpush1.bf16.msra.mxu1 %v30540_v59  ;;  %30542 = vst [vmem:[#allocation29_spill] sm:$0xff] %v27160_v12  ;;  %v27163_v8 = vpack.c.bf16 %v8021_v44, %v8014_v0  ;;  %v8034_v59 = vsub.f32 %v8032_v15, %v8033_v37  ;;  %v8028_v14 = vand.u32 4294901760, %v8027_v25  ;;  %v30551_v0 = vld [vmem:[#allocation155_spill] sm:$0xff]  ;;  %v30552_v44 = vld [vmem:[#allocation145_spill] sm:$0xff] }
0x127c   : > { %20827 = vmatprep.subr.bf16.mxu1 %v30541_v11  ;;  %v30560_v11 = vld [vmem:[#allocation161_spill] sm:$0xff]  ;;  %v30561_v25 = vld [vmem:[#allocation163_spill] sm:$0xff] }
0x127d   : > { %30544 = vst [vmem:[#allocation34_spill] sm:$0xff] %v27163_v8  ;;  %v8035_v39 = vand.u32 4294901760, %v8034_v59  ;;  %v30562_v59 = vld [vmem:[#allocation165_spill] sm:$0xff]  ;;  %v30570_v15 = vld [vmem:[#allocation179_spill] sm:$0xff] }
0x127f   : > { %20829 = vmatpush1.bf16.msra.mxu1 %v30543_v63  ;;  %v27171_v34 = vpack.c.bf16 %v8035_v39, %v8028_v14  ;;  %v27176_v63 = vpack.c.bf16 %v27117_v5, %v27115_v60  ;;  %v30555_v14 = vld [vmem:[#allocation152_spill] sm:$0xff]  ;;  %v27190_v39 = vpack.c.bf16 %v27148_v24, %v27146_v62  ;;  %v30566_v62 = vld [vmem:[#allocation173_spill] sm:$0xff]  ;;  %v30567_v24 = vld [vmem:[#allocation175_spill] sm:$0xff] }
0x1280   : > { %20831 = vmatprep.subr.bf16.mxu1 %v30545_v32  ;;  %v27182_v32 = vpack.c.bf16 %v27136_v2, %v27133_v58 }
0x1281   : > { %30548 = vst [vmem:[#allocation42_spill] sm:$0xff] %v27171_v34  ;;  %30550 = vst [vmem:[#allocation47_spill] sm:$0xff] %v27176_v63 }
0x1282   : > { %30553 = vst [vmem:[#allocation49_spill] sm:$0xff] %v27182_v32  ;;  %30556 = vst [vmem:[#allocation55_spill] sm:$0xff] %v27190_v39 }
0x1283   : > { %20833 = vmatpush1.bf16.msra.mxu1 %v30547_v18  ;;  %v30563_v18 = vld [vmem:[#allocation167_spill] sm:$0xff] }
0x1284   : > { %20835 = vmatprep.subr.bf16.mxu1 %v30549_v28  ;;  %v30564_v28 = vld [vmem:[#allocation169_spill] sm:$0xff] }
0x1287   : > { %20837 = vmatpush1.bf16.msra.mxu1 %v30551_v0  ;;  %v30565_v0 = vld [vmem:[#allocation171_spill] sm:$0xff] }
0x1288   : > { %20839 = vmatprep.subr.bf16.mxu1 %v30552_v44  ;;  %v30568_v44 = vld [vmem:[#allocation176_spill] sm:$0xff] }
0x128a   : > { %8984 = vmatmul.mubr.f32.vlgmr.msra.gmra.mrb[32].mxu1 %v27012_v7 }
0x128b   : > { %20841 = vmatpush1.bf16.msra.mxu1 %v30554_v13  ;;  %9184 = vmatprep.mubr.f32.mxu1 %v26971_v22  ;;  %v30571_v13 = vld [vmem:[#allocation180_spill] sm:$0xff] }
0x128c   : > { %20843 = vmatprep.subr.bf16.mxu1 %v30555_v14  ;;  %v30572_v14 = vand.u32 4294901760, %v27097_v23  ;;  %v30582_v23 = vand.u32 4294901760, %v27133_v58  ;;  %v30593_v58 = vld [vmem:[#allocation194_spill] sm:$0xff] }
0x128f   : > { %20845 = vmatpush1.bf16.msra.mxu1 %v30557_v38  ;;  %v30573_v38 = vand.u32 4294901760, %v27099_v47  ;;  %v30583_v47 = vand.u32 4294901760, %v27136_v2  ;;  %v30594_v2 = vld [vmem:[#allocation196_spill] sm:$0xff] }
0x1290   : > { %20847 = vmatprep.subr.bf16.mxu1 %v30558_v43 }
0x1291   : > { %v27212_v43 = vpack.c.bf16 %v30573_v38, %v30572_v14  ;;  %v30591_v14 = vld [vmem:[#allocation190_spill] sm:$0xff]  ;;  %v30592_v38 = vld [vmem:[#allocation192_spill] sm:$0xff] }
0x1293   : > { %20849 = vmatpush1.bf16.msra.mxu1 %v30560_v11  ;;  %30574 = vst [vmem:[#allocation63_spill] sm:$0xff] %v27212_v43  ;;  %v30575_v11 = vld [vmem:[#allocation182_spill] sm:$0xff] }
0x1294   : > { %20851 = vmatprep.subr.bf16.mxu1 %v30561_v25  ;;  %v30576_v25 = vld [vmem:[#allocation143_spill] sm:$0xff] }
0x1297   : > { %20853 = vmatpush1.bf16.msra.mxu1 %v30562_v59  ;;  %v30577_v59 = vand.u32 4294901760, %v27115_v60  ;;  %v30588_v60 = vld [vmem:[#allocation197_spill] sm:$0xff] }
0x1298   : > { %20855 = vmatprep.subr.bf16.mxu1 %v30563_v18  ;;  %v30578_v18 = vand.u32 4294901760, %v27117_v5  ;;  %v30589_v5 = vld [vmem:[#allocation157_spill] sm:$0xff] }
0x129b   : > { %20857 = vmatpush1.bf16.msra.mxu1 %v30564_v28  ;;  %v27220_v28 = vpack.c.bf16 %v30578_v18, %v30577_v59  ;;  %v7875_v18 = vpop.permute.xlu1 %7874 }
0x129c   : > { %20859 = vmatprep.subr.bf16.mxu1 %v30565_v0  ;;  %v30580_v0 = vld [vmem:[#allocation137_spill] sm:$0xff] }
0x129d   : > { %30579 = vst [vmem:[#allocation65_spill] sm:$0xff] %v27220_v28 }
0x129f   : > { %20861 = vmatpush1.bf16.msra.mxu1 %v30566_v62  ;;  %v30581_v62 = vld [vmem:[#allocation185_spill] sm:$0xff] }
0x12a0   : > { %20863 = vmatprep.subr.bf16.mxu1 %v30567_v24  ;;  %v27228_v24 = vpack.c.bf16 %v30583_v47, %v30582_v23 }
0x12a2   : > { %30584 = vst [vmem:[#allocation71_spill] sm:$0xff] %v27228_v24 }
0x12a3   : > { %20865 = vmatpush1.bf16.msra.mxu1 %v30568_v44  ;;  %v30585_v44 = vld [vmem:[#allocation186_spill] sm:$0xff] }
0x12a4   : > { %20867 = vmatprep.subr.bf16.mxu1 %v30569_v10  ;;  %v30586_v10 = vld [vmem:[#allocation187_spill] sm:$0xff] }
0x12a7   : > { %20869 = vmatpush1.bf16.msra.mxu1 %v30570_v15  ;;  %v27232_v15 = vpack.c.bf16 %v8019_v19, %v8012_v52  ;;  %v30597_v52 = vld [vmem:[#allocation138_spill] sm:$0xff] }
0x12a8   : > { %20871 = vmatprep.subr.bf16.mxu1 %v30571_v13  ;;  %v27236_v13 = vpack.c.bf16 %v8033_v37, %v8026_v56  ;;  %v27258_v37 = vpop.permute.xlu0 %7288 }
0x12a9   : > { %30587 = vst [vmem:[#allocation74_spill] sm:$0xff] %v27232_v15  ;;  %30598 = vst [vmem:[#allocation22_spill] sm:$0xff] %v27258_v37 }
0x12aa   : > { %30590 = vst [vmem:[#allocation79_spill] sm:$0xff] %v27236_v13 }
0x12ab   : > { %20873 = vmatpush1.bf16.msra.mxu1 %v30575_v11  ;;  %v30595_v11 = vld [vmem:[#allocation198_spill] sm:$0xff] }
0x12ac   : > { %20875 = vmatprep.subr.bf16.mxu1 %v30576_v25  ;;  %v30596_v25 = vld [vmem:[#allocation133_spill] sm:$0xff] }
0x12af   : > { %20877 = vmatpush1.bf16.msra.mxu1 %v30580_v0 }
0x12b0   : > { %20879 = vmatprep.subr.bf16.mxu1 %v30581_v62 }
0x12b3   : > { %20881 = vmatpush1.bf16.msra.mxu1 %v30585_v44 }
0x12b4   : > { %20883 = vmatprep.subr.bf16.mxu1 %v30586_v10 }
0x12b7   : > { %20885 = vmatpush1.bf16.msra.mxu1 %v30588_v60 }
0x12b8   : > { %20887 = vmatprep.subr.bf16.mxu1 %v30589_v5 }
0x12bb   : > { %20889 = vmatpush1.bf16.msra.mxu1 %v30591_v14  ;;  %v30599_v14 = vld [vmem:[#allocation81_spill] sm:$0xff] }
0x12bc   : > { %20891 = vmatprep.subr.bf16.mxu1 %v30592_v38  ;;  %v30600_v38 = vld [vmem:[#allocation87_spill] sm:$0xff] }
0x12bf   : > { %20893 = vmatpush1.bf16.msra.mxu1 %v30593_v58  ;;  %v30601_v58 = vld [vmem:[#allocation90_spill] sm:$0xff] }
0x12c0   : > { %20895 = vmatprep.subr.bf16.mxu1 %v30594_v2  ;;  %v30602_v2 = vld [vmem:[#allocation95_spill] sm:$0xff] }
0x12c3   : > { %20897 = vmatpush1.bf16.msra.mxu1 %v30595_v11  ;;  %v30603_v11 = vld [vmem:[#allocation97_spill] sm:$0xff] }
0x12c4   : > { %20899 = vmatprep.subr.bf16.mxu1 %v30596_v25  ;;  %v30604_v25 = vld [vmem:[#allocation103_spill] sm:$0xff] }
0x12c7   : > { %20901 = vmatpush1.bf16.msra.mxu1 %v30597_v52  ;;  %v30605_v52 = vld [vmem:[#allocation106_spill] sm:$0xff] }
0x12c8   : > { %20903 = vmatprep.subr.bf16.mxu1 %v30474_v1 }
0x12ca   : > { %9187 = vmatmul.mubr.f32.vlgmr.msra.gmra.mrb[32].mxu1 %v27017_v53 }
0x12cb   : > { %20905 = vmatpush1.bf16.msra.mxu1 %v30475_v50  ;;  %9324 = vmatprep.mubr.f32.mxu1 %v26976_v40 }
0x12cc   : > { %20907 = vmatprep.subr.bf16.mxu1 %v30476_v61 }
0x12cf   : > { %20909 = vmatpush1.bf16.msra.mxu1 %v30477_v4 }
0x12d0   : > { %20911 = vmatprep.subr.bf16.mxu1 %v30478_v54 }
0x12d3   : > { %20913 = vmatpush1.bf16.msra.mxu1 %v30479_v41 }
0x12d4   : > { %20915 = vmatprep.subr.bf16.mxu1 %v30480_v49 }
0x12d7   : > { %20917 = vmatpush1.bf16.msra.mxu1 %v30481_v16 }
0x12d8   : > { %20919 = vmatprep.subr.bf16.mxu1 %v30482_v36 }
0x12db   : > { %20921 = vmatpush1.bf16.msra.mxu1 %v30483_v42 }
0x12dc   : > { %20923 = vmatprep.subr.bf16.mxu1 %v30484_v29 }
0x12dd   : > { %v7867_v19 = vpop.f32.mrb[30].mxu1 }
0x12de   : > { %v21969_v56 = vadd.f32 %v7867_v19, %v27258_v37  ;;  %v18549_v59 = vpop.f32.mrb[31].mxu1  ;;  %v30606_v19 = vld [vmem:[#allocation111_spill] sm:$0xff] }
0x12df   : > { %20925 = vmatpush1.bf16.msra.mxu1 %v30485_v45  ;;  %v30608_v59 = vld [vmem:[#allocation119_spill] sm:$0xff] }
0x12e0   : > { %v7871_v0 = vsel %vm6034_vm3, %v21969_v56, 0.0  ;;  %20927 = vmatprep.subr.bf16.mxu1 %v30486_v21  ;;  %v30607_v56 = vld [vmem:[#allocation113_spill] sm:$0xff] }
0x12e1   : > { %v7877_v62 = vadd.f32 %v7875_v18, %v7871_v0  ;;  %v30609_v18 = vld [vmem:[#allocation132_spill] sm:$0xff]  ;;  %v30610_v0 = vld [vmem:[#allocation7_spill] sm:$0xff] }
0x12e3   : > { %v7880_v23 = vsel %vm7878_vm15, %v7877_v62, 0  ;;  %20929 = vmatpush1.bf16.msra.mxu1 %v30487_v3  ;;  %v30611_v62 = vld [vmem:[#allocation122_spill] sm:$0xff] }
0x12e4   : > { %v27267_v47 = vand.u32 4294901760, %v7880_v23  ;;  %20931 = vmatprep.subr.bf16.mxu1 %v30488_v20 }
0x12e6   : > { %v27271_v44 = vsub.f32 %v7880_v23, %v27267_v47  ;;  %v30612_v23 = vld [vmem:[#allocation10_spill] sm:$0xff] }
0x12e7   : > { %20933 = vmatpush1.bf16.msra.mxu1 %v30489_v17 }
0x12e8   : > { %20935 = vmatprep.subr.bf16.mxu1 %v30490_v26  ;;  %v29493_v10 = vand.u32 4294901760, %v27271_v44 }
0x12ea   : > { %v7960_v60 = vsub.f32 %v27271_v44, %v29493_v10  ;;  %v30615_v10 = vld [vmem:[#allocation14_spill] sm:$0xff] }
0x12eb   : > { %20937 = vmatpush1.bf16.msra.mxu1 %v30491_v51 }
0x12ec   : > { %v7961_v5 = vand.u32 4294901760, %v7960_v60  ;;  %20939 = vmatprep.subr.bf16.mxu1 %v30492_v9  ;;  %v30613_v60 = vld [vmem:[#allocation300_spill] sm:$0xff] }
0x12ee   : > { %18571 = vmatmul.mubr.f32.vlgmr.msra.gmra.mrb[12].mxu0 %v7961_v5  ;;  %v30614_v5 = vld [vmem:[#allocation12_spill] sm:$0xff] }
0x12ef   : > { %20637 = vmatpush3.bf16.msra.mxu0 %v27125_v57  ;;  %20941 = vmatpush1.bf16.msra.mxu1 %v30493_v35 }
0x12f0   : > { %20638 = vmatprep.subr.bf16.mxu0 %v30377_v46  ;;  %20943 = vmatprep.subr.bf16.mxu1 %v30494_v48 }
0x12f1   : > { %18593 = vmatprep.mubr.msk.f32.mxu0 %vm22213_vm2, %v30380_v33 }
0x12f3   : > { %20640 = vmatpush3.bf16.msra.mxu0 %v27141_v6  ;;  %20945 = vmatpush1.bf16.msra.mxu1 %v30495_v55 }
0x12f4   : > { %20641 = vmatprep.subr.bf16.mxu0 %v30377_v46  ;;  %20947 = vmatprep.subr.bf16.mxu1 %v30599_v14 }
0x12f7   : > { %20643 = vmatpush3.bf16.msra.mxu0 %v27160_v12  ;;  %20949 = vmatpush1.bf16.msra.mxu1 %v30600_v38 }
0x12f8   : > { %20644 = vmatprep.subr.bf16.mxu0 %v30377_v46  ;;  %20951 = vmatprep.subr.bf16.mxu1 %v30601_v58 }
0x12fb   : > { %20646 = vmatpush3.bf16.msra.mxu0 %v27163_v8  ;;  %20953 = vmatpush1.bf16.msra.mxu1 %v30602_v2 }
0x12fc   : > { %20647 = vmatprep.subr.bf16.mxu0 %v30377_v46  ;;  %20955 = vmatprep.subr.bf16.mxu1 %v30603_v11 }
0x12ff   : > { %20649 = vmatpush3.bf16.msra.mxu0 %v27171_v34  ;;  %20957 = vmatpush1.bf16.msra.mxu1 %v30604_v25  ;;  %v30631_v34 = vld [vmem:[#allocation35_spill] sm:$0xff] }
0x1300   : > { %20650 = vmatprep.subr.bf16.mxu0 %v30377_v46  ;;  %20959 = vmatprep.subr.bf16.mxu1 %v30605_v52 }
0x1302   : > { %18594 = vmatmul.mubr.f32.vlgmr.msra.gmra.mrb[12].mxu0 %v27267_v47 }
0x1303   : > { %20652 = vmatpush3.bf16.msra.mxu0 %v27168_v27  ;;  %20961 = vmatpush1.bf16.msra.mxu1 %v30606_v19  ;;  %v30629_v27 = vld [vmem:[#allocation33_spill] sm:$0xff] }
0x1304   : > { %20653 = vmatprep.subr.bf16.mxu0 %v30377_v46  ;;  %20963 = vmatprep.subr.bf16.mxu1 %v30607_v56 }
0x1305   : > { %18616 = vmatprep.mubr.msk.f32.mxu0 %vm22213_vm2, %v30380_v33 }
0x1307   : > { %20655 = vmatpush3.bf16.msra.mxu0 %v27176_v63  ;;  %20965 = vmatpush1.bf16.msra.mxu1 %v30608_v59  ;;  %v30628_v63 = vld [vmem:[#allocation31_spill] sm:$0xff] }
0x1308   : > { %20656 = vmatprep.subr.bf16.mxu0 %v30377_v46  ;;  %20967 = vmatprep.subr.bf16.mxu1 %v30609_v18  ;;  %v30616_v18 = vld [vmem:[#allocation15_spill] sm:$0xff] }
0x130a   : > { %9328 = vmatmul.mubr.f32.vlgmr.msra.gmra.mrb[32].mxu1 %v30610_v0 }
0x130b   : > { %20658 = vmatpush3.bf16.msra.mxu0 %v27182_v32  ;;  %20969 = vmatpush1.bf16.msra.mxu1 %v30611_v62  ;;  %v30617_v62 = vld [vmem:[#allocation17_spill] sm:$0xff]  ;;  %v30619_v32 = vld [vmem:[#allocation19_spill] sm:$0xff] }
0x130c   : > { %20659 = vmatprep.subr.bf16.mxu0 %v30377_v46  ;;  %20971 = vmatprep.subr.bf16.mxu1 %v30612_v23  ;;  %v30618_v23 = vld [vmem:[#allocation9_spill] sm:$0xff] }
0x130d   : > { %9591 = vmatprep.mubr.f32.mxu1 %v30613_v60 }
0x130f   : > { %20661 = vmatpush3.bf16.msra.mxu0 %v27190_v39  ;;  %20973 = vmatpush1.bf16.msra.mxu1 %v30614_v5  ;;  %v30620_v5 = vld [vmem:[#allocation20_spill] sm:$0xff]  ;;  %v30625_v39 = vld [vmem:[#allocation26_spill] sm:$0xff] }
0x1310   : > { %20662 = vmatprep.subr.bf16.mxu0 %v30377_v46  ;;  %20975 = vmatprep.subr.bf16.mxu1 %v30615_v10  ;;  %v30621_v10 = vld [vmem:[#allocation11_spill] sm:$0xff] }
0x1313   : > { %20664 = vmatpush3.bf16.msra.mxu0 %v27194_v30  ;;  %20977 = vmatpush1.bf16.msra.mxu1 %v30616_v18  ;;  %v30622_v18 = vld [vmem:[#allocation21_spill] sm:$0xff] }
0x1314   : > { %20665 = vmatprep.subr.bf16.mxu0 %v30377_v46  ;;  %20979 = vmatprep.subr.bf16.mxu1 %v30617_v62  ;;  %v30623_v62 = vld [vmem:[#allocation25_spill] sm:$0xff] }
0x1315   : > { %v30624_v30 = vld [vmem:[#allocation13_spill] sm:$0xff] }
0x1316   : > { %18617 = vmatmul.mubr.f32.vlgmr.msra.gmra.mrb[12].mxu0 %v27271_v44 }
0x1317   : > { %20667 = vmatpush3.bf16.msra.mxu0 %v30618_v23  ;;  %20981 = vmatpush1.bf16.msra.mxu1 %v30619_v32  ;;  %v30626_v32 = vld [vmem:[#allocation30_spill] sm:$0xff] }
0x1318   : > { %20668 = vmatprep.subr.bf16.mxu0 %v30377_v46  ;;  %20983 = vmatprep.subr.bf16.mxu1 %v30620_v5  ;;  %v30627_v5 = vld [vmem:[#allocation16_spill] sm:$0xff] }
0x1319   : > { %18639 = vmatprep.mubr.msk.f32.mxu0 %vm22213_vm2, %v30380_v33 }
0x131b   : > { %20670 = vmatpush3.bf16.msra.mxu0 %v30621_v10  ;;  %20985 = vmatpush1.bf16.msra.mxu1 %v30622_v18  ;;  %v30630_v18 = vld [vmem:[#allocation18_spill] sm:$0xff] }
0x131c   : > { %20671 = vmatprep.subr.bf16.mxu0 %v30377_v46  ;;  %20987 = vmatprep.subr.bf16.mxu1 %v30623_v62  ;;  %v30632_v62 = vld [vmem:[#allocation36_spill] sm:$0xff] }
0x131f   : > { %20673 = vmatpush3.bf16.msra.mxu0 %v30624_v30  ;;  %20989 = vmatpush1.bf16.msra.mxu1 %v30625_v39  ;;  %v30633_v39 = vand.u32 4294901760, %v27271_v44  ;;  %v30638_v44 = vld [vmem:[#allocation46_spill] sm:$0xff] }
0x1320   : > { %20674 = vmatprep.subr.bf16.mxu0 %v30377_v46  ;;  %20991 = vmatprep.subr.bf16.mxu1 %v30626_v32  ;;  %v30634_v32 = vld [vmem:[#allocation38_spill] sm:$0xff] }
0x1323   : > { %20676 = vmatpush3.bf16.msra.mxu0 %v30627_v5  ;;  %20993 = vmatpush1.bf16.msra.mxu1 %v30628_v63  ;;  %v30635_v63 = vld [vmem:[#allocation41_spill] sm:$0xff] }
0x1324   : > { %20677 = vmatprep.subr.bf16.mxu0 %v30377_v46  ;;  %20995 = vmatprep.subr.bf16.mxu1 %v30629_v27  ;;  %v30636_v27 = vld [vmem:[#allocation43_spill] sm:$0xff] }
0x1327   : > { %20679 = vmatpush3.bf16.msra.mxu0 %v30630_v18  ;;  %20997 = vmatpush1.bf16.msra.mxu1 %v30631_v34  ;;  %v30637_v34 = vld [vmem:[#allocation45_spill] sm:$0xff] }
0x1328   : > { %20680 = vmatprep.subr.bf16.mxu0 %v30377_v46  ;;  %20999 = vmatprep.subr.bf16.mxu1 %v30632_v62  ;;  %v30639_v62 = vld [vmem:[#allocation50_spill] sm:$0xff] }
0x132a   : > { %18640 = vmatmul.mubr.f32.vlgmr.msra.gmra.mrb[12].mxu0 %v30633_v39  ;;  %v30640_v39 = vld [vmem:[#allocation51_spill] sm:$0xff] }
0x132b   : > { %20682 = vmatpush3.bf16.msra.mxu0 %v27212_v43  ;;  %21001 = vmatpush1.bf16.msra.mxu1 %v30634_v32  ;;  %v30641_v32 = vld [vmem:[#allocation52_spill] sm:$0xff] }
0x132c   : > { %20683 = vmatprep.subr.bf16.mxu0 %v30377_v46  ;;  %21003 = vmatprep.subr.bf16.mxu1 %v30635_v63  ;;  %v30642_v63 = vld [vmem:[#allocation54_spill] sm:$0xff] }
0x132d   : > { %18662 = vmatprep.mubr.msk.f32.mxu0 %vm22213_vm2, %v30380_v33 }
0x132f   : > { %20685 = vmatpush3.bf16.msra.mxu0 %v27220_v28  ;;  %21005 = vmatpush1.bf16.msra.mxu1 %v30636_v27  ;;  %v30643_v27 = vld [vmem:[#allocation57_spill] sm:$0xff] }
0x1330   : > { %20686 = vmatprep.subr.bf16.mxu0 %v30377_v46  ;;  %21007 = vmatprep.subr.bf16.mxu1 %v30637_v34  ;;  %v30644_v34 = vld [vmem:[#allocation59_spill] sm:$0xff] }
0x1333   : > { %20688 = vmatpush3.bf16.msra.mxu0 %v27228_v24  ;;  %21009 = vmatpush1.bf16.msra.mxu1 %v30638_v44  ;;  %v30645_v44 = vld [vmem:[#allocation61_spill] sm:$0xff] }
0x1334   : > { %20689 = vmatprep.subr.bf16.mxu0 %v30377_v46  ;;  %21011 = vmatprep.subr.bf16.mxu1 %v30639_v62  ;;  %v30646_v62 = vld [vmem:[#allocation62_spill] sm:$0xff] }
0x1337   : > { %20691 = vmatpush3.bf16.msra.mxu0 %v27232_v15  ;;  %21013 = vmatpush1.bf16.msra.mxu1 %v30640_v39  ;;  %v30647_v39 = vld [vmem:[#allocation66_spill] sm:$0xff] }
0x1338   : > { %20692 = vmatprep.subr.bf16.mxu0 %v30377_v46  ;;  %21015 = vmatprep.subr.bf16.mxu1 %v30641_v32  ;;  %v30648_v32 = vld [vmem:[#allocation67_spill] sm:$0xff] }
0x133b   : > { %20694 = vmatpush3.bf16.msra.mxu0 %v27236_v13  ;;  %21017 = vmatpush1.bf16.msra.mxu1 %v30642_v63  ;;  %v30649_v63 = vld [vmem:[#allocation126_spill] sm:$0xff] }
0x133c   : > { %20695 = vmatprep.subr.bf16.mxu0 %v30377_v46  ;;  %21019 = vmatprep.subr.bf16.mxu1 %v30643_v27  ;;  %v30653_v27 = vld [vmem:[#allocation142_spill] sm:$0xff] }
0x133e   : > { %18663 = vmatmul.mubr.f32.vlgmr.msra.gmra.mrb[12].mxu0 %v27267_v47 }
0x133f   : > { %20697 = vmatpush3.bf16.msra.mxu0 %v30618_v23  ;;  %21021 = vmatpush1.bf16.msra.mxu1 %v30644_v34  ;;  %v30668_v34 = vld [vmem:[#allocation181_spill] sm:$0xff] }
0x1340   : > { %20698 = vmatprep.subr.bf16.mxu0 %v30377_v46  ;;  %21023 = vmatprep.subr.bf16.mxu1 %v30645_v44  ;;  %v30680_v44 = vld [vmem:[#allocation89_spill] sm:$0xff] }
0x1341   : > { %18685 = vmatprep.mubr.msk.f32.mxu0 %vm22213_vm2, %v30380_v33 }
0x1343   : > { %20700 = vmatpush3.bf16.msra.mxu0 %v30621_v10  ;;  %21025 = vmatpush1.bf16.msra.mxu1 %v30646_v62  ;;  %v30683_v62 = vld [vmem:[#allocation136_spill] sm:$0xff] }
0x1344   : > { %20701 = vmatprep.subr.bf16.mxu0 %v30377_v46  ;;  %21027 = vmatprep.subr.bf16.mxu1 %v30647_v39  ;;  %v30685_v39 = vld [vmem:[#allocation200_spill] sm:$0xff] }
0x1347   : > { %20703 = vmatpush3.bf16.msra.mxu0 %v30624_v30  ;;  %21029 = vmatpush1.bf16.msra.mxu1 %v30648_v32  ;;  %v30687_v32 = vld [vmem:[#allocation140_spill] sm:$0xff] }
0x1348   : > { %20704 = vmatprep.subr.bf16.mxu0 %v30377_v46  ;;  %21031 = vmatprep.subr.bf16.mxu1 %v30474_v1  ;;  %v30650_v1 = vld [vmem:[#allocation135_spill] sm:$0xff] }
0x134a   : > { %9593 = vmatmul.mubr.f32.vlgmr.msra.gmra.mrb[32].mxu1 %v27012_v7 }
0x134b   : > { %20706 = vmatpush3.bf16.msra.mxu0 %v30627_v5  ;;  %21033 = vmatpush1.bf16.msra.mxu1 %v30475_v50  ;;  %v30651_v50 = vld [vmem:[#allocation141_spill] sm:$0xff] }
0x134c   : > { %20707 = vmatprep.subr.bf16.mxu0 %v30377_v46  ;;  %21035 = vmatprep.subr.bf16.mxu1 %v30476_v61  ;;  %v30652_v61 = vld [vmem:[#allocation301_spill] sm:$0xff] }
0x134d   : > { %9728 = vmatprep.mubr.f32.mxu1 %v30613_v60 }
0x134f   : > { %20709 = vmatpush3.bf16.msra.mxu0 %v30630_v18  ;;  %21037 = vmatpush1.bf16.msra.mxu1 %v30477_v4  ;;  %v30654_v4 = vld [vmem:[#allocation147_spill] sm:$0xff] }
0x1350   : > { %21095 = vmatprep.subr.bf16.mxu0 %v30649_v63  ;;  %21039 = vmatprep.subr.bf16.mxu1 %v30478_v54  ;;  %v30655_v54 = vld [vmem:[#allocation150_spill] sm:$0xff] }
0x1352   : > { %18686 = vmatmul.mubr.f32.vlgmr.msra.gmra.mrb[12].mxu0 %v27267_v47  ;;  %v30656_v47 = vld [vmem:[#allocation156_spill] sm:$0xff] }
0x1353   : > { %21097 = vmatpush3.bf16.msra.mxu0 %v30650_v1  ;;  %21041 = vmatpush1.bf16.msra.mxu1 %v30479_v41  ;;  %v30657_v41 = vld [vmem:[#allocation158_spill] sm:$0xff] }
0x1354   : > { %21099 = vmatprep.subr.bf16.mxu0 %v30651_v50  ;;  %21043 = vmatprep.subr.bf16.mxu1 %v30480_v49  ;;  %v30658_v49 = vld [vmem:[#allocation160_spill] sm:$0xff] }
0x1355   : > { %9837 = vmatprep.mubr.f32.mxu0 %v30652_v61  ;;  %v30689_v61 = vld [vmem:[#allocation201_spill] sm:$0xff] }
0x1357   : > { %21101 = vmatpush3.bf16.msra.mxu0 %v30653_v27  ;;  %21045 = vmatpush1.bf16.msra.mxu1 %v30481_v16  ;;  %v30659_v16 = vld [vmem:[#allocation162_spill] sm:$0xff] }
0x1358   : > { %21103 = vmatprep.subr.bf16.mxu0 %v30654_v4  ;;  %21047 = vmatprep.subr.bf16.mxu1 %v30482_v36  ;;  %v30660_v36 = vld [vmem:[#allocation164_spill] sm:$0xff] }
0x135b   : > { %21105 = vmatpush3.bf16.msra.mxu0 %v30655_v54  ;;  %21049 = vmatpush1.bf16.msra.mxu1 %v30483_v42  ;;  %v30661_v42 = vld [vmem:[#allocation166_spill] sm:$0xff] }
0x135c   : > { %21107 = vmatprep.subr.bf16.mxu0 %v30656_v47  ;;  %21051 = vmatprep.subr.bf16.mxu1 %v30484_v29  ;;  %v30662_v29 = vld [vmem:[#allocation168_spill] sm:$0xff] }
0x135f   : > { %21109 = vmatpush3.bf16.msra.mxu0 %v30657_v41  ;;  %21053 = vmatpush1.bf16.msra.mxu1 %v30485_v45  ;;  %v30663_v45 = vld [vmem:[#allocation170_spill] sm:$0xff] }
0x1360   : > { %21111 = vmatprep.subr.bf16.mxu0 %v30658_v49  ;;  %21055 = vmatprep.subr.bf16.mxu1 %v30486_v21  ;;  %v30664_v21 = vld [vmem:[#allocation172_spill] sm:$0xff] }
0x1363   : > { %21113 = vmatpush3.bf16.msra.mxu0 %v30659_v16  ;;  %21057 = vmatpush1.bf16.msra.mxu1 %v30487_v3  ;;  %v30665_v3 = vld [vmem:[#allocation174_spill] sm:$0xff] }
0x1364   : > { %21115 = vmatprep.subr.bf16.mxu0 %v30660_v36  ;;  %21059 = vmatprep.subr.bf16.mxu1 %v30488_v20  ;;  %v30666_v20 = vld [vmem:[#allocation178_spill] sm:$0xff] }
0x1367   : > { %21117 = vmatpush3.bf16.msra.mxu0 %v30661_v42  ;;  %21061 = vmatpush1.bf16.msra.mxu1 %v30489_v17  ;;  %v30667_v17 = vld [vmem:[#allocation8_spill] sm:$0xff] }
0x1368   : > { %21119 = vmatprep.subr.bf16.mxu0 %v30662_v29  ;;  %21063 = vmatprep.subr.bf16.mxu1 %v30490_v26  ;;  %v30669_v26 = vld [vmem:[#allocation183_spill] sm:$0xff] }
0x136b   : > { %21121 = vmatpush3.bf16.msra.mxu0 %v30663_v45  ;;  %21065 = vmatpush1.bf16.msra.mxu1 %v30491_v51  ;;  %v30670_v51 = vld [vmem:[#allocation144_spill] sm:$0xff] }
0x136c   : > { %21123 = vmatprep.subr.bf16.mxu0 %v30664_v21  ;;  %21067 = vmatprep.subr.bf16.mxu1 %v30492_v9  ;;  %v30671_v9 = vld [vmem:[#allocation184_spill] sm:$0xff] }
0x136f   : > { %21125 = vmatpush3.bf16.msra.mxu0 %v30665_v3  ;;  %21069 = vmatpush1.bf16.msra.mxu1 %v30493_v35  ;;  %v30672_v35 = vld [vmem:[#allocation149_spill] sm:$0xff] }
0x1370   : > { %21127 = vmatprep.subr.bf16.mxu0 %v30666_v20  ;;  %21071 = vmatprep.subr.bf16.mxu1 %v30494_v48  ;;  %v30673_v48 = vld [vmem:[#allocation151_spill] sm:$0xff]  ;;  %v30690_v20 = vld [vmem:[#allocation206_spill] sm:$0xff] }
0x1372   : > { %9843 = vmatmul.mubr.f32.vlgmr.msra.gmra.mrb[14].mxu0 %v30667_v17  ;;  %v30691_v17 = vld [vmem:[#allocation99_spill] sm:$0xff] }
0x1373   : > { %21129 = vmatpush3.bf16.msra.mxu0 %v30668_v34  ;;  %21073 = vmatpush1.bf16.msra.mxu1 %v30495_v55  ;;  %v30674_v55 = vld [vmem:[#allocation154_spill] sm:$0xff]  ;;  %v30692_v34 = vld [vmem:[#allocation100_spill] sm:$0xff] }
0x1374   : > { %21131 = vmatprep.subr.bf16.mxu0 %v30669_v26  ;;  %21075 = vmatprep.subr.bf16.mxu1 %v30599_v14  ;;  %v30675_v14 = vld [vmem:[#allocation188_spill] sm:$0xff]  ;;  %v30693_v26 = vld [vmem:[#allocation211_spill] sm:$0xff] }
0x1375   : > { %10073 = vmatprep.mubr.f32.mxu0 %v30613_v60 }
0x1377   : > { %21133 = vmatpush3.bf16.msra.mxu0 %v30670_v51  ;;  %21077 = vmatpush1.bf16.msra.mxu1 %v30600_v38  ;;  %v30676_v38 = vld [vmem:[#allocation189_spill] sm:$0xff]  ;;  %v30694_v51 = vld [vmem:[#allocation214_spill] sm:$0xff] }
0x1378   : > { %21135 = vmatprep.subr.bf16.mxu0 %v30671_v9  ;;  %21079 = vmatprep.subr.bf16.mxu1 %v30601_v58  ;;  %v30677_v58 = vld [vmem:[#allocation191_spill] sm:$0xff]  ;;  %v30695_v9 = vld [vmem:[#allocation102_spill] sm:$0xff] }
0x137b   : > { %21137 = vmatpush3.bf16.msra.mxu0 %v30672_v35  ;;  %21081 = vmatpush1.bf16.msra.mxu1 %v30602_v2  ;;  %v30678_v2 = vld [vmem:[#allocation193_spill] sm:$0xff] }
0x137c   : > { %21139 = vmatprep.subr.bf16.mxu0 %v30673_v48  ;;  %21083 = vmatprep.subr.bf16.mxu1 %v30603_v11  ;;  %v30679_v11 = vld [vmem:[#allocation195_spill] sm:$0xff]  ;;  %v30696_v35 = vld [vmem:[#allocation105_spill] sm:$0xff]  ;;  %v30697_v48 = vld [vmem:[#allocation220_spill] sm:$0xff] }
0x137f   : > { %21141 = vmatpush3.bf16.msra.mxu0 %v30674_v55  ;;  %21085 = vmatpush1.bf16.msra.mxu1 %v30604_v25  ;;  %v30681_v25 = vld [vmem:[#allocation199_spill] sm:$0xff]  ;;  %v30698_v55 = vld [vmem:[#allocation221_spill] sm:$0xff] }
0x1380   : > { %21143 = vmatprep.subr.bf16.mxu0 %v30675_v14  ;;  %21087 = vmatprep.subr.bf16.mxu1 %v30605_v52  ;;  %v30682_v52 = vld [vmem:[#allocation91_spill] sm:$0xff] }
0x1381   : > { %v30699_v14 = vld [vmem:[#allocation107_spill] sm:$0xff] }
0x1383   : > { %21145 = vmatpush3.bf16.msra.mxu0 %v30676_v38  ;;  %21089 = vmatpush1.bf16.msra.mxu1 %v30606_v19  ;;  %v30684_v19 = vld [vmem:[#allocation93_spill] sm:$0xff]  ;;  %v30701_v38 = vld [vmem:[#allocation222_spill] sm:$0xff] }
0x1384   : > { %21147 = vmatprep.subr.bf16.mxu0 %v30677_v58  ;;  %21091 = vmatprep.subr.bf16.mxu1 %v30607_v56  ;;  %v30686_v56 = vld [vmem:[#allocation94_spill] sm:$0xff]  ;;  %v30702_v58 = vld [vmem:[#allocation223_spill] sm:$0xff] }
0x1387   : > { %21149 = vmatpush3.bf16.msra.mxu0 %v30678_v2  ;;  %21093 = vmatpush1.bf16.msra.mxu1 %v30608_v59  ;;  %v30688_v59 = vld [vmem:[#allocation98_spill] sm:$0xff] }
0x1388   : > { %21151 = vmatprep.subr.bf16.mxu0 %v30679_v11  ;;  %21371 = vmatprep.subr.bf16.mxu1 %v30680_v44  ;;  %v30703_v2 = vld [vmem:[#allocation114_spill] sm:$0xff]  ;;  %v30704_v11 = vld [vmem:[#allocation115_spill] sm:$0xff] }
0x138a   : > { %9730 = vmatmul.mubr.f32.vlgmr.msra.gmra.mrb[32].mxu1 %v27012_v7 }
0x138b   : > { %21153 = vmatpush3.bf16.msra.mxu0 %v30681_v25  ;;  %21373 = vmatpush3.bf16.msra.mxu1 %v30682_v52  ;;  %v30705_v25 = vld [vmem:[#allocation127_spill] sm:$0xff] }
0x138c   : > { %21155 = vmatprep.subr.bf16.mxu0 %v30683_v62  ;;  %21375 = vmatprep.subr.bf16.mxu1 %v30684_v19  ;;  %v30706_v62 = vld [vmem:[#allocation224_spill] sm:$0xff] }
0x138f   : > { %21157 = vmatpush3.bf16.msra.mxu0 %v30685_v39  ;;  %21377 = vmatpush3.bf16.msra.mxu1 %v30686_v56  ;;  %v30707_v39 = vld [vmem:[#allocation116_spill] sm:$0xff] }
0x1390   : > { %21159 = vmatprep.subr.bf16.mxu0 %v30687_v32  ;;  %21379 = vmatprep.subr.bf16.mxu1 %v30688_v59  ;;  %v30708_v32 = vld [vmem:[#allocation118_spill] sm:$0xff] }
0x1392   : > { %10075 = vmatmul.mubr.f32.vlgmr.msra.gmra.mrb[16].mxu0 %v27012_v7 }
0x1393   : > { %21161 = vmatpush3.bf16.msra.mxu0 %v30689_v61  ;;  %10210 = vmatprep.mubr.f32.mxu0 %v26971_v22  ;;  %v30700_v22 = vld [vmem:[#allocation110_spill] sm:$0xff]  ;;  %v30709_v61 = vld [vmem:[#allocation131_spill] sm:$0xff] }
0x1394   : > { %21163 = vmatprep.subr.bf16.mxu0 %v30690_v20  ;;  %21381 = vmatpush3.bf16.msra.mxu1 %v30691_v17  ;;  %v30710_v20 = vld [vmem:[#allocation225_spill] sm:$0xff] }
0x1395   : > { %21383 = vmatprep.subr.bf16.mxu1 %v30692_v34 }
0x1397   : > { %21165 = vmatpush3.bf16.msra.mxu0 %v30693_v26  ;;  %v30711_v26 = vld [vmem:[#allocation123_spill] sm:$0xff] }
0x1398   : > { %21167 = vmatprep.subr.bf16.mxu0 %v30694_v51  ;;  %21385 = vmatpush3.bf16.msra.mxu1 %v30695_v9  ;;  %v30712_v51 = vld [vmem:[#allocation234_spill] sm:$0xff] }
0x1399   : > { %21387 = vmatprep.subr.bf16.mxu1 %v30696_v35 }
0x139b   : > { %21169 = vmatpush3.bf16.msra.mxu0 %v30697_v48  ;;  %v30713_v48 = vld [vmem:[#allocation226_spill] sm:$0xff] }
0x139c   : > { %21171 = vmatprep.subr.bf16.mxu0 %v30698_v55  ;;  %21389 = vmatpush3.bf16.msra.mxu1 %v30699_v14  ;;  %v30714_v55 = vld [vmem:[#allocation227_spill] sm:$0xff] }
0x139d   : > { %21391 = vmatprep.subr.bf16.mxu1 %v30700_v22 }
0x139f   : > { %21173 = vmatpush3.bf16.msra.mxu0 %v30701_v38  ;;  %v30715_v38 = vld [vmem:[#allocation228_spill] sm:$0xff] }
0x13a0   : > { %21175 = vmatprep.subr.bf16.mxu0 %v30702_v58  ;;  %21393 = vmatpush3.bf16.msra.mxu1 %v30703_v2  ;;  %v30718_v58 = vld [vmem:[#allocation204_spill] sm:$0xff] }
0x13a1   : > { %21395 = vmatprep.subr.bf16.mxu1 %v30704_v11 }
0x13a3   : > { %21177 = vmatpush3.bf16.msra.mxu0 %v30705_v25  ;;  %v30719_v25 = vld [vmem:[#allocation205_spill] sm:$0xff] }
0x13a4   : > { %21179 = vmatprep.subr.bf16.mxu0 %v30706_v62  ;;  %21397 = vmatpush3.bf16.msra.mxu1 %v30707_v39  ;;  %v30720_v62 = vld [vmem:[#allocation207_spill] sm:$0xff] }
0x13a5   : > { %21399 = vmatprep.subr.bf16.mxu1 %v30708_v32 }
0x13a7   : > { %21181 = vmatpush3.bf16.msra.mxu0 %v30709_v61  ;;  %v30721_v61 = vld [vmem:[#allocation208_spill] sm:$0xff] }
0x13a8   : > { %21183 = vmatprep.subr.bf16.mxu0 %v30710_v20  ;;  %21401 = vmatpush3.bf16.msra.mxu1 %v30711_v26  ;;  %v30722_v20 = vld [vmem:[#allocation209_spill] sm:$0xff] }
0x13a9   : > { %21435 = vmatprep.subr.bf16.mxu1 %v30712_v51  ;;  %v30723_v51 = vld [vmem:[#allocation121_spill] sm:$0xff] }
0x13ab   : > { %21185 = vmatpush3.bf16.msra.mxu0 %v30713_v48  ;;  %v30724_v48 = vld [vmem:[#allocation210_spill] sm:$0xff] }
0x13ac   : > { %21187 = vmatprep.subr.bf16.mxu0 %v30714_v55  ;;  %v30725_v55 = vld [vmem:[#allocation212_spill] sm:$0xff] }
0x13af   : > { %21189 = vmatpush3.bf16.msra.mxu0 %v30715_v38  ;;  %v30727_v38 = vld [vmem:[#allocation215_spill] sm:$0xff] }
0x13b0   : > { %21191 = vmatprep.subr.bf16.mxu0 %v30649_v63 }
0x13b2   : > { %10213 = vmatmul.mubr.f32.vlgmr.msra.gmra.mrb[18].mxu0 %v27017_v53  ;;  %v30716_v53 = vld [vmem:[#allocation202_spill] sm:$0xff] }
0x13b3   : > { %21193 = vmatpush3.bf16.msra.mxu0 %v30650_v1  ;;  %10317 = vmatprep.mubr.f32.mxu0 %v26976_v40  ;;  %v30717_v40 = vld [vmem:[#allocation203_spill] sm:$0xff] }
0x13b4   : > { %21195 = vmatprep.subr.bf16.mxu0 %v30651_v50 }
0x13b7   : > { %21197 = vmatpush3.bf16.msra.mxu0 %v30653_v27 }
0x13b8   : > { %21199 = vmatprep.subr.bf16.mxu0 %v30654_v4 }
0x13bb   : > { %21201 = vmatpush3.bf16.msra.mxu0 %v30655_v54 }
0x13bc   : > { %21203 = vmatprep.subr.bf16.mxu0 %v30656_v47 }
0x13bf   : > { %21205 = vmatpush3.bf16.msra.mxu0 %v30657_v41 }
0x13c0   : > { %21207 = vmatprep.subr.bf16.mxu0 %v30658_v49 }
0x13c3   : > { %21209 = vmatpush3.bf16.msra.mxu0 %v30659_v16 }
0x13c4   : > { %21211 = vmatprep.subr.bf16.mxu0 %v30660_v36 }
0x13c7   : > { %21213 = vmatpush3.bf16.msra.mxu0 %v30661_v42 }
0x13c8   : > { %21215 = vmatprep.subr.bf16.mxu0 %v30662_v29 }
0x13cb   : > { %21217 = vmatpush3.bf16.msra.mxu0 %v30663_v45 }
0x13cc   : > { %21219 = vmatprep.subr.bf16.mxu0 %v30664_v21 }
0x13cf   : > { %21221 = vmatpush3.bf16.msra.mxu0 %v30665_v3 }
0x13d0   : > { %21223 = vmatprep.subr.bf16.mxu0 %v30716_v53  ;;  %v30728_v53 = vld [vmem:[#allocation216_spill] sm:$0xff] }
0x13d2   : > { %10321 = vmatmul.mubr.f32.vlgmr.msra.gmra.mrb[20].mxu0 %v30610_v0  ;;  %v30726_v0 = vld [vmem:[#allocation213_spill] sm:$0xff] }
0x13d3   : > { %21225 = vmatpush3.bf16.msra.mxu0 %v30717_v40  ;;  %10487 = vmatprep.mubr.f32.mxu0 %v30613_v60  ;;  %v30729_v40 = vld [vmem:[#allocation217_spill] sm:$0xff] }
0x13d4   : > { %21227 = vmatprep.subr.bf16.mxu0 %v30718_v58  ;;  %v30730_v58 = vld [vmem:[#allocation218_spill] sm:$0xff] }
0x13d7   : > { %21229 = vmatpush3.bf16.msra.mxu0 %v30719_v25  ;;  %v30731_v25 = vld [vmem:[#allocation219_spill] sm:$0xff] }
0x13d8   : > { %21231 = vmatprep.subr.bf16.mxu0 %v30720_v62 }
0x13db   : > { %21233 = vmatpush3.bf16.msra.mxu0 %v30721_v61 }
0x13dc   : > { %21235 = vmatprep.subr.bf16.mxu0 %v30722_v20 }
0x13df   : > { %21237 = vmatpush3.bf16.msra.mxu0 %v30723_v51 }
0x13e0   : > { %21239 = vmatprep.subr.bf16.mxu0 %v30724_v48 }
0x13e3   : > { %21241 = vmatpush3.bf16.msra.mxu0 %v30725_v55 }
0x13e4   : > { %21243 = vmatprep.subr.bf16.mxu0 %v30726_v0 }
0x13e7   : > { %21245 = vmatpush3.bf16.msra.mxu0 %v30727_v38 }
0x13e8   : > { %21247 = vmatprep.subr.bf16.mxu0 %v30728_v53 }
0x13eb   : > { %21249 = vmatpush3.bf16.msra.mxu0 %v30729_v40 }
0x13ec   : > { %21251 = vmatprep.subr.bf16.mxu0 %v30730_v58 }
0x13ef   : > { %21253 = vmatpush3.bf16.msra.mxu0 %v30731_v25 }
0x13f0   : > { %21255 = vmatprep.subr.bf16.mxu0 %v30649_v63 }
0x13f2   : > { %10489 = vmatmul.mubr.f32.vlgmr.msra.gmra.mrb[22].mxu0 %v27012_v7 }
0x13f3   : > { %21257 = vmatpush3.bf16.msra.mxu0 %v30650_v1  ;;  %10591 = vmatprep.mubr.f32.mxu0 %v30613_v60 }
0x13f4   : > { %21259 = vmatprep.subr.bf16.mxu0 %v30651_v50 }
0x13f7   : > { %21261 = vmatpush3.bf16.msra.mxu0 %v30653_v27 }
0x13f8   : > { %21263 = vmatprep.subr.bf16.mxu0 %v30654_v4 }
0x13fb   : > { %21265 = vmatpush3.bf16.msra.mxu0 %v30655_v54 }
0x13fc   : > { %21267 = vmatprep.subr.bf16.mxu0 %v30656_v47 }
0x13ff   : > { %21269 = vmatpush3.bf16.msra.mxu0 %v30657_v41 }
0x1400   : > { %21271 = vmatprep.subr.bf16.mxu0 %v30658_v49 }
0x1403   : > { %21273 = vmatpush3.bf16.msra.mxu0 %v30659_v16 }
0x1404   : > { %21275 = vmatprep.subr.bf16.mxu0 %v30660_v36 }
0x1407   : > { %21277 = vmatpush3.bf16.msra.mxu0 %v30661_v42 }
0x1408   : > { %21279 = vmatprep.subr.bf16.mxu0 %v30662_v29 }
0x140b   : > { %21281 = vmatpush3.bf16.msra.mxu0 %v30663_v45 }
0x140c   : > { %21283 = vmatprep.subr.bf16.mxu0 %v30664_v21 }
0x140f   : > { %21285 = vmatpush3.bf16.msra.mxu0 %v30665_v3 }
0x1412   : > { %10593 = vmatmul.mubr.f32.vlgmr.msra.gmra.mrb[24].mxu0 %v27012_v7 }
0x1413   : > { %10862 = vmatprep.mubr.f32.mxu0 %v30380_v33 }
0x1425   : > { %v8441_v60 = vpop.f32.mrb[12].mxu0 }
0x1426   : > { %8446 = vst.msk [vmem:[%s27559_s28] sm:$0xff] %vm8445_vm1, %v8441_v60  ;;  %v18687_v63 = vpop.f32.mrb[13].mxu0 }
0x1445   : > { %v17160_v1 = vpop.f32.mrb[14].mxu0 }
0x1446   : > { %v17161_v50 = vpop.f32.mrb[15].mxu0 }
0x1447   : > { %v17162_v27 = vadd.f32 %v17161_v50, %v17160_v1 }
0x145d   : > { %v9731_v4 = vpop.f32.mrb[32].mxu1 }
0x145e   : > { %v9733_v54 = vpop.f32.mrb[33].mxu1 }
0x145f   : > { %v10601_v7 = vcombine.low %v9731_v4, %v9733_v54 }
0x1461   : > { %10602 = vrot.lane.b32.xlu0 %v10601_v7, %s22201_s21 }
0x1465   : > { %v17195_v47 = vpop.f32.mrb[16].mxu0 }
0x1466   : > { %v17196_v41 = vpop.f32.mrb[17].mxu0 }
0x1467   : > { %v17197_v49 = vadd.f32 %v17196_v41, %v17195_v47 }
0x1469   : > { %v10077_v16 = vadd.f32 %v17197_v49, %v17162_v27 }
0x1485   : > { %v17230_v36 = vpop.f32.mrb[18].mxu0 }
0x1486   : > { %v17231_v42 = vpop.f32.mrb[19].mxu0 }
0x1487   : > { %v17232_v29 = vadd.f32 %v17231_v42, %v17230_v36 }
0x1489   : > { %v10215_v45 = vadd.f32 %v17232_v29, %v10077_v16 }
0x14a5   : > { %v17265_v21 = vpop.f32.mrb[20].mxu0 }
0x14a6   : > { %v17266_v3 = vpop.f32.mrb[21].mxu0 }
0x14a7   : > { %v17267_v62 = vadd.f32 %v17266_v3, %v17265_v21 }
0x14a9   : > { %v10323_v61 = vadd.f32 %v17267_v62, %v10215_v45 }
0x14c5   : > { %v17300_v20 = vpop.f32.mrb[22].mxu0 }
0x14c6   : > { %v17301_v51 = vpop.f32.mrb[23].mxu0 }
0x14c7   : > { %v17302_v48 = vadd.f32 %v17301_v51, %v17300_v20 }
0x14c9   : > { %v10491_v55 = vadd.f32 %v17302_v48, %v10323_v61 }
0x14d3   : > { %v10603_v0 = vpop.permute.xlu0 %10602 }
0x14d4   : > { %v10606_v38 = vrot.slane %v10603_v0, 4 }
0x14d6   : > { %v10607_v53 = vsel %vm370_vm4, %v10606_v38, %v10603_v0 }
0x14d7   : > { %10611 = vst.msk [vmem:[#allocation2] sm:$0xff] %vm24865_vm5, %v10607_v53  ;;  %vm30737_vm5 = vcmask 736256  }
0x14de   : > { %v10613_v58 = vld [vmem:[#allocation2] sm:$0xff] }
0x14df   : > { %10623 = vrot.lane.b32.xlu0 %v10613_v58, %s22203_s23  ;;  %v27568_v25 = vcombine.high %v10613_v58, %v10613_v58  ;;  %v10619_v27 = vcombine.low %v10613_v58, %v10613_v58 }
0x14e3   : > { %10634 = vrot.lane.b32.xlu0 %v27568_v25, %s22205_s25 }
0x14e5   : > { %v17335_v60 = vpop.f32.mrb[24].mxu0 }
0x14e6   : > { %v17336_v63 = vpop.f32.mrb[25].mxu0 }
0x14e7   : > { %v17337_v1 = vadd.f32 %v17336_v63, %v17335_v60  ;;  %10645 = vrot.lane.b32.xlu0 %v10613_v58, %s22202_s22 }
0x14e9   : > { %v10595_v50 = vadd.f32 %v17337_v1, %v10491_v55 }
0x14eb   : > { %10604 = vrot.lane.b32.xlu1 %v10595_v50, %s22201_s21  ;;  %10621 = vrot.lane.b32.xlu0 %v10619_v27, %s22203_s23 }
0x14ef   : > { %10632 = vrot.lane.b32.xlu1 %v10613_v58, %s22205_s25  ;;  %10643 = vrot.lane.b32.xlu0 %v10619_v27, %s22202_s22 }
0x14f3   : > { %10656 = vrot.lane.b32.xlu1 %v27568_v25, %s30733_s15  ;;  %10665 = vrot.lane.b32.xlu0 %v10619_v27, %s22207_s27 }
0x14f7   : > { %10667 = vrot.lane.b32.xlu1 %v10613_v58, %s22207_s27 }
0x14fb   : > { %10678 = vrot.lane.b32.xlu1 %v27568_v25, %s30734_s11 }
0x14ff   : > { %10689 = vrot.lane.b32.xlu1 %v10613_v58, %s30735_s29 }
0x1503   : > { %10654 = vrot.lane.b32.xlu1 %v10613_v58, %s30733_s15 }
0x1551   : > { %v10624_v7 = vpop.permute.xlu0 %10623 }
0x1555   : > { %v10635_v49 = vpop.permute.xlu0 %10634 }
0x1559   : > { %v10646_v29 = vpop.permute.xlu0 %10645 }
0x155d   : > { %v10605_v4 = vpop.permute.xlu1 %10604  ;;  %v10622_v21 = vpop.permute.xlu0 %10621 }
0x155e   : > { %v10608_v54 = vsel %vm370_vm4, %v10606_v38, %v10605_v4  ;;  %v10627_v61 = vsel %vm2726_vm7, %v10622_v21, %v10624_v7 }
0x155f   : > { %10612 = vst.msk [vmem:[#allocation2 + $0x8] sm:$0xf] %vm2710_vm6, %v10608_v54  ;;  %v10706_v55 = vsel %vm2813_vm8, %v10613_v58, %v10627_v61  ;;  %vm30738_vm6 = vmmov %vm30737_vm5 }
0x1561   : > { %v10633_v47 = vpop.permute.xlu1 %10632  ;;  %v10644_v62 = vpop.permute.xlu0 %10643 }
0x1562   : > { %v10638_v20 = vsel %vm2738_vm9, %v10633_v47, %v10635_v49  ;;  %v10649_v51 = vsel %vm2750_vm10, %v10644_v62, %v10646_v29 }
0x1563   : > { %v10709_v0 = vsel %vm2813_vm8, %v10638_v20, %v10649_v51 }
0x1565   : > { %v10657_v41 = vpop.permute.xlu1 %10656  ;;  %v10666_v53 = vpop.permute.xlu0 %10665 }
0x1566   : > { %v10614_v16 = vld [vmem:[#allocation2 + $0x8] sm:$0xf] }
0x1567   : > { %10658 = vrot.lane.b32.xlu0 %v10614_v16, %s30733_s15  ;;  %10636 = vrot.lane.b32.xlu1 %v10614_v16, %s22205_s25  ;;  %v10620_v36 = vcombine.low %v10614_v16, %v10614_v16 }
0x1569   : > { %v10668_v42 = vpop.permute.xlu1 %10667 }
0x156a   : > { %v10671_v40 = vsel %vm2774_vm12, %v10666_v53, %v10668_v42 }
0x156b   : > { %10680 = vrot.lane.b32.xlu0 %v10614_v16, %s30734_s11  ;;  %10625 = vrot.lane.b32.xlu1 %v10620_v36, %s22203_s23 }
0x156d   : > { %v10679_v45 = vpop.permute.xlu1 %10678 }
0x156f   : > { %10669 = vrot.lane.b32.xlu0 %v10620_v36, %s22207_s27  ;;  %10647 = vrot.lane.b32.xlu1 %v10620_v36, %s22202_s22 }
0x1571   : > { %v10690_v3 = vpop.permute.xlu1 %10689 }
0x1573   : > { %10691 = vrot.lane.b32.xlu0 %v10620_v36, %s30735_s29  ;;  %10676 = vrot.lane.b32.xlu1 %v10613_v58, %s30734_s11 }
0x1575   : > { %v10655_v48 = vpop.permute.xlu1 %10654 }
0x1576   : > { %v10660_v38 = vsel %vm2762_vm11, %v10655_v48, %v10657_v41 }
0x1577   : > { %10687 = vrot.lane.b32.xlu0 %v10619_v27, %s30735_s29  ;;  %10700 = vrot.lane.b32.xlu1 %v27568_v25, %s30736_s16  ;;  %v10712_v60 = vsel %vm2813_vm8, %v10660_v38, %v10671_v40 }
0x157b   : > { %10702 = vrot.lane.b32.xlu0 %v10614_v16, %s30736_s16  ;;  %10698 = vrot.lane.b32.xlu1 %v10613_v58, %s30736_s16 }
0x157f   : > { %10730 = vrot.lane.b32.xlu0 %v10706_v55, %s22210_s30  ;;  %10736 = vrot.lane.b32.xlu1 %v10709_v0, %s22210_s30 }
0x1583   : > { %10742 = vrot.lane.b32.xlu0 %v10712_v60, %s22210_s30 }
0x15d9   : > { %v10659_v63 = vpop.permute.xlu0 %10658  ;;  %v10637_v1 = vpop.permute.xlu1 %10636 }
0x15da   : > { %v10639_v21 = vsel %vm2738_vm9, %v10635_v49, %v10637_v1  ;;  %v10661_v51 = vsel %vm2762_vm11, %v10657_v41, %v10659_v63  ;;  %vm30739_vm11 = vcmask 990208  }
0x15dd   : > { %v10681_v50 = vpop.permute.xlu0 %10680  ;;  %v10626_v27 = vpop.permute.xlu1 %10625 }
0x15de   : > { %v10628_v58 = vsel %vm2726_vm7, %v10624_v7, %v10626_v27  ;;  %v10708_v4 = vsel %vm2813_vm8, %v10614_v16, %v10626_v27  ;;  %v10683_v0 = vsel %vm2786_vm13, %v10679_v45, %v10681_v50 }
0x15df   : > { %10734 = vrot.lane.b32.xlu1 %v10708_v4, %s22210_s30  ;;  %v10707_v54 = vsel %vm2813_vm8, %v27568_v25, %v10628_v58 }
0x15e0   : > { %10732 = vrot.lane.b32.xlu0 %v10707_v54, %s22210_s30 }
0x15e1   : > { %v10670_v47 = vpop.permute.xlu0 %10669  ;;  %v10648_v36 = vpop.permute.xlu1 %10647 }
0x15e2   : > { %v10650_v62 = vsel %vm2750_vm10, %v10646_v29, %v10648_v36  ;;  %v10711_v61 = vsel %vm2813_vm8, %v10637_v1, %v10648_v36  ;;  %v10672_v16 = vsel %vm2774_vm12, %v10668_v42, %v10670_v47  ;;  %v10714_v48 = vsel %vm2813_vm8, %v10659_v63, %v10670_v47  ;;  %vm30740_vm12 = vmmov %vm30739_vm11 }
0x15e3   : > { %10740 = vrot.lane.b32.xlu1 %v10711_v61, %s22210_s30  ;;  %v10710_v7 = vsel %vm2813_vm8, %v10639_v21, %v10650_v62  ;;  %v10713_v49 = vsel %vm2813_vm8, %v10661_v51, %v10672_v16 }
0x15e4   : > { %10738 = vrot.lane.b32.xlu0 %v10710_v7, %s22210_s30 }
0x15e5   : > { %v10692_v20 = vpop.permute.xlu0 %10691  ;;  %v10677_v25 = vpop.permute.xlu1 %10676 }
0x15e6   : > { %v10694_v29 = vsel %vm2798_vm14, %v10690_v3, %v10692_v20  ;;  %v10717_v38 = vsel %vm2813_vm8, %v10681_v50, %v10692_v20  ;;  %v10682_v40 = vsel %vm2786_vm13, %v10677_v25, %v10679_v45 }
0x15e7   : > { %10746 = vrot.lane.b32.xlu1 %v10714_v48, %s22210_s30  ;;  %v10716_v41 = vsel %vm2813_vm8, %v10683_v0, %v10694_v29 }
0x15e8   : > { %10744 = vrot.lane.b32.xlu0 %v10713_v49, %s22210_s30 }
0x15e9   : > { %v10688_v55 = vpop.permute.xlu0 %10687  ;;  %v10701_v42 = vpop.permute.xlu1 %10700 }
0x15ea   : > { %v10693_v53 = vsel %vm2798_vm14, %v10688_v55, %v10690_v3  ;;  %vm30741_vm14 = vmmov %vm30739_vm11 }
0x15eb   : > { %10752 = vrot.lane.b32.xlu1 %v10717_v38, %s22210_s30  ;;  %v10715_v63 = vsel %vm2813_vm8, %v10682_v40, %v10693_v53 }
0x15ec   : > { %10750 = vrot.lane.b32.xlu0 %v10716_v41, %s22210_s30 }
0x15ed   : > { %v10703_v60 = vpop.permute.xlu0 %10702  ;;  %v10699_v27 = vpop.permute.xlu1 %10698 }
0x15ee   : > { %v10705_v1 = vsel %vm30737_vm5, %v10701_v42, %v10703_v60  ;;  %v10704_v3 = vsel %vm30738_vm6, %v10699_v27, %v10701_v42  ;;  %vm30742_vm5 = vmmov %vm30739_vm11 }
0x15ef   : > { %10748 = vrot.lane.b32.xlu1 %v10715_v63, %s22210_s30  ;;  %vm30743_vm6 = vmmov %vm30742_vm5 }
0x15f0   : > { %10756 = vrot.lane.b32.xlu0 %v10705_v1, %s22210_s30 }
0x15f1   : > { %v10731_v50 = vpop.permute.xlu0 %10730  ;;  %v10737_v58 = vpop.permute.xlu1 %10736 }
0x15f3   : > { %10758 = vrot.lane.b32.xlu1 %v10703_v60, %s22210_s30 }
0x15f4   : > { %10754 = vrot.lane.b32.xlu0 %v10704_v3, %s22210_s30 }
0x15f5   : > { %v10743_v4 = vpop.permute.xlu0 %10742 }
0x1651   : > { %v27644_v45 = vpop.permute.xlu1 %10734 }
0x1652   : > { %v10733_v54 = vpop.permute.xlu0 %10732 }
0x1653   : > { %v10761_v47 = vsel %vm30739_vm11, %v10733_v54, %v27644_v45  ;;  %v10760_v36 = vsel %vm30740_vm12, %v10731_v50, %v10733_v54  ;;  %vm30744_vm11 = vmmov %vm30742_vm5 }
0x1654   : > { %v10788_v21 = vand.u32 4294901760, %v10761_v47  ;;  %v10790_v20 = vand.u32 4294901760, %v10760_v36  ;;  %vm30745_vm12 = vmmov %vm30742_vm5 }
0x1655   : > { %v27649_v62 = vpop.permute.xlu1 %10740 }
0x1656   : > { %v10739_v61 = vpop.permute.xlu0 %10738  ;;  %v27654_v48 = vsub.f32 %v10761_v47, %v10788_v21  ;;  %v27662_v41 = vsub.f32 %v10760_v36, %v10790_v20 }
0x1657   : > { %v10762_v7 = vsel %vm30741_vm14, %v10737_v58, %v10739_v61  ;;  %v10763_v16 = vsel %vm30742_vm5, %v10739_v61, %v27649_v62  ;;  %vm30746_vm14 = vmmov %vm30742_vm5 }
0x1658   : > { %v10792_v25 = vand.u32 4294901760, %v10763_v16  ;;  %v10794_v51 = vand.u32 4294901760, %v10762_v7  ;;  %v29501_v3 = vand.u32 4294901760, %v27654_v48 }
0x1659   : > { %v10747_v49 = vpop.permute.xlu1 %10746 }
0x165a   : > { %v27656_v29 = vsub.f32 %v10763_v16, %v10792_v25  ;;  %v10745_v55 = vpop.permute.xlu0 %10744  ;;  %v27658_v0 = vpack.c.bf16 %v10794_v51, %v10790_v20  ;;  %v11364_v42 = vand.u32 4294901760, %v10747_v49  ;;  %v27664_v40 = vsub.f32 %v10762_v7, %v10794_v51 }
0x165b   : > { %v10764_v38 = vsel %vm30743_vm6, %v10743_v4, %v10745_v55  ;;  %v10765_v53 = vsel %vm30744_vm11, %v10745_v55, %v10747_v49  ;;  %v27666_v63 = vpack.c.bf16 %v10792_v25, %v10788_v21  ;;  %vm30751_vm6 = vmmov %vm30742_vm5 }
0x165c   : > { %v10796_v60 = vand.u32 4294901760, %v10765_v53  ;;  %v10798_v1 = vand.u32 4294901760, %v10764_v38  ;;  %v27670_v58 = vsub.f32 %v10747_v49, %v11364_v42  ;;  %v10877_v49 = vsub.f32 %v27654_v48, %v29501_v3 }
0x165d   : > { %v10753_v27 = vpop.permute.xlu1 %10752  ;;  %21287 = vmatprep.subr.bf16.mxu0 %v27666_v63  ;;  %v30748_v3 = vand.u32 4294901760, %v27662_v41  ;;  %v30749_v24 = vand.u32 4294901760, %v27664_v40 }
0x165e   : > { %v11367_v4 = vand.u32 4294901760, %v10753_v27  ;;  %v10751_v54 = vpop.permute.xlu0 %10750  ;;  %v27673_v47 = vsub.f32 %v10765_v53, %v10796_v60  ;;  %21289 = vmatpush1.bf16.msra.mxu0 %v27658_v0  ;;  %v27683_v20 = vsub.f32 %v10764_v38, %v10798_v1  ;;  %v11454_v55 = vand.u32 4294901760, %v27670_v58 }
0x165f   : > { %v10767_v36 = vsel %vm30745_vm12, %v10751_v54, %v10753_v27  ;;  %v10883_v15 = vsub.f32 %v27662_v41, %v30748_v3  ;;  %v10878_v43 = vand.u32 4294901760, %v10877_v49 }
0x1660   : > { %v27679_v7 = vpack.c.bf16 %v11367_v4, %v11364_v42  ;;  %v27681_v16 = vsub.f32 %v10753_v27, %v11367_v4  ;;  %v10800_v25 = vand.u32 4294901760, %v10767_v36  ;;  %v30747_v42 = vand.u32 4294901760, %v27656_v29 }
0x1661   : > { %v10749_v51 = vpop.permute.xlu1 %10748 }
0x1662   : > { %v11461_v53 = vand.u32 4294901760, %v27681_v16  ;;  %v10766_v21 = vsel %vm30746_vm14, %v10749_v51, %v10751_v54  ;;  %v10757_v50 = vpop.permute.xlu0 %10756  ;;  %v10889_v27 = vsub.f32 %v27656_v29, %v30747_v42  ;;  %v27695_v4 = vsub.f32 %v10767_v36, %v10800_v25 }
0x1663   : > { %v10802_v61 = vand.u32 4294901760, %v10766_v21  ;;  %v27697_v13 = vpack.c.bf16 %v10800_v25, %v10796_v60  ;;  %v10895_v54 = vsub.f32 %v27664_v40, %v30749_v24  ;;  %v11455_v36 = vsub.f32 %v27670_v58, %v11454_v55 }
0x1664   : > { %v11462_v3 = vsub.f32 %v27681_v16, %v11461_v53  ;;  %v30752_v57 = vand.u32 4294901760, %v27695_v4  ;;  %v30753_v51 = vand.u32 4294901760, %v27683_v20  ;;  %vm30790_vm14 = vcmask 1047760  }
0x1665   : > { %v27707_v42 = vpack.c.bf16 %v10802_v61, %v10798_v1  ;;  %v27709_v38 = vsub.f32 %v10766_v21, %v10802_v61  ;;  %21291 = vmatprep.subr.bf16.mxu0 %v27697_v13  ;;  %v27712_v60 = vpop.permute.xlu1 %10758  ;;  %v10890_v21 = vand.u32 4294901760, %v10889_v27  ;;  %v30750_v61 = vand.u32 4294901760, %v27673_v47 }
0x1666   : > { %v10769_v25 = vsel %vm30742_vm5, %v10757_v50, %v27712_v60  ;;  %v10755_v24 = vpop.permute.xlu0 %10754  ;;  %v10896_v8 = vand.u32 4294901760, %v10895_v54  ;;  %v10913_v49 = vsub.f32 %v27695_v4, %v30752_v57  ;;  %v11463_v54 = vand.u32 4294901760, %v11462_v3 }
0x1667   : > { %v10784_v1 = vsel %vm2813_vm8, %v10769_v25, 0  ;;  %21293 = vmatpush1.bf16.msra.mxu0 %v27707_v42  ;;  %v10901_v28 = vsub.f32 %v27673_v47, %v30750_v61  ;;  %v10768_v6 = vsel %vm30751_vm6, %v10755_v24, %v10757_v50  ;;  %v10907_v25 = vsub.f32 %v27683_v20, %v30753_v51 }
0x1668   : > { %v27724_v12 = vand.u32 4294901760, %v10784_v1  ;;  %v30754_v37 = vand.u32 4294901760, %v27709_v38  ;;  %v10782_v18 = vsel %vm2813_vm8, %v10768_v6, 0  ;;  %v10884_v61 = vand.u32 4294901760, %v10883_v15  ;;  %v30755_v6 = vld [vmem:[#allocation77_spill] sm:$0xff] }
0x1669   : > { %v27738_v30 = vand.u32 4294901760, %v10782_v18  ;;  %v10914_v50 = vand.u32 4294901760, %v10913_v49  ;;  %v11456_v57 = vand.u32 4294901760, %v11455_v36  ;;  %v21294_v24 = vpack.c.bf16 %v10890_v21, %v10878_v43 }
0x166a   : > { %v10919_v27 = vsub.f32 %v27709_v38, %v30754_v37  ;;  %v10923_v5 = vsub.f32 %v10784_v1, %v27724_v12  ;;  %10805 = vmatprep.subr.mxu0 %v27724_v12  ;;  %v10902_v10 = vand.u32 4294901760, %v10901_v28  ;;  %v21296_v37 = vpack.c.bf16 %v10896_v8, %v10884_v61 }
0x166b   : > { %v10929_v51 = vsub.f32 %v10782_v18, %v27738_v30  ;;  %10807 = vmatpush1.msra.mxu0 %v27738_v30  ;;  %v10908_v3 = vand.u32 4294901760, %v10907_v25  ;;  %v27745_v36 = vpack.c.bf16 %v11463_v54, %v11456_v57  ;;  %v21350_v43 = vpack.c.bf16 %v27681_v16, %v27670_v58  ;;  %v30767_v16 = vld [vmem:[#allocation124_spill] sm:$0xff] }
0x166c   : > { %v10920_v23 = vand.u32 4294901760, %v10919_v27  ;;  %v10924_v31 = vand.u32 4294901760, %v10923_v5  ;;  %21295 = vmatprep.subr.bf16.mxu0 %v21294_v24  ;;  %10868 = vmatmul.mubr.f32.vlgmr.msra.gmra.mrb[26].mxu0 %v30755_v6  ;;  %v21298_v15 = vpack.c.bf16 %v10914_v50, %v10902_v10  ;;  %v27749_v21 = vpack.c.bf16 %v11461_v53, %v11454_v55  ;;  %v30756_v27 = vld [vmem:[#allocation70_spill] sm:$0xff]  ;;  %v30757_v55 = vld [vmem:[#allocation73_spill] sm:$0xff]  ;;  %v30762_v24 = vld [vmem:[#allocation75_spill] sm:$0xff] }
0x166d   : > { %v10930_v1 = vand.u32 4294901760, %v10929_v51  ;;  %21297 = vmatpush1.bf16.msra.mxu0 %v21296_v37  ;;  %10988 = vmatprep.mubr.f32.mxu0 %v30380_v33  ;;  %v21302_v49 = vpack.c.bf16 %v27656_v29, %v27654_v48  ;;  %v21304_v25 = vpack.c.bf16 %v27664_v40, %v27662_v41  ;;  %v30758_v53 = vand.u32 4294901760, %v27654_v48 }
0x166e   : > { %v10925_v26 = vsub.f32 %v10923_v5, %v10924_v31  ;;  %21299 = vmatprep.subr.bf16.mxu0 %v21298_v15  ;;  %v21300_v28 = vpack.c.bf16 %v10920_v23, %v10908_v3  ;;  %v21306_v23 = vpack.c.bf16 %v27695_v4, %v27673_v47  ;;  %v30759_v61 = vand.u32 4294901760, %v27656_v29 }
0x166f   : > { %v10931_v8 = vsub.f32 %v10929_v51, %v10930_v1  ;;  %v30760_v54 = vand.u32 4294901760, %v27662_v41  ;;  %v30761_v50 = vand.u32 4294901760, %v27664_v40  ;;  %v30764_v37 = vand.u32 4294901760, %v27695_v4 }
0x1670   : > { %v10926_v18 = vand.u32 4294901760, %v10925_v26  ;;  %v21308_v26 = vpack.c.bf16 %v27709_v38, %v27683_v20  ;;  %v30765_v48 = vand.u32 4294901760, %v27683_v20  ;;  %v30766_v29 = vand.u32 4294901760, %v27709_v38 }
0x1671   : > { %21301 = vmatpush1.bf16.msra.mxu0 %v21300_v28  ;;  %v10932_v10 = vand.u32 4294901760, %v10931_v8  ;;  %v21320_v57 = vpack.c.bf16 %v30761_v50, %v30760_v54  ;;  %v11361_v40 = vand.u32 4294901760, %v27649_v62  ;;  %v30771_v8 = vld [vmem:[#allocation267_spill] sm:$0xff]  ;;  %v30783_v54 = vld [vmem:[#allocation82_spill] sm:$0xff]  ;;  %vm30791_vm5 = vcmask 474112  }
0x1672   : > { %10927 = vmatprep.subr.mxu0 %v10926_v18  ;;  %v21324_v41 = vpack.c.bf16 %v30766_v29, %v30765_v48 }
0x1673   : > { %v11446_v20 = vsub.f32 %v27649_v62, %v11361_v40 }
0x1675   : > { %10933 = vmatpush1.msra.mxu0 %v10932_v10  ;;  %v30773_v10 = vld [vmem:[#allocation128_spill] sm:$0xff] }
0x1676   : > { %21303 = vmatprep.subr.bf16.mxu0 %v21302_v49  ;;  %10990 = vmatmul.mubr.f32.vlgmr.msra.gmra.mrb[26].mxu0 %v30756_v27  ;;  %v30775_v49 = vld [vmem:[#allocation229_spill] sm:$0xff] }
0x1677   : > { %21305 = vmatpush1.bf16.msra.mxu0 %v21304_v25  ;;  %11080 = vmatprep.mubr.f32.mxu0 %v30380_v33  ;;  %v30776_v25 = vld [vmem:[#allocation230_spill] sm:$0xff] }
0x1678   : > { %21307 = vmatprep.subr.bf16.mxu0 %v21306_v23  ;;  %v30778_v23 = vld [vmem:[#allocation232_spill] sm:$0xff] }
0x167b   : > { %21309 = vmatpush1.bf16.msra.mxu0 %v21308_v26  ;;  %v30779_v26 = vld [vmem:[#allocation233_spill] sm:$0xff] }
0x167c   : > { %11022 = vmatprep.subr.mxu0 %v10923_v5  ;;  %v21318_v5 = vpack.c.bf16 %v30759_v61, %v30758_v53  ;;  %v30781_v53 = vld [vmem:[#allocation236_spill] sm:$0xff]  ;;  %v30782_v61 = vld [vmem:[#allocation237_spill] sm:$0xff] }
0x167f   : > { %11025 = vmatpush1.msra.mxu0 %v10929_v51  ;;  %v30763_v51 = vand.u32 4294901760, %v27673_v47  ;;  %v11358_v47 = vand.u32 4294901760, %v27644_v45 }
0x1680   : > { %21311 = vmatprep.subr.bf16.mxu0 %v27666_v63  ;;  %11083 = vmatmul.mubr.f32.vlgmr.msra.gmra.mrb[26].mxu0 %v30757_v55 }
0x1681   : > { %21313 = vmatpush1.bf16.msra.mxu0 %v27658_v0  ;;  %11163 = vmatprep.mubr.f32.mxu0 %v30380_v33  ;;  %v21322_v15 = vpack.c.bf16 %v30764_v37, %v30763_v51  ;;  %v11439_v38 = vsub.f32 %v27644_v45, %v11358_v47  ;;  %v30784_v51 = vld [vmem:[#allocation83_spill] sm:$0xff] }
0x1682   : > { %21315 = vmatprep.subr.bf16.mxu0 %v27697_v13 }
0x1683   : > { %v11440_v4 = vand.u32 4294901760, %v11439_v38  ;;  %v21347_v18 = vpack.c.bf16 %v11446_v20, %v11439_v38 }
0x1685   : > { %21317 = vmatpush1.bf16.msra.mxu0 %v27707_v42 }
0x1686   : > { %11106 = vmatprep.subr.mxu0 %v27724_v12 }
0x1689   : > { %11108 = vmatpush1.msra.mxu0 %v27738_v30 }
0x168a   : > { %21319 = vmatprep.subr.bf16.mxu0 %v21318_v5  ;;  %11167 = vmatmul.mubr.f32.vlgmr.msra.gmra.mrb[26].mxu0 %v30762_v24 }
0x168b   : > { %21321 = vmatpush1.bf16.msra.mxu0 %v21320_v57  ;;  %11267 = vmatprep.mubr.f32.mxu0 %v30380_v33 }
0x168c   : > { %21323 = vmatprep.subr.bf16.mxu0 %v21322_v15  ;;  %v30786_v15 = vld [vmem:[#allocation84_spill] sm:$0xff] }
0x168d   : > { %vm30787_vm11 = vcmp.eq.s32.totalorder %v30786_v15, 1 }
0x168f   : > { %21325 = vmatpush1.bf16.msra.mxu0 %v21324_v41 }
0x1690   : > { %11208 = vmatprep.subr.mxu0 %v10924_v31  ;;  %v11447_v31 = vand.u32 4294901760, %v11446_v20 }
0x1692   : > { %v11448_v45 = vsub.f32 %v11446_v20, %v11447_v31  ;;  %v21359_v58 = vpack.c.bf16 %v11447_v31, %v11440_v4 }
0x1693   : > { %11212 = vmatpush1.msra.mxu0 %v10930_v1 }
0x1694   : > { %21327 = vmatprep.subr.bf16.mxu0 %v27666_v63  ;;  %11269 = vmatmul.mubr.f32.vlgmr.msra.gmra.mrb[26].mxu0 %v30756_v27  ;;  %v10786_v63 = vsel %vm2813_vm8, %v27712_v60, 0  ;;  %vm30785_vm8 = vcmp.eq.s32.totalorder %v30784_v51, 1 }
0x1695   : > { %21329 = vmatpush1.bf16.msra.mxu0 %v27658_v0  ;;  %11349 = vmatprep.mubr.f32.mxu0 %v30380_v33  ;;  %v21335_v0 = vpack.c.bf16 %v11361_v40, %v11358_v47  ;;  %v30788_v47 = vld [vmem:[#allocation86_spill] sm:$0xff] }
0x1696   : > { %21331 = vmatprep.subr.bf16.mxu0 %v27697_v13  ;;  %v11370_v13 = vand.u32 4294901760, %v10786_v63  ;;  %vm30789_vm12 = vcmp.eq.s32.totalorder %v30788_v47, 1 }
0x1698   : > { %v11467_v62 = vsub.f32 %v10786_v63, %v11370_v13 }
0x1699   : > { %21333 = vmatpush1.bf16.msra.mxu0 %v27707_v42  ;;  %v11449_v42 = vand.u32 4294901760, %v11448_v45 }
0x169a   : > { %11292 = vmatprep.subr.mxu0 %v27724_v12  ;;  %v11441_v12 = vsub.f32 %v11439_v38, %v11440_v4  ;;  %v11468_v60 = vand.u32 4294901760, %v11467_v62 }
0x169c   : > { %v11469_v1 = vsub.f32 %v11467_v62, %v11468_v60 }
0x169d   : > { %11294 = vmatpush1.msra.mxu0 %v27738_v30  ;;  %v11442_v30 = vand.u32 4294901760, %v11441_v12 }
0x169e   : > { %11351 = vmatmul.mubr.f32.vlgmr.msra.gmra.mrb[26].mxu0 %v30756_v27  ;;  %21334 = vmatprep.subr.bf16.mxu0 %v30377_v46  ;;  %v11470_v28 = vand.u32 4294901760, %v11469_v1 }
0x169f   : > { %21336 = vmatpush3.bf16.msra.mxu0 %v21335_v0  ;;  %18698 = vmatprep.mubr.msk.f32.mxu0 %vm22213_vm2, %v30380_v33  ;;  %v21341_v3 = vpack.c.bf16 %v11449_v42, %v11442_v30 }
0x16a0   : > { %21337 = vmatprep.subr.bf16.mxu0 %v30377_v46 }
0x16a3   : > { %21339 = vmatpush3.bf16.msra.mxu0 %v27679_v7 }
0x16a4   : > { %18696 = vmatprep.subr.mxu0 %v30380_v33 }
0x16a7   : > { %18697 = vmatpush3.msra.mxu0 %v11370_v13 }
0x16a8   : > { %21340 = vmatprep.subr.bf16.mxu0 %v30377_v46  ;;  %18699 = vmatmul.mubr.f32.vlgmr.msra.gmra.mrb[28].mxu0 %v30755_v6  ;;  %v30768_v6 = vld [vmem:[#allocation264_spill] sm:$0xff] }
0x16a9   : > { %21342 = vmatpush3.bf16.msra.mxu0 %v21341_v3  ;;  %18711 = vmatprep.mubr.msk.f32.mxu0 %vm22213_vm2, %v30380_v33 }
0x16aa   : > { %21343 = vmatprep.subr.bf16.mxu0 %v30377_v46 }
0x16ad   : > { %21345 = vmatpush3.bf16.msra.mxu0 %v27745_v36  ;;  %v30769_v36 = vld [vmem:[#allocation265_spill] sm:$0xff] }
0x16ae   : > { %18709 = vmatprep.subr.mxu0 %v30380_v33 }
0x16b1   : > { %18710 = vmatpush3.msra.mxu0 %v11470_v28 }
0x16b2   : > { %21346 = vmatprep.subr.bf16.mxu0 %v30377_v46  ;;  %18712 = vmatmul.mubr.f32.vlgmr.msra.gmra.mrb[28].mxu0 %v30756_v27 }
0x16b3   : > { %21348 = vmatpush3.bf16.msra.mxu0 %v21347_v18  ;;  %18724 = vmatprep.mubr.msk.f32.mxu0 %vm22213_vm2, %v30380_v33 }
0x16b4   : > { %21349 = vmatprep.subr.bf16.mxu0 %v30377_v46 }
0x16b7   : > { %21351 = vmatpush3.bf16.msra.mxu0 %v21350_v43  ;;  %v30770_v43 = vld [vmem:[#allocation266_spill] sm:$0xff] }
0x16b8   : > { %18722 = vmatprep.subr.mxu0 %v30380_v33 }
0x16bb   : > { %18723 = vmatpush3.msra.mxu0 %v11467_v62 }
0x16bc   : > { %21352 = vmatprep.subr.bf16.mxu0 %v30377_v46  ;;  %18725 = vmatmul.mubr.f32.vlgmr.msra.gmra.mrb[28].mxu0 %v30757_v55  ;;  %v30780_v55 = vld [vmem:[#allocation235_spill] sm:$0xff] }
0x16bd   : > { %21354 = vmatpush3.bf16.msra.mxu0 %v21335_v0  ;;  %18737 = vmatprep.mubr.msk.f32.mxu0 %vm22213_vm2, %v30380_v33 }
0x16be   : > { %21355 = vmatprep.subr.bf16.mxu0 %v30377_v46 }
0x16c1   : > { %21357 = vmatpush3.bf16.msra.mxu0 %v27679_v7 }
0x16c2   : > { %18735 = vmatprep.subr.mxu0 %v30380_v33 }
0x16c5   : > { %18736 = vmatpush3.msra.mxu0 %v11370_v13 }
0x16c6   : > { %21358 = vmatprep.subr.bf16.mxu0 %v30377_v46  ;;  %18738 = vmatmul.mubr.f32.vlgmr.msra.gmra.mrb[28].mxu0 %v30762_v24 }
0x16c7   : > { %21360 = vmatpush3.bf16.msra.mxu0 %v21359_v58  ;;  %18750 = vmatprep.mubr.msk.f32.mxu0 %vm22213_vm2, %v30380_v33 }
0x16c8   : > { %21361 = vmatprep.subr.bf16.mxu0 %v30377_v46 }
0x16cb   : > { %21363 = vmatpush3.bf16.msra.mxu0 %v27749_v21  ;;  %v30772_v21 = vld [vmem:[#allocation268_spill] sm:$0xff] }
0x16cc   : > { %18748 = vmatprep.subr.mxu0 %v30380_v33 }
0x16cf   : > { %18749 = vmatpush3.msra.mxu0 %v11468_v60 }
0x16d0   : > { %21364 = vmatprep.subr.bf16.mxu0 %v30377_v46  ;;  %18751 = vmatmul.mubr.f32.vlgmr.msra.gmra.mrb[28].mxu0 %v30756_v27 }
0x16d1   : > { %21366 = vmatpush3.bf16.msra.mxu0 %v21335_v0  ;;  %18763 = vmatprep.mubr.msk.f32.mxu0 %vm22213_vm2, %v30380_v33 }
0x16d2   : > { %21367 = vmatprep.subr.bf16.mxu0 %v30377_v46 }
0x16d5   : > { %21369 = vmatpush3.bf16.msra.mxu0 %v27679_v7  ;;  %v30774_v7 = vld [vmem:[#allocation129_spill] sm:$0xff] }
0x16d6   : > { %18761 = vmatprep.subr.mxu0 %v30380_v33 }
0x16d9   : > { %18762 = vmatpush3.msra.mxu0 %v11370_v13 }
0x16da   : > { %18764 = vmatmul.mubr.f32.vlgmr.msra.gmra.mrb[28].mxu0 %v30756_v27  ;;  %21403 = vmatprep.subr.bf16.mxu0 %v30767_v16  ;;  %v30777_v27 = vld [vmem:[#allocation231_spill] sm:$0xff] }
0x16db   : > { %21405 = vmatpush3.bf16.msra.mxu0 %v30768_v6 }
0x16dc   : > { %21407 = vmatprep.subr.bf16.mxu0 %v30769_v36 }
0x16df   : > { %21409 = vmatpush3.bf16.msra.mxu0 %v30770_v43 }
0x16e0   : > { %21411 = vmatprep.subr.bf16.mxu0 %v30771_v8 }
0x16e3   : > { %21413 = vmatpush3.bf16.msra.mxu0 %v30772_v21 }
0x16e4   : > { %21415 = vmatprep.subr.bf16.mxu0 %v30773_v10 }
0x16e7   : > { %21417 = vmatpush3.bf16.msra.mxu0 %v30774_v7 }
0x16e8   : > { %21419 = vmatprep.subr.bf16.mxu0 %v30775_v49 }
0x16eb   : > { %21421 = vmatpush3.bf16.msra.mxu0 %v30776_v25 }
0x16ec   : > { %21423 = vmatprep.subr.bf16.mxu0 %v30777_v27 }
0x16ef   : > { %21425 = vmatpush3.bf16.msra.mxu0 %v30778_v23 }
0x16f0   : > { %21427 = vmatprep.subr.bf16.mxu0 %v30779_v26 }
0x16f3   : > { %21429 = vmatpush3.bf16.msra.mxu0 %v30780_v55 }
0x16f4   : > { %21431 = vmatprep.subr.bf16.mxu0 %v30781_v53 }
0x16f7   : > { %21433 = vmatpush3.bf16.msra.mxu0 %v30782_v61 }
0x16f8   : > { %21467 = vmatprep.subr.bf16.mxu0 %v30680_v44 }
0x1771   : > { %v11352_v5 = vpop.f32.mrb[26].mxu0 }
0x1772   : > { %v21970_v50 = vadd.f32 %v11352_v5, %v30783_v54  ;;  %v11354_v57 = vpop.f32.mrb[27].mxu0 }
0x1773   : > { %v21971_v24 = vadd.f32 %v11354_v57, %v30783_v54 }
0x1774   : > { %v11855_v37 = vsel %vm30785_vm8, %v21970_v50, -3e+38 }
0x1775   : > { %v11856_v48 = vsel %vm30787_vm11, %v21971_v24, -3e+38  ;;  %11861 = vrot.lane.b32.xlu1 %v11855_v37, %s22201_s21 }
0x1776   : > { %11863 = vrot.lane.b32.xlu0 %v11856_v48, %s22201_s21 }
0x17ad   : > { %v11851_v29 = vpop.f32.mrb[28].mxu0 }
0x17ae   : > { %v21972_v41 = vadd.f32 %v11851_v29, %v30783_v54  ;;  %v18765_v40 = vpop.f32.mrb[29].mxu0 }
0x17b0   : > { %v11857_v20 = vsel %vm30789_vm12, %v21972_v41, -3e+38 }
0x17b1   : > { %11865 = vrot.lane.b32.xlu1 %v11857_v20, %s22201_s21  ;;  %s30833_s21 = smov 116  }
0x17e7   : > { %v11862_v38 = vpop.permute.xlu1 %11861 }
0x17e8   : > { %11872 = vst.msk [vmem:[#allocation3] sm:$0xff] %vm30790_vm14, %v11862_v38  ;;  %v11864_v31 = vpop.permute.xlu0 %11863 }
0x17e9   : > { %v11867_v63 = vsel %vm370_vm4, %v11862_v38, %v11864_v31  ;;  %v30792_v38 = vld [vmem:[#allocation269_spill] sm:$0xff] }
0x17ea   : > { %11897 = vrot.lane.b32.xlu1 %v11867_v63, %s22205_s25 }
0x17ef   : > { %v11875_v4 = vld [vmem:[#allocation3] sm:$0xff] }
0x17f0   : > { %11881 = vrot.lane.b32.xlu0 %v11875_v4, %s22203_s23 }
0x17f4   : > { %11883 = vrot.lane.b32.xlu0 %v11867_v63, %s22203_s23 }
0x1823   : > { %v11866_v0 = vpop.permute.xlu1 %11865 }
0x1824   : > { %v11868_v13 = vsel %vm370_vm4, %v11864_v31, %v11866_v0  ;;  %v30793_v31 = vld [vmem:[#allocation270_spill] sm:$0xff]  ;;  %v30796_v0 = vld [vmem:[#allocation273_spill] sm:$0xff]  ;;  %vm30817_vm4 = vcmask 154624  }
0x1825   : > { %11874 = vst.msk [vmem:[#allocation3 + $0x10] sm:$0xff] %vm30791_vm5, %v11868_v13  ;;  %v30797_v13 = vld [vmem:[#allocation238_spill] sm:$0xff] }
0x182c   : > { %v11877_v45 = vld [vmem:[#allocation3 + $0x10] sm:$0xff] }
0x182d   : > { %11899 = vrot.lane.b32.xlu0 %v11877_v45, %s22205_s25  ;;  %11885 = vrot.lane.b32.xlu1 %v11877_v45, %s22203_s23 }
0x1831   : > { %11895 = vrot.lane.b32.xlu1 %v11875_v4, %s22205_s25 }
0x185c   : > { %v11898_v62 = vpop.permute.xlu1 %11897 }
0x1862   : > { %v11882_v12 = vpop.permute.xlu0 %11881 }
0x1866   : > { %v11884_v42 = vpop.permute.xlu0 %11883 }
0x1867   : > { %v11887_v60 = vsel %vm2726_vm7, %v11882_v12, %v11884_v42  ;;  %v30799_v12 = vld [vmem:[#allocation240_spill] sm:$0xff] }
0x1868   : > { %v11892_v16 = vmax.f32 %v11875_v4, %v11887_v60  ;;  %v30795_v4 = vld [vmem:[#allocation272_spill] sm:$0xff]  ;;  %v30803_v60 = vld [vmem:[#allocation123_spill] sm:$0xff] }
0x189f   : > { %v11886_v30 = vpop.permute.xlu1 %11885  ;;  %v11900_v28 = vpop.permute.xlu0 %11899 }
0x18a0   : > { %v11888_v3 = vsel %vm2726_vm7, %v11884_v42, %v11886_v30  ;;  %v11894_v1 = vmax.f32 %v11877_v45, %v11886_v30  ;;  %v11902_v43 = vsel %vm2738_vm9, %v11898_v62, %v11900_v28  ;;  %v30798_v45 = vld [vmem:[#allocation239_spill] sm:$0xff]  ;;  %v30801_v42 = vld [vmem:[#allocation242_spill] sm:$0xff] }
0x18a1   : > { %v11893_v18 = vmax.f32 %v11867_v63, %v11888_v3  ;;  %v30794_v63 = vld [vmem:[#allocation271_spill] sm:$0xff]  ;;  %v30804_v3 = vld [vmem:[#allocation244_spill] sm:$0xff] }
0x18a2   : > { %v27887_v58 = vmax.f32 %v11894_v1, %v11900_v28  ;;  %v30802_v30 = vld [vmem:[#allocation243_spill] sm:$0xff]  ;;  %v30805_v1 = vld [vmem:[#allocation245_spill] sm:$0xff]  ;;  %v30806_v28 = vld [vmem:[#allocation246_spill] sm:$0xff] }
0x18a3   : > { %v11896_v6 = vpop.permute.xlu1 %11895  ;;  %v11907_v21 = vmax.f32 %v11893_v18, %v11902_v43  ;;  %v30807_v18 = vld [vmem:[#allocation247_spill] sm:$0xff]  ;;  %v30819_v43 = vld [vmem:[#allocation258_spill] sm:$0xff] }
0x18a4   : > { %v11901_v36 = vsel %vm2738_vm9, %v11896_v6, %v11898_v62  ;;  %11916 = vrot.lane.b32.xlu1 %v27887_v58, %s22202_s22  ;;  %v30800_v62 = vld [vmem:[#allocation241_spill] sm:$0xff]  ;;  %v30811_v6 = vld [vmem:[#allocation251_spill] sm:$0xff] }
0x18a5   : > { %v11906_v8 = vmax.f32 %v11892_v16, %v11901_v36  ;;  %v30808_v16 = vld [vmem:[#allocation248_spill] sm:$0xff]  ;;  %v30815_v36 = vld [vmem:[#allocation255_spill] sm:$0xff] }
0x18a7   : > { %11912 = vrot.lane.b32.xlu0 %v11906_v8, %s22202_s22 }
0x18a8   : > { %11928 = vrot.lane.b32.xlu1 %v11907_v21, %s30734_s11 }
0x18ab   : > { %11914 = vrot.lane.b32.xlu0 %v11907_v21, %s22202_s22 }
0x18ac   : > { %11926 = vrot.lane.b32.xlu1 %v11906_v8, %s30734_s11 }
0x18af   : > { %11930 = vrot.lane.b32.xlu0 %v27887_v58, %s30734_s11 }
0x1916   : > { %v27899_v10 = vpop.permute.xlu1 %11916 }
0x1919   : > { %v11913_v7 = vpop.permute.xlu0 %11912 }
0x191a   : > { %v11929_v49 = vpop.permute.xlu1 %11928 }
0x191d   : > { %v11915_v25 = vpop.permute.xlu0 %11914 }
0x191e   : > { %v11918_v27 = vsel %vm2750_vm10, %v11913_v7, %v11915_v25  ;;  %v11919_v23 = vsel %vm2750_vm10, %v11915_v25, %v27899_v10  ;;  %v11927_v26 = vpop.permute.xlu1 %11926  ;;  %v30825_v7 = vld [vmem:[#allocation275_spill] sm:$0xff]  ;;  %v30826_v25 = vld [vmem:[#allocation109_spill] sm:$0xff] }
0x191f   : > { %v11923_v55 = vmax.f32 %v11906_v8, %v11918_v27  ;;  %v11932_v53 = vsel %vm2786_vm13, %v11927_v26, %v11929_v49  ;;  %v11924_v61 = vmax.f32 %v11907_v21, %v11919_v23  ;;  %v30822_v8 = vld [vmem:[#allocation261_spill] sm:$0xff]  ;;  %v30823_v21 = vld [vmem:[#allocation262_spill] sm:$0xff]  ;;  %v30829_v26 = vld [vmem:[#allocation279_spill] sm:$0xff] }
0x1920   : > { %v30827_v27 = vld [vmem:[#allocation277_spill] sm:$0xff]  ;;  %v30828_v23 = vld [vmem:[#allocation278_spill] sm:$0xff] }
0x1921   : > { %v11937_v5 = vmax.f32 %v11923_v55, %v11932_v53  ;;  %v27905_v54 = vpop.permute.xlu0 %11930  ;;  %v30830_v55 = vld [vmem:[#allocation274_spill] sm:$0xff]  ;;  %v30831_v53 = vld [vmem:[#allocation280_spill] sm:$0xff] }
0x1922   : > { %v11933_v50 = vsel %vm2786_vm13, %v11929_v49, %v27905_v54 }
0x1923   : > { %v27909_v57 = vand.u32 4294901760, %v11937_v5  ;;  %v11938_v24 = vmax.f32 %v11924_v61, %v11933_v50  ;;  %v30832_v61 = vld [vmem:[#allocation276_spill] sm:$0xff] }
0x1925   : > { %v12046_v51 = vsub.f32 %v11937_v5, %v27909_v57  ;;  %v12039_v37 = vand.u32 4294901760, %v11938_v24 }
0x1927   : > { %v12047_v15 = vand.u32 4294901760, %v12046_v51  ;;  %v12040_v48 = vsub.f32 %v11938_v24, %v12039_v37  ;;  %12280 = vmatprep.mubr.f32.mxu0 %v12039_v37 }
0x1928   : > { %12282 = vmatmul.mubr.f32.vlgmr.msra.gmra.mrb[30].mxu0 %v27909_v57 }
0x1929   : > { %21469 = vmatpush3.bf16.msra.mxu0 %v30682_v52  ;;  %v12041_v29 = vand.u32 4294901760, %v12040_v48  ;;  %v12048_v41 = vsub.f32 %v12046_v51, %v12047_v15 }
0x192a   : > { %21471 = vmatprep.subr.bf16.mxu0 %v30684_v19 }
0x192b   : > { %12524 = vmatprep.mubr.f32.mxu0 %v12041_v29  ;;  %v12042_v40 = vsub.f32 %v12040_v48, %v12041_v29  ;;  %v12049_v20 = vand.u32 4294901760, %v12048_v41 }
0x192d   : > { %21473 = vmatpush3.bf16.msra.mxu0 %v30686_v56  ;;  %v12043_v47 = vand.u32 4294901760, %v12042_v40 }
0x192e   : > { %21475 = vmatprep.subr.bf16.mxu0 %v30688_v59 }
0x192f   : > { %12044 = vmatprep.mubr.f32.mxu1 %v12043_v47 }
0x1930   : > { %12050 = vmatmul.mubr.f32.vlgmr.msra.gmra.mrb[34].mxu1 %v12049_v20 }
0x1931   : > { %21437 = vmatpush3.bf16.msra.mxu1 %v30792_v38  ;;  %21477 = vmatpush3.bf16.msra.mxu0 %v30691_v17 }
0x1932   : > { %12417 = vmatprep.mubr.f32.mxu1 %v12040_v48  ;;  %21439 = vmatprep.subr.bf16.mxu1 %v30793_v31 }
0x1933   : > { %21479 = vmatprep.subr.bf16.mxu0 %v30692_v34 }
0x1935   : > { %21441 = vmatpush3.bf16.msra.mxu1 %v30794_v63  ;;  %21481 = vmatpush3.bf16.msra.mxu0 %v30695_v9 }
0x1936   : > { %21443 = vmatprep.subr.bf16.mxu1 %v30795_v4  ;;  %21483 = vmatprep.subr.bf16.mxu0 %v30696_v35 }
0x1939   : > { %21445 = vmatpush3.bf16.msra.mxu1 %v30796_v0  ;;  %21485 = vmatpush3.bf16.msra.mxu0 %v30699_v14 }
0x193a   : > { %21447 = vmatprep.subr.bf16.mxu1 %v30797_v13  ;;  %21487 = vmatprep.subr.bf16.mxu0 %v30700_v22 }
0x193d   : > { %21449 = vmatpush3.bf16.msra.mxu1 %v30798_v45  ;;  %21489 = vmatpush3.bf16.msra.mxu0 %v30703_v2 }
0x193e   : > { %21451 = vmatprep.subr.bf16.mxu1 %v30799_v12  ;;  %21491 = vmatprep.subr.bf16.mxu0 %v30704_v11 }
0x1941   : > { %21453 = vmatpush3.bf16.msra.mxu1 %v30800_v62  ;;  %21493 = vmatpush3.bf16.msra.mxu0 %v30707_v39 }
0x1942   : > { %21455 = vmatprep.subr.bf16.mxu1 %v30801_v42  ;;  %21495 = vmatprep.subr.bf16.mxu0 %v30708_v32 }
0x1945   : > { %21457 = vmatpush3.bf16.msra.mxu1 %v30802_v30  ;;  %21497 = vmatpush3.bf16.msra.mxu0 %v30803_v60 }
0x1946   : > { %21459 = vmatprep.subr.bf16.mxu1 %v30804_v3  ;;  %21531 = vmatprep.subr.bf16.mxu0 %v30680_v44  ;;  %v30809_v44 = vld [vmem:[#allocation249_spill] sm:$0xff] }
0x1948   : > { %12528 = vmatmul.mubr.f32.vlgmr.msra.gmra.mrb[32].mxu0 %v12047_v15 }
0x1949   : > { %21461 = vmatpush3.bf16.msra.mxu1 %v30805_v1  ;;  %21533 = vmatpush3.bf16.msra.mxu0 %v30682_v52  ;;  %v30810_v52 = vld [vmem:[#allocation250_spill] sm:$0xff] }
0x194a   : > { %12798 = vmatprep.mubr.f32.mxu0 %v12039_v37  ;;  %21463 = vmatprep.subr.bf16.mxu1 %v30806_v28 }
0x194b   : > { %21535 = vmatprep.subr.bf16.mxu0 %v30684_v19  ;;  %v30812_v19 = vld [vmem:[#allocation252_spill] sm:$0xff] }
0x194d   : > { %21465 = vmatpush3.bf16.msra.mxu1 %v30807_v18  ;;  %21537 = vmatpush3.bf16.msra.mxu0 %v30686_v56  ;;  %v30813_v56 = vld [vmem:[#allocation253_spill] sm:$0xff] }
0x194e   : > { %21499 = vmatprep.subr.bf16.mxu1 %v30808_v16  ;;  %21539 = vmatprep.subr.bf16.mxu0 %v30688_v59  ;;  %v30814_v59 = vld [vmem:[#allocation254_spill] sm:$0xff] }
0x1950   : > { %12420 = vmatmul.mubr.f32.vlgmr.msra.gmra.mrb[36].mxu1 %v12046_v51 }
0x1951   : > { %21501 = vmatpush3.bf16.msra.mxu1 %v30809_v44  ;;  %12694 = vmatprep.mubr.f32.mxu1 %v12039_v37 }
0x1952   : > { %21541 = vmatpush3.bf16.msra.mxu0 %v30691_v17  ;;  %21503 = vmatprep.subr.bf16.mxu1 %v30810_v52  ;;  %v11925_v17 = vmax.f32 %v27887_v58, %v27899_v10  ;;  %v30820_v58 = vld [vmem:[#allocation259_spill] sm:$0xff] }
0x1953   : > { %21543 = vmatprep.subr.bf16.mxu0 %v30692_v34 }
0x1954   : > { %v11939_v34 = vmax.f32 %v11925_v17, %v27905_v54 }
0x1955   : > { %21505 = vmatpush3.bf16.msra.mxu1 %v30811_v6 }
0x1956   : > { %21545 = vmatpush3.bf16.msra.mxu0 %v30695_v9  ;;  %21507 = vmatprep.subr.bf16.mxu1 %v30812_v19  ;;  %v30816_v9 = vld [vmem:[#allocation256_spill] sm:$0xff] }
0x1957   : > { %21547 = vmatprep.subr.bf16.mxu0 %v30696_v35  ;;  %v11941_v35 = vsel %vm30817_vm4, %v11939_v34, 0 }
0x1959   : > { %21509 = vmatpush3.bf16.msra.mxu1 %v30813_v56 }
0x195a   : > { %21549 = vmatpush3.bf16.msra.mxu0 %v30699_v14  ;;  %21511 = vmatprep.subr.bf16.mxu1 %v30814_v59  ;;  %v30818_v14 = vld [vmem:[#allocation257_spill] sm:$0xff] }
0x195b   : > { %21551 = vmatprep.subr.bf16.mxu0 %v30700_v22  ;;  %v12873_v22 = vand.u32 4294901760, %v11941_v35 }
0x195d   : > { %21513 = vmatpush3.bf16.msra.mxu1 %v30815_v36 }
0x195e   : > { %21553 = vmatpush3.bf16.msra.mxu0 %v30703_v2  ;;  %21515 = vmatprep.subr.bf16.mxu1 %v30816_v9  ;;  %v30821_v2 = vld [vmem:[#allocation260_spill] sm:$0xff] }
0x195f   : > { %21555 = vmatprep.subr.bf16.mxu0 %v30704_v11  ;;  %v12874_v11 = vsub.f32 %v11941_v35, %v12873_v22 }
0x1961   : > { %21517 = vmatpush3.bf16.msra.mxu1 %v30818_v14 }
0x1962   : > { %21557 = vmatpush3.bf16.msra.mxu0 %v30707_v39  ;;  %21519 = vmatprep.subr.bf16.mxu1 %v30819_v43  ;;  %v12875_v39 = vand.u32 4294901760, %v12874_v11 }
0x1963   : > { %21559 = vmatprep.subr.bf16.mxu0 %v30708_v32  ;;  %v30824_v32 = vld [vmem:[#allocation263_spill] sm:$0xff] }
0x1964   : > { %v12876_v10 = vsub.f32 %v12874_v11, %v12875_v39 }
0x1965   : > { %21521 = vmatpush3.bf16.msra.mxu1 %v30820_v58 }
0x1966   : > { %21561 = vmatpush3.bf16.msra.mxu0 %v30803_v60  ;;  %21523 = vmatprep.subr.bf16.mxu1 %v30821_v2  ;;  %v12877_v49 = vand.u32 4294901760, %v12876_v10 }
0x1967   : > { %21580 = vmatprep.subr.bf16.mxu0 %v30377_v46 }
0x1969   : > { %12800 = vmatmul.mubr.f32.vlgmr.msra.gmra.mrb[34].mxu0 %v27909_v57  ;;  %21525 = vmatpush3.bf16.msra.mxu1 %v30822_v8 }
0x196a   : > { %21527 = vmatprep.subr.bf16.mxu1 %v30823_v21  ;;  %18838 = vmatprep.mubr.msk.f32.mxu0 %vm22213_vm2, %v30380_v33 }
0x196d   : > { %21529 = vmatpush3.bf16.msra.mxu1 %v30824_v32 }
0x196e   : > { %21562 = vmatprep.subr.bf16.mxu1 %v30377_v46 }
0x1970   : > { %12696 = vmatmul.mubr.f32.vlgmr.msra.gmra.mrb[38].mxu1 %v27909_v57 }
0x1971   : > { %21564 = vmatpush3.bf16.msra.mxu1 %v30825_v7  ;;  %18772 = vmatprep.mubr.msk.f32.mxu1 %vm22213_vm2, %v30380_v33 }
0x1972   : > { %18770 = vmatprep.subr.mxu1 %v30380_v33 }
0x1975   : > { %18771 = vmatpush3.msra.mxu1 %v30826_v25 }
0x1976   : > { %18773 = vmatmul.mubr.f32.vlgmr.msra.gmra.mrb[40].mxu1 %v12877_v49  ;;  %21565 = vmatprep.subr.bf16.mxu1 %v30377_v46 }
0x1977   : > { %21567 = vmatpush3.bf16.msra.mxu1 %v30827_v27  ;;  %18781 = vmatprep.mubr.msk.f32.mxu1 %vm22213_vm2, %v30380_v33 }
0x1978   : > { %18779 = vmatprep.subr.mxu1 %v30380_v33 }
0x197b   : > { %18780 = vmatpush3.msra.mxu1 %v30828_v23 }
0x197c   : > { %21568 = vmatprep.subr.bf16.mxu1 %v30377_v46 }
0x197e   : > { %18782 = vmatmul.mubr.f32.vlgmr.msra.gmra.mrb[40].mxu1 %v12873_v22 }
0x197f   : > { %21570 = vmatpush3.bf16.msra.mxu1 %v30829_v26  ;;  %18790 = vmatprep.mubr.msk.f32.mxu1 %vm22213_vm2, %v30380_v33 }
0x1980   : > { %18788 = vmatprep.subr.mxu1 %v30380_v33 }
0x1983   : > { %18789 = vmatpush3.msra.mxu1 %v30830_v55 }
0x1984   : > { %21571 = vmatprep.subr.bf16.mxu1 %v30377_v46 }
0x1986   : > { %18791 = vmatmul.mubr.f32.vlgmr.msra.gmra.mrb[40].mxu1 %v12874_v11 }
0x1987   : > { %21573 = vmatpush3.bf16.msra.mxu1 %v30825_v7  ;;  %18799 = vmatprep.mubr.msk.f32.mxu1 %vm22213_vm2, %v30380_v33 }
0x1988   : > { %18797 = vmatprep.subr.mxu1 %v30380_v33 }
0x198b   : > { %18798 = vmatpush3.msra.mxu1 %v30826_v25 }
0x198c   : > { %21574 = vmatprep.subr.bf16.mxu1 %v30377_v46 }
0x198e   : > { %18800 = vmatmul.mubr.f32.vlgmr.msra.gmra.mrb[40].mxu1 %v12875_v39 }
0x198f   : > { %21576 = vmatpush3.bf16.msra.mxu1 %v30831_v53  ;;  %18808 = vmatprep.mubr.msk.f32.mxu1 %vm22213_vm2, %v30380_v33 }
0x1990   : > { %18806 = vmatprep.subr.mxu1 %v30380_v33 }
0x1993   : > { %18807 = vmatpush3.msra.mxu1 %v30832_v61 }
0x1994   : > { %21577 = vmatprep.subr.bf16.mxu1 %v30377_v46 }
0x1996   : > { %18809 = vmatmul.mubr.f32.vlgmr.msra.gmra.mrb[40].mxu1 %v12873_v22 }
0x1997   : > { %21579 = vmatpush3.bf16.msra.mxu1 %v30825_v7  ;;  %18817 = vmatprep.mubr.msk.f32.mxu1 %vm22213_vm2, %v30380_v33 }
0x1998   : > { %18815 = vmatprep.subr.mxu1 %v30380_v33 }
0x199b   : > { %18816 = vmatpush3.msra.mxu1 %v30826_v25 }
0x199c   : > { %21652 = vmatprep.subr.bf16.mxu1 %v30377_v46 }
0x199e   : > { %18818 = vmatmul.mubr.f32.vlgmr.msra.gmra.mrb[40].mxu1 %v12873_v22 }
0x199f   : > { %18964 = vmatprep.mubr.msk.f32.mxu1 %vm22213_vm2, %v30380_v33 }
0x19fb   : > { %v17441_v5 = vpop.f32.mrb[30].mxu0 }
0x19fc   : > { %v17442_v54 = vpop.f32.mrb[31].mxu0 }
0x19fd   : > { %v17443_v50 = vadd.f32 %v17442_v54, %v17441_v5 }
0x1a03   : > { %v17406_v57 = vpop.f32.mrb[34].mxu1 }
0x1a04   : > { %v17407_v24 = vpop.f32.mrb[35].mxu1 }
0x1a05   : > { %v17408_v51 = vadd.f32 %v17407_v24, %v17406_v57 }
0x1a07   : > { %v12284_v37 = vadd.f32 %v17443_v50, %v17408_v51 }
0x1a1b   : > { %v17511_v15 = vpop.f32.mrb[32].mxu0 }
0x1a1c   : > { %v17512_v48 = vpop.f32.mrb[33].mxu0 }
0x1a1d   : > { %v17513_v29 = vadd.f32 %v17512_v48, %v17511_v15 }
0x1a23   : > { %v17476_v41 = vpop.f32.mrb[36].mxu1 }
0x1a24   : > { %v17477_v40 = vpop.f32.mrb[37].mxu1 }
0x1a25   : > { %v17478_v47 = vadd.f32 %v17477_v40, %v17476_v41 }
0x1a27   : > { %v12422_v20 = vadd.f32 %v17478_v47, %v12284_v37 }
0x1a29   : > { %v12530_v38 = vadd.f32 %v17513_v29, %v12422_v20 }
0x1a3c   : > { %v17581_v31 = vpop.f32.mrb[34].mxu0 }
0x1a3d   : > { %v17582_v63 = vpop.f32.mrb[35].mxu0 }
0x1a3e   : > { %v17583_v4 = vadd.f32 %v17582_v63, %v17581_v31 }
0x1a43   : > { %v17546_v0 = vpop.f32.mrb[38].mxu1 }
0x1a44   : > { %v17547_v13 = vpop.f32.mrb[39].mxu1 }
0x1a45   : > { %v17548_v45 = vadd.f32 %v17547_v13, %v17546_v0 }
0x1a47   : > { %v12698_v12 = vadd.f32 %v17548_v45, %v12530_v38 }
0x1a49   : > { %v12802_v62 = vadd.f32 %v17583_v4, %v12698_v12  ;;  %v30836_v12 = vld [vmem:[#allocation284_spill] sm:$0xff] }
0x1a71   : > { %v13273_v42 = vpop.f32.mrb[40].mxu1 }
0x1a72   : > { %v21973_v30 = vadd.f32 %v13273_v42, %v12802_v62  ;;  %v18819_v60 = vpop.f32.mrb[41].mxu1 }
0x1a74   : > { %13278 = vrot.lane.b32.xlu0 %v21973_v30, %s22215_s18 }
0x1ae6   : > { %v13279_v3 = vpop.permute.xlu0 %13278 }
0x1ae7   : > { %13281 = vst.msk [vmem:[#allocation4] sm:$0xff] %vm5422_vm0, %v13279_v3 }
0x1aee   : > { %v28025_v1 = vld [vmem:[#allocation4] sm:$0xff] }
0x1aef   : > { %v13283_v28 = vmax.f32 %v28025_v1, 0.0 }
0x1af1   : > { %13287 = vrot.lane.b32.xlu0 %v13283_v28, %s22205_s25  ;;  %13285 = vrot.lane.b32.xlu1 %v13283_v28, %s22203_s23 }
0x1af5   : > { %13291 = vrot.lane.b32.xlu0 %v13283_v28, %s22216_s19  ;;  %13289 = vrot.lane.b32.xlu1 %v13283_v28, %s22217_s12 }
0x1af9   : > { %13295 = vrot.lane.b32.xlu0 %v13283_v28, %s22207_s27  ;;  %13293 = vrot.lane.b32.xlu1 %v13283_v28, %s30833_s21 }
0x1afd   : > { %13299 = vrot.lane.b32.xlu0 %v13283_v28, %s30834_s14  ;;  %13297 = vrot.lane.b32.xlu1 %v13283_v28, %s30835_s17 }
0x1b01   : > { %13301 = vrot.lane.b32.xlu1 %v13283_v28, %s22210_s30 }
0x1b63   : > { %v13288_v18 = vpop.permute.xlu0 %13287  ;;  %v13286_v16 = vpop.permute.xlu1 %13285 }
0x1b64   : > { %13305 = vrot.lane.b32.xlu1 %v13288_v18, %s22210_s30  ;;  %13303 = vrot.lane.b32.xlu0 %v13286_v16, %s22210_s30 }
0x1b67   : > { %v13292_v44 = vpop.permute.xlu0 %13291  ;;  %v13290_v52 = vpop.permute.xlu1 %13289 }
0x1b68   : > { %13309 = vrot.lane.b32.xlu1 %v13292_v44, %s22210_s30  ;;  %13307 = vrot.lane.b32.xlu0 %v13290_v52, %s22210_s30 }
0x1b6b   : > { %v13296_v6 = vpop.permute.xlu0 %13295  ;;  %v13294_v19 = vpop.permute.xlu1 %13293 }
0x1b6c   : > { %13313 = vrot.lane.b32.xlu1 %v13296_v6, %s22210_s30  ;;  %13311 = vrot.lane.b32.xlu0 %v13294_v19, %s22210_s30 }
0x1b6f   : > { %v13300_v56 = vpop.permute.xlu0 %13299  ;;  %v13298_v59 = vpop.permute.xlu1 %13297 }
0x1b70   : > { %13317 = vrot.lane.b32.xlu1 %v13300_v56, %s22210_s30  ;;  %13315 = vrot.lane.b32.xlu0 %v13298_v59, %s22210_s30 }
0x1b73   : > { %v13302_v17 = vpop.permute.xlu1 %13301 }
0x1b74   : > { %v13329_v9 = vand.u32 4294901760, %v13302_v17 }
0x1b76   : > { %v28051_v8 = vsub.f32 %v13302_v17, %v13329_v9 }
0x1b78   : > { %v13415_v27 = vand.u32 4294901760, %v28051_v8 }
0x1b7a   : > { %v13416_v57 = vsub.f32 %v28051_v8, %v13415_v27 }
0x1b7c   : > { %v13417_v47 = vand.u32 4294901760, %v13416_v57 }
0x1bd6   : > { %v13304_v34 = vpop.permute.xlu0 %13303  ;;  %v13306_v36 = vpop.permute.xlu1 %13305 }
0x1bd7   : > { %v13332_v35 = vand.u32 4294901760, %v13304_v34  ;;  %v13335_v58 = vand.u32 4294901760, %v13306_v36 }
0x1bd9   : > { %v28045_v14 = vpack.c.bf16 %v13332_v35, %v13329_v9  ;;  %v28048_v11 = vsub.f32 %v13304_v34, %v13332_v35  ;;  %v28061_v23 = vsub.f32 %v13306_v36, %v13335_v58  ;;  %v30837_v9 = vld [vmem:[#allocation281_spill] sm:$0xff] }
0x1bda   : > { %v13308_v43 = vpop.permute.xlu0 %13307  ;;  %v13310_v22 = vpop.permute.xlu1 %13309 }
0x1bdb   : > { %v13338_v2 = vand.u32 4294901760, %v13308_v43  ;;  %21582 = vmatpush3.bf16.msra.mxu0 %v28045_v14  ;;  %v13422_v32 = vand.u32 4294901760, %v28048_v11  ;;  %v13341_v7 = vand.u32 4294901760, %v13310_v22  ;;  %v13429_v51 = vand.u32 4294901760, %v28061_v23 }
0x1bdc   : > { %21583 = vmatprep.subr.bf16.mxu0 %v30377_v46  ;;  %v21605_v36 = vpack.c.bf16 %v28048_v11, %v28051_v8 }
0x1bdd   : > { %v28053_v21 = vpack.c.bf16 %v13338_v2, %v13335_v58  ;;  %v28057_v10 = vsub.f32 %v13308_v43, %v13338_v2  ;;  %v13423_v5 = vsub.f32 %v28048_v11, %v13422_v32  ;;  %v28079_v37 = vsub.f32 %v13310_v22, %v13341_v7  ;;  %v30838_v58 = vld [vmem:[#allocation282_spill] sm:$0xff] }
0x1bde   : > { %v13312_v39 = vpop.permute.xlu0 %13311  ;;  %v13314_v25 = vpop.permute.xlu1 %13313  ;;  %v13430_v20 = vsub.f32 %v28061_v23, %v13429_v51  ;;  %v21629_v2 = vpack.c.bf16 %v13422_v32, %v13415_v27 }
0x1bdf   : > { %21585 = vmatpush3.bf16.msra.mxu0 %v28053_v21  ;;  %v13344_v49 = vand.u32 4294901760, %v13312_v39  ;;  %v13347_v53 = vand.u32 4294901760, %v13314_v25  ;;  %v13436_v54 = vand.u32 4294901760, %v28057_v10  ;;  %v13424_v48 = vand.u32 4294901760, %v13423_v5 }
0x1be0   : > { %21586 = vmatprep.subr.bf16.mxu0 %v30377_v46  ;;  %v13443_v38 = vand.u32 4294901760, %v28079_v37  ;;  %v13431_v62 = vand.u32 4294901760, %v13430_v20  ;;  %v21608_v35 = vpack.c.bf16 %v28057_v10, %v28061_v23 }
0x1be1   : > { %v28063_v26 = vpack.c.bf16 %v13344_v49, %v13341_v7  ;;  %v28069_v50 = vsub.f32 %v13312_v39, %v13344_v49  ;;  %v13437_v29 = vsub.f32 %v28057_v10, %v13436_v54  ;;  %v28093_v31 = vsub.f32 %v13314_v25, %v13347_v53  ;;  %v30839_v39 = vld [vmem:[#allocation283_spill] sm:$0xff]  ;;  %v30863_v49 = vld [vmem:[#allocation28_spill] sm:$0xff] }
0x1be2   : > { %v13316_v55 = vpop.permute.xlu0 %13315  ;;  %v13318_v15 = vpop.permute.xlu1 %13317  ;;  %v21593_v45 = vpack.c.bf16 %v13424_v48, %v13417_v47  ;;  %v13444_v42 = vsub.f32 %v28079_v37, %v13443_v38  ;;  %v21632_v7 = vpack.c.bf16 %v13436_v54, %v13429_v51 }
0x1be3   : > { %v13350_v61 = vand.u32 4294901760, %v13316_v55  ;;  %21588 = vmatpush3.bf16.msra.mxu0 %v28063_v26  ;;  %v13450_v41 = vand.u32 4294901760, %v28069_v50  ;;  %v28095_v63 = vand.u32 4294901760, %v13318_v15  ;;  %v13438_v4 = vand.u32 4294901760, %v13437_v29 }
0x1be4   : > { %21589 = vmatprep.subr.bf16.mxu0 %v30377_v46  ;;  %v13457_v30 = vand.u32 4294901760, %v28093_v31  ;;  %v13445_v16 = vand.u32 4294901760, %v13444_v42  ;;  %v21611_v43 = vpack.c.bf16 %v28069_v50, %v28079_v37 }
0x1be5   : > { %v28075_v24 = vpack.c.bf16 %v13350_v61, %v13347_v53  ;;  %v28085_v40 = vsub.f32 %v13316_v55, %v13350_v61  ;;  %v13451_v0 = vsub.f32 %v28069_v50, %v13450_v41  ;;  %v13470_v28 = vsub.f32 %v13318_v15, %v28095_v63 }
0x1be6   : > { %v21596_v18 = vpack.c.bf16 %v13438_v4, %v13431_v62  ;;  %v13458_v44 = vsub.f32 %v28093_v31, %v13457_v30  ;;  %v21635_v11 = vpack.c.bf16 %v13450_v41, %v13443_v38 }
0x1be7   : > { %21591 = vmatpush3.bf16.msra.mxu0 %v28075_v24  ;;  %v13464_v13 = vand.u32 4294901760, %v28085_v40  ;;  %v13452_v60 = vand.u32 4294901760, %v13451_v0  ;;  %v13471_v6 = vand.u32 4294901760, %v13470_v28  ;;  %v21614_v22 = vpack.c.bf16 %v28085_v40, %v28093_v31 }
0x1be8   : > { %18836 = vmatprep.subr.mxu0 %v30380_v33  ;;  %v13459_v56 = vand.u32 4294901760, %v13458_v44 }
0x1be9   : > { %v13465_v3 = vsub.f32 %v28085_v40, %v13464_v13  ;;  %v21599_v19 = vpack.c.bf16 %v13452_v60, %v13445_v16  ;;  %v13472_v59 = vsub.f32 %v13470_v28, %v13471_v6  ;;  %v21638_v8 = vpack.c.bf16 %v13464_v13, %v13457_v30 }
0x1beb   : > { %18837 = vmatpush3.msra.mxu0 %v28095_v63  ;;  %v13466_v52 = vand.u32 4294901760, %v13465_v3  ;;  %v13473_v34 = vand.u32 4294901760, %v13472_v59 }
0x1bec   : > { %21592 = vmatprep.subr.bf16.mxu0 %v30377_v46  ;;  %18839 = vmatmul.mubr.f32.vlgmr.msra.gmra.mrb[36].mxu0 %v30836_v12 }
0x1bed   : > { %21594 = vmatpush3.bf16.msra.mxu0 %v21593_v45  ;;  %18859 = vmatprep.mubr.msk.f32.mxu0 %vm22213_vm2, %v30380_v33  ;;  %v21602_v17 = vpack.c.bf16 %v13466_v52, %v13459_v56 }
0x1bee   : > { %21595 = vmatprep.subr.bf16.mxu0 %v30377_v46 }
0x1bf1   : > { %21597 = vmatpush3.bf16.msra.mxu0 %v21596_v18 }
0x1bf2   : > { %21598 = vmatprep.subr.bf16.mxu0 %v30377_v46 }
0x1bf5   : > { %21600 = vmatpush3.bf16.msra.mxu0 %v21599_v19 }
0x1bf6   : > { %21601 = vmatprep.subr.bf16.mxu0 %v30377_v46 }
0x1bf9   : > { %21603 = vmatpush3.bf16.msra.mxu0 %v21602_v17 }
0x1bfa   : > { %18857 = vmatprep.subr.mxu0 %v30380_v33 }
0x1bfd   : > { %18858 = vmatpush3.msra.mxu0 %v13473_v34 }
0x1bfe   : > { %21604 = vmatprep.subr.bf16.mxu0 %v30377_v46  ;;  %18860 = vmatmul.mubr.f32.vlgmr.msra.gmra.mrb[36].mxu0 %v30837_v9 }
0x1bff   : > { %21606 = vmatpush3.bf16.msra.mxu0 %v21605_v36  ;;  %18880 = vmatprep.mubr.msk.f32.mxu0 %vm22213_vm2, %v30380_v33 }
0x1c00   : > { %21607 = vmatprep.subr.bf16.mxu0 %v30377_v46 }
0x1c03   : > { %21609 = vmatpush3.bf16.msra.mxu0 %v21608_v35 }
0x1c04   : > { %21610 = vmatprep.subr.bf16.mxu0 %v30377_v46 }
0x1c07   : > { %21612 = vmatpush3.bf16.msra.mxu0 %v21611_v43 }
0x1c08   : > { %21613 = vmatprep.subr.bf16.mxu0 %v30377_v46 }
0x1c0b   : > { %21615 = vmatpush3.bf16.msra.mxu0 %v21614_v22 }
0x1c0c   : > { %18878 = vmatprep.subr.mxu0 %v30380_v33 }
0x1c0f   : > { %18879 = vmatpush3.msra.mxu0 %v13470_v28 }
0x1c10   : > { %21616 = vmatprep.subr.bf16.mxu0 %v30377_v46  ;;  %18881 = vmatmul.mubr.f32.vlgmr.msra.gmra.mrb[36].mxu0 %v30838_v58 }
0x1c11   : > { %21618 = vmatpush3.bf16.msra.mxu0 %v28045_v14  ;;  %18901 = vmatprep.mubr.msk.f32.mxu0 %vm22213_vm2, %v30380_v33 }
0x1c12   : > { %21619 = vmatprep.subr.bf16.mxu0 %v30377_v46 }
0x1c15   : > { %21621 = vmatpush3.bf16.msra.mxu0 %v28053_v21 }
0x1c16   : > { %21622 = vmatprep.subr.bf16.mxu0 %v30377_v46 }
0x1c19   : > { %21624 = vmatpush3.bf16.msra.mxu0 %v28063_v26 }
0x1c1a   : > { %21625 = vmatprep.subr.bf16.mxu0 %v30377_v46 }
0x1c1d   : > { %21627 = vmatpush3.bf16.msra.mxu0 %v28075_v24 }
0x1c1e   : > { %18899 = vmatprep.subr.mxu0 %v30380_v33 }
0x1c21   : > { %18900 = vmatpush3.msra.mxu0 %v28095_v63 }
0x1c22   : > { %21628 = vmatprep.subr.bf16.mxu0 %v30377_v46  ;;  %18902 = vmatmul.mubr.f32.vlgmr.msra.gmra.mrb[36].mxu0 %v30839_v39 }
0x1c23   : > { %21630 = vmatpush3.bf16.msra.mxu0 %v21629_v2  ;;  %18922 = vmatprep.mubr.msk.f32.mxu0 %vm22213_vm2, %v30380_v33 }
0x1c24   : > { %21631 = vmatprep.subr.bf16.mxu0 %v30377_v46 }
0x1c27   : > { %21633 = vmatpush3.bf16.msra.mxu0 %v21632_v7 }
0x1c28   : > { %21634 = vmatprep.subr.bf16.mxu0 %v30377_v46 }
0x1c2b   : > { %21636 = vmatpush3.bf16.msra.mxu0 %v21635_v11 }
0x1c2c   : > { %21637 = vmatprep.subr.bf16.mxu0 %v30377_v46 }
0x1c2f   : > { %21639 = vmatpush3.bf16.msra.mxu0 %v21638_v8 }
0x1c30   : > { %18920 = vmatprep.subr.mxu0 %v30380_v33 }
0x1c33   : > { %18921 = vmatpush3.msra.mxu0 %v13471_v6 }
0x1c34   : > { %21640 = vmatprep.subr.bf16.mxu0 %v30377_v46  ;;  %18923 = vmatmul.mubr.f32.vlgmr.msra.gmra.mrb[36].mxu0 %v30837_v9 }
0x1c35   : > { %21642 = vmatpush3.bf16.msra.mxu0 %v28045_v14  ;;  %18943 = vmatprep.mubr.msk.f32.mxu0 %vm22213_vm2, %v30380_v33 }
0x1c36   : > { %21643 = vmatprep.subr.bf16.mxu0 %v30377_v46 }
0x1c39   : > { %21645 = vmatpush3.bf16.msra.mxu0 %v28053_v21  ;;  %v30840_v21 = vld [vmem:[#allocation285_spill] sm:$0xff] }
0x1c3a   : > { %21646 = vmatprep.subr.bf16.mxu0 %v30377_v46 }
0x1c3d   : > { %21648 = vmatpush3.bf16.msra.mxu0 %v28063_v26 }
0x1c3e   : > { %21649 = vmatprep.subr.bf16.mxu0 %v30377_v46 }
0x1c41   : > { %21651 = vmatpush3.bf16.msra.mxu0 %v28075_v24 }
0x1c42   : > { %18941 = vmatprep.subr.mxu0 %v30380_v33 }
0x1c45   : > { %18942 = vmatpush3.msra.mxu0 %v28095_v63 }
0x1c46   : > { %18944 = vmatmul.mubr.f32.vlgmr.msra.gmra.mrb[36].mxu0 %v30837_v9  ;;  %21724 = vmatprep.subr.bf16.mxu0 %v30377_v46 }
0x1c47   : > { %19090 = vmatprep.mubr.msk.f32.mxu0 %vm22213_vm2, %v30380_v33 }
0x1d19   : > { %v13874_v14 = vpop.f32.mrb[36].mxu0 }
0x1d1a   : > { %v21974_v32 = vadd.f32 %v13874_v14, %v30840_v21  ;;  %v18945_v10 = vpop.f32.mrb[37].mxu0  ;;  %v30842_v21 = vld [vmem:[#allocation289_spill] sm:$0xff] }
0x1d1c   : > { %v13878_v25 = vsel %vm6034_vm3, %v21974_v32, 0.0 }
0x1d1d   : > { %13880 = vrot.lane.b32.xlu0 %v13878_v25, %s22215_s18 }
0x1d8f   : > { %v13881_v27 = vpop.permute.xlu0 %13880 }
0x1d90   : > { %13883 = vst.msk [vmem:[#allocation5] sm:$0xff] %vm5422_vm0, %v13881_v27 }
0x1d97   : > { %v13884_v23 = vld [vmem:[#allocation5] sm:$0xff] }
0x1d98   : > { %v13885_v26 = vmax.f32 %v13884_v23, 0.0 }
0x1d9a   : > { %13889 = vrot.lane.b32.xlu0 %v13885_v26, %s22205_s25  ;;  %13887 = vrot.lane.b32.xlu1 %v13885_v26, %s22203_s23 }
0x1d9e   : > { %13893 = vrot.lane.b32.xlu0 %v13885_v26, %s22216_s19  ;;  %13891 = vrot.lane.b32.xlu1 %v13885_v26, %s22217_s12 }
0x1da2   : > { %13897 = vrot.lane.b32.xlu0 %v13885_v26, %s22207_s27  ;;  %13895 = vrot.lane.b32.xlu1 %v13885_v26, %s30833_s21 }
0x1da6   : > { %13901 = vrot.lane.b32.xlu0 %v13885_v26, %s30834_s14  ;;  %13899 = vrot.lane.b32.xlu1 %v13885_v26, %s30835_s17 }
0x1daa   : > { %13903 = vrot.lane.b32.xlu1 %v13885_v26, %s22210_s30 }
0x1e0c   : > { %v13890_v55 = vpop.permute.xlu0 %13889  ;;  %v13888_v53 = vpop.permute.xlu1 %13887 }
0x1e0d   : > { %13907 = vrot.lane.b32.xlu1 %v13890_v55, %s22210_s30  ;;  %13905 = vrot.lane.b32.xlu0 %v13888_v53, %s22210_s30 }
0x1e10   : > { %v13894_v61 = vpop.permute.xlu0 %13893  ;;  %v13892_v5 = vpop.permute.xlu1 %13891 }
0x1e11   : > { %13911 = vrot.lane.b32.xlu1 %v13894_v61, %s22210_s30  ;;  %13909 = vrot.lane.b32.xlu0 %v13892_v5, %s22210_s30 }
0x1e14   : > { %v13898_v54 = vpop.permute.xlu0 %13897  ;;  %v13896_v50 = vpop.permute.xlu1 %13895 }
0x1e15   : > { %13915 = vrot.lane.b32.xlu1 %v13898_v54, %s22210_s30  ;;  %13913 = vrot.lane.b32.xlu0 %v13896_v50, %s22210_s30 }
0x1e18   : > { %v13902_v57 = vpop.permute.xlu0 %13901  ;;  %v13900_v24 = vpop.permute.xlu1 %13899 }
0x1e19   : > { %13919 = vrot.lane.b32.xlu1 %v13902_v57, %s22210_s30  ;;  %13917 = vrot.lane.b32.xlu0 %v13900_v24, %s22210_s30 }
0x1e1c   : > { %v13904_v51 = vpop.permute.xlu1 %13903 }
0x1e1d   : > { %14483 = vrot.lane.b32.xlu0 %v28025_v1, %s22202_s22  ;;  %v13931_v48 = vand.u32 4294901760, %v13904_v51 }
0x1e1f   : > { %v28221_v63 = vsub.f32 %v13904_v51, %v13931_v48 }
0x1e21   : > { %v14017_v42 = vand.u32 4294901760, %v28221_v63 }
0x1e23   : > { %v14018_v6 = vsub.f32 %v28221_v63, %v14017_v42 }
0x1e25   : > { %v14019_v43 = vand.u32 4294901760, %v14018_v6 }
0x1e7f   : > { %v13906_v37 = vpop.permute.xlu0 %13905  ;;  %v13908_v15 = vpop.permute.xlu1 %13907 }
0x1e80   : > { %v13934_v29 = vand.u32 4294901760, %v13906_v37  ;;  %v13937_v20 = vand.u32 4294901760, %v13908_v15 }
0x1e82   : > { %v28215_v41 = vpack.c.bf16 %v13934_v29, %v13931_v48  ;;  %v28218_v31 = vsub.f32 %v13906_v37, %v13934_v29  ;;  %v28231_v30 = vsub.f32 %v13908_v15, %v13937_v20  ;;  %v30843_v48 = vld [vmem:[#allocation286_spill] sm:$0xff] }
0x1e83   : > { %v13910_v40 = vpop.permute.xlu0 %13909  ;;  %v13912_v47 = vpop.permute.xlu1 %13911 }
0x1e84   : > { %v13940_v38 = vand.u32 4294901760, %v13910_v40  ;;  %21654 = vmatpush3.bf16.msra.mxu1 %v28215_v41  ;;  %v14024_v0 = vand.u32 4294901760, %v28218_v31  ;;  %v13943_v45 = vand.u32 4294901760, %v13912_v47  ;;  %v14031_v56 = vand.u32 4294901760, %v28231_v30 }
0x1e85   : > { %21655 = vmatprep.subr.bf16.mxu1 %v30377_v46  ;;  %v21677_v15 = vpack.c.bf16 %v28218_v31, %v28221_v63 }
0x1e86   : > { %v28223_v1 = vpack.c.bf16 %v13940_v38, %v13937_v20  ;;  %v28227_v13 = vsub.f32 %v13910_v40, %v13940_v38  ;;  %v14025_v16 = vsub.f32 %v28218_v31, %v14024_v0  ;;  %v28249_v59 = vsub.f32 %v13912_v47, %v13943_v45  ;;  %v30844_v20 = vld [vmem:[#allocation287_spill] sm:$0xff] }
0x1e87   : > { %v13914_v4 = vpop.permute.xlu0 %13913  ;;  %v13916_v62 = vpop.permute.xlu1 %13915  ;;  %v14032_v22 = vsub.f32 %v28231_v30, %v14031_v56  ;;  %v21701_v38 = vpack.c.bf16 %v14024_v0, %v14017_v42 }
0x1e88   : > { %21657 = vmatpush3.bf16.msra.mxu1 %v28223_v1  ;;  %v13946_v12 = vand.u32 4294901760, %v13914_v4  ;;  %v13949_v28 = vand.u32 4294901760, %v13916_v62  ;;  %v14038_v44 = vand.u32 4294901760, %v28227_v13  ;;  %v14026_v34 = vand.u32 4294901760, %v14025_v16 }
0x1e89   : > { %21658 = vmatprep.subr.bf16.mxu1 %v30377_v46  ;;  %v14045_v58 = vand.u32 4294901760, %v28249_v59  ;;  %v14033_v32 = vand.u32 4294901760, %v14032_v22  ;;  %v21680_v29 = vpack.c.bf16 %v28227_v13, %v28231_v30 }
0x1e8a   : > { %v28233_v60 = vpack.c.bf16 %v13946_v12, %v13943_v45  ;;  %v28239_v52 = vsub.f32 %v13914_v4, %v13946_v12  ;;  %v14039_v36 = vsub.f32 %v28227_v13, %v14038_v44  ;;  %v28263_v2 = vsub.f32 %v13916_v62, %v13949_v28  ;;  %v30845_v4 = vld [vmem:[#allocation288_spill] sm:$0xff] }
0x1e8b   : > { %v13918_v3 = vpop.permute.xlu0 %13917  ;;  %v13920_v17 = vpop.permute.xlu1 %13919  ;;  %v21665_v14 = vpack.c.bf16 %v14026_v34, %v14019_v43  ;;  %v14046_v10 = vsub.f32 %v28249_v59, %v14045_v58  ;;  %v21704_v45 = vpack.c.bf16 %v14038_v44, %v14031_v56 }
0x1e8c   : > { %v13952_v18 = vand.u32 4294901760, %v13918_v3  ;;  %21660 = vmatpush3.bf16.msra.mxu1 %v28233_v60  ;;  %v14052_v9 = vand.u32 4294901760, %v28239_v52  ;;  %v28265_v39 = vand.u32 4294901760, %v13920_v17  ;;  %v14040_v7 = vand.u32 4294901760, %v14039_v36 }
0x1e8d   : > { %21661 = vmatprep.subr.bf16.mxu1 %v30377_v46  ;;  %v14059_v25 = vand.u32 4294901760, %v28263_v2  ;;  %v14047_v53 = vand.u32 4294901760, %v14046_v10  ;;  %v21683_v40 = vpack.c.bf16 %v28239_v52, %v28249_v59 }
0x1e8e   : > { %v28245_v19 = vpack.c.bf16 %v13952_v18, %v13949_v28  ;;  %v28255_v35 = vsub.f32 %v13918_v3, %v13952_v18  ;;  %v14053_v11 = vsub.f32 %v28239_v52, %v14052_v9  ;;  %v14072_v26 = vsub.f32 %v13920_v17, %v28265_v39 }
0x1e8f   : > { %v21668_v55 = vpack.c.bf16 %v14040_v7, %v14033_v32  ;;  %v14060_v61 = vsub.f32 %v28263_v2, %v14059_v25  ;;  %v21707_v31 = vpack.c.bf16 %v14052_v9, %v14045_v58  ;;  %v14484_v12 = vpop.permute.xlu0 %14483 }
0x1e90   : > { %21663 = vmatpush3.bf16.msra.mxu1 %v28245_v19  ;;  %v14066_v8 = vand.u32 4294901760, %v28255_v35  ;;  %v14054_v27 = vand.u32 4294901760, %v14053_v11  ;;  %v14073_v54 = vand.u32 4294901760, %v14072_v26  ;;  %v21686_v47 = vpack.c.bf16 %v28255_v35, %v28263_v2 }
0x1e91   : > { %18962 = vmatprep.subr.mxu1 %v30380_v33  ;;  %v14061_v57 = vand.u32 4294901760, %v14060_v61 }
0x1e92   : > { %v14067_v23 = vsub.f32 %v28255_v35, %v14066_v8  ;;  %v21671_v50 = vpack.c.bf16 %v14054_v27, %v14047_v53  ;;  %v14074_v24 = vsub.f32 %v14072_v26, %v14073_v54  ;;  %v21710_v63 = vpack.c.bf16 %v14066_v8, %v14059_v25 }
0x1e94   : > { %18963 = vmatpush3.msra.mxu1 %v28265_v39  ;;  %v14068_v5 = vand.u32 4294901760, %v14067_v23  ;;  %v14075_v37 = vand.u32 4294901760, %v14074_v24 }
0x1e95   : > { %21664 = vmatprep.subr.bf16.mxu1 %v30377_v46  ;;  %18965 = vmatmul.mubr.f32.vlgmr.msra.gmra.mrb[42].mxu1 %v30842_v21 }
0x1e96   : > { %21666 = vmatpush3.bf16.msra.mxu1 %v21665_v14  ;;  %18985 = vmatprep.mubr.msk.f32.mxu1 %vm22213_vm2, %v30380_v33  ;;  %v21674_v51 = vpack.c.bf16 %v14068_v5, %v14061_v57 }
0x1e97   : > { %21667 = vmatprep.subr.bf16.mxu1 %v30377_v46 }
0x1e9a   : > { %21669 = vmatpush3.bf16.msra.mxu1 %v21668_v55 }
0x1e9b   : > { %21670 = vmatprep.subr.bf16.mxu1 %v30377_v46 }
0x1e9e   : > { %21672 = vmatpush3.bf16.msra.mxu1 %v21671_v50 }
0x1e9f   : > { %21673 = vmatprep.subr.bf16.mxu1 %v30377_v46 }
0x1ea2   : > { %21675 = vmatpush3.bf16.msra.mxu1 %v21674_v51 }
0x1ea3   : > { %18983 = vmatprep.subr.mxu1 %v30380_v33 }
0x1ea6   : > { %18984 = vmatpush3.msra.mxu1 %v14075_v37 }
0x1ea7   : > { %21676 = vmatprep.subr.bf16.mxu1 %v30377_v46  ;;  %18986 = vmatmul.mubr.f32.vlgmr.msra.gmra.mrb[42].mxu1 %v30843_v48 }
0x1ea8   : > { %21678 = vmatpush3.bf16.msra.mxu1 %v21677_v15  ;;  %19006 = vmatprep.mubr.msk.f32.mxu1 %vm22213_vm2, %v30380_v33 }
0x1ea9   : > { %21679 = vmatprep.subr.bf16.mxu1 %v30377_v46 }
0x1eac   : > { %21681 = vmatpush3.bf16.msra.mxu1 %v21680_v29 }
0x1ead   : > { %21682 = vmatprep.subr.bf16.mxu1 %v30377_v46 }
0x1eb0   : > { %21684 = vmatpush3.bf16.msra.mxu1 %v21683_v40 }
0x1eb1   : > { %21685 = vmatprep.subr.bf16.mxu1 %v30377_v46 }
0x1eb4   : > { %21687 = vmatpush3.bf16.msra.mxu1 %v21686_v47 }
0x1eb5   : > { %19004 = vmatprep.subr.mxu1 %v30380_v33 }
0x1eb8   : > { %19005 = vmatpush3.msra.mxu1 %v14072_v26 }
0x1eb9   : > { %21688 = vmatprep.subr.bf16.mxu1 %v30377_v46  ;;  %19007 = vmatmul.mubr.f32.vlgmr.msra.gmra.mrb[42].mxu1 %v30844_v20 }
0x1eba   : > { %21690 = vmatpush3.bf16.msra.mxu1 %v28215_v41  ;;  %19027 = vmatprep.mubr.msk.f32.mxu1 %vm22213_vm2, %v30380_v33 }
0x1ebb   : > { %21691 = vmatprep.subr.bf16.mxu1 %v30377_v46 }
0x1ebe   : > { %21693 = vmatpush3.bf16.msra.mxu1 %v28223_v1 }
0x1ebf   : > { %21694 = vmatprep.subr.bf16.mxu1 %v30377_v46 }
0x1ec2   : > { %21696 = vmatpush3.bf16.msra.mxu1 %v28233_v60 }
0x1ec3   : > { %21697 = vmatprep.subr.bf16.mxu1 %v30377_v46 }
0x1ec6   : > { %21699 = vmatpush3.bf16.msra.mxu1 %v28245_v19 }
0x1ec7   : > { %19025 = vmatprep.subr.mxu1 %v30380_v33 }
0x1eca   : > { %19026 = vmatpush3.msra.mxu1 %v28265_v39 }
0x1ecb   : > { %21700 = vmatprep.subr.bf16.mxu1 %v30377_v46  ;;  %19028 = vmatmul.mubr.f32.vlgmr.msra.gmra.mrb[42].mxu1 %v30845_v4 }
0x1ecc   : > { %21702 = vmatpush3.bf16.msra.mxu1 %v21701_v38  ;;  %19048 = vmatprep.mubr.msk.f32.mxu1 %vm22213_vm2, %v30380_v33 }
0x1ecd   : > { %21703 = vmatprep.subr.bf16.mxu1 %v30377_v46 }
0x1ed0   : > { %21705 = vmatpush3.bf16.msra.mxu1 %v21704_v45 }
0x1ed1   : > { %21706 = vmatprep.subr.bf16.mxu1 %v30377_v46 }
0x1ed4   : > { %21708 = vmatpush3.bf16.msra.mxu1 %v21707_v31 }
0x1ed5   : > { %21709 = vmatprep.subr.bf16.mxu1 %v30377_v46 }
0x1ed8   : > { %21711 = vmatpush3.bf16.msra.mxu1 %v21710_v63 }
0x1ed9   : > { %19046 = vmatprep.subr.mxu1 %v30380_v33 }
0x1edc   : > { %19047 = vmatpush3.msra.mxu1 %v14073_v54 }
0x1edd   : > { %21712 = vmatprep.subr.bf16.mxu1 %v30377_v46  ;;  %19049 = vmatmul.mubr.f32.vlgmr.msra.gmra.mrb[42].mxu1 %v30843_v48 }
0x1ede   : > { %21714 = vmatpush3.bf16.msra.mxu1 %v28215_v41  ;;  %19069 = vmatprep.mubr.msk.f32.mxu1 %vm22213_vm2, %v30380_v33 }
0x1edf   : > { %21715 = vmatprep.subr.bf16.mxu1 %v30377_v46 }
0x1ee2   : > { %21717 = vmatpush3.bf16.msra.mxu1 %v28223_v1  ;;  %v30846_v1 = vld [vmem:[#allocation290_spill] sm:$0xff] }
0x1ee3   : > { %21718 = vmatprep.subr.bf16.mxu1 %v30377_v46 }
0x1ee6   : > { %21720 = vmatpush3.bf16.msra.mxu1 %v28233_v60 }
0x1ee7   : > { %21721 = vmatprep.subr.bf16.mxu1 %v30377_v46 }
0x1eea   : > { %21723 = vmatpush3.bf16.msra.mxu1 %v28245_v19 }
0x1eeb   : > { %19067 = vmatprep.subr.mxu1 %v30380_v33 }
0x1eee   : > { %19068 = vmatpush3.msra.mxu1 %v28265_v39 }
0x1eef   : > { %19070 = vmatmul.mubr.f32.vlgmr.msra.gmra.mrb[42].mxu1 %v30843_v48  ;;  %21796 = vmatprep.subr.bf16.mxu1 %v30377_v46 }
0x1ef0   : > { %19216 = vmatprep.mubr.msk.f32.mxu1 %vm22213_vm2, %v30380_v33 }
0x1fc2   : > { %v14476_v41 = vpop.f32.mrb[42].mxu1 }
0x1fc3   : > { %v21975_v0 = vadd.f32 %v14476_v41, %v30846_v1  ;;  %v19071_v13 = vpop.f32.mrb[43].mxu1 }
0x1fc4   : > { %v30847_v13 = vld [vmem:[#allocation294_spill] sm:$0xff] }
0x1fc5   : > { %v14480_v62 = vsel %vm6034_vm3, %v21975_v0, 0.0 }
0x1fc6   : > { %v14486_v42 = vadd.f32 %v14484_v12, %v14480_v62 }
0x1fc8   : > { %14488 = vrot.lane.b32.xlu1 %v14486_v42, %s22215_s18 }
0x203a   : > { %v14489_v30 = vpop.permute.xlu1 %14488 }
0x203b   : > { %14491 = vst.msk [vmem:[#allocation6] sm:$0xff] %vm5422_vm0, %v14489_v30 }
0x2042   : > { %v28366_v60 = vld [vmem:[#allocation6] sm:$0xff] }
0x2043   : > { %v14493_v3 = vmax.f32 %v28366_v60, 0.0 }
0x2045   : > { %14497 = vrot.lane.b32.xlu1 %v14493_v3, %s22205_s25  ;;  %14495 = vrot.lane.b32.xlu0 %v14493_v3, %s22203_s23 }
0x2049   : > { %14501 = vrot.lane.b32.xlu1 %v14493_v3, %s22216_s19  ;;  %14499 = vrot.lane.b32.xlu0 %v14493_v3, %s22217_s12 }
0x204d   : > { %14505 = vrot.lane.b32.xlu1 %v14493_v3, %s22207_s27  ;;  %14503 = vrot.lane.b32.xlu0 %v14493_v3, %s30833_s21 }
0x2051   : > { %14509 = vrot.lane.b32.xlu1 %v14493_v3, %s30834_s14  ;;  %14507 = vrot.lane.b32.xlu0 %v14493_v3, %s30835_s17 }
0x2055   : > { %14511 = vrot.lane.b32.xlu0 %v14493_v3, %s22210_s30 }
0x20b7   : > { %v14498_v28 = vpop.permute.xlu1 %14497  ;;  %v14496_v18 = vpop.permute.xlu0 %14495 }
0x20b8   : > { %14515 = vrot.lane.b32.xlu0 %v14498_v28, %s22210_s30  ;;  %14513 = vrot.lane.b32.xlu1 %v14496_v18, %s22210_s30 }
0x20bb   : > { %v14502_v16 = vpop.permute.xlu1 %14501  ;;  %v14500_v44 = vpop.permute.xlu0 %14499 }
0x20bc   : > { %14519 = vrot.lane.b32.xlu0 %v14502_v16, %s22210_s30  ;;  %14517 = vrot.lane.b32.xlu1 %v14500_v44, %s22210_s30 }
0x20bf   : > { %v14506_v52 = vpop.permute.xlu1 %14505  ;;  %v14504_v6 = vpop.permute.xlu0 %14503 }
0x20c0   : > { %14523 = vrot.lane.b32.xlu0 %v14506_v52, %s22210_s30  ;;  %14521 = vrot.lane.b32.xlu1 %v14504_v6, %s22210_s30 }
0x20c3   : > { %v14510_v19 = vpop.permute.xlu1 %14509  ;;  %v14508_v56 = vpop.permute.xlu0 %14507 }
0x20c4   : > { %14527 = vrot.lane.b32.xlu0 %v14510_v19, %s22210_s30  ;;  %14525 = vrot.lane.b32.xlu1 %v14508_v56, %s22210_s30 }
0x20c7   : > { %v14512_v59 = vpop.permute.xlu0 %14511 }
0x20c8   : > { %v14539_v36 = vand.u32 4294901760, %v14512_v59 }
0x20ca   : > { %v28392_v7 = vsub.f32 %v14512_v59, %v14539_v36 }
0x20cc   : > { %v14625_v27 = vand.u32 4294901760, %v28392_v7 }
0x20ce   : > { %v14626_v57 = vsub.f32 %v28392_v7, %v14625_v27 }
0x20d0   : > { %v14627_v20 = vand.u32 4294901760, %v14626_v57 }
0x212a   : > { %v14514_v17 = vpop.permute.xlu1 %14513  ;;  %v14516_v34 = vpop.permute.xlu0 %14515 }
0x212b   : > { %v14542_v9 = vand.u32 4294901760, %v14514_v17  ;;  %v14545_v58 = vand.u32 4294901760, %v14516_v34 }
0x212d   : > { %v28386_v35 = vpack.c.bf16 %v14542_v9, %v14539_v36  ;;  %v28389_v39 = vsub.f32 %v14514_v17, %v14542_v9  ;;  %v28402_v23 = vsub.f32 %v14516_v34, %v14545_v58  ;;  %v30848_v9 = vld [vmem:[#allocation291_spill] sm:$0xff] }
0x212e   : > { %v14518_v43 = vpop.permute.xlu1 %14517  ;;  %v14520_v22 = vpop.permute.xlu0 %14519 }
0x212f   : > { %v14548_v2 = vand.u32 4294901760, %v14518_v43  ;;  %21726 = vmatpush3.bf16.msra.mxu0 %v28386_v35  ;;  %v14632_v14 = vand.u32 4294901760, %v28389_v39  ;;  %v14551_v32 = vand.u32 4294901760, %v14520_v22  ;;  %v14639_v51 = vand.u32 4294901760, %v28402_v23 }
0x2130   : > { %21727 = vmatprep.subr.bf16.mxu0 %v30377_v46  ;;  %v21749_v36 = vpack.c.bf16 %v28389_v39, %v28392_v7 }
0x2131   : > { %v28394_v11 = vpack.c.bf16 %v14548_v2, %v14545_v58  ;;  %v28398_v21 = vsub.f32 %v14518_v43, %v14548_v2  ;;  %v14633_v5 = vsub.f32 %v28389_v39, %v14632_v14  ;;  %v28420_v37 = vsub.f32 %v14520_v22, %v14551_v32  ;;  %v30849_v2 = vld [vmem:[#allocation292_spill] sm:$0xff] }
0x2132   : > { %v14522_v8 = vpop.permute.xlu1 %14521  ;;  %v14524_v25 = vpop.permute.xlu0 %14523  ;;  %v14640_v38 = vsub.f32 %v28402_v23, %v14639_v51 }
0x2133   : > { %21729 = vmatpush3.bf16.msra.mxu0 %v28394_v11  ;;  %v14554_v10 = vand.u32 4294901760, %v14522_v8  ;;  %v14557_v53 = vand.u32 4294901760, %v14524_v25  ;;  %v14646_v54 = vand.u32 4294901760, %v28398_v21  ;;  %v14634_v48 = vand.u32 4294901760, %v14633_v5 }
0x2134   : > { %21730 = vmatprep.subr.bf16.mxu0 %v30377_v46  ;;  %v14653_v4 = vand.u32 4294901760, %v28420_v37  ;;  %v14641_v12 = vand.u32 4294901760, %v14640_v38  ;;  %v21752_v43 = vpack.c.bf16 %v28398_v21, %v28402_v23  ;;  %v30856_v23 = vld [vmem:[#allocation295_spill] sm:$0xff] }
0x2135   : > { %v28404_v26 = vpack.c.bf16 %v14554_v10, %v14551_v32  ;;  %v28410_v50 = vsub.f32 %v14522_v8, %v14554_v10  ;;  %v14647_v29 = vsub.f32 %v28398_v21, %v14646_v54  ;;  %v28434_v45 = vsub.f32 %v14524_v25, %v14557_v53  ;;  %v30850_v32 = vld [vmem:[#allocation293_spill] sm:$0xff]  ;;  %v30854_v21 = vld [vmem:[#allocation16_spill] sm:$0xff]  ;;  %v30855_v25 = vld [vmem:[#allocation18_spill] sm:$0xff] }
0x2136   : > { %v14526_v55 = vpop.permute.xlu1 %14525  ;;  %v14528_v15 = vpop.permute.xlu0 %14527  ;;  %v21737_v0 = vpack.c.bf16 %v14634_v48, %v14627_v20  ;;  %v14654_v62 = vsub.f32 %v28420_v37, %v14653_v4  ;;  %v21773_v8 = vpack.c.bf16 %v14632_v14, %v14625_v27  ;;  %v21776_v10 = vpack.c.bf16 %v14646_v54, %v14639_v51  ;;  %v30853_v14 = vld [vmem:[#allocation13_spill] sm:$0xff] }
0x2137   : > { %v14560_v61 = vand.u32 4294901760, %v14526_v55  ;;  %21732 = vmatpush3.bf16.msra.mxu0 %v28404_v26  ;;  %v14660_v40 = vand.u32 4294901760, %v28410_v50  ;;  %v28436_v31 = vand.u32 4294901760, %v14528_v15  ;;  %v14648_v63 = vand.u32 4294901760, %v14647_v29 }
0x2138   : > { %21733 = vmatprep.subr.bf16.mxu0 %v30377_v46  ;;  %v14667_v42 = vand.u32 4294901760, %v28434_v45  ;;  %v14655_v16 = vand.u32 4294901760, %v14654_v62  ;;  %v21755_v22 = vpack.c.bf16 %v28410_v50, %v28420_v37 }
0x2139   : > { %v28416_v24 = vpack.c.bf16 %v14560_v61, %v14557_v53  ;;  %v28426_v47 = vsub.f32 %v14526_v55, %v14560_v61  ;;  %v14661_v41 = vsub.f32 %v28410_v50, %v14660_v40  ;;  %v14680_v28 = vsub.f32 %v14528_v15, %v28436_v31 }
0x213a   : > { %v21740_v18 = vpack.c.bf16 %v14648_v63, %v14641_v12  ;;  %v14668_v44 = vsub.f32 %v28434_v45, %v14667_v42  ;;  %v21779_v39 = vpack.c.bf16 %v14660_v40, %v14653_v4 }
0x213b   : > { %21735 = vmatpush3.bf16.msra.mxu0 %v28416_v24  ;;  %v14674_v1 = vand.u32 4294901760, %v28426_v47  ;;  %v14662_v30 = vand.u32 4294901760, %v14661_v41  ;;  %v14681_v6 = vand.u32 4294901760, %v14680_v28  ;;  %v21758_v58 = vpack.c.bf16 %v28426_v47, %v28434_v45 }
0x213c   : > { %19088 = vmatprep.subr.mxu0 %v30380_v33  ;;  %v14669_v56 = vand.u32 4294901760, %v14668_v44 }
0x213d   : > { %v14675_v3 = vsub.f32 %v28426_v47, %v14674_v1  ;;  %v21743_v19 = vpack.c.bf16 %v14662_v30, %v14655_v16  ;;  %v14682_v59 = vsub.f32 %v14680_v28, %v14681_v6  ;;  %v21782_v7 = vpack.c.bf16 %v14674_v1, %v14667_v42 }
0x213f   : > { %19089 = vmatpush3.msra.mxu0 %v28436_v31  ;;  %v14676_v52 = vand.u32 4294901760, %v14675_v3  ;;  %v14683_v34 = vand.u32 4294901760, %v14682_v59 }
0x2140   : > { %21736 = vmatprep.subr.bf16.mxu0 %v30377_v46  ;;  %19091 = vmatmul.mubr.f32.vlgmr.msra.gmra.mrb[38].mxu0 %v30847_v13 }
0x2141   : > { %21738 = vmatpush3.bf16.msra.mxu0 %v21737_v0  ;;  %19111 = vmatprep.mubr.msk.f32.mxu0 %vm22213_vm2, %v30380_v33  ;;  %v21746_v17 = vpack.c.bf16 %v14676_v52, %v14669_v56 }
0x2142   : > { %21739 = vmatprep.subr.bf16.mxu0 %v30377_v46 }
0x2145   : > { %21741 = vmatpush3.bf16.msra.mxu0 %v21740_v18 }
0x2146   : > { %21742 = vmatprep.subr.bf16.mxu0 %v30377_v46 }
0x2149   : > { %21744 = vmatpush3.bf16.msra.mxu0 %v21743_v19 }
0x214a   : > { %21745 = vmatprep.subr.bf16.mxu0 %v30377_v46 }
0x214d   : > { %21747 = vmatpush3.bf16.msra.mxu0 %v21746_v17 }
0x214e   : > { %19109 = vmatprep.subr.mxu0 %v30380_v33 }
0x2151   : > { %19110 = vmatpush3.msra.mxu0 %v14683_v34 }
0x2152   : > { %21748 = vmatprep.subr.bf16.mxu0 %v30377_v46  ;;  %19112 = vmatmul.mubr.f32.vlgmr.msra.gmra.mrb[38].mxu0 %v30848_v9 }
0x2153   : > { %21750 = vmatpush3.bf16.msra.mxu0 %v21749_v36  ;;  %19132 = vmatprep.mubr.msk.f32.mxu0 %vm22213_vm2, %v30380_v33 }
0x2154   : > { %21751 = vmatprep.subr.bf16.mxu0 %v30377_v46 }
0x2157   : > { %21753 = vmatpush3.bf16.msra.mxu0 %v21752_v43 }
0x2158   : > { %21754 = vmatprep.subr.bf16.mxu0 %v30377_v46 }
0x215b   : > { %21756 = vmatpush3.bf16.msra.mxu0 %v21755_v22 }
0x215c   : > { %21757 = vmatprep.subr.bf16.mxu0 %v30377_v46 }
0x215f   : > { %21759 = vmatpush3.bf16.msra.mxu0 %v21758_v58 }
0x2160   : > { %19130 = vmatprep.subr.mxu0 %v30380_v33 }
0x2163   : > { %19131 = vmatpush3.msra.mxu0 %v14680_v28 }
0x2164   : > { %21760 = vmatprep.subr.bf16.mxu0 %v30377_v46  ;;  %19133 = vmatmul.mubr.f32.vlgmr.msra.gmra.mrb[38].mxu0 %v30849_v2 }
0x2165   : > { %21762 = vmatpush3.bf16.msra.mxu0 %v28386_v35  ;;  %19153 = vmatprep.mubr.msk.f32.mxu0 %vm22213_vm2, %v30380_v33 }
0x2166   : > { %21763 = vmatprep.subr.bf16.mxu0 %v30377_v46 }
0x2169   : > { %21765 = vmatpush3.bf16.msra.mxu0 %v28394_v11 }
0x216a   : > { %21766 = vmatprep.subr.bf16.mxu0 %v30377_v46 }
0x216d   : > { %21768 = vmatpush3.bf16.msra.mxu0 %v28404_v26 }
0x216e   : > { %21769 = vmatprep.subr.bf16.mxu0 %v30377_v46 }
0x2171   : > { %21771 = vmatpush3.bf16.msra.mxu0 %v28416_v24 }
0x2172   : > { %19151 = vmatprep.subr.mxu0 %v30380_v33 }
0x2175   : > { %19152 = vmatpush3.msra.mxu0 %v28436_v31 }
0x2176   : > { %21772 = vmatprep.subr.bf16.mxu0 %v30377_v46  ;;  %19154 = vmatmul.mubr.f32.vlgmr.msra.gmra.mrb[38].mxu0 %v30850_v32 }
0x2177   : > { %21774 = vmatpush3.bf16.msra.mxu0 %v21773_v8  ;;  %19174 = vmatprep.mubr.msk.f32.mxu0 %vm22213_vm2, %v30380_v33 }
0x2178   : > { %21775 = vmatprep.subr.bf16.mxu0 %v30377_v46 }
0x217b   : > { %21777 = vmatpush3.bf16.msra.mxu0 %v21776_v10 }
0x217c   : > { %21778 = vmatprep.subr.bf16.mxu0 %v30377_v46 }
0x217f   : > { %21780 = vmatpush3.bf16.msra.mxu0 %v21779_v39 }
0x2180   : > { %21781 = vmatprep.subr.bf16.mxu0 %v30377_v46 }
0x2183   : > { %21783 = vmatpush3.bf16.msra.mxu0 %v21782_v7 }
0x2184   : > { %19172 = vmatprep.subr.mxu0 %v30380_v33 }
0x2187   : > { %19173 = vmatpush3.msra.mxu0 %v14681_v6 }
0x2188   : > { %21784 = vmatprep.subr.bf16.mxu0 %v30377_v46  ;;  %19175 = vmatmul.mubr.f32.vlgmr.msra.gmra.mrb[38].mxu0 %v30848_v9 }
0x2189   : > { %21786 = vmatpush3.bf16.msra.mxu0 %v28386_v35  ;;  %19195 = vmatprep.mubr.msk.f32.mxu0 %vm22213_vm2, %v30380_v33  ;;  %v30851_v35 = vld [vmem:[#allocation9_spill] sm:$0xff] }
0x218a   : > { %21787 = vmatprep.subr.bf16.mxu0 %v30377_v46 }
0x218d   : > { %21789 = vmatpush3.bf16.msra.mxu0 %v28394_v11  ;;  %v30852_v11 = vld [vmem:[#allocation11_spill] sm:$0xff] }
0x218e   : > { %21790 = vmatprep.subr.bf16.mxu0 %v30377_v46 }
0x2191   : > { %21792 = vmatpush3.bf16.msra.mxu0 %v28404_v26 }
0x2192   : > { %21793 = vmatprep.subr.bf16.mxu0 %v30377_v46 }
0x2195   : > { %21795 = vmatpush3.bf16.msra.mxu0 %v28416_v24 }
0x2196   : > { %19193 = vmatprep.subr.mxu0 %v30380_v33 }
0x2199   : > { %19194 = vmatpush3.msra.mxu0 %v28436_v31 }
0x219a   : > { %19196 = vmatmul.mubr.f32.vlgmr.msra.gmra.mrb[38].mxu0 %v30848_v9  ;;  %21868 = vmatprep.subr.bf16.mxu0 %v30377_v46 }
0x219b   : > { %21870 = vmatpush3.bf16.msra.mxu0 %v30851_v35  ;;  %19344 = vmatprep.mubr.msk.f32.mxu0 %vm22213_vm2, %v30380_v33 }
0x219c   : > { %21871 = vmatprep.subr.bf16.mxu0 %v30377_v46 }
0x219f   : > { %21873 = vmatpush3.bf16.msra.mxu0 %v30852_v11 }
0x21a0   : > { %21874 = vmatprep.subr.bf16.mxu0 %v30377_v46 }
0x21a3   : > { %21876 = vmatpush3.bf16.msra.mxu0 %v30853_v14 }
0x21a4   : > { %21877 = vmatprep.subr.bf16.mxu0 %v30377_v46 }
0x21a7   : > { %21879 = vmatpush3.bf16.msra.mxu0 %v30854_v21 }
0x21a8   : > { %21880 = vmatprep.subr.bf16.mxu0 %v30377_v46 }
0x21ab   : > { %21882 = vmatpush3.bf16.msra.mxu0 %v30855_v25 }
0x21ac   : > { %21883 = vmatprep.subr.bf16.mxu0 %v30377_v46 }
0x226d   : > { %v15084_v27 = vpop.f32.mrb[38].mxu0 }
0x226e   : > { %v21976_v26 = vadd.f32 %v15084_v27, %v30856_v23  ;;  %v19197_v55 = vpop.f32.mrb[39].mxu0 }
0x2270   : > { %v15088_v53 = vsel %vm6034_vm3, %v21976_v26, 0.0 }
0x2271   : > { %15090 = vrot.lane.b32.xlu1 %v15088_v53, %s22215_s18 }
0x22e3   : > { %v15091_v61 = vpop.permute.xlu1 %15090 }
0x22e4   : > { %15093 = vst.msk [vmem:[#allocation5] sm:$0xff] %vm5422_vm0, %v15091_v61 }
0x22eb   : > { %v15094_v5 = vld [vmem:[#allocation5] sm:$0xff] }
0x22ec   : > { %v15095_v54 = vmax.f32 %v15094_v5, 0.0  ;;  %v30857_v5 = vld [vmem:[#allocation299_spill] sm:$0xff] }
0x22ee   : > { %15099 = vrot.lane.b32.xlu1 %v15095_v54, %s22205_s25  ;;  %15097 = vrot.lane.b32.xlu0 %v15095_v54, %s22203_s23 }
0x22f2   : > { %15103 = vrot.lane.b32.xlu1 %v15095_v54, %s22216_s19  ;;  %15101 = vrot.lane.b32.xlu0 %v15095_v54, %s22217_s12 }
0x22f6   : > { %15107 = vrot.lane.b32.xlu1 %v15095_v54, %s22207_s27  ;;  %15105 = vrot.lane.b32.xlu0 %v15095_v54, %s30833_s21 }
0x22fa   : > { %15111 = vrot.lane.b32.xlu1 %v15095_v54, %s30834_s14  ;;  %15109 = vrot.lane.b32.xlu0 %v15095_v54, %s30835_s17 }
0x22fe   : > { %15113 = vrot.lane.b32.xlu0 %v15095_v54, %s22210_s30 }
0x2360   : > { %v15100_v50 = vpop.permute.xlu1 %15099  ;;  %v15098_v57 = vpop.permute.xlu0 %15097 }
0x2361   : > { %15117 = vrot.lane.b32.xlu0 %v15100_v50, %s22210_s30  ;;  %15115 = vrot.lane.b32.xlu1 %v15098_v57, %s22210_s30 }
0x2364   : > { %v15104_v24 = vpop.permute.xlu1 %15103  ;;  %v15102_v51 = vpop.permute.xlu0 %15101 }
0x2365   : > { %15121 = vrot.lane.b32.xlu0 %v15104_v24, %s22210_s30  ;;  %15119 = vrot.lane.b32.xlu1 %v15102_v51, %s22210_s30 }
0x2368   : > { %v15108_v37 = vpop.permute.xlu1 %15107  ;;  %v15106_v15 = vpop.permute.xlu0 %15105 }
0x2369   : > { %15125 = vrot.lane.b32.xlu0 %v15108_v37, %s22210_s30  ;;  %15123 = vrot.lane.b32.xlu1 %v15106_v15, %s22210_s30 }
0x236c   : > { %v15112_v48 = vpop.permute.xlu1 %15111  ;;  %v15110_v29 = vpop.permute.xlu0 %15109 }
0x236d   : > { %15129 = vrot.lane.b32.xlu0 %v15112_v48, %s22210_s30  ;;  %15127 = vrot.lane.b32.xlu1 %v15110_v29, %s22210_s30 }
0x2370   : > { %v15114_v40 = vpop.permute.xlu0 %15113 }
0x2371   : > { %15693 = vrot.lane.b32.xlu1 %v28366_v60, %s22202_s22  ;;  %v15141_v38 = vand.u32 4294901760, %v15114_v40 }
0x2373   : > { %v28572_v13 = vsub.f32 %v15114_v40, %v15141_v38 }
0x2375   : > { %v15227_v18 = vand.u32 4294901760, %v28572_v13 }
0x2377   : > { %v15228_v34 = vsub.f32 %v28572_v13, %v15227_v18 }
0x2379   : > { %v15229_v10 = vand.u32 4294901760, %v15228_v34 }
0x23d3   : > { %v15116_v47 = vpop.permute.xlu1 %15115  ;;  %v15118_v20 = vpop.permute.xlu0 %15117 }
0x23d4   : > { %v15144_v4 = vand.u32 4294901760, %v15116_v47  ;;  %v15147_v41 = vand.u32 4294901760, %v15118_v20 }
0x23d6   : > { %v28566_v45 = vpack.c.bf16 %v15144_v4, %v15141_v38  ;;  %v28569_v0 = vsub.f32 %v15116_v47, %v15144_v4  ;;  %v28582_v16 = vsub.f32 %v15118_v20, %v15147_v41 }
0x23d7   : > { %v15120_v31 = vpop.permute.xlu1 %15119  ;;  %v15122_v63 = vpop.permute.xlu0 %15121 }
0x23d8   : > { %v15150_v1 = vand.u32 4294901760, %v15120_v31  ;;  %21798 = vmatpush3.bf16.msra.mxu1 %v28566_v45  ;;  %v15234_v62 = vand.u32 4294901760, %v28569_v0  ;;  %v15153_v30 = vand.u32 4294901760, %v15122_v63  ;;  %v15241_v9 = vand.u32 4294901760, %v28582_v16 }
0x23d9   : > { %21799 = vmatprep.subr.bf16.mxu1 %v30377_v46 }
0x23da   : > { %v28574_v60 = vpack.c.bf16 %v15150_v1, %v15147_v41  ;;  %v28578_v42 = vsub.f32 %v15120_v31, %v15150_v1  ;;  %v15235_v56 = vsub.f32 %v28569_v0, %v15234_v62  ;;  %v28600_v43 = vsub.f32 %v15122_v63, %v15153_v30  ;;  %v30858_v1 = vld [vmem:[#allocation296_spill] sm:$0xff] }
0x23db   : > { %v15124_v12 = vpop.permute.xlu1 %15123  ;;  %v15126_v28 = vpop.permute.xlu0 %15125  ;;  %v15242_v39 = vsub.f32 %v28582_v16, %v15241_v9  ;;  %v21821_v41 = vpack.c.bf16 %v28569_v0, %v28572_v13 }
0x23dc   : > { %21801 = vmatpush3.bf16.msra.mxu1 %v28574_v60  ;;  %v15156_v3 = vand.u32 4294901760, %v15124_v12  ;;  %v15159_v6 = vand.u32 4294901760, %v15126_v28  ;;  %v15248_v59 = vand.u32 4294901760, %v28578_v42  ;;  %v15236_v58 = vand.u32 4294901760, %v15235_v56 }
0x23dd   : > { %21802 = vmatprep.subr.bf16.mxu1 %v30377_v46  ;;  %v15255_v7 = vand.u32 4294901760, %v28600_v43  ;;  %v15243_v54 = vand.u32 4294901760, %v15242_v39  ;;  %v30870_v39 = vld [vmem:[#allocation55_spill] sm:$0xff] }
0x23de   : > { %v28584_v44 = vpack.c.bf16 %v15156_v3, %v15153_v30  ;;  %v28590_v17 = vsub.f32 %v15124_v12, %v15156_v3  ;;  %v15249_v2 = vsub.f32 %v28578_v42, %v15248_v59  ;;  %v28614_v27 = vsub.f32 %v15126_v28, %v15159_v6  ;;  %v30859_v28 = vld [vmem:[#allocation297_spill] sm:$0xff] }
0x23df   : > { %v15128_v52 = vpop.permute.xlu1 %15127  ;;  %v15130_v22 = vpop.permute.xlu0 %15129  ;;  %v21809_v61 = vpack.c.bf16 %v15236_v58, %v15229_v10  ;;  %v15256_v50 = vsub.f32 %v28600_v43, %v15255_v7  ;;  %v21824_v12 = vpack.c.bf16 %v28578_v42, %v28582_v16  ;;  %v30865_v58 = vld [vmem:[#allocation34_spill] sm:$0xff]  ;;  %v30869_v10 = vld [vmem:[#allocation49_spill] sm:$0xff] }
0x23e0   : > { %v15162_v19 = vand.u32 4294901760, %v15128_v52  ;;  %21804 = vmatpush3.bf16.msra.mxu1 %v28584_v44  ;;  %v15262_v8 = vand.u32 4294901760, %v28590_v17  ;;  %v28616_v23 = vand.u32 4294901760, %v15130_v22  ;;  %v15250_v26 = vand.u32 4294901760, %v15249_v2  ;;  %v30866_v2 = vld [vmem:[#allocation42_spill] sm:$0xff] }
0x23e1   : > { %21805 = vmatprep.subr.bf16.mxu1 %v30377_v46  ;;  %v15269_v57 = vand.u32 4294901760, %v28614_v27  ;;  %v15257_v48 = vand.u32 4294901760, %v15256_v50  ;;  %v21827_v30 = vpack.c.bf16 %v28590_v17, %v28600_v43  ;;  %v30862_v43 = vld [vmem:[#allocation23_spill] sm:$0xff] }
0x23e2   : > { %v28596_v36 = vpack.c.bf16 %v15162_v19, %v15159_v6  ;;  %v28606_v32 = vsub.f32 %v15128_v52, %v15162_v19  ;;  %v15263_v55 = vsub.f32 %v28590_v17, %v15262_v8  ;;  %v15282_v37 = vsub.f32 %v15130_v22, %v28616_v23  ;;  %v30860_v6 = vld [vmem:[#allocation298_spill] sm:$0xff]  ;;  %v30864_v22 = vld [vmem:[#allocation29_spill] sm:$0xff] }
0x23e3   : > { %v21812_v15 = vpack.c.bf16 %v15250_v26, %v15243_v54  ;;  %v15270_v29 = vsub.f32 %v28614_v27, %v15269_v57  ;;  %v21845_v52 = vpack.c.bf16 %v15234_v62, %v15227_v18  ;;  %v21848_v19 = vpack.c.bf16 %v15248_v59, %v15241_v9  ;;  %v30861_v62 = vld [vmem:[#allocation22_spill] sm:$0xff]  ;;  %v15694_v16 = vpop.permute.xlu1 %15693  ;;  %v30874_v26 = vld [vmem:[#allocation71_spill] sm:$0xff] }
0x23e4   : > { %21807 = vmatpush3.bf16.msra.mxu1 %v28596_v36  ;;  %v15276_v53 = vand.u32 4294901760, %v28606_v32  ;;  %v15264_v24 = vand.u32 4294901760, %v15263_v55  ;;  %v15283_v47 = vand.u32 4294901760, %v15282_v37  ;;  %v21830_v3 = vpack.c.bf16 %v28606_v32, %v28614_v27  ;;  %v30872_v27 = vld [vmem:[#allocation63_spill] sm:$0xff]  ;;  %v30875_v55 = vld [vmem:[#allocation74_spill] sm:$0xff] }
0x23e5   : > { %19214 = vmatprep.subr.mxu1 %v30380_v33  ;;  %v15271_v38 = vand.u32 4294901760, %v15270_v29  ;;  %v21851_v0 = vpack.c.bf16 %v15262_v8, %v15255_v7  ;;  %v30867_v8 = vld [vmem:[#allocation39_spill] sm:$0xff]  ;;  %v30871_v7 = vld [vmem:[#allocation58_spill] sm:$0xff] }
0x23e6   : > { %v15277_v51 = vsub.f32 %v28606_v32, %v15276_v53  ;;  %v21815_v20 = vpack.c.bf16 %v15264_v24, %v15257_v48  ;;  %v15284_v4 = vsub.f32 %v15282_v37, %v15283_v47  ;;  %v21854_v13 = vpack.c.bf16 %v15276_v53, %v15269_v57  ;;  %v30868_v32 = vld [vmem:[#allocation47_spill] sm:$0xff] }
0x23e7   : > { %v30876_v53 = vld [vmem:[#allocation79_spill] sm:$0xff] }
0x23e8   : > { %19215 = vmatpush3.msra.mxu1 %v28616_v23  ;;  %v15278_v40 = vand.u32 4294901760, %v15277_v51  ;;  %v15285_v63 = vand.u32 4294901760, %v15284_v4 }
0x23e9   : > { %21808 = vmatprep.subr.bf16.mxu1 %v30377_v46  ;;  %19217 = vmatmul.mubr.f32.vlgmr.msra.gmra.mrb[44].mxu1 %v30857_v5 }
0x23ea   : > { %21810 = vmatpush3.bf16.msra.mxu1 %v21809_v61  ;;  %19237 = vmatprep.mubr.msk.f32.mxu1 %vm22213_vm2, %v30380_v33  ;;  %v21818_v31 = vpack.c.bf16 %v15278_v40, %v15271_v38 }
0x23eb   : > { %21811 = vmatprep.subr.bf16.mxu1 %v30377_v46 }
0x23ee   : > { %21813 = vmatpush3.bf16.msra.mxu1 %v21812_v15 }
0x23ef   : > { %21814 = vmatprep.subr.bf16.mxu1 %v30377_v46 }
0x23f2   : > { %21816 = vmatpush3.bf16.msra.mxu1 %v21815_v20 }
0x23f3   : > { %21817 = vmatprep.subr.bf16.mxu1 %v30377_v46 }
0x23f6   : > { %21819 = vmatpush3.bf16.msra.mxu1 %v21818_v31 }
0x23f7   : > { %19235 = vmatprep.subr.mxu1 %v30380_v33 }
0x23fa   : > { %19236 = vmatpush3.msra.mxu1 %v15285_v63 }
0x23fb   : > { %21820 = vmatprep.subr.bf16.mxu1 %v30377_v46  ;;  %19238 = vmatmul.mubr.f32.vlgmr.msra.gmra.mrb[44].mxu1 %v30858_v1 }
0x23fc   : > { %21822 = vmatpush3.bf16.msra.mxu1 %v21821_v41  ;;  %19258 = vmatprep.mubr.msk.f32.mxu1 %vm22213_vm2, %v30380_v33 }
0x23fd   : > { %21823 = vmatprep.subr.bf16.mxu1 %v30377_v46 }
0x2400   : > { %21825 = vmatpush3.bf16.msra.mxu1 %v21824_v12 }
0x2401   : > { %21826 = vmatprep.subr.bf16.mxu1 %v30377_v46 }
0x2404   : > { %21828 = vmatpush3.bf16.msra.mxu1 %v21827_v30 }
0x2405   : > { %21829 = vmatprep.subr.bf16.mxu1 %v30377_v46 }
0x2408   : > { %21831 = vmatpush3.bf16.msra.mxu1 %v21830_v3 }
0x2409   : > { %19256 = vmatprep.subr.mxu1 %v30380_v33 }
0x240c   : > { %19257 = vmatpush3.msra.mxu1 %v15282_v37 }
0x240d   : > { %21832 = vmatprep.subr.bf16.mxu1 %v30377_v46  ;;  %19259 = vmatmul.mubr.f32.vlgmr.msra.gmra.mrb[44].mxu1 %v30859_v28 }
0x240e   : > { %21834 = vmatpush3.bf16.msra.mxu1 %v28566_v45  ;;  %19279 = vmatprep.mubr.msk.f32.mxu1 %vm22213_vm2, %v30380_v33 }
0x240f   : > { %21835 = vmatprep.subr.bf16.mxu1 %v30377_v46 }
0x2412   : > { %21837 = vmatpush3.bf16.msra.mxu1 %v28574_v60 }
0x2413   : > { %21838 = vmatprep.subr.bf16.mxu1 %v30377_v46 }
0x2416   : > { %21840 = vmatpush3.bf16.msra.mxu1 %v28584_v44 }
0x2417   : > { %21841 = vmatprep.subr.bf16.mxu1 %v30377_v46 }
0x241a   : > { %21843 = vmatpush3.bf16.msra.mxu1 %v28596_v36 }
0x241b   : > { %19277 = vmatprep.subr.mxu1 %v30380_v33 }
0x241e   : > { %19278 = vmatpush3.msra.mxu1 %v28616_v23 }
0x241f   : > { %21844 = vmatprep.subr.bf16.mxu1 %v30377_v46  ;;  %19280 = vmatmul.mubr.f32.vlgmr.msra.gmra.mrb[44].mxu1 %v30860_v6 }
0x2420   : > { %21846 = vmatpush3.bf16.msra.mxu1 %v21845_v52  ;;  %19300 = vmatprep.mubr.msk.f32.mxu1 %vm22213_vm2, %v30380_v33 }
0x2421   : > { %21847 = vmatprep.subr.bf16.mxu1 %v30377_v46 }
0x2424   : > { %21849 = vmatpush3.bf16.msra.mxu1 %v21848_v19 }
0x2425   : > { %21850 = vmatprep.subr.bf16.mxu1 %v30377_v46 }
0x2428   : > { %21852 = vmatpush3.bf16.msra.mxu1 %v21851_v0 }
0x2429   : > { %21853 = vmatprep.subr.bf16.mxu1 %v30377_v46 }
0x242c   : > { %21855 = vmatpush3.bf16.msra.mxu1 %v21854_v13 }
0x242d   : > { %19298 = vmatprep.subr.mxu1 %v30380_v33 }
0x2430   : > { %19299 = vmatpush3.msra.mxu1 %v15283_v47 }
0x2431   : > { %21856 = vmatprep.subr.bf16.mxu1 %v30377_v46  ;;  %19301 = vmatmul.mubr.f32.vlgmr.msra.gmra.mrb[44].mxu1 %v30858_v1 }
0x2432   : > { %21858 = vmatpush3.bf16.msra.mxu1 %v28566_v45  ;;  %19321 = vmatprep.mubr.msk.f32.mxu1 %vm22213_vm2, %v30380_v33 }
0x2433   : > { %21859 = vmatprep.subr.bf16.mxu1 %v30377_v46 }
0x2436   : > { %21861 = vmatpush3.bf16.msra.mxu1 %v28574_v60 }
0x2437   : > { %21862 = vmatprep.subr.bf16.mxu1 %v30377_v46 }
0x243a   : > { %21864 = vmatpush3.bf16.msra.mxu1 %v28584_v44 }
0x243b   : > { %21865 = vmatprep.subr.bf16.mxu1 %v30377_v46 }
0x243e   : > { %21867 = vmatpush3.bf16.msra.mxu1 %v28596_v36 }
0x243f   : > { %19319 = vmatprep.subr.mxu1 %v30380_v33 }
0x2442   : > { %19320 = vmatpush3.msra.mxu1 %v28616_v23  ;;  %v30873_v23 = vld [vmem:[#allocation65_spill] sm:$0xff] }
0x2443   : > { %19322 = vmatmul.mubr.f32.vlgmr.msra.gmra.mrb[44].mxu1 %v30858_v1 }
0x2516   : > { %v15686_v45 = vpop.f32.mrb[44].mxu1 }
0x2517   : > { %v21977_v42 = vadd.f32 %v15686_v45, %v30861_v62  ;;  %v19323_v18 = vpop.f32.mrb[45].mxu1 }
0x2519   : > { %v15690_v60 = vsel %vm6034_vm3, %v21977_v42, 0.0 }
0x251a   : > { %v15696_v56 = vadd.f32 %v15694_v16, %v15690_v60 }
0x251c   : > { %v15698_v44 = vsel %vm7878_vm15, %v15696_v56, 0 }
0x251d   : > { %v28713_v59 = vand.u32 4294901760, %v15698_v44 }
0x251f   : > { %v15776_v17 = vsub.f32 %v15698_v44, %v28713_v59 }
0x2521   : > { %v15777_v34 = vand.u32 4294901760, %v15776_v17 }
0x2523   : > { %v15778_v36 = vsub.f32 %v15776_v17, %v15777_v34 }
0x2525   : > { %v15779_v9 = vand.u32 4294901760, %v15778_v36 }
0x2527   : > { %19345 = vmatmul.mubr.f32.vlgmr.msra.gmra.mrb[40].mxu0 %v15779_v9 }
0x2528   : > { %21885 = vmatpush3.bf16.msra.mxu0 %v30862_v43  ;;  %19367 = vmatprep.mubr.msk.f32.mxu0 %vm22213_vm2, %v30380_v33 }
0x2529   : > { %21886 = vmatprep.subr.bf16.mxu0 %v30377_v46 }
0x252c   : > { %21888 = vmatpush3.bf16.msra.mxu0 %v30863_v49 }
0x252d   : > { %21889 = vmatprep.subr.bf16.mxu0 %v30377_v46 }
0x2530   : > { %21891 = vmatpush3.bf16.msra.mxu0 %v30864_v22 }
0x2531   : > { %21892 = vmatprep.subr.bf16.mxu0 %v30377_v46 }
0x2534   : > { %21894 = vmatpush3.bf16.msra.mxu0 %v30865_v58 }
0x2535   : > { %21895 = vmatprep.subr.bf16.mxu0 %v30377_v46 }
0x2538   : > { %21897 = vmatpush3.bf16.msra.mxu0 %v30866_v2 }
0x2539   : > { %21898 = vmatprep.subr.bf16.mxu0 %v30377_v46 }
0x253b   : > { %19368 = vmatmul.mubr.f32.vlgmr.msra.gmra.mrb[40].mxu0 %v28713_v59 }
0x253c   : > { %21900 = vmatpush3.bf16.msra.mxu0 %v30867_v8  ;;  %19390 = vmatprep.mubr.msk.f32.mxu0 %vm22213_vm2, %v30380_v33 }
0x253d   : > { %21901 = vmatprep.subr.bf16.mxu0 %v30377_v46 }
0x2540   : > { %21903 = vmatpush3.bf16.msra.mxu0 %v30868_v32 }
0x2541   : > { %21904 = vmatprep.subr.bf16.mxu0 %v30377_v46 }
0x2544   : > { %21906 = vmatpush3.bf16.msra.mxu0 %v30869_v10 }
0x2545   : > { %21907 = vmatprep.subr.bf16.mxu0 %v30377_v46 }
0x2548   : > { %21909 = vmatpush3.bf16.msra.mxu0 %v30870_v39 }
0x2549   : > { %21910 = vmatprep.subr.bf16.mxu0 %v30377_v46 }
0x254c   : > { %21912 = vmatpush3.bf16.msra.mxu0 %v30871_v7 }
0x254d   : > { %21913 = vmatprep.subr.bf16.mxu0 %v30377_v46 }
0x254f   : > { %19391 = vmatmul.mubr.f32.vlgmr.msra.gmra.mrb[40].mxu0 %v15776_v17 }
0x2550   : > { %21915 = vmatpush3.bf16.msra.mxu0 %v30851_v35  ;;  %19413 = vmatprep.mubr.msk.f32.mxu0 %vm22213_vm2, %v30380_v33 }
0x2551   : > { %21916 = vmatprep.subr.bf16.mxu0 %v30377_v46 }
0x2554   : > { %21918 = vmatpush3.bf16.msra.mxu0 %v30852_v11 }
0x2555   : > { %21919 = vmatprep.subr.bf16.mxu0 %v30377_v46 }
0x2558   : > { %21921 = vmatpush3.bf16.msra.mxu0 %v30853_v14 }
0x2559   : > { %21922 = vmatprep.subr.bf16.mxu0 %v30377_v46 }
0x255c   : > { %21924 = vmatpush3.bf16.msra.mxu0 %v30854_v21 }
0x255d   : > { %21925 = vmatprep.subr.bf16.mxu0 %v30377_v46 }
0x2560   : > { %21927 = vmatpush3.bf16.msra.mxu0 %v30855_v25 }
0x2561   : > { %21928 = vmatprep.subr.bf16.mxu0 %v30377_v46 }
0x2563   : > { %19414 = vmatmul.mubr.f32.vlgmr.msra.gmra.mrb[40].mxu0 %v15777_v34 }
0x2564   : > { %21930 = vmatpush3.bf16.msra.mxu0 %v30872_v27  ;;  %19436 = vmatprep.mubr.msk.f32.mxu0 %vm22213_vm2, %v30380_v33 }
0x2565   : > { %21931 = vmatprep.subr.bf16.mxu0 %v30377_v46 }
0x2568   : > { %21933 = vmatpush3.bf16.msra.mxu0 %v30873_v23 }
0x2569   : > { %21934 = vmatprep.subr.bf16.mxu0 %v30377_v46 }
0x256c   : > { %21936 = vmatpush3.bf16.msra.mxu0 %v30874_v26 }
0x256d   : > { %21937 = vmatprep.subr.bf16.mxu0 %v30377_v46 }
0x2570   : > { %21939 = vmatpush3.bf16.msra.mxu0 %v30875_v55 }
0x2571   : > { %21940 = vmatprep.subr.bf16.mxu0 %v30377_v46 }
0x2574   : > { %21942 = vmatpush3.bf16.msra.mxu0 %v30876_v53 }
0x2575   : > { %21943 = vmatprep.subr.bf16.mxu0 %v30377_v46 }
0x2577   : > { %19437 = vmatmul.mubr.f32.vlgmr.msra.gmra.mrb[40].mxu0 %v28713_v59 }
0x2578   : > { %21945 = vmatpush3.bf16.msra.mxu0 %v30851_v35  ;;  %19459 = vmatprep.mubr.msk.f32.mxu0 %vm22213_vm2, %v30380_v33 }
0x2579   : > { %21946 = vmatprep.subr.bf16.mxu0 %v30377_v46 }
0x257c   : > { %21948 = vmatpush3.bf16.msra.mxu0 %v30852_v11 }
0x257d   : > { %21949 = vmatprep.subr.bf16.mxu0 %v30377_v46 }
0x2580   : > { %21951 = vmatpush3.bf16.msra.mxu0 %v30853_v14 }
0x2581   : > { %21952 = vmatprep.subr.bf16.mxu0 %v30377_v46 }
0x2584   : > { %21954 = vmatpush3.bf16.msra.mxu0 %v30854_v21 }
0x2585   : > { %21955 = vmatprep.subr.bf16.mxu0 %v30377_v46 }
0x2588   : > { %21957 = vmatpush3.bf16.msra.mxu0 %v30855_v25 }
0x258b   : > { %19460 = vmatmul.mubr.f32.vlgmr.msra.gmra.mrb[40].mxu0 %v28713_v59 }
0x265e   : > { %v16259_v35 = vpop.f32.mrb[40].mxu0 }
0x265f   : > { %16338 = vst.msk [vmem:[%s27559_s28 + $0x8] sm:$0xff] %vm8445_vm1, %v16259_v35  ;;  %v19461_v33 = vpop.f32.mrb[41].mxu0 }
0x2660 PF: > { %s20_s13 = sadd.s32 1, %s22198_s13  }
0x2661   : > { %p17_p4 = scmp.ge.s32.totalorder %s20_s13, 4  }
0x2663   :  { %19 = sbr.rel (!%p17_p4) target bundleno = 1 (0x1), region = 98 }

</bundles_post_ra>
